<compile_context>
chip_gen: v6e
topology: v6e:2x2x1
jax: 0.10.0
libtpu: 0.0.40
codegen_flags: <defaults>
</compile_context>

<pallas_src>
import math

import jax
import jax.numpy as jnp
from jax.experimental import pallas as pl
from jax.experimental.pallas import tpu as pltpu

# ----------------------------- config ---------------------------------------
B = 2            # batch
L = 8            # sequence length
H = 32           # hidden size
NUM_HEADS = 4
DH = H // NUM_HEADS
FFN = 64
NUM_LAYERS = 2
VOCAB = 100
TYPE_VOCAB = 2
NUM_TAGS = 5
CLS_PAD = 128    # classifier output padded to a full lane width (lane-dense store)


# ----------------------------- fused Pallas kernel ---------------------------
def _fused_forward_kernel(emb_ref, mask_ref, emb_ln_g_ref, emb_ln_b_ref,
                          wqkv_ref, bqkv_ref, wo_ref, bo_ref,
                          ln1_g_ref, ln1_b_ref, w1_ref, b1_ref, w2_ref, b2_ref,
                          ln2_g_ref, ln2_b_ref,
                          wcls_ref, bcls_ref,
                          transT_ref, start_ref, end_ref, oh_ref,
                          logits_ref, loss_ref):
    def layer_norm(x, g, b):
        mu = jnp.mean(x, axis=-1, keepdims=True)
        var = jnp.mean((x - mu) * (x - mu), axis=-1, keepdims=True)
        return (x - mu) * jax.lax.rsqrt(var + 1e-12) * g + b

    def gelu(y):
        # TODO(synk): BERT uses exact erf-GELU; tanh approximation used here.
        return 0.5 * y * (1.0 + jnp.tanh(0.7978845608028654 * (y + 0.044715 * y * y * y)))

    add_mask = mask_ref[...]                                   # (B, 1, L) additive mask
    scale = 1.0 / math.sqrt(DH)

    # embeddings -> LayerNorm (no residual)
    h = layer_norm(emb_ref[...], emb_ln_g_ref[...], emb_ln_b_ref[...])   # (B*L, H)

    for li in range(NUM_LAYERS):
        # --- fused QKV projection: one (B*L, H) x (H, 3H) MXU pass ---
        qkv = jnp.dot(h, wqkv_ref[li], preferred_element_type=jnp.float32) + bqkv_ref[li]
        qkv3 = qkv.reshape(B, L, 3 * H)                        # tile-aligned reshape (16 -> 2x8)
        wo = wo_ref[li]
        attn = None
        for hd in range(NUM_HEADS):
            q = qkv3[:, :, hd * DH:(hd + 1) * DH]              # (B, L, dh)
            k = qkv3[:, :, H + hd * DH:H + (hd + 1) * DH]
            v = qkv3[:, :, 2 * H + hd * DH:2 * H + (hd + 1) * DH]
            s = jnp.einsum("bqd,bkd->bqk", q, k,
                           preferred_element_type=jnp.float32) * scale     # (B, L, L)
            s = s + add_mask
            s = s - jnp.max(s, axis=-1, keepdims=True)
            p = jnp.exp(s)
            p = p * pl.reciprocal(jnp.sum(p, axis=-1, keepdims=True), approx=True)
            ctx = jnp.einsum("bqk,bkd->bqd", p, v,
                             preferred_element_type=jnp.float32)           # (B, L, dh)
            ctx2 = ctx.reshape(B * L, DH)
            part = jnp.dot(ctx2, wo[hd * DH:(hd + 1) * DH, :],
                           preferred_element_type=jnp.float32)             # (B*L, H)
            attn = part if attn is None else attn + part
        attn = attn + bo_ref[li]
        h = layer_norm(attn + h, ln1_g_ref[li], ln1_b_ref[li])
        ffn = gelu(jnp.dot(h, w1_ref[li], preferred_element_type=jnp.float32) + b1_ref[li])
        ffn = jnp.dot(ffn, w2_ref[li], preferred_element_type=jnp.float32) + b2_ref[li]
        h = layer_norm(ffn + h, ln2_g_ref[li], ln2_b_ref[li])

    # --- classifier (lane-dense 128-wide output; dropout == identity in eval) ---
    logits_pad = jnp.dot(h, wcls_ref[...], preferred_element_type=jnp.float32) + bcls_ref[...]
    logits_ref[...] = logits_pad                               # unmasked (B*L, 128) store

    # ------------------------- CRF negative log-likelihood -----------------------
    # TODO(synk): pytorch-crf can take a mask; the reference call passes none, so none here.
    emit = logits_pad[:, :NUM_TAGS].reshape(B, L, NUM_TAGS)    # (B, L, T)
    oh = oh_ref[...]                                           # (B, L, T) one-hot gold labels
    transT = transT_ref[...]                                   # transT[j, i] = trans[i, j]
    start = start_ref[...]                                     # (1, T)
    end = end_ref[...]                                         # (1, T)
    tag_iota = jax.lax.broadcasted_iota(jnp.int32, (1, 1, NUM_TAGS), 2)

    def lse_last(x):                                           # logsumexp over the lane dim
        m = jnp.max(x, axis=-1, keepdims=True)
        return m + jnp.log(jnp.sum(jnp.exp(x - m), axis=-1, keepdims=True))

    # forward recursion (partition function), vectorized over the batch
    alpha = start + emit[:, 0:1, :]                            # (B, 1, T)
    for t in range(1, L):
        new_alpha = emit[:, t:t + 1, :]
        for j in range(NUM_TAGS):
            lse_j = lse_last(alpha + transT[j:j + 1, :])       # (B, 1, 1)
            new_alpha = new_alpha + jnp.where(tag_iota == j, lse_j, 0.0)
        alpha = new_alpha
    total_log_z = jnp.sum(lse_last(alpha + end))               # summed over batch

    # gold-path score (summed over batch), fully vectorized via one-hot labels
    emit_term = jnp.sum(oh * emit)
    start_term = jnp.sum(oh[:, 0:1, :] * start)
    end_term = jnp.sum(oh[:, L - 1:L, :] * end)
    oh_prev = oh[:, :L - 1, :]                                 # (B, L-1, T)
    oh_next = oh[:, 1:, :]                                     # (B, L-1, T)
    trans_term = jnp.float32(0.0)
    for j in range(NUM_TAGS):
        # trans[prev, j] selected via transT row j, gated by (next label == j)
        sel = jnp.sum(oh_prev * transT[j:j + 1, :], axis=-1, keepdims=True)   # (B, L-1, 1)
        trans_term = trans_term + jnp.sum(oh_next[:, :, j:j + 1] * sel)
    total_score = emit_term + start_term + end_term + trans_term

    loss_ref[0, 0] = (total_log_z - total_score) * (1.0 / B)   # mean over batch


# ----------------------------- model glue ------------------------------------
def slot_filling_forward(params, input_ids, attention_mask, token_type_ids, labels):
    # embedding gathers are JAX glue; everything else runs in the single fused kernel
    emb = (jnp.take(params["word_emb"], input_ids, axis=0)
           + params["pos_emb"][None, :L, :]
           + jnp.take(params["type_emb"], token_type_ids, axis=0))        # (B, L, H)
    emb2 = emb.reshape(B * L, H).astype(jnp.float32)
    add_mask = ((1.0 - attention_mask.astype(jnp.float32)) * -1e9).reshape(B, 1, L)
    labels_oh = jax.nn.one_hot(labels, NUM_TAGS, dtype=jnp.float32)        # (B, L, T)

    vmem = pl.BlockSpec(memory_space=pltpu.MemorySpace.VMEM)
    smem = pl.BlockSpec(memory_space=pltpu.MemorySpace.SMEM)

    logits_pad, loss = pl.pallas_call(
        _fused_forward_kernel,
        out_shape=(jax.ShapeDtypeStruct((B * L, CLS_PAD), jnp.float32),
                   jax.ShapeDtypeStruct((1, 1), jnp.float32)),
        in_specs=[vmem] * 22,
        out_specs=(vmem, smem),
    )(emb2, add_mask,
      params["emb_ln_g"], params["emb_ln_b"],
      params["wqkv"], params["bqkv"], params["wo"], params["bo"],
      params["ln1_g"], params["ln1_b"],
      params["w1"], params["b1"], params["w2"], params["b2"],
      params["ln2_g"], params["ln2_b"],
      params["wcls_pad"], params["bcls_pad"],
      params["transT"], params["start_t"], params["end_t"],
      labels_oh)

    logits = logits_pad[:, :NUM_TAGS].reshape(B, L, NUM_TAGS)
    # query_cls_output (= sequence_outputs[:, 0, :]) is unused in the reference return value.
    crf_loss = loss[0, 0]
    return crf_loss, logits


def init_params(key):
    keys = jax.random.split(key, 64)
    it = iter(keys)

    def nrm(shape, scale=0.02):
        return jax.random.normal(next(it), shape, dtype=jnp.float32) * scale

    wqkv, bqkv, wo, bo = [], [], [], []
    ln1_g, ln1_b, w1, b1, w2, b2, ln2_g, ln2_b = [], [], [], [], [], [], [], []
    for _ in range(NUM_LAYERS):
        wq, wk, wv = nrm((H, H)), nrm((H, H)), nrm((H, H))
        wqkv.append(jnp.concatenate([wq, wk, wv], axis=1))          # fused (H, 3H)
        bqkv.append(jnp.zeros((1, 3 * H), jnp.float32))
        wo.append(nrm((H, H)))
        bo.append(jnp.zeros((1, H), jnp.float32))
        ln1_g.append(jnp.ones((1, H), jnp.float32))
        ln1_b.append(jnp.zeros((1, H), jnp.float32))
        w1.append(nrm((H, FFN)))
        b1.append(jnp.zeros((1, FFN), jnp.float32))
        w2.append(nrm((FFN, H)))
        b2.append(jnp.zeros((1, H), jnp.float32))
        ln2_g.append(jnp.ones((1, H), jnp.float32))
        ln2_b.append(jnp.zeros((1, H), jnp.float32))

    wcls = nrm((H, NUM_TAGS))
    trans = nrm((NUM_TAGS, NUM_TAGS), scale=0.1)

    return {
        "word_emb": nrm((VOCAB, H)),
        "pos_emb": nrm((L, H)),
        "type_emb": nrm((TYPE_VOCAB, H)),
        "emb_ln_g": jnp.ones((1, H), jnp.float32),
        "emb_ln_b": jnp.zeros((1, H), jnp.float32),
        "wqkv": jnp.stack(wqkv), "bqkv": jnp.stack(bqkv),
        "wo": jnp.stack(wo), "bo": jnp.stack(bo),
        "ln1_g": jnp.stack(ln1_g), "ln1_b": jnp.stack(ln1_b),
        "w1": jnp.stack(w1), "b1": jnp.stack(b1),
        "w2": jnp.stack(w2), "b2": jnp.stack(b2),
        "ln2_g": jnp.stack(ln2_g), "ln2_b": jnp.stack(ln2_b),
        # classifier padded to 128 output lanes (zero weights/bias beyond NUM_TAGS)
        "wcls_pad": jnp.pad(wcls, ((0, 0), (0, CLS_PAD - NUM_TAGS))),
        "bcls_pad": jnp.zeros((1, CLS_PAD), jnp.float32),
        # CRF parameters (kernel consumes transposed transitions)
        "transT": trans.T,
        "start_t": nrm((1, NUM_TAGS), scale=0.1),
        "end_t": nrm((1, NUM_TAGS), scale=0.1),
    }


if __name__ == "__main__":
    key = jax.random.PRNGKey(0)
    pkey, ikey, tkey, lkey = jax.random.split(key, 4)

    params = init_params(pkey)
    input_ids = jax.random.randint(ikey, (B, L), 0, VOCAB, dtype=jnp.int32)
    token_type_ids = jax.random.randint(tkey, (B, L), 0, TYPE_VOCAB, dtype=jnp.int32)
    attention_mask = jnp.ones((B, L), dtype=jnp.int32)
    labels = jax.random.randint(lkey, (B, L), 0, NUM_TAGS, dtype=jnp.int32)

    crf_loss, logits = slot_filling_forward(
        params, input_ids, attention_mask, token_type_ids, labels)
    jax.block_until_ready((crf_loss, logits))
    assert logits.shape == (B, L, NUM_TAGS)
    assert crf_loss.shape == ()
    print("KERNEL_OK")
</pallas_src>

<mosaic_0001>
module attributes {stable_mosaic.version = 11 : i64} {
  func.func @_fused_forward_kernel(%arg0: memref<16x32xf32, #tpu.memory_space<vmem>>, %arg1: memref<2x1x8xf32, #tpu.memory_space<vmem>>, %arg2: memref<1x32xf32, #tpu.memory_space<vmem>>, %arg3: memref<1x32xf32, #tpu.memory_space<vmem>>, %arg4: memref<2x32x96xf32, #tpu.memory_space<vmem>>, %arg5: memref<2x1x96xf32, #tpu.memory_space<vmem>>, %arg6: memref<2x32x32xf32, #tpu.memory_space<vmem>>, %arg7: memref<2x1x32xf32, #tpu.memory_space<vmem>>, %arg8: memref<2x1x32xf32, #tpu.memory_space<vmem>>, %arg9: memref<2x1x32xf32, #tpu.memory_space<vmem>>, %arg10: memref<2x32x64xf32, #tpu.memory_space<vmem>>, %arg11: memref<2x1x64xf32, #tpu.memory_space<vmem>>, %arg12: memref<2x64x32xf32, #tpu.memory_space<vmem>>, %arg13: memref<2x1x32xf32, #tpu.memory_space<vmem>>, %arg14: memref<2x1x32xf32, #tpu.memory_space<vmem>>, %arg15: memref<2x1x32xf32, #tpu.memory_space<vmem>>, %arg16: memref<32x128xf32, #tpu.memory_space<vmem>>, %arg17: memref<1x128xf32, #tpu.memory_space<vmem>>, %arg18: memref<5x5xf32, #tpu.memory_space<vmem>>, %arg19: memref<1x5xf32, #tpu.memory_space<vmem>>, %arg20: memref<1x5xf32, #tpu.memory_space<vmem>>, %arg21: memref<2x8x5xf32, #tpu.memory_space<vmem>>, %arg22: memref<16x128xf32, #tpu.memory_space<vmem>>, %arg23: memref<1x1xf32, #tpu.memory_space<smem>>) attributes {dimension_semantics = [], scalar_prefetch = 0 : i64, scratch_operands = 0 : i64, tpu.core_type = #tpu.core_type<tc>} {
    %c0 = arith.constant 0 : index
    %c0_0 = arith.constant 0 : index
    %c0_1 = arith.constant 0 : index
    %0 = vector.load %arg1[%c0, %c0_0, %c0_1] : memref<2x1x8xf32, #tpu.memory_space<vmem>>, vector<2x1x8xf32>
    %c0_2 = arith.constant 0 : index
    %c0_3 = arith.constant 0 : index
    %1 = vector.load %arg0[%c0_2, %c0_3] : memref<16x32xf32, #tpu.memory_space<vmem>>, vector<16x32xf32>
    %c0_4 = arith.constant 0 : index
    %c0_5 = arith.constant 0 : index
    %2 = vector.load %arg2[%c0_4, %c0_5] : memref<1x32xf32, #tpu.memory_space<vmem>>, vector<1x32xf32>
    %c0_6 = arith.constant 0 : index
    %c0_7 = arith.constant 0 : index
    %3 = vector.load %arg3[%c0_6, %c0_7] : memref<1x32xf32, #tpu.memory_space<vmem>>, vector<1x32xf32>
    %cst = arith.constant dense<0.000000e+00> : vector<16xf32>
    %4 = vector.multi_reduction <add>, %1, %cst [1] : vector<16x32xf32> to vector<16xf32>
    %5 = vector.shape_cast %4 : vector<16xf32> to vector<16x1xf32>
    %cst_8 = arith.constant 3.200000e+01 : f32
    %6 = vector.broadcast %cst_8 : f32 to vector<16x1xf32>
    %7 = arith.divf %5, %6 : vector<16x1xf32>
    %8 = vector.broadcast %7 : vector<16x1xf32> to vector<16x32xf32>
    %9 = arith.subf %1, %8 : vector<16x32xf32>
    %10 = vector.broadcast %7 : vector<16x1xf32> to vector<16x32xf32>
    %11 = arith.subf %1, %10 : vector<16x32xf32>
    %12 = arith.mulf %9, %11 : vector<16x32xf32>
    %cst_9 = arith.constant dense<0.000000e+00> : vector<16xf32>
    %13 = vector.multi_reduction <add>, %12, %cst_9 [1] : vector<16x32xf32> to vector<16xf32>
    %14 = vector.shape_cast %13 : vector<16xf32> to vector<16x1xf32>
    %cst_10 = arith.constant 3.200000e+01 : f32
    %15 = vector.broadcast %cst_10 : f32 to vector<16x1xf32>
    %16 = arith.divf %14, %15 : vector<16x1xf32>
    %17 = vector.broadcast %7 : vector<16x1xf32> to vector<16x32xf32>
    %18 = arith.subf %1, %17 : vector<16x32xf32>
    %cst_11 = arith.constant 9.99999996E-13 : f32
    %19 = vector.broadcast %cst_11 : f32 to vector<16x1xf32>
    %20 = arith.addf %16, %19 : vector<16x1xf32>
    %21 = math.rsqrt %20 : vector<16x1xf32>
    %22 = vector.broadcast %21 : vector<16x1xf32> to vector<16x32xf32>
    %23 = arith.mulf %18, %22 : vector<16x32xf32>
    %24 = vector.broadcast %2 : vector<1x32xf32> to vector<16x32xf32>
    %25 = arith.mulf %23, %24 : vector<16x32xf32>
    %26 = vector.broadcast %3 : vector<1x32xf32> to vector<16x32xf32>
    %27 = arith.addf %25, %26 : vector<16x32xf32>
    %c0_12 = arith.constant 0 : index
    %c0_13 = arith.constant 0 : index
    %c0_14 = arith.constant 0 : index
    %28 = vector.load %arg4[%c0_12, %c0_13, %c0_14] : memref<2x32x96xf32, #tpu.memory_space<vmem>>, vector<1x32x96xf32>
    %29 = vector.shape_cast %28 : vector<1x32x96xf32> to vector<32x96xf32>
    %cst_15 = arith.constant dense<0.000000e+00> : vector<16x96xf32>
    %30 = tpu.matmul %27, %29, %cst_15 {dimension_numbers = #tpu.dot_dimension_numbers<[1], [0], [0], [1], [0, 0, 1, 1], [], []>} : vector<16x32xf32>, vector<32x96xf32>, vector<16x96xf32> -> vector<16x96xf32>
    %c0_16 = arith.constant 0 : index
    %c0_17 = arith.constant 0 : index
    %c0_18 = arith.constant 0 : index
    %31 = vector.load %arg5[%c0_16, %c0_17, %c0_18] : memref<2x1x96xf32, #tpu.memory_space<vmem>>, vector<1x1x96xf32>
    %32 = vector.shape_cast %31 : vector<1x1x96xf32> to vector<1x96xf32>
    %33 = vector.broadcast %32 : vector<1x96xf32> to vector<16x96xf32>
    %34 = arith.addf %30, %33 : vector<16x96xf32>
    %35 = vector.shape_cast %34 : vector<16x96xf32> to vector<2x8x96xf32>
    %c0_19 = arith.constant 0 : index
    %c0_20 = arith.constant 0 : index
    %c0_21 = arith.constant 0 : index
    %36 = vector.load %arg6[%c0_19, %c0_20, %c0_21] : memref<2x32x32xf32, #tpu.memory_space<vmem>>, vector<1x32x32xf32>
    %37 = vector.shape_cast %36 : vector<1x32x32xf32> to vector<32x32xf32>
    %38 = vector.extract_strided_slice %35 {offsets = [0, 0, 0], sizes = [2, 8, 8], strides = [1, 1, 1]} : vector<2x8x96xf32> to vector<2x8x8xf32>
    %39 = vector.extract_strided_slice %35 {offsets = [0, 0, 32], sizes = [2, 8, 8], strides = [1, 1, 1]} : vector<2x8x96xf32> to vector<2x8x8xf32>
    %40 = vector.extract_strided_slice %35 {offsets = [0, 0, 64], sizes = [2, 8, 8], strides = [1, 1, 1]} : vector<2x8x96xf32> to vector<2x8x8xf32>
    "tpu.trace_start"() <{level = 10 : i32, message = "bqd,bkd->bqk"}> : () -> ()
    %cst_22 = arith.constant dense<0.000000e+00> : vector<2x8x8xf32>
    %41 = tpu.matmul %38, %39, %cst_22 {dimension_numbers = #tpu.dot_dimension_numbers<[2], [2], [1], [1], [0, 0, 0, 1, 1, 1], [0], [0]>} : vector<2x8x8xf32>, vector<2x8x8xf32>, vector<2x8x8xf32> -> vector<2x8x8xf32>
    "tpu.trace_stop"() : () -> ()
    %cst_23 = arith.constant 0.353553385 : f32
    %42 = vector.broadcast %cst_23 : f32 to vector<2x8x8xf32>
    %43 = arith.mulf %41, %42 : vector<2x8x8xf32>
    %44 = vector.broadcast %0 : vector<2x1x8xf32> to vector<2x8x8xf32>
    %45 = arith.addf %43, %44 : vector<2x8x8xf32>
    %cst_24 = arith.constant dense<0xFF800000> : vector<2x8xf32>
    %46 = vector.multi_reduction <maximumf>, %45, %cst_24 [2] : vector<2x8x8xf32> to vector<2x8xf32>
    %47 = vector.shape_cast %46 : vector<2x8xf32> to vector<2x8x1xf32>
    %48 = vector.broadcast %47 : vector<2x8x1xf32> to vector<2x8x8xf32>
    %49 = arith.subf %45, %48 : vector<2x8x8xf32>
    %50 = math.exp %49 : vector<2x8x8xf32>
    %cst_25 = arith.constant dense<0.000000e+00> : vector<2x8xf32>
    %51 = vector.multi_reduction <add>, %50, %cst_25 [2] : vector<2x8x8xf32> to vector<2x8xf32>
    %52 = vector.shape_cast %51 : vector<2x8xf32> to vector<2x8x1xf32>
    %53 = tpu.reciprocal %52 {approx = true} : vector<2x8x1xf32> -> vector<2x8x1xf32>
    %54 = vector.broadcast %53 : vector<2x8x1xf32> to vector<2x8x8xf32>
    %55 = arith.mulf %50, %54 : vector<2x8x8xf32>
    "tpu.trace_start"() <{level = 10 : i32, message = "bqk,bkd->bqd"}> : () -> ()
    %cst_26 = arith.constant dense<0.000000e+00> : vector<2x8x8xf32>
    %56 = tpu.matmul %55, %40, %cst_26 {dimension_numbers = #tpu.dot_dimension_numbers<[2], [1], [1], [2], [0, 0, 0, 1, 1, 2], [0], [0]>} : vector<2x8x8xf32>, vector<2x8x8xf32>, vector<2x8x8xf32> -> vector<2x8x8xf32>
    "tpu.trace_stop"() : () -> ()
    %57 = vector.shape_cast %56 : vector<2x8x8xf32> to vector<16x8xf32>
    %58 = vector.extract_strided_slice %37 {offsets = [0, 0], sizes = [8, 32], strides = [1, 1]} : vector<32x32xf32> to vector<8x32xf32>
    %cst_27 = arith.constant dense<0.000000e+00> : vector<16x32xf32>
    %59 = tpu.matmul %57, %58, %cst_27 {dimension_numbers = #tpu.dot_dimension_numbers<[1], [0], [0], [1], [0, 0, 1, 1], [], []>} : vector<16x8xf32>, vector<8x32xf32>, vector<16x32xf32> -> vector<16x32xf32>
    %60 = vector.extract_strided_slice %35 {offsets = [0, 0, 8], sizes = [2, 8, 8], strides = [1, 1, 1]} : vector<2x8x96xf32> to vector<2x8x8xf32>
    %61 = vector.extract_strided_slice %35 {offsets = [0, 0, 40], sizes = [2, 8, 8], strides = [1, 1, 1]} : vector<2x8x96xf32> to vector<2x8x8xf32>
    %62 = vector.extract_strided_slice %35 {offsets = [0, 0, 72], sizes = [2, 8, 8], strides = [1, 1, 1]} : vector<2x8x96xf32> to vector<2x8x8xf32>
    "tpu.trace_start"() <{level = 10 : i32, message = "bqd,bkd->bqk"}> : () -> ()
    %cst_28 = arith.constant dense<0.000000e+00> : vector<2x8x8xf32>
    %63 = tpu.matmul %60, %61, %cst_28 {dimension_numbers = #tpu.dot_dimension_numbers<[2], [2], [1], [1], [0, 0, 0, 1, 1, 1], [0], [0]>} : vector<2x8x8xf32>, vector<2x8x8xf32>, vector<2x8x8xf32> -> vector<2x8x8xf32>
    "tpu.trace_stop"() : () -> ()
    %cst_29 = arith.constant 0.353553385 : f32
    %64 = vector.broadcast %cst_29 : f32 to vector<2x8x8xf32>
    %65 = arith.mulf %63, %64 : vector<2x8x8xf32>
    %66 = vector.broadcast %0 : vector<2x1x8xf32> to vector<2x8x8xf32>
    %67 = arith.addf %65, %66 : vector<2x8x8xf32>
    %cst_30 = arith.constant dense<0xFF800000> : vector<2x8xf32>
    %68 = vector.multi_reduction <maximumf>, %67, %cst_30 [2] : vector<2x8x8xf32> to vector<2x8xf32>
    %69 = vector.shape_cast %68 : vector<2x8xf32> to vector<2x8x1xf32>
    %70 = vector.broadcast %69 : vector<2x8x1xf32> to vector<2x8x8xf32>
    %71 = arith.subf %67, %70 : vector<2x8x8xf32>
    %72 = math.exp %71 : vector<2x8x8xf32>
    %cst_31 = arith.constant dense<0.000000e+00> : vector<2x8xf32>
    %73 = vector.multi_reduction <add>, %72, %cst_31 [2] : vector<2x8x8xf32> to vector<2x8xf32>
    %74 = vector.shape_cast %73 : vector<2x8xf32> to vector<2x8x1xf32>
    %75 = tpu.reciprocal %74 {approx = true} : vector<2x8x1xf32> -> vector<2x8x1xf32>
    %76 = vector.broadcast %75 : vector<2x8x1xf32> to vector<2x8x8xf32>
    %77 = arith.mulf %72, %76 : vector<2x8x8xf32>
    "tpu.trace_start"() <{level = 10 : i32, message = "bqk,bkd->bqd"}> : () -> ()
    %cst_32 = arith.constant dense<0.000000e+00> : vector<2x8x8xf32>
    %78 = tpu.matmul %77, %62, %cst_32 {dimension_numbers = #tpu.dot_dimension_numbers<[2], [1], [1], [2], [0, 0, 0, 1, 1, 2], [0], [0]>} : vector<2x8x8xf32>, vector<2x8x8xf32>, vector<2x8x8xf32> -> vector<2x8x8xf32>
    "tpu.trace_stop"() : () -> ()
    %79 = vector.shape_cast %78 : vector<2x8x8xf32> to vector<16x8xf32>
    %80 = vector.extract_strided_slice %37 {offsets = [8, 0], sizes = [8, 32], strides = [1, 1]} : vector<32x32xf32> to vector<8x32xf32>
    %cst_33 = arith.constant dense<0.000000e+00> : vector<16x32xf32>
    %81 = tpu.matmul %79, %80, %cst_33 {dimension_numbers = #tpu.dot_dimension_numbers<[1], [0], [0], [1], [0, 0, 1, 1], [], []>} : vector<16x8xf32>, vector<8x32xf32>, vector<16x32xf32> -> vector<16x32xf32>
    %82 = arith.addf %59, %81 : vector<16x32xf32>
    %83 = vector.extract_strided_slice %35 {offsets = [0, 0, 16], sizes = [2, 8, 8], strides = [1, 1, 1]} : vector<2x8x96xf32> to vector<2x8x8xf32>
    %84 = vector.extract_strided_slice %35 {offsets = [0, 0, 48], sizes = [2, 8, 8], strides = [1, 1, 1]} : vector<2x8x96xf32> to vector<2x8x8xf32>
    %85 = vector.extract_strided_slice %35 {offsets = [0, 0, 80], sizes = [2, 8, 8], strides = [1, 1, 1]} : vector<2x8x96xf32> to vector<2x8x8xf32>
    "tpu.trace_start"() <{level = 10 : i32, message = "bqd,bkd->bqk"}> : () -> ()
    %cst_34 = arith.constant dense<0.000000e+00> : vector<2x8x8xf32>
    %86 = tpu.matmul %83, %84, %cst_34 {dimension_numbers = #tpu.dot_dimension_numbers<[2], [2], [1], [1], [0, 0, 0, 1, 1, 1], [0], [0]>} : vector<2x8x8xf32>, vector<2x8x8xf32>, vector<2x8x8xf32> -> vector<2x8x8xf32>
    "tpu.trace_stop"() : () -> ()
    %cst_35 = arith.constant 0.353553385 : f32
    %87 = vector.broadcast %cst_35 : f32 to vector<2x8x8xf32>
    %88 = arith.mulf %86, %87 : vector<2x8x8xf32>
    %89 = vector.broadcast %0 : vector<2x1x8xf32> to vector<2x8x8xf32>
    %90 = arith.addf %88, %89 : vector<2x8x8xf32>
    %cst_36 = arith.constant dense<0xFF800000> : vector<2x8xf32>
    %91 = vector.multi_reduction <maximumf>, %90, %cst_36 [2] : vector<2x8x8xf32> to vector<2x8xf32>
    %92 = vector.shape_cast %91 : vector<2x8xf32> to vector<2x8x1xf32>
    %93 = vector.broadcast %92 : vector<2x8x1xf32> to vector<2x8x8xf32>
    %94 = arith.subf %90, %93 : vector<2x8x8xf32>
    %95 = math.exp %94 : vector<2x8x8xf32>
    %cst_37 = arith.constant dense<0.000000e+00> : vector<2x8xf32>
    %96 = vector.multi_reduction <add>, %95, %cst_37 [2] : vector<2x8x8xf32> to vector<2x8xf32>
    %97 = vector.shape_cast %96 : vector<2x8xf32> to vector<2x8x1xf32>
    %98 = tpu.reciprocal %97 {approx = true} : vector<2x8x1xf32> -> vector<2x8x1xf32>
    %99 = vector.broadcast %98 : vector<2x8x1xf32> to vector<2x8x8xf32>
    %100 = arith.mulf %95, %99 : vector<2x8x8xf32>
    "tpu.trace_start"() <{level = 10 : i32, message = "bqk,bkd->bqd"}> : () -> ()
    %cst_38 = arith.constant dense<0.000000e+00> : vector<2x8x8xf32>
    %101 = tpu.matmul %100, %85, %cst_38 {dimension_numbers = #tpu.dot_dimension_numbers<[2], [1], [1], [2], [0, 0, 0, 1, 1, 2], [0], [0]>} : vector<2x8x8xf32>, vector<2x8x8xf32>, vector<2x8x8xf32> -> vector<2x8x8xf32>
    "tpu.trace_stop"() : () -> ()
    %102 = vector.shape_cast %101 : vector<2x8x8xf32> to vector<16x8xf32>
    %103 = vector.extract_strided_slice %37 {offsets = [16, 0], sizes = [8, 32], strides = [1, 1]} : vector<32x32xf32> to vector<8x32xf32>
    %cst_39 = arith.constant dense<0.000000e+00> : vector<16x32xf32>
    %104 = tpu.matmul %102, %103, %cst_39 {dimension_numbers = #tpu.dot_dimension_numbers<[1], [0], [0], [1], [0, 0, 1, 1], [], []>} : vector<16x8xf32>, vector<8x32xf32>, vector<16x32xf32> -> vector<16x32xf32>
    %105 = arith.addf %82, %104 : vector<16x32xf32>
    %106 = vector.extract_strided_slice %35 {offsets = [0, 0, 24], sizes = [2, 8, 8], strides = [1, 1, 1]} : vector<2x8x96xf32> to vector<2x8x8xf32>
    %107 = vector.extract_strided_slice %35 {offsets = [0, 0, 56], sizes = [2, 8, 8], strides = [1, 1, 1]} : vector<2x8x96xf32> to vector<2x8x8xf32>
    %108 = vector.extract_strided_slice %35 {offsets = [0, 0, 88], sizes = [2, 8, 8], strides = [1, 1, 1]} : vector<2x8x96xf32> to vector<2x8x8xf32>
    "tpu.trace_start"() <{level = 10 : i32, message = "bqd,bkd->bqk"}> : () -> ()
    %cst_40 = arith.constant dense<0.000000e+00> : vector<2x8x8xf32>
    %109 = tpu.matmul %106, %107, %cst_40 {dimension_numbers = #tpu.dot_dimension_numbers<[2], [2], [1], [1], [0, 0, 0, 1, 1, 1], [0], [0]>} : vector<2x8x8xf32>, vector<2x8x8xf32>, vector<2x8x8xf32> -> vector<2x8x8xf32>
    "tpu.trace_stop"() : () -> ()
    %cst_41 = arith.constant 0.353553385 : f32
    %110 = vector.broadcast %cst_41 : f32 to vector<2x8x8xf32>
    %111 = arith.mulf %109, %110 : vector<2x8x8xf32>
    %112 = vector.broadcast %0 : vector<2x1x8xf32> to vector<2x8x8xf32>
    %113 = arith.addf %111, %112 : vector<2x8x8xf32>
    %cst_42 = arith.constant dense<0xFF800000> : vector<2x8xf32>
    %114 = vector.multi_reduction <maximumf>, %113, %cst_42 [2] : vector<2x8x8xf32> to vector<2x8xf32>
    %115 = vector.shape_cast %114 : vector<2x8xf32> to vector<2x8x1xf32>
    %116 = vector.broadcast %115 : vector<2x8x1xf32> to vector<2x8x8xf32>
    %117 = arith.subf %113, %116 : vector<2x8x8xf32>
    %118 = math.exp %117 : vector<2x8x8xf32>
    %cst_43 = arith.constant dense<0.000000e+00> : vector<2x8xf32>
    %119 = vector.multi_reduction <add>, %118, %cst_43 [2] : vector<2x8x8xf32> to vector<2x8xf32>
    %120 = vector.shape_cast %119 : vector<2x8xf32> to vector<2x8x1xf32>
    %121 = tpu.reciprocal %120 {approx = true} : vector<2x8x1xf32> -> vector<2x8x1xf32>
    %122 = vector.broadcast %121 : vector<2x8x1xf32> to vector<2x8x8xf32>
    %123 = arith.mulf %118, %122 : vector<2x8x8xf32>
    "tpu.trace_start"() <{level = 10 : i32, message = "bqk,bkd->bqd"}> : () -> ()
    %cst_44 = arith.constant dense<0.000000e+00> : vector<2x8x8xf32>
    %124 = tpu.matmul %123, %108, %cst_44 {dimension_numbers = #tpu.dot_dimension_numbers<[2], [1], [1], [2], [0, 0, 0, 1, 1, 2], [0], [0]>} : vector<2x8x8xf32>, vector<2x8x8xf32>, vector<2x8x8xf32> -> vector<2x8x8xf32>
    "tpu.trace_stop"() : () -> ()
    %125 = vector.shape_cast %124 : vector<2x8x8xf32> to vector<16x8xf32>
    %126 = vector.extract_strided_slice %37 {offsets = [24, 0], sizes = [8, 32], strides = [1, 1]} : vector<32x32xf32> to vector<8x32xf32>
    %cst_45 = arith.constant dense<0.000000e+00> : vector<16x32xf32>
    %127 = tpu.matmul %125, %126, %cst_45 {dimension_numbers = #tpu.dot_dimension_numbers<[1], [0], [0], [1], [0, 0, 1, 1], [], []>} : vector<16x8xf32>, vector<8x32xf32>, vector<16x32xf32> -> vector<16x32xf32>
    %128 = arith.addf %105, %127 : vector<16x32xf32>
    %c0_46 = arith.constant 0 : index
    %c0_47 = arith.constant 0 : index
    %c0_48 = arith.constant 0 : index
    %129 = vector.load %arg7[%c0_46, %c0_47, %c0_48] : memref<2x1x32xf32, #tpu.memory_space<vmem>>, vector<1x1x32xf32>
    %130 = vector.shape_cast %129 : vector<1x1x32xf32> to vector<1x32xf32>
    %131 = vector.broadcast %130 : vector<1x32xf32> to vector<16x32xf32>
    %132 = arith.addf %128, %131 : vector<16x32xf32>
    %133 = arith.addf %132, %27 : vector<16x32xf32>
    %c0_49 = arith.constant 0 : index
    %c0_50 = arith.constant 0 : index
    %c0_51 = arith.constant 0 : index
    %134 = vector.load %arg8[%c0_49, %c0_50, %c0_51] : memref<2x1x32xf32, #tpu.memory_space<vmem>>, vector<1x1x32xf32>
    %135 = vector.shape_cast %134 : vector<1x1x32xf32> to vector<1x32xf32>
    %c0_52 = arith.constant 0 : index
    %c0_53 = arith.constant 0 : index
    %c0_54 = arith.constant 0 : index
    %136 = vector.load %arg9[%c0_52, %c0_53, %c0_54] : memref<2x1x32xf32, #tpu.memory_space<vmem>>, vector<1x1x32xf32>
    %137 = vector.shape_cast %136 : vector<1x1x32xf32> to vector<1x32xf32>
    %cst_55 = arith.constant dense<0.000000e+00> : vector<16xf32>
    %138 = vector.multi_reduction <add>, %133, %cst_55 [1] : vector<16x32xf32> to vector<16xf32>
    %139 = vector.shape_cast %138 : vector<16xf32> to vector<16x1xf32>
    %cst_56 = arith.constant 3.200000e+01 : f32
    %140 = vector.broadcast %cst_56 : f32 to vector<16x1xf32>
    %141 = arith.divf %139, %140 : vector<16x1xf32>
    %142 = vector.broadcast %141 : vector<16x1xf32> to vector<16x32xf32>
    %143 = arith.subf %133, %142 : vector<16x32xf32>
    %144 = vector.broadcast %141 : vector<16x1xf32> to vector<16x32xf32>
    %145 = arith.subf %133, %144 : vector<16x32xf32>
    %146 = arith.mulf %143, %145 : vector<16x32xf32>
    %cst_57 = arith.constant dense<0.000000e+00> : vector<16xf32>
    %147 = vector.multi_reduction <add>, %146, %cst_57 [1] : vector<16x32xf32> to vector<16xf32>
    %148 = vector.shape_cast %147 : vector<16xf32> to vector<16x1xf32>
    %cst_58 = arith.constant 3.200000e+01 : f32
    %149 = vector.broadcast %cst_58 : f32 to vector<16x1xf32>
    %150 = arith.divf %148, %149 : vector<16x1xf32>
    %151 = vector.broadcast %141 : vector<16x1xf32> to vector<16x32xf32>
    %152 = arith.subf %133, %151 : vector<16x32xf32>
    %cst_59 = arith.constant 9.99999996E-13 : f32
    %153 = vector.broadcast %cst_59 : f32 to vector<16x1xf32>
    %154 = arith.addf %150, %153 : vector<16x1xf32>
    %155 = math.rsqrt %154 : vector<16x1xf32>
    %156 = vector.broadcast %155 : vector<16x1xf32> to vector<16x32xf32>
    %157 = arith.mulf %152, %156 : vector<16x32xf32>
    %158 = vector.broadcast %135 : vector<1x32xf32> to vector<16x32xf32>
    %159 = arith.mulf %157, %158 : vector<16x32xf32>
    %160 = vector.broadcast %137 : vector<1x32xf32> to vector<16x32xf32>
    %161 = arith.addf %159, %160 : vector<16x32xf32>
    %c0_60 = arith.constant 0 : index
    %c0_61 = arith.constant 0 : index
    %c0_62 = arith.constant 0 : index
    %162 = vector.load %arg10[%c0_60, %c0_61, %c0_62] : memref<2x32x64xf32, #tpu.memory_space<vmem>>, vector<1x32x64xf32>
    %163 = vector.shape_cast %162 : vector<1x32x64xf32> to vector<32x64xf32>
    %cst_63 = arith.constant dense<0.000000e+00> : vector<16x64xf32>
    %164 = tpu.matmul %161, %163, %cst_63 {dimension_numbers = #tpu.dot_dimension_numbers<[1], [0], [0], [1], [0, 0, 1, 1], [], []>} : vector<16x32xf32>, vector<32x64xf32>, vector<16x64xf32> -> vector<16x64xf32>
    %c0_64 = arith.constant 0 : index
    %c0_65 = arith.constant 0 : index
    %c0_66 = arith.constant 0 : index
    %165 = vector.load %arg11[%c0_64, %c0_65, %c0_66] : memref<2x1x64xf32, #tpu.memory_space<vmem>>, vector<1x1x64xf32>
    %166 = vector.shape_cast %165 : vector<1x1x64xf32> to vector<1x64xf32>
    %167 = vector.broadcast %166 : vector<1x64xf32> to vector<16x64xf32>
    %168 = arith.addf %164, %167 : vector<16x64xf32>
    %cst_67 = arith.constant 5.000000e-01 : f32
    %169 = vector.broadcast %cst_67 : f32 to vector<16x64xf32>
    %170 = arith.mulf %169, %168 : vector<16x64xf32>
    %cst_68 = arith.constant 4.471500e-02 : f32
    %171 = vector.broadcast %cst_68 : f32 to vector<16x64xf32>
    %172 = arith.mulf %171, %168 : vector<16x64xf32>
    %173 = arith.mulf %172, %168 : vector<16x64xf32>
    %174 = arith.mulf %173, %168 : vector<16x64xf32>
    %175 = arith.addf %168, %174 : vector<16x64xf32>
    %cst_69 = arith.constant 0.797884583 : f32
    %176 = vector.broadcast %cst_69 : f32 to vector<16x64xf32>
    %177 = arith.mulf %176, %175 : vector<16x64xf32>
    %178 = math.tanh %177 : vector<16x64xf32>
    %cst_70 = arith.constant 1.000000e+00 : f32
    %179 = vector.broadcast %cst_70 : f32 to vector<16x64xf32>
    %180 = arith.addf %179, %178 : vector<16x64xf32>
    %181 = arith.mulf %170, %180 : vector<16x64xf32>
    %c0_71 = arith.constant 0 : index
    %c0_72 = arith.constant 0 : index
    %c0_73 = arith.constant 0 : index
    %182 = vector.load %arg12[%c0_71, %c0_72, %c0_73] : memref<2x64x32xf32, #tpu.memory_space<vmem>>, vector<1x64x32xf32>
    %183 = vector.shape_cast %182 : vector<1x64x32xf32> to vector<64x32xf32>
    %cst_74 = arith.constant dense<0.000000e+00> : vector<16x32xf32>
    %184 = tpu.matmul %181, %183, %cst_74 {dimension_numbers = #tpu.dot_dimension_numbers<[1], [0], [0], [1], [0, 0, 1, 1], [], []>} : vector<16x64xf32>, vector<64x32xf32>, vector<16x32xf32> -> vector<16x32xf32>
    %c0_75 = arith.constant 0 : index
    %c0_76 = arith.constant 0 : index
    %c0_77 = arith.constant 0 : index
    %185 = vector.load %arg13[%c0_75, %c0_76, %c0_77] : memref<2x1x32xf32, #tpu.memory_space<vmem>>, vector<1x1x32xf32>
    %186 = vector.shape_cast %185 : vector<1x1x32xf32> to vector<1x32xf32>
    %187 = vector.broadcast %186 : vector<1x32xf32> to vector<16x32xf32>
    %188 = arith.addf %184, %187 : vector<16x32xf32>
    %189 = arith.addf %188, %161 : vector<16x32xf32>
    %c0_78 = arith.constant 0 : index
    %c0_79 = arith.constant 0 : index
    %c0_80 = arith.constant 0 : index
    %190 = vector.load %arg14[%c0_78, %c0_79, %c0_80] : memref<2x1x32xf32, #tpu.memory_space<vmem>>, vector<1x1x32xf32>
    %191 = vector.shape_cast %190 : vector<1x1x32xf32> to vector<1x32xf32>
    %c0_81 = arith.constant 0 : index
    %c0_82 = arith.constant 0 : index
    %c0_83 = arith.constant 0 : index
    %192 = vector.load %arg15[%c0_81, %c0_82, %c0_83] : memref<2x1x32xf32, #tpu.memory_space<vmem>>, vector<1x1x32xf32>
    %193 = vector.shape_cast %192 : vector<1x1x32xf32> to vector<1x32xf32>
    %cst_84 = arith.constant dense<0.000000e+00> : vector<16xf32>
    %194 = vector.multi_reduction <add>, %189, %cst_84 [1] : vector<16x32xf32> to vector<16xf32>
    %195 = vector.shape_cast %194 : vector<16xf32> to vector<16x1xf32>
    %cst_85 = arith.constant 3.200000e+01 : f32
    %196 = vector.broadcast %cst_85 : f32 to vector<16x1xf32>
    %197 = arith.divf %195, %196 : vector<16x1xf32>
    %198 = vector.broadcast %197 : vector<16x1xf32> to vector<16x32xf32>
    %199 = arith.subf %189, %198 : vector<16x32xf32>
    %200 = vector.broadcast %197 : vector<16x1xf32> to vector<16x32xf32>
    %201 = arith.subf %189, %200 : vector<16x32xf32>
    %202 = arith.mulf %199, %201 : vector<16x32xf32>
    %cst_86 = arith.constant dense<0.000000e+00> : vector<16xf32>
    %203 = vector.multi_reduction <add>, %202, %cst_86 [1] : vector<16x32xf32> to vector<16xf32>
    %204 = vector.shape_cast %203 : vector<16xf32> to vector<16x1xf32>
    %cst_87 = arith.constant 3.200000e+01 : f32
    %205 = vector.broadcast %cst_87 : f32 to vector<16x1xf32>
    %206 = arith.divf %204, %205 : vector<16x1xf32>
    %207 = vector.broadcast %197 : vector<16x1xf32> to vector<16x32xf32>
    %208 = arith.subf %189, %207 : vector<16x32xf32>
    %cst_88 = arith.constant 9.99999996E-13 : f32
    %209 = vector.broadcast %cst_88 : f32 to vector<16x1xf32>
    %210 = arith.addf %206, %209 : vector<16x1xf32>
    %211 = math.rsqrt %210 : vector<16x1xf32>
    %212 = vector.broadcast %211 : vector<16x1xf32> to vector<16x32xf32>
    %213 = arith.mulf %208, %212 : vector<16x32xf32>
    %214 = vector.broadcast %191 : vector<1x32xf32> to vector<16x32xf32>
    %215 = arith.mulf %213, %214 : vector<16x32xf32>
    %216 = vector.broadcast %193 : vector<1x32xf32> to vector<16x32xf32>
    %217 = arith.addf %215, %216 : vector<16x32xf32>
    %c1 = arith.constant 1 : index
    %c0_89 = arith.constant 0 : index
    %c0_90 = arith.constant 0 : index
    %218 = vector.load %arg4[%c1, %c0_89, %c0_90] : memref<2x32x96xf32, #tpu.memory_space<vmem>>, vector<1x32x96xf32>
    %219 = vector.shape_cast %218 : vector<1x32x96xf32> to vector<32x96xf32>
    %cst_91 = arith.constant dense<0.000000e+00> : vector<16x96xf32>
    %220 = tpu.matmul %217, %219, %cst_91 {dimension_numbers = #tpu.dot_dimension_numbers<[1], [0], [0], [1], [0, 0, 1, 1], [], []>} : vector<16x32xf32>, vector<32x96xf32>, vector<16x96xf32> -> vector<16x96xf32>
    %c1_92 = arith.constant 1 : index
    %c0_93 = arith.constant 0 : index
    %c0_94 = arith.constant 0 : index
    %221 = vector.load %arg5[%c1_92, %c0_93, %c0_94] : memref<2x1x96xf32, #tpu.memory_space<vmem>>, vector<1x1x96xf32>
    %222 = vector.shape_cast %221 : vector<1x1x96xf32> to vector<1x96xf32>
    %223 = vector.broadcast %222 : vector<1x96xf32> to vector<16x96xf32>
    %224 = arith.addf %220, %223 : vector<16x96xf32>
    %225 = vector.shape_cast %224 : vector<16x96xf32> to vector<2x8x96xf32>
    %c1_95 = arith.constant 1 : index
    %c0_96 = arith.constant 0 : index
    %c0_97 = arith.constant 0 : index
    %226 = vector.load %arg6[%c1_95, %c0_96, %c0_97] : memref<2x32x32xf32, #tpu.memory_space<vmem>>, vector<1x32x32xf32>
    %227 = vector.shape_cast %226 : vector<1x32x32xf32> to vector<32x32xf32>
    %228 = vector.extract_strided_slice %225 {offsets = [0, 0, 0], sizes = [2, 8, 8], strides = [1, 1, 1]} : vector<2x8x96xf32> to vector<2x8x8xf32>
    %229 = vector.extract_strided_slice %225 {offsets = [0, 0, 32], sizes = [2, 8, 8], strides = [1, 1, 1]} : vector<2x8x96xf32> to vector<2x8x8xf32>
    %230 = vector.extract_strided_slice %225 {offsets = [0, 0, 64], sizes = [2, 8, 8], strides = [1, 1, 1]} : vector<2x8x96xf32> to vector<2x8x8xf32>
    "tpu.trace_start"() <{level = 10 : i32, message = "bqd,bkd->bqk"}> : () -> ()
    %cst_98 = arith.constant dense<0.000000e+00> : vector<2x8x8xf32>
    %231 = tpu.matmul %228, %229, %cst_98 {dimension_numbers = #tpu.dot_dimension_numbers<[2], [2], [1], [1], [0, 0, 0, 1, 1, 1], [0], [0]>} : vector<2x8x8xf32>, vector<2x8x8xf32>, vector<2x8x8xf32> -> vector<2x8x8xf32>
    "tpu.trace_stop"() : () -> ()
    %cst_99 = arith.constant 0.353553385 : f32
    %232 = vector.broadcast %cst_99 : f32 to vector<2x8x8xf32>
    %233 = arith.mulf %231, %232 : vector<2x8x8xf32>
    %234 = vector.broadcast %0 : vector<2x1x8xf32> to vector<2x8x8xf32>
    %235 = arith.addf %233, %234 : vector<2x8x8xf32>
    %cst_100 = arith.constant dense<0xFF800000> : vector<2x8xf32>
    %236 = vector.multi_reduction <maximumf>, %235, %cst_100 [2] : vector<2x8x8xf32> to vector<2x8xf32>
    %237 = vector.shape_cast %236 : vector<2x8xf32> to vector<2x8x1xf32>
    %238 = vector.broadcast %237 : vector<2x8x1xf32> to vector<2x8x8xf32>
    %239 = arith.subf %235, %238 : vector<2x8x8xf32>
    %240 = math.exp %239 : vector<2x8x8xf32>
    %cst_101 = arith.constant dense<0.000000e+00> : vector<2x8xf32>
    %241 = vector.multi_reduction <add>, %240, %cst_101 [2] : vector<2x8x8xf32> to vector<2x8xf32>
    %242 = vector.shape_cast %241 : vector<2x8xf32> to vector<2x8x1xf32>
    %243 = tpu.reciprocal %242 {approx = true} : vector<2x8x1xf32> -> vector<2x8x1xf32>
    %244 = vector.broadcast %243 : vector<2x8x1xf32> to vector<2x8x8xf32>
    %245 = arith.mulf %240, %244 : vector<2x8x8xf32>
    "tpu.trace_start"() <{level = 10 : i32, message = "bqk,bkd->bqd"}> : () -> ()
    %cst_102 = arith.constant dense<0.000000e+00> : vector<2x8x8xf32>
    %246 = tpu.matmul %245, %230, %cst_102 {dimension_numbers = #tpu.dot_dimension_numbers<[2], [1], [1], [2], [0, 0, 0, 1, 1, 2], [0], [0]>} : vector<2x8x8xf32>, vector<2x8x8xf32>, vector<2x8x8xf32> -> vector<2x8x8xf32>
    "tpu.trace_stop"() : () -> ()
    %247 = vector.shape_cast %246 : vector<2x8x8xf32> to vector<16x8xf32>
    %248 = vector.extract_strided_slice %227 {offsets = [0, 0], sizes = [8, 32], strides = [1, 1]} : vector<32x32xf32> to vector<8x32xf32>
    %cst_103 = arith.constant dense<0.000000e+00> : vector<16x32xf32>
    %249 = tpu.matmul %247, %248, %cst_103 {dimension_numbers = #tpu.dot_dimension_numbers<[1], [0], [0], [1], [0, 0, 1, 1], [], []>} : vector<16x8xf32>, vector<8x32xf32>, vector<16x32xf32> -> vector<16x32xf32>
    %250 = vector.extract_strided_slice %225 {offsets = [0, 0, 8], sizes = [2, 8, 8], strides = [1, 1, 1]} : vector<2x8x96xf32> to vector<2x8x8xf32>
    %251 = vector.extract_strided_slice %225 {offsets = [0, 0, 40], sizes = [2, 8, 8], strides = [1, 1, 1]} : vector<2x8x96xf32> to vector<2x8x8xf32>
    %252 = vector.extract_strided_slice %225 {offsets = [0, 0, 72], sizes = [2, 8, 8], strides = [1, 1, 1]} : vector<2x8x96xf32> to vector<2x8x8xf32>
    "tpu.trace_start"() <{level = 10 : i32, message = "bqd,bkd->bqk"}> : () -> ()
    %cst_104 = arith.constant dense<0.000000e+00> : vector<2x8x8xf32>
    %253 = tpu.matmul %250, %251, %cst_104 {dimension_numbers = #tpu.dot_dimension_numbers<[2], [2], [1], [1], [0, 0, 0, 1, 1, 1], [0], [0]>} : vector<2x8x8xf32>, vector<2x8x8xf32>, vector<2x8x8xf32> -> vector<2x8x8xf32>
    "tpu.trace_stop"() : () -> ()
    %cst_105 = arith.constant 0.353553385 : f32
    %254 = vector.broadcast %cst_105 : f32 to vector<2x8x8xf32>
    %255 = arith.mulf %253, %254 : vector<2x8x8xf32>
    %256 = vector.broadcast %0 : vector<2x1x8xf32> to vector<2x8x8xf32>
    %257 = arith.addf %255, %256 : vector<2x8x8xf32>
    %cst_106 = arith.constant dense<0xFF800000> : vector<2x8xf32>
    %258 = vector.multi_reduction <maximumf>, %257, %cst_106 [2] : vector<2x8x8xf32> to vector<2x8xf32>
    %259 = vector.shape_cast %258 : vector<2x8xf32> to vector<2x8x1xf32>
    %260 = vector.broadcast %259 : vector<2x8x1xf32> to vector<2x8x8xf32>
    %261 = arith.subf %257, %260 : vector<2x8x8xf32>
    %262 = math.exp %261 : vector<2x8x8xf32>
    %cst_107 = arith.constant dense<0.000000e+00> : vector<2x8xf32>
    %263 = vector.multi_reduction <add>, %262, %cst_107 [2] : vector<2x8x8xf32> to vector<2x8xf32>
    %264 = vector.shape_cast %263 : vector<2x8xf32> to vector<2x8x1xf32>
    %265 = tpu.reciprocal %264 {approx = true} : vector<2x8x1xf32> -> vector<2x8x1xf32>
    %266 = vector.broadcast %265 : vector<2x8x1xf32> to vector<2x8x8xf32>
    %267 = arith.mulf %262, %266 : vector<2x8x8xf32>
    "tpu.trace_start"() <{level = 10 : i32, message = "bqk,bkd->bqd"}> : () -> ()
    %cst_108 = arith.constant dense<0.000000e+00> : vector<2x8x8xf32>
    %268 = tpu.matmul %267, %252, %cst_108 {dimension_numbers = #tpu.dot_dimension_numbers<[2], [1], [1], [2], [0, 0, 0, 1, 1, 2], [0], [0]>} : vector<2x8x8xf32>, vector<2x8x8xf32>, vector<2x8x8xf32> -> vector<2x8x8xf32>
    "tpu.trace_stop"() : () -> ()
    %269 = vector.shape_cast %268 : vector<2x8x8xf32> to vector<16x8xf32>
    %270 = vector.extract_strided_slice %227 {offsets = [8, 0], sizes = [8, 32], strides = [1, 1]} : vector<32x32xf32> to vector<8x32xf32>
    %cst_109 = arith.constant dense<0.000000e+00> : vector<16x32xf32>
    %271 = tpu.matmul %269, %270, %cst_109 {dimension_numbers = #tpu.dot_dimension_numbers<[1], [0], [0], [1], [0, 0, 1, 1], [], []>} : vector<16x8xf32>, vector<8x32xf32>, vector<16x32xf32> -> vector<16x32xf32>
    %272 = arith.addf %249, %271 : vector<16x32xf32>
    %273 = vector.extract_strided_slice %225 {offsets = [0, 0, 16], sizes = [2, 8, 8], strides = [1, 1, 1]} : vector<2x8x96xf32> to vector<2x8x8xf32>
    %274 = vector.extract_strided_slice %225 {offsets = [0, 0, 48], sizes = [2, 8, 8], strides = [1, 1, 1]} : vector<2x8x96xf32> to vector<2x8x8xf32>
    %275 = vector.extract_strided_slice %225 {offsets = [0, 0, 80], sizes = [2, 8, 8], strides = [1, 1, 1]} : vector<2x8x96xf32> to vector<2x8x8xf32>
    "tpu.trace_start"() <{level = 10 : i32, message = "bqd,bkd->bqk"}> : () -> ()
    %cst_110 = arith.constant dense<0.000000e+00> : vector<2x8x8xf32>
    %276 = tpu.matmul %273, %274, %cst_110 {dimension_numbers = #tpu.dot_dimension_numbers<[2], [2], [1], [1], [0, 0, 0, 1, 1, 1], [0], [0]>} : vector<2x8x8xf32>, vector<2x8x8xf32>, vector<2x8x8xf32> -> vector<2x8x8xf32>
    "tpu.trace_stop"() : () -> ()
    %cst_111 = arith.constant 0.353553385 : f32
    %277 = vector.broadcast %cst_111 : f32 to vector<2x8x8xf32>
    %278 = arith.mulf %276, %277 : vector<2x8x8xf32>
    %279 = vector.broadcast %0 : vector<2x1x8xf32> to vector<2x8x8xf32>
    %280 = arith.addf %278, %279 : vector<2x8x8xf32>
    %cst_112 = arith.constant dense<0xFF800000> : vector<2x8xf32>
    %281 = vector.multi_reduction <maximumf>, %280, %cst_112 [2] : vector<2x8x8xf32> to vector<2x8xf32>
    %282 = vector.shape_cast %281 : vector<2x8xf32> to vector<2x8x1xf32>
    %283 = vector.broadcast %282 : vector<2x8x1xf32> to vector<2x8x8xf32>
    %284 = arith.subf %280, %283 : vector<2x8x8xf32>
    %285 = math.exp %284 : vector<2x8x8xf32>
    %cst_113 = arith.constant dense<0.000000e+00> : vector<2x8xf32>
    %286 = vector.multi_reduction <add>, %285, %cst_113 [2] : vector<2x8x8xf32> to vector<2x8xf32>
    %287 = vector.shape_cast %286 : vector<2x8xf32> to vector<2x8x1xf32>
    %288 = tpu.reciprocal %287 {approx = true} : vector<2x8x1xf32> -> vector<2x8x1xf32>
    %289 = vector.broadcast %288 : vector<2x8x1xf32> to vector<2x8x8xf32>
    %290 = arith.mulf %285, %289 : vector<2x8x8xf32>
    "tpu.trace_start"() <{level = 10 : i32, message = "bqk,bkd->bqd"}> : () -> ()
    %cst_114 = arith.constant dense<0.000000e+00> : vector<2x8x8xf32>
    %291 = tpu.matmul %290, %275, %cst_114 {dimension_numbers = #tpu.dot_dimension_numbers<[2], [1], [1], [2], [0, 0, 0, 1, 1, 2], [0], [0]>} : vector<2x8x8xf32>, vector<2x8x8xf32>, vector<2x8x8xf32> -> vector<2x8x8xf32>
    "tpu.trace_stop"() : () -> ()
    %292 = vector.shape_cast %291 : vector<2x8x8xf32> to vector<16x8xf32>
    %293 = vector.extract_strided_slice %227 {offsets = [16, 0], sizes = [8, 32], strides = [1, 1]} : vector<32x32xf32> to vector<8x32xf32>
    %cst_115 = arith.constant dense<0.000000e+00> : vector<16x32xf32>
    %294 = tpu.matmul %292, %293, %cst_115 {dimension_numbers = #tpu.dot_dimension_numbers<[1], [0], [0], [1], [0, 0, 1, 1], [], []>} : vector<16x8xf32>, vector<8x32xf32>, vector<16x32xf32> -> vector<16x32xf32>
    %295 = arith.addf %272, %294 : vector<16x32xf32>
    %296 = vector.extract_strided_slice %225 {offsets = [0, 0, 24], sizes = [2, 8, 8], strides = [1, 1, 1]} : vector<2x8x96xf32> to vector<2x8x8xf32>
    %297 = vector.extract_strided_slice %225 {offsets = [0, 0, 56], sizes = [2, 8, 8], strides = [1, 1, 1]} : vector<2x8x96xf32> to vector<2x8x8xf32>
    %298 = vector.extract_strided_slice %225 {offsets = [0, 0, 88], sizes = [2, 8, 8], strides = [1, 1, 1]} : vector<2x8x96xf32> to vector<2x8x8xf32>
    "tpu.trace_start"() <{level = 10 : i32, message = "bqd,bkd->bqk"}> : () -> ()
    %cst_116 = arith.constant dense<0.000000e+00> : vector<2x8x8xf32>
    %299 = tpu.matmul %296, %297, %cst_116 {dimension_numbers = #tpu.dot_dimension_numbers<[2], [2], [1], [1], [0, 0, 0, 1, 1, 1], [0], [0]>} : vector<2x8x8xf32>, vector<2x8x8xf32>, vector<2x8x8xf32> -> vector<2x8x8xf32>
    "tpu.trace_stop"() : () -> ()
    %cst_117 = arith.constant 0.353553385 : f32
    %300 = vector.broadcast %cst_117 : f32 to vector<2x8x8xf32>
    %301 = arith.mulf %299, %300 : vector<2x8x8xf32>
    %302 = vector.broadcast %0 : vector<2x1x8xf32> to vector<2x8x8xf32>
    %303 = arith.addf %301, %302 : vector<2x8x8xf32>
    %cst_118 = arith.constant dense<0xFF800000> : vector<2x8xf32>
    %304 = vector.multi_reduction <maximumf>, %303, %cst_118 [2] : vector<2x8x8xf32> to vector<2x8xf32>
    %305 = vector.shape_cast %304 : vector<2x8xf32> to vector<2x8x1xf32>
    %306 = vector.broadcast %305 : vector<2x8x1xf32> to vector<2x8x8xf32>
    %307 = arith.subf %303, %306 : vector<2x8x8xf32>
    %308 = math.exp %307 : vector<2x8x8xf32>
    %cst_119 = arith.constant dense<0.000000e+00> : vector<2x8xf32>
    %309 = vector.multi_reduction <add>, %308, %cst_119 [2] : vector<2x8x8xf32> to vector<2x8xf32>
    %310 = vector.shape_cast %309 : vector<2x8xf32> to vector<2x8x1xf32>
    %311 = tpu.reciprocal %310 {approx = true} : vector<2x8x1xf32> -> vector<2x8x1xf32>
    %312 = vector.broadcast %311 : vector<2x8x1xf32> to vector<2x8x8xf32>
    %313 = arith.mulf %308, %312 : vector<2x8x8xf32>
    "tpu.trace_start"() <{level = 10 : i32, message = "bqk,bkd->bqd"}> : () -> ()
    %cst_120 = arith.constant dense<0.000000e+00> : vector<2x8x8xf32>
    %314 = tpu.matmul %313, %298, %cst_120 {dimension_numbers = #tpu.dot_dimension_numbers<[2], [1], [1], [2], [0, 0, 0, 1, 1, 2], [0], [0]>} : vector<2x8x8xf32>, vector<2x8x8xf32>, vector<2x8x8xf32> -> vector<2x8x8xf32>
    "tpu.trace_stop"() : () -> ()
    %315 = vector.shape_cast %314 : vector<2x8x8xf32> to vector<16x8xf32>
    %316 = vector.extract_strided_slice %227 {offsets = [24, 0], sizes = [8, 32], strides = [1, 1]} : vector<32x32xf32> to vector<8x32xf32>
    %cst_121 = arith.constant dense<0.000000e+00> : vector<16x32xf32>
    %317 = tpu.matmul %315, %316, %cst_121 {dimension_numbers = #tpu.dot_dimension_numbers<[1], [0], [0], [1], [0, 0, 1, 1], [], []>} : vector<16x8xf32>, vector<8x32xf32>, vector<16x32xf32> -> vector<16x32xf32>
    %318 = arith.addf %295, %317 : vector<16x32xf32>
    %c1_122 = arith.constant 1 : index
    %c0_123 = arith.constant 0 : index
    %c0_124 = arith.constant 0 : index
    %319 = vector.load %arg7[%c1_122, %c0_123, %c0_124] : memref<2x1x32xf32, #tpu.memory_space<vmem>>, vector<1x1x32xf32>
    %320 = vector.shape_cast %319 : vector<1x1x32xf32> to vector<1x32xf32>
    %321 = vector.broadcast %320 : vector<1x32xf32> to vector<16x32xf32>
    %322 = arith.addf %318, %321 : vector<16x32xf32>
    %323 = arith.addf %322, %217 : vector<16x32xf32>
    %c1_125 = arith.constant 1 : index
    %c0_126 = arith.constant 0 : index
    %c0_127 = arith.constant 0 : index
    %324 = vector.load %arg8[%c1_125, %c0_126, %c0_127] : memref<2x1x32xf32, #tpu.memory_space<vmem>>, vector<1x1x32xf32>
    %325 = vector.shape_cast %324 : vector<1x1x32xf32> to vector<1x32xf32>
    %c1_128 = arith.constant 1 : index
    %c0_129 = arith.constant 0 : index
    %c0_130 = arith.constant 0 : index
    %326 = vector.load %arg9[%c1_128, %c0_129, %c0_130] : memref<2x1x32xf32, #tpu.memory_space<vmem>>, vector<1x1x32xf32>
    %327 = vector.shape_cast %326 : vector<1x1x32xf32> to vector<1x32xf32>
    %cst_131 = arith.constant dense<0.000000e+00> : vector<16xf32>
    %328 = vector.multi_reduction <add>, %323, %cst_131 [1] : vector<16x32xf32> to vector<16xf32>
    %329 = vector.shape_cast %328 : vector<16xf32> to vector<16x1xf32>
    %cst_132 = arith.constant 3.200000e+01 : f32
    %330 = vector.broadcast %cst_132 : f32 to vector<16x1xf32>
    %331 = arith.divf %329, %330 : vector<16x1xf32>
    %332 = vector.broadcast %331 : vector<16x1xf32> to vector<16x32xf32>
    %333 = arith.subf %323, %332 : vector<16x32xf32>
    %334 = vector.broadcast %331 : vector<16x1xf32> to vector<16x32xf32>
    %335 = arith.subf %323, %334 : vector<16x32xf32>
    %336 = arith.mulf %333, %335 : vector<16x32xf32>
    %cst_133 = arith.constant dense<0.000000e+00> : vector<16xf32>
    %337 = vector.multi_reduction <add>, %336, %cst_133 [1] : vector<16x32xf32> to vector<16xf32>
    %338 = vector.shape_cast %337 : vector<16xf32> to vector<16x1xf32>
    %cst_134 = arith.constant 3.200000e+01 : f32
    %339 = vector.broadcast %cst_134 : f32 to vector<16x1xf32>
    %340 = arith.divf %338, %339 : vector<16x1xf32>
    %341 = vector.broadcast %331 : vector<16x1xf32> to vector<16x32xf32>
    %342 = arith.subf %323, %341 : vector<16x32xf32>
    %cst_135 = arith.constant 9.99999996E-13 : f32
    %343 = vector.broadcast %cst_135 : f32 to vector<16x1xf32>
    %344 = arith.addf %340, %343 : vector<16x1xf32>
    %345 = math.rsqrt %344 : vector<16x1xf32>
    %346 = vector.broadcast %345 : vector<16x1xf32> to vector<16x32xf32>
    %347 = arith.mulf %342, %346 : vector<16x32xf32>
    %348 = vector.broadcast %325 : vector<1x32xf32> to vector<16x32xf32>
    %349 = arith.mulf %347, %348 : vector<16x32xf32>
    %350 = vector.broadcast %327 : vector<1x32xf32> to vector<16x32xf32>
    %351 = arith.addf %349, %350 : vector<16x32xf32>
    %c1_136 = arith.constant 1 : index
    %c0_137 = arith.constant 0 : index
    %c0_138 = arith.constant 0 : index
    %352 = vector.load %arg10[%c1_136, %c0_137, %c0_138] : memref<2x32x64xf32, #tpu.memory_space<vmem>>, vector<1x32x64xf32>
    %353 = vector.shape_cast %352 : vector<1x32x64xf32> to vector<32x64xf32>
    %cst_139 = arith.constant dense<0.000000e+00> : vector<16x64xf32>
    %354 = tpu.matmul %351, %353, %cst_139 {dimension_numbers = #tpu.dot_dimension_numbers<[1], [0], [0], [1], [0, 0, 1, 1], [], []>} : vector<16x32xf32>, vector<32x64xf32>, vector<16x64xf32> -> vector<16x64xf32>
    %c1_140 = arith.constant 1 : index
    %c0_141 = arith.constant 0 : index
    %c0_142 = arith.constant 0 : index
    %355 = vector.load %arg11[%c1_140, %c0_141, %c0_142] : memref<2x1x64xf32, #tpu.memory_space<vmem>>, vector<1x1x64xf32>
    %356 = vector.shape_cast %355 : vector<1x1x64xf32> to vector<1x64xf32>
    %357 = vector.broadcast %356 : vector<1x64xf32> to vector<16x64xf32>
    %358 = arith.addf %354, %357 : vector<16x64xf32>
    %cst_143 = arith.constant 5.000000e-01 : f32
    %359 = vector.broadcast %cst_143 : f32 to vector<16x64xf32>
    %360 = arith.mulf %359, %358 : vector<16x64xf32>
    %cst_144 = arith.constant 4.471500e-02 : f32
    %361 = vector.broadcast %cst_144 : f32 to vector<16x64xf32>
    %362 = arith.mulf %361, %358 : vector<16x64xf32>
    %363 = arith.mulf %362, %358 : vector<16x64xf32>
    %364 = arith.mulf %363, %358 : vector<16x64xf32>
    %365 = arith.addf %358, %364 : vector<16x64xf32>
    %cst_145 = arith.constant 0.797884583 : f32
    %366 = vector.broadcast %cst_145 : f32 to vector<16x64xf32>
    %367 = arith.mulf %366, %365 : vector<16x64xf32>
    %368 = math.tanh %367 : vector<16x64xf32>
    %cst_146 = arith.constant 1.000000e+00 : f32
    %369 = vector.broadcast %cst_146 : f32 to vector<16x64xf32>
    %370 = arith.addf %369, %368 : vector<16x64xf32>
    %371 = arith.mulf %360, %370 : vector<16x64xf32>
    %c1_147 = arith.constant 1 : index
    %c0_148 = arith.constant 0 : index
    %c0_149 = arith.constant 0 : index
    %372 = vector.load %arg12[%c1_147, %c0_148, %c0_149] : memref<2x64x32xf32, #tpu.memory_space<vmem>>, vector<1x64x32xf32>
    %373 = vector.shape_cast %372 : vector<1x64x32xf32> to vector<64x32xf32>
    %cst_150 = arith.constant dense<0.000000e+00> : vector<16x32xf32>
    %374 = tpu.matmul %371, %373, %cst_150 {dimension_numbers = #tpu.dot_dimension_numbers<[1], [0], [0], [1], [0, 0, 1, 1], [], []>} : vector<16x64xf32>, vector<64x32xf32>, vector<16x32xf32> -> vector<16x32xf32>
    %c1_151 = arith.constant 1 : index
    %c0_152 = arith.constant 0 : index
    %c0_153 = arith.constant 0 : index
    %375 = vector.load %arg13[%c1_151, %c0_152, %c0_153] : memref<2x1x32xf32, #tpu.memory_space<vmem>>, vector<1x1x32xf32>
    %376 = vector.shape_cast %375 : vector<1x1x32xf32> to vector<1x32xf32>
    %377 = vector.broadcast %376 : vector<1x32xf32> to vector<16x32xf32>
    %378 = arith.addf %374, %377 : vector<16x32xf32>
    %379 = arith.addf %378, %351 : vector<16x32xf32>
    %c1_154 = arith.constant 1 : index
    %c0_155 = arith.constant 0 : index
    %c0_156 = arith.constant 0 : index
    %380 = vector.load %arg14[%c1_154, %c0_155, %c0_156] : memref<2x1x32xf32, #tpu.memory_space<vmem>>, vector<1x1x32xf32>
    %381 = vector.shape_cast %380 : vector<1x1x32xf32> to vector<1x32xf32>
    %c1_157 = arith.constant 1 : index
    %c0_158 = arith.constant 0 : index
    %c0_159 = arith.constant 0 : index
    %382 = vector.load %arg15[%c1_157, %c0_158, %c0_159] : memref<2x1x32xf32, #tpu.memory_space<vmem>>, vector<1x1x32xf32>
    %383 = vector.shape_cast %382 : vector<1x1x32xf32> to vector<1x32xf32>
    %cst_160 = arith.constant dense<0.000000e+00> : vector<16xf32>
    %384 = vector.multi_reduction <add>, %379, %cst_160 [1] : vector<16x32xf32> to vector<16xf32>
    %385 = vector.shape_cast %384 : vector<16xf32> to vector<16x1xf32>
    %cst_161 = arith.constant 3.200000e+01 : f32
    %386 = vector.broadcast %cst_161 : f32 to vector<16x1xf32>
    %387 = arith.divf %385, %386 : vector<16x1xf32>
    %388 = vector.broadcast %387 : vector<16x1xf32> to vector<16x32xf32>
    %389 = arith.subf %379, %388 : vector<16x32xf32>
    %390 = vector.broadcast %387 : vector<16x1xf32> to vector<16x32xf32>
    %391 = arith.subf %379, %390 : vector<16x32xf32>
    %392 = arith.mulf %389, %391 : vector<16x32xf32>
    %cst_162 = arith.constant dense<0.000000e+00> : vector<16xf32>
    %393 = vector.multi_reduction <add>, %392, %cst_162 [1] : vector<16x32xf32> to vector<16xf32>
    %394 = vector.shape_cast %393 : vector<16xf32> to vector<16x1xf32>
    %cst_163 = arith.constant 3.200000e+01 : f32
    %395 = vector.broadcast %cst_163 : f32 to vector<16x1xf32>
    %396 = arith.divf %394, %395 : vector<16x1xf32>
    %397 = vector.broadcast %387 : vector<16x1xf32> to vector<16x32xf32>
    %398 = arith.subf %379, %397 : vector<16x32xf32>
    %cst_164 = arith.constant 9.99999996E-13 : f32
    %399 = vector.broadcast %cst_164 : f32 to vector<16x1xf32>
    %400 = arith.addf %396, %399 : vector<16x1xf32>
    %401 = math.rsqrt %400 : vector<16x1xf32>
    %402 = vector.broadcast %401 : vector<16x1xf32> to vector<16x32xf32>
    %403 = arith.mulf %398, %402 : vector<16x32xf32>
    %404 = vector.broadcast %381 : vector<1x32xf32> to vector<16x32xf32>
    %405 = arith.mulf %403, %404 : vector<16x32xf32>
    %406 = vector.broadcast %383 : vector<1x32xf32> to vector<16x32xf32>
    %407 = arith.addf %405, %406 : vector<16x32xf32>
    %c0_165 = arith.constant 0 : index
    %c0_166 = arith.constant 0 : index
    %408 = vector.load %arg16[%c0_165, %c0_166] : memref<32x128xf32, #tpu.memory_space<vmem>>, vector<32x128xf32>
    %cst_167 = arith.constant dense<0.000000e+00> : vector<16x128xf32>
    %409 = tpu.matmul %407, %408, %cst_167 {dimension_numbers = #tpu.dot_dimension_numbers<[1], [0], [0], [1], [0, 0, 1, 1], [], []>} : vector<16x32xf32>, vector<32x128xf32>, vector<16x128xf32> -> vector<16x128xf32>
    %c0_168 = arith.constant 0 : index
    %c0_169 = arith.constant 0 : index
    %410 = vector.load %arg17[%c0_168, %c0_169] : memref<1x128xf32, #tpu.memory_space<vmem>>, vector<1x128xf32>
    %411 = vector.broadcast %410 : vector<1x128xf32> to vector<16x128xf32>
    %412 = arith.addf %409, %411 : vector<16x128xf32>
    %c0_170 = arith.constant 0 : index
    %c0_171 = arith.constant 0 : index
    %413 = vector.load %arg22[%c0_170, %c0_171] : memref<16x128xf32, #tpu.memory_space<vmem>>, vector<16x128xf32>
    tpu.vector_store %arg22[%c0_170, %c0_171], %412 {strides = array<i32>} : memref<16x128xf32, #tpu.memory_space<vmem>>, vector<16x128xf32>,
    %414 = vector.extract_strided_slice %412 {offsets = [0, 0], sizes = [16, 5], strides = [1, 1]} : vector<16x128xf32> to vector<16x5xf32>
    %415 = vector.shape_cast %414 : vector<16x5xf32> to vector<2x8x5xf32>
    %c0_172 = arith.constant 0 : index
    %c0_173 = arith.constant 0 : index
    %c0_174 = arith.constant 0 : index
    %416 = vector.load %arg21[%c0_172, %c0_173, %c0_174] : memref<2x8x5xf32, #tpu.memory_space<vmem>>, vector<2x8x5xf32>
    %c0_175 = arith.constant 0 : index
    %c0_176 = arith.constant 0 : index
    %417 = vector.load %arg18[%c0_175, %c0_176] : memref<5x5xf32, #tpu.memory_space<vmem>>, vector<5x5xf32>
    %c0_177 = arith.constant 0 : index
    %c0_178 = arith.constant 0 : index
    %418 = vector.load %arg19[%c0_177, %c0_178] : memref<1x5xf32, #tpu.memory_space<vmem>>, vector<1x5xf32>
    %c0_179 = arith.constant 0 : index
    %c0_180 = arith.constant 0 : index
    %419 = vector.load %arg20[%c0_179, %c0_180] : memref<1x5xf32, #tpu.memory_space<vmem>>, vector<1x5xf32>
    %420 = tpu.iota {dimensions = array<i32: 2>} : vector<1x1x5xi32>
    %421 = vector.extract_strided_slice %415 {offsets = [0, 0, 0], sizes = [2, 1, 5], strides = [1, 1, 1]} : vector<2x8x5xf32> to vector<2x1x5xf32>
    %422 = vector.shape_cast %418 : vector<1x5xf32> to vector<1x1x5xf32>
    %423 = vector.broadcast %422 : vector<1x1x5xf32> to vector<2x1x5xf32>
    %424 = arith.addf %423, %421 : vector<2x1x5xf32>
    %425 = vector.extract_strided_slice %415 {offsets = [0, 1, 0], sizes = [2, 1, 5], strides = [1, 1, 1]} : vector<2x8x5xf32> to vector<2x1x5xf32>
    %426 = vector.extract_strided_slice %417 {offsets = [0, 0], sizes = [1, 5], strides = [1, 1]} : vector<5x5xf32> to vector<1x5xf32>
    %427 = vector.shape_cast %426 : vector<1x5xf32> to vector<1x1x5xf32>
    %428 = vector.broadcast %427 : vector<1x1x5xf32> to vector<2x1x5xf32>
    %429 = arith.addf %424, %428 : vector<2x1x5xf32>
    %cst_181 = arith.constant dense<0xFF800000> : vector<2x1xf32>
    %430 = vector.multi_reduction <maximumf>, %429, %cst_181 [2] : vector<2x1x5xf32> to vector<2x1xf32>
    %431 = vector.shape_cast %430 : vector<2x1xf32> to vector<2x1x1xf32>
    %432 = vector.broadcast %431 : vector<2x1x1xf32> to vector<2x1x5xf32>
    %433 = arith.subf %429, %432 : vector<2x1x5xf32>
    %434 = math.exp %433 : vector<2x1x5xf32>
    %cst_182 = arith.constant dense<0.000000e+00> : vector<2x1xf32>
    %435 = vector.multi_reduction <add>, %434, %cst_182 [2] : vector<2x1x5xf32> to vector<2x1xf32>
    %436 = vector.shape_cast %435 : vector<2x1xf32> to vector<2x1x1xf32>
    %437 = math.log %436 : vector<2x1x1xf32>
    %438 = arith.addf %431, %437 : vector<2x1x1xf32>
    %c0_i32 = arith.constant 0 : i32
    %439 = vector.broadcast %c0_i32 : i32 to vector<1x1x5xi32>
    %440 = arith.cmpi eq, %420, %439 : vector<1x1x5xi32>
    %cst_183 = arith.constant 0.000000e+00 : f32
    %441 = vector.shape_cast %440 : vector<1x1x5xi1> to vector<1x1x5xi1>
    %442 = vector.broadcast %441 : vector<1x1x5xi1> to vector<2x1x5xi1>
    %443 = vector.shape_cast %438 : vector<2x1x1xf32> to vector<2x1x1xf32>
    %444 = vector.broadcast %443 : vector<2x1x1xf32> to vector<2x1x5xf32>
    %445 = vector.broadcast %cst_183 : f32 to vector<2x1x5xf32>
    %446 = arith.select %442, %444, %445 : vector<2x1x5xi1>, vector<2x1x5xf32>
    %447 = arith.addf %425, %446 : vector<2x1x5xf32>
    %448 = vector.extract_strided_slice %417 {offsets = [1, 0], sizes = [1, 5], strides = [1, 1]} : vector<5x5xf32> to vector<1x5xf32>
    %449 = vector.shape_cast %448 : vector<1x5xf32> to vector<1x1x5xf32>
    %450 = vector.broadcast %449 : vector<1x1x5xf32> to vector<2x1x5xf32>
    %451 = arith.addf %424, %450 : vector<2x1x5xf32>
    %cst_184 = arith.constant dense<0xFF800000> : vector<2x1xf32>
    %452 = vector.multi_reduction <maximumf>, %451, %cst_184 [2] : vector<2x1x5xf32> to vector<2x1xf32>
    %453 = vector.shape_cast %452 : vector<2x1xf32> to vector<2x1x1xf32>
    %454 = vector.broadcast %453 : vector<2x1x1xf32> to vector<2x1x5xf32>
    %455 = arith.subf %451, %454 : vector<2x1x5xf32>
    %456 = math.exp %455 : vector<2x1x5xf32>
    %cst_185 = arith.constant dense<0.000000e+00> : vector<2x1xf32>
    %457 = vector.multi_reduction <add>, %456, %cst_185 [2] : vector<2x1x5xf32> to vector<2x1xf32>
    %458 = vector.shape_cast %457 : vector<2x1xf32> to vector<2x1x1xf32>
    %459 = math.log %458 : vector<2x1x1xf32>
    %460 = arith.addf %453, %459 : vector<2x1x1xf32>
    %c1_i32 = arith.constant 1 : i32
    %461 = vector.broadcast %c1_i32 : i32 to vector<1x1x5xi32>
    %462 = arith.cmpi eq, %420, %461 : vector<1x1x5xi32>
    %cst_186 = arith.constant 0.000000e+00 : f32
    %463 = vector.shape_cast %462 : vector<1x1x5xi1> to vector<1x1x5xi1>
    %464 = vector.broadcast %463 : vector<1x1x5xi1> to vector<2x1x5xi1>
    %465 = vector.shape_cast %460 : vector<2x1x1xf32> to vector<2x1x1xf32>
    %466 = vector.broadcast %465 : vector<2x1x1xf32> to vector<2x1x5xf32>
    %467 = vector.broadcast %cst_186 : f32 to vector<2x1x5xf32>
    %468 = arith.select %464, %466, %467 : vector<2x1x5xi1>, vector<2x1x5xf32>
    %469 = arith.addf %447, %468 : vector<2x1x5xf32>
    %470 = vector.extract_strided_slice %417 {offsets = [2, 0], sizes = [1, 5], strides = [1, 1]} : vector<5x5xf32> to vector<1x5xf32>
    %471 = vector.shape_cast %470 : vector<1x5xf32> to vector<1x1x5xf32>
    %472 = vector.broadcast %471 : vector<1x1x5xf32> to vector<2x1x5xf32>
    %473 = arith.addf %424, %472 : vector<2x1x5xf32>
    %cst_187 = arith.constant dense<0xFF800000> : vector<2x1xf32>
    %474 = vector.multi_reduction <maximumf>, %473, %cst_187 [2] : vector<2x1x5xf32> to vector<2x1xf32>
    %475 = vector.shape_cast %474 : vector<2x1xf32> to vector<2x1x1xf32>
    %476 = vector.broadcast %475 : vector<2x1x1xf32> to vector<2x1x5xf32>
    %477 = arith.subf %473, %476 : vector<2x1x5xf32>
    %478 = math.exp %477 : vector<2x1x5xf32>
    %cst_188 = arith.constant dense<0.000000e+00> : vector<2x1xf32>
    %479 = vector.multi_reduction <add>, %478, %cst_188 [2] : vector<2x1x5xf32> to vector<2x1xf32>
    %480 = vector.shape_cast %479 : vector<2x1xf32> to vector<2x1x1xf32>
    %481 = math.log %480 : vector<2x1x1xf32>
    %482 = arith.addf %475, %481 : vector<2x1x1xf32>
    %c2_i32 = arith.constant 2 : i32
    %483 = vector.broadcast %c2_i32 : i32 to vector<1x1x5xi32>
    %484 = arith.cmpi eq, %420, %483 : vector<1x1x5xi32>
    %cst_189 = arith.constant 0.000000e+00 : f32
    %485 = vector.shape_cast %484 : vector<1x1x5xi1> to vector<1x1x5xi1>
    %486 = vector.broadcast %485 : vector<1x1x5xi1> to vector<2x1x5xi1>
    %487 = vector.shape_cast %482 : vector<2x1x1xf32> to vector<2x1x1xf32>
    %488 = vector.broadcast %487 : vector<2x1x1xf32> to vector<2x1x5xf32>
    %489 = vector.broadcast %cst_189 : f32 to vector<2x1x5xf32>
    %490 = arith.select %486, %488, %489 : vector<2x1x5xi1>, vector<2x1x5xf32>
    %491 = arith.addf %469, %490 : vector<2x1x5xf32>
    %492 = vector.extract_strided_slice %417 {offsets = [3, 0], sizes = [1, 5], strides = [1, 1]} : vector<5x5xf32> to vector<1x5xf32>
    %493 = vector.shape_cast %492 : vector<1x5xf32> to vector<1x1x5xf32>
    %494 = vector.broadcast %493 : vector<1x1x5xf32> to vector<2x1x5xf32>
    %495 = arith.addf %424, %494 : vector<2x1x5xf32>
    %cst_190 = arith.constant dense<0xFF800000> : vector<2x1xf32>
    %496 = vector.multi_reduction <maximumf>, %495, %cst_190 [2] : vector<2x1x5xf32> to vector<2x1xf32>
    %497 = vector.shape_cast %496 : vector<2x1xf32> to vector<2x1x1xf32>
    %498 = vector.broadcast %497 : vector<2x1x1xf32> to vector<2x1x5xf32>
    %499 = arith.subf %495, %498 : vector<2x1x5xf32>
    %500 = math.exp %499 : vector<2x1x5xf32>
    %cst_191 = arith.constant dense<0.000000e+00> : vector<2x1xf32>
    %501 = vector.multi_reduction <add>, %500, %cst_191 [2] : vector<2x1x5xf32> to vector<2x1xf32>
    %502 = vector.shape_cast %501 : vector<2x1xf32> to vector<2x1x1xf32>
    %503 = math.log %502 : vector<2x1x1xf32>
    %504 = arith.addf %497, %503 : vector<2x1x1xf32>
    %c3_i32 = arith.constant 3 : i32
    %505 = vector.broadcast %c3_i32 : i32 to vector<1x1x5xi32>
    %506 = arith.cmpi eq, %420, %505 : vector<1x1x5xi32>
    %cst_192 = arith.constant 0.000000e+00 : f32
    %507 = vector.shape_cast %506 : vector<1x1x5xi1> to vector<1x1x5xi1>
    %508 = vector.broadcast %507 : vector<1x1x5xi1> to vector<2x1x5xi1>
    %509 = vector.shape_cast %504 : vector<2x1x1xf32> to vector<2x1x1xf32>
    %510 = vector.broadcast %509 : vector<2x1x1xf32> to vector<2x1x5xf32>
    %511 = vector.broadcast %cst_192 : f32 to vector<2x1x5xf32>
    %512 = arith.select %508, %510, %511 : vector<2x1x5xi1>, vector<2x1x5xf32>
    %513 = arith.addf %491, %512 : vector<2x1x5xf32>
    %514 = vector.extract_strided_slice %417 {offsets = [4, 0], sizes = [1, 5], strides = [1, 1]} : vector<5x5xf32> to vector<1x5xf32>
    %515 = vector.shape_cast %514 : vector<1x5xf32> to vector<1x1x5xf32>
    %516 = vector.broadcast %515 : vector<1x1x5xf32> to vector<2x1x5xf32>
    %517 = arith.addf %424, %516 : vector<2x1x5xf32>
    %cst_193 = arith.constant dense<0xFF800000> : vector<2x1xf32>
    %518 = vector.multi_reduction <maximumf>, %517, %cst_193 [2] : vector<2x1x5xf32> to vector<2x1xf32>
    %519 = vector.shape_cast %518 : vector<2x1xf32> to vector<2x1x1xf32>
    %520 = vector.broadcast %519 : vector<2x1x1xf32> to vector<2x1x5xf32>
    %521 = arith.subf %517, %520 : vector<2x1x5xf32>
    %522 = math.exp %521 : vector<2x1x5xf32>
    %cst_194 = arith.constant dense<0.000000e+00> : vector<2x1xf32>
    %523 = vector.multi_reduction <add>, %522, %cst_194 [2] : vector<2x1x5xf32> to vector<2x1xf32>
    %524 = vector.shape_cast %523 : vector<2x1xf32> to vector<2x1x1xf32>
    %525 = math.log %524 : vector<2x1x1xf32>
    %526 = arith.addf %519, %525 : vector<2x1x1xf32>
    %c4_i32 = arith.constant 4 : i32
    %527 = vector.broadcast %c4_i32 : i32 to vector<1x1x5xi32>
    %528 = arith.cmpi eq, %420, %527 : vector<1x1x5xi32>
    %cst_195 = arith.constant 0.000000e+00 : f32
    %529 = vector.shape_cast %528 : vector<1x1x5xi1> to vector<1x1x5xi1>
    %530 = vector.broadcast %529 : vector<1x1x5xi1> to vector<2x1x5xi1>
    %531 = vector.shape_cast %526 : vector<2x1x1xf32> to vector<2x1x1xf32>
    %532 = vector.broadcast %531 : vector<2x1x1xf32> to vector<2x1x5xf32>
    %533 = vector.broadcast %cst_195 : f32 to vector<2x1x5xf32>
    %534 = arith.select %530, %532, %533 : vector<2x1x5xi1>, vector<2x1x5xf32>
    %535 = arith.addf %513, %534 : vector<2x1x5xf32>
    %536 = vector.extract_strided_slice %415 {offsets = [0, 2, 0], sizes = [2, 1, 5], strides = [1, 1, 1]} : vector<2x8x5xf32> to vector<2x1x5xf32>
    %537 = vector.extract_strided_slice %417 {offsets = [0, 0], sizes = [1, 5], strides = [1, 1]} : vector<5x5xf32> to vector<1x5xf32>
    %538 = vector.shape_cast %537 : vector<1x5xf32> to vector<1x1x5xf32>
    %539 = vector.broadcast %538 : vector<1x1x5xf32> to vector<2x1x5xf32>
    %540 = arith.addf %535, %539 : vector<2x1x5xf32>
    %cst_196 = arith.constant dense<0xFF800000> : vector<2x1xf32>
    %541 = vector.multi_reduction <maximumf>, %540, %cst_196 [2] : vector<2x1x5xf32> to vector<2x1xf32>
    %542 = vector.shape_cast %541 : vector<2x1xf32> to vector<2x1x1xf32>
    %543 = vector.broadcast %542 : vector<2x1x1xf32> to vector<2x1x5xf32>
    %544 = arith.subf %540, %543 : vector<2x1x5xf32>
    %545 = math.exp %544 : vector<2x1x5xf32>
    %cst_197 = arith.constant dense<0.000000e+00> : vector<2x1xf32>
    %546 = vector.multi_reduction <add>, %545, %cst_197 [2] : vector<2x1x5xf32> to vector<2x1xf32>
    %547 = vector.shape_cast %546 : vector<2x1xf32> to vector<2x1x1xf32>
    %548 = math.log %547 : vector<2x1x1xf32>
    %549 = arith.addf %542, %548 : vector<2x1x1xf32>
    %c0_i32_198 = arith.constant 0 : i32
    %550 = vector.broadcast %c0_i32_198 : i32 to vector<1x1x5xi32>
    %551 = arith.cmpi eq, %420, %550 : vector<1x1x5xi32>
    %cst_199 = arith.constant 0.000000e+00 : f32
    %552 = vector.shape_cast %551 : vector<1x1x5xi1> to vector<1x1x5xi1>
    %553 = vector.broadcast %552 : vector<1x1x5xi1> to vector<2x1x5xi1>
    %554 = vector.shape_cast %549 : vector<2x1x1xf32> to vector<2x1x1xf32>
    %555 = vector.broadcast %554 : vector<2x1x1xf32> to vector<2x1x5xf32>
    %556 = vector.broadcast %cst_199 : f32 to vector<2x1x5xf32>
    %557 = arith.select %553, %555, %556 : vector<2x1x5xi1>, vector<2x1x5xf32>
    %558 = arith.addf %536, %557 : vector<2x1x5xf32>
    %559 = vector.extract_strided_slice %417 {offsets = [1, 0], sizes = [1, 5], strides = [1, 1]} : vector<5x5xf32> to vector<1x5xf32>
    %560 = vector.shape_cast %559 : vector<1x5xf32> to vector<1x1x5xf32>
    %561 = vector.broadcast %560 : vector<1x1x5xf32> to vector<2x1x5xf32>
    %562 = arith.addf %535, %561 : vector<2x1x5xf32>
    %cst_200 = arith.constant dense<0xFF800000> : vector<2x1xf32>
    %563 = vector.multi_reduction <maximumf>, %562, %cst_200 [2] : vector<2x1x5xf32> to vector<2x1xf32>
    %564 = vector.shape_cast %563 : vector<2x1xf32> to vector<2x1x1xf32>
    %565 = vector.broadcast %564 : vector<2x1x1xf32> to vector<2x1x5xf32>
    %566 = arith.subf %562, %565 : vector<2x1x5xf32>
    %567 = math.exp %566 : vector<2x1x5xf32>
    %cst_201 = arith.constant dense<0.000000e+00> : vector<2x1xf32>
    %568 = vector.multi_reduction <add>, %567, %cst_201 [2] : vector<2x1x5xf32> to vector<2x1xf32>
    %569 = vector.shape_cast %568 : vector<2x1xf32> to vector<2x1x1xf32>
    %570 = math.log %569 : vector<2x1x1xf32>
    %571 = arith.addf %564, %570 : vector<2x1x1xf32>
    %c1_i32_202 = arith.constant 1 : i32
    %572 = vector.broadcast %c1_i32_202 : i32 to vector<1x1x5xi32>
    %573 = arith.cmpi eq, %420, %572 : vector<1x1x5xi32>
    %cst_203 = arith.constant 0.000000e+00 : f32
    %574 = vector.shape_cast %573 : vector<1x1x5xi1> to vector<1x1x5xi1>
    %575 = vector.broadcast %574 : vector<1x1x5xi1> to vector<2x1x5xi1>
    %576 = vector.shape_cast %571 : vector<2x1x1xf32> to vector<2x1x1xf32>
    %577 = vector.broadcast %576 : vector<2x1x1xf32> to vector<2x1x5xf32>
    %578 = vector.broadcast %cst_203 : f32 to vector<2x1x5xf32>
    %579 = arith.select %575, %577, %578 : vector<2x1x5xi1>, vector<2x1x5xf32>
    %580 = arith.addf %558, %579 : vector<2x1x5xf32>
    %581 = vector.extract_strided_slice %417 {offsets = [2, 0], sizes = [1, 5], strides = [1, 1]} : vector<5x5xf32> to vector<1x5xf32>
    %582 = vector.shape_cast %581 : vector<1x5xf32> to vector<1x1x5xf32>
    %583 = vector.broadcast %582 : vector<1x1x5xf32> to vector<2x1x5xf32>
    %584 = arith.addf %535, %583 : vector<2x1x5xf32>
    %cst_204 = arith.constant dense<0xFF800000> : vector<2x1xf32>
    %585 = vector.multi_reduction <maximumf>, %584, %cst_204 [2] : vector<2x1x5xf32> to vector<2x1xf32>
    %586 = vector.shape_cast %585 : vector<2x1xf32> to vector<2x1x1xf32>
    %587 = vector.broadcast %586 : vector<2x1x1xf32> to vector<2x1x5xf32>
    %588 = arith.subf %584, %587 : vector<2x1x5xf32>
    %589 = math.exp %588 : vector<2x1x5xf32>
    %cst_205 = arith.constant dense<0.000000e+00> : vector<2x1xf32>
    %590 = vector.multi_reduction <add>, %589, %cst_205 [2] : vector<2x1x5xf32> to vector<2x1xf32>
    %591 = vector.shape_cast %590 : vector<2x1xf32> to vector<2x1x1xf32>
    %592 = math.log %591 : vector<2x1x1xf32>
    %593 = arith.addf %586, %592 : vector<2x1x1xf32>
    %c2_i32_206 = arith.constant 2 : i32
    %594 = vector.broadcast %c2_i32_206 : i32 to vector<1x1x5xi32>
    %595 = arith.cmpi eq, %420, %594 : vector<1x1x5xi32>
    %cst_207 = arith.constant 0.000000e+00 : f32
    %596 = vector.shape_cast %595 : vector<1x1x5xi1> to vector<1x1x5xi1>
    %597 = vector.broadcast %596 : vector<1x1x5xi1> to vector<2x1x5xi1>
    %598 = vector.shape_cast %593 : vector<2x1x1xf32> to vector<2x1x1xf32>
    %599 = vector.broadcast %598 : vector<2x1x1xf32> to vector<2x1x5xf32>
    %600 = vector.broadcast %cst_207 : f32 to vector<2x1x5xf32>
    %601 = arith.select %597, %599, %600 : vector<2x1x5xi1>, vector<2x1x5xf32>
    %602 = arith.addf %580, %601 : vector<2x1x5xf32>
    %603 = vector.extract_strided_slice %417 {offsets = [3, 0], sizes = [1, 5], strides = [1, 1]} : vector<5x5xf32> to vector<1x5xf32>
    %604 = vector.shape_cast %603 : vector<1x5xf32> to vector<1x1x5xf32>
    %605 = vector.broadcast %604 : vector<1x1x5xf32> to vector<2x1x5xf32>
    %606 = arith.addf %535, %605 : vector<2x1x5xf32>
    %cst_208 = arith.constant dense<0xFF800000> : vector<2x1xf32>
    %607 = vector.multi_reduction <maximumf>, %606, %cst_208 [2] : vector<2x1x5xf32> to vector<2x1xf32>
    %608 = vector.shape_cast %607 : vector<2x1xf32> to vector<2x1x1xf32>
    %609 = vector.broadcast %608 : vector<2x1x1xf32> to vector<2x1x5xf32>
    %610 = arith.subf %606, %609 : vector<2x1x5xf32>
    %611 = math.exp %610 : vector<2x1x5xf32>
    %cst_209 = arith.constant dense<0.000000e+00> : vector<2x1xf32>
    %612 = vector.multi_reduction <add>, %611, %cst_209 [2] : vector<2x1x5xf32> to vector<2x1xf32>
    %613 = vector.shape_cast %612 : vector<2x1xf32> to vector<2x1x1xf32>
    %614 = math.log %613 : vector<2x1x1xf32>
    %615 = arith.addf %608, %614 : vector<2x1x1xf32>
    %c3_i32_210 = arith.constant 3 : i32
    %616 = vector.broadcast %c3_i32_210 : i32 to vector<1x1x5xi32>
    %617 = arith.cmpi eq, %420, %616 : vector<1x1x5xi32>
    %cst_211 = arith.constant 0.000000e+00 : f32
    %618 = vector.shape_cast %617 : vector<1x1x5xi1> to vector<1x1x5xi1>
    %619 = vector.broadcast %618 : vector<1x1x5xi1> to vector<2x1x5xi1>
    %620 = vector.shape_cast %615 : vector<2x1x1xf32> to vector<2x1x1xf32>
    %621 = vector.broadcast %620 : vector<2x1x1xf32> to vector<2x1x5xf32>
    %622 = vector.broadcast %cst_211 : f32 to vector<2x1x5xf32>
    %623 = arith.select %619, %621, %622 : vector<2x1x5xi1>, vector<2x1x5xf32>
    %624 = arith.addf %602, %623 : vector<2x1x5xf32>
    %625 = vector.extract_strided_slice %417 {offsets = [4, 0], sizes = [1, 5], strides = [1, 1]} : vector<5x5xf32> to vector<1x5xf32>
    %626 = vector.shape_cast %625 : vector<1x5xf32> to vector<1x1x5xf32>
    %627 = vector.broadcast %626 : vector<1x1x5xf32> to vector<2x1x5xf32>
    %628 = arith.addf %535, %627 : vector<2x1x5xf32>
    %cst_212 = arith.constant dense<0xFF800000> : vector<2x1xf32>
    %629 = vector.multi_reduction <maximumf>, %628, %cst_212 [2] : vector<2x1x5xf32> to vector<2x1xf32>
    %630 = vector.shape_cast %629 : vector<2x1xf32> to vector<2x1x1xf32>
    %631 = vector.broadcast %630 : vector<2x1x1xf32> to vector<2x1x5xf32>
    %632 = arith.subf %628, %631 : vector<2x1x5xf32>
    %633 = math.exp %632 : vector<2x1x5xf32>
    %cst_213 = arith.constant dense<0.000000e+00> : vector<2x1xf32>
    %634 = vector.multi_reduction <add>, %633, %cst_213 [2] : vector<2x1x5xf32> to vector<2x1xf32>
    %635 = vector.shape_cast %634 : vector<2x1xf32> to vector<2x1x1xf32>
    %636 = math.log %635 : vector<2x1x1xf32>
    %637 = arith.addf %630, %636 : vector<2x1x1xf32>
    %c4_i32_214 = arith.constant 4 : i32
    %638 = vector.broadcast %c4_i32_214 : i32 to vector<1x1x5xi32>
    %639 = arith.cmpi eq, %420, %638 : vector<1x1x5xi32>
    %cst_215 = arith.constant 0.000000e+00 : f32
    %640 = vector.shape_cast %639 : vector<1x1x5xi1> to vector<1x1x5xi1>
    %641 = vector.broadcast %640 : vector<1x1x5xi1> to vector<2x1x5xi1>
    %642 = vector.shape_cast %637 : vector<2x1x1xf32> to vector<2x1x1xf32>
    %643 = vector.broadcast %642 : vector<2x1x1xf32> to vector<2x1x5xf32>
    %644 = vector.broadcast %cst_215 : f32 to vector<2x1x5xf32>
    %645 = arith.select %641, %643, %644 : vector<2x1x5xi1>, vector<2x1x5xf32>
    %646 = arith.addf %624, %645 : vector<2x1x5xf32>
    %647 = vector.extract_strided_slice %415 {offsets = [0, 3, 0], sizes = [2, 1, 5], strides = [1, 1, 1]} : vector<2x8x5xf32> to vector<2x1x5xf32>
    %648 = vector.extract_strided_slice %417 {offsets = [0, 0], sizes = [1, 5], strides = [1, 1]} : vector<5x5xf32> to vector<1x5xf32>
    %649 = vector.shape_cast %648 : vector<1x5xf32> to vector<1x1x5xf32>
    %650 = vector.broadcast %649 : vector<1x1x5xf32> to vector<2x1x5xf32>
    %651 = arith.addf %646, %650 : vector<2x1x5xf32>
    %cst_216 = arith.constant dense<0xFF800000> : vector<2x1xf32>
    %652 = vector.multi_reduction <maximumf>, %651, %cst_216 [2] : vector<2x1x5xf32> to vector<2x1xf32>
    %653 = vector.shape_cast %652 : vector<2x1xf32> to vector<2x1x1xf32>
    %654 = vector.broadcast %653 : vector<2x1x1xf32> to vector<2x1x5xf32>
    %655 = arith.subf %651, %654 : vector<2x1x5xf32>
    %656 = math.exp %655 : vector<2x1x5xf32>
    %cst_217 = arith.constant dense<0.000000e+00> : vector<2x1xf32>
    %657 = vector.multi_reduction <add>, %656, %cst_217 [2] : vector<2x1x5xf32> to vector<2x1xf32>
    %658 = vector.shape_cast %657 : vector<2x1xf32> to vector<2x1x1xf32>
    %659 = math.log %658 : vector<2x1x1xf32>
    %660 = arith.addf %653, %659 : vector<2x1x1xf32>
    %c0_i32_218 = arith.constant 0 : i32
    %661 = vector.broadcast %c0_i32_218 : i32 to vector<1x1x5xi32>
    %662 = arith.cmpi eq, %420, %661 : vector<1x1x5xi32>
    %cst_219 = arith.constant 0.000000e+00 : f32
    %663 = vector.shape_cast %662 : vector<1x1x5xi1> to vector<1x1x5xi1>
    %664 = vector.broadcast %663 : vector<1x1x5xi1> to vector<2x1x5xi1>
    %665 = vector.shape_cast %660 : vector<2x1x1xf32> to vector<2x1x1xf32>
    %666 = vector.broadcast %665 : vector<2x1x1xf32> to vector<2x1x5xf32>
    %667 = vector.broadcast %cst_219 : f32 to vector<2x1x5xf32>
    %668 = arith.select %664, %666, %667 : vector<2x1x5xi1>, vector<2x1x5xf32>
    %669 = arith.addf %647, %668 : vector<2x1x5xf32>
    %670 = vector.extract_strided_slice %417 {offsets = [1, 0], sizes = [1, 5], strides = [1, 1]} : vector<5x5xf32> to vector<1x5xf32>
    %671 = vector.shape_cast %670 : vector<1x5xf32> to vector<1x1x5xf32>
    %672 = vector.broadcast %671 : vector<1x1x5xf32> to vector<2x1x5xf32>
    %673 = arith.addf %646, %672 : vector<2x1x5xf32>
    %cst_220 = arith.constant dense<0xFF800000> : vector<2x1xf32>
    %674 = vector.multi_reduction <maximumf>, %673, %cst_220 [2] : vector<2x1x5xf32> to vector<2x1xf32>
    %675 = vector.shape_cast %674 : vector<2x1xf32> to vector<2x1x1xf32>
    %676 = vector.broadcast %675 : vector<2x1x1xf32> to vector<2x1x5xf32>
    %677 = arith.subf %673, %676 : vector<2x1x5xf32>
    %678 = math.exp %677 : vector<2x1x5xf32>
    %cst_221 = arith.constant dense<0.000000e+00> : vector<2x1xf32>
    %679 = vector.multi_reduction <add>, %678, %cst_221 [2] : vector<2x1x5xf32> to vector<2x1xf32>
    %680 = vector.shape_cast %679 : vector<2x1xf32> to vector<2x1x1xf32>
    %681 = math.log %680 : vector<2x1x1xf32>
    %682 = arith.addf %675, %681 : vector<2x1x1xf32>
    %c1_i32_222 = arith.constant 1 : i32
    %683 = vector.broadcast %c1_i32_222 : i32 to vector<1x1x5xi32>
    %684 = arith.cmpi eq, %420, %683 : vector<1x1x5xi32>
    %cst_223 = arith.constant 0.000000e+00 : f32
    %685 = vector.shape_cast %684 : vector<1x1x5xi1> to vector<1x1x5xi1>
    %686 = vector.broadcast %685 : vector<1x1x5xi1> to vector<2x1x5xi1>
    %687 = vector.shape_cast %682 : vector<2x1x1xf32> to vector<2x1x1xf32>
    %688 = vector.broadcast %687 : vector<2x1x1xf32> to vector<2x1x5xf32>
    %689 = vector.broadcast %cst_223 : f32 to vector<2x1x5xf32>
    %690 = arith.select %686, %688, %689 : vector<2x1x5xi1>, vector<2x1x5xf32>
    %691 = arith.addf %669, %690 : vector<2x1x5xf32>
    %692 = vector.extract_strided_slice %417 {offsets = [2, 0], sizes = [1, 5], strides = [1, 1]} : vector<5x5xf32> to vector<1x5xf32>
    %693 = vector.shape_cast %692 : vector<1x5xf32> to vector<1x1x5xf32>
    %694 = vector.broadcast %693 : vector<1x1x5xf32> to vector<2x1x5xf32>
    %695 = arith.addf %646, %694 : vector<2x1x5xf32>
    %cst_224 = arith.constant dense<0xFF800000> : vector<2x1xf32>
    %696 = vector.multi_reduction <maximumf>, %695, %cst_224 [2] : vector<2x1x5xf32> to vector<2x1xf32>
    %697 = vector.shape_cast %696 : vector<2x1xf32> to vector<2x1x1xf32>
    %698 = vector.broadcast %697 : vector<2x1x1xf32> to vector<2x1x5xf32>
    %699 = arith.subf %695, %698 : vector<2x1x5xf32>
    %700 = math.exp %699 : vector<2x1x5xf32>
    %cst_225 = arith.constant dense<0.000000e+00> : vector<2x1xf32>
    %701 = vector.multi_reduction <add>, %700, %cst_225 [2] : vector<2x1x5xf32> to vector<2x1xf32>
    %702 = vector.shape_cast %701 : vector<2x1xf32> to vector<2x1x1xf32>
    %703 = math.log %702 : vector<2x1x1xf32>
    %704 = arith.addf %697, %703 : vector<2x1x1xf32>
    %c2_i32_226 = arith.constant 2 : i32
    %705 = vector.broadcast %c2_i32_226 : i32 to vector<1x1x5xi32>
    %706 = arith.cmpi eq, %420, %705 : vector<1x1x5xi32>
    %cst_227 = arith.constant 0.000000e+00 : f32
    %707 = vector.shape_cast %706 : vector<1x1x5xi1> to vector<1x1x5xi1>
    %708 = vector.broadcast %707 : vector<1x1x5xi1> to vector<2x1x5xi1>
    %709 = vector.shape_cast %704 : vector<2x1x1xf32> to vector<2x1x1xf32>
    %710 = vector.broadcast %709 : vector<2x1x1xf32> to vector<2x1x5xf32>
    %711 = vector.broadcast %cst_227 : f32 to vector<2x1x5xf32>
    %712 = arith.select %708, %710, %711 : vector<2x1x5xi1>, vector<2x1x5xf32>
    %713 = arith.addf %691, %712 : vector<2x1x5xf32>
    %714 = vector.extract_strided_slice %417 {offsets = [3, 0], sizes = [1, 5], strides = [1, 1]} : vector<5x5xf32> to vector<1x5xf32>
    %715 = vector.shape_cast %714 : vector<1x5xf32> to vector<1x1x5xf32>
    %716 = vector.broadcast %715 : vector<1x1x5xf32> to vector<2x1x5xf32>
    %717 = arith.addf %646, %716 : vector<2x1x5xf32>
    %cst_228 = arith.constant dense<0xFF800000> : vector<2x1xf32>
    %718 = vector.multi_reduction <maximumf>, %717, %cst_228 [2] : vector<2x1x5xf32> to vector<2x1xf32>
    %719 = vector.shape_cast %718 : vector<2x1xf32> to vector<2x1x1xf32>
    %720 = vector.broadcast %719 : vector<2x1x1xf32> to vector<2x1x5xf32>
    %721 = arith.subf %717, %720 : vector<2x1x5xf32>
    %722 = math.exp %721 : vector<2x1x5xf32>
    %cst_229 = arith.constant dense<0.000000e+00> : vector<2x1xf32>
    %723 = vector.multi_reduction <add>, %722, %cst_229 [2] : vector<2x1x5xf32> to vector<2x1xf32>
    %724 = vector.shape_cast %723 : vector<2x1xf32> to vector<2x1x1xf32>
    %725 = math.log %724 : vector<2x1x1xf32>
    %726 = arith.addf %719, %725 : vector<2x1x1xf32>
    %c3_i32_230 = arith.constant 3 : i32
    %727 = vector.broadcast %c3_i32_230 : i32 to vector<1x1x5xi32>
    %728 = arith.cmpi eq, %420, %727 : vector<1x1x5xi32>
    %cst_231 = arith.constant 0.000000e+00 : f32
    %729 = vector.shape_cast %728 : vector<1x1x5xi1> to vector<1x1x5xi1>
    %730 = vector.broadcast %729 : vector<1x1x5xi1> to vector<2x1x5xi1>
    %731 = vector.shape_cast %726 : vector<2x1x1xf32> to vector<2x1x1xf32>
    %732 = vector.broadcast %731 : vector<2x1x1xf32> to vector<2x1x5xf32>
    %733 = vector.broadcast %cst_231 : f32 to vector<2x1x5xf32>
    %734 = arith.select %730, %732, %733 : vector<2x1x5xi1>, vector<2x1x5xf32>
    %735 = arith.addf %713, %734 : vector<2x1x5xf32>
    %736 = vector.extract_strided_slice %417 {offsets = [4, 0], sizes = [1, 5], strides = [1, 1]} : vector<5x5xf32> to vector<1x5xf32>
    %737 = vector.shape_cast %736 : vector<1x5xf32> to vector<1x1x5xf32>
    %738 = vector.broadcast %737 : vector<1x1x5xf32> to vector<2x1x5xf32>
    %739 = arith.addf %646, %738 : vector<2x1x5xf32>
    %cst_232 = arith.constant dense<0xFF800000> : vector<2x1xf32>
    %740 = vector.multi_reduction <maximumf>, %739, %cst_232 [2] : vector<2x1x5xf32> to vector<2x1xf32>
    %741 = vector.shape_cast %740 : vector<2x1xf32> to vector<2x1x1xf32>
    %742 = vector.broadcast %741 : vector<2x1x1xf32> to vector<2x1x5xf32>
    %743 = arith.subf %739, %742 : vector<2x1x5xf32>
    %744 = math.exp %743 : vector<2x1x5xf32>
    %cst_233 = arith.constant dense<0.000000e+00> : vector<2x1xf32>
    %745 = vector.multi_reduction <add>, %744, %cst_233 [2] : vector<2x1x5xf32> to vector<2x1xf32>
    %746 = vector.shape_cast %745 : vector<2x1xf32> to vector<2x1x1xf32>
    %747 = math.log %746 : vector<2x1x1xf32>
    %748 = arith.addf %741, %747 : vector<2x1x1xf32>
    %c4_i32_234 = arith.constant 4 : i32
    %749 = vector.broadcast %c4_i32_234 : i32 to vector<1x1x5xi32>
    %750 = arith.cmpi eq, %420, %749 : vector<1x1x5xi32>
    %cst_235 = arith.constant 0.000000e+00 : f32
    %751 = vector.shape_cast %750 : vector<1x1x5xi1> to vector<1x1x5xi1>
    %752 = vector.broadcast %751 : vector<1x1x5xi1> to vector<2x1x5xi1>
    %753 = vector.shape_cast %748 : vector<2x1x1xf32> to vector<2x1x1xf32>
    %754 = vector.broadcast %753 : vector<2x1x1xf32> to vector<2x1x5xf32>
    %755 = vector.broadcast %cst_235 : f32 to vector<2x1x5xf32>
    %756 = arith.select %752, %754, %755 : vector<2x1x5xi1>, vector<2x1x5xf32>
    %757 = arith.addf %735, %756 : vector<2x1x5xf32>
    %758 = vector.extract_strided_slice %415 {offsets = [0, 4, 0], sizes = [2, 1, 5], strides = [1, 1, 1]} : vector<2x8x5xf32> to vector<2x1x5xf32>
    %759 = vector.extract_strided_slice %417 {offsets = [0, 0], sizes = [1, 5], strides = [1, 1]} : vector<5x5xf32> to vector<1x5xf32>
    %760 = vector.shape_cast %759 : vector<1x5xf32> to vector<1x1x5xf32>
    %761 = vector.broadcast %760 : vector<1x1x5xf32> to vector<2x1x5xf32>
    %762 = arith.addf %757, %761 : vector<2x1x5xf32>
    %cst_236 = arith.constant dense<0xFF800000> : vector<2x1xf32>
    %763 = vector.multi_reduction <maximumf>, %762, %cst_236 [2] : vector<2x1x5xf32> to vector<2x1xf32>
    %764 = vector.shape_cast %763 : vector<2x1xf32> to vector<2x1x1xf32>
    %765 = vector.broadcast %764 : vector<2x1x1xf32> to vector<2x1x5xf32>
    %766 = arith.subf %762, %765 : vector<2x1x5xf32>
    %767 = math.exp %766 : vector<2x1x5xf32>
    %cst_237 = arith.constant dense<0.000000e+00> : vector<2x1xf32>
    %768 = vector.multi_reduction <add>, %767, %cst_237 [2] : vector<2x1x5xf32> to vector<2x1xf32>
    %769 = vector.shape_cast %768 : vector<2x1xf32> to vector<2x1x1xf32>
    %770 = math.log %769 : vector<2x1x1xf32>
    %771 = arith.addf %764, %770 : vector<2x1x1xf32>
    %c0_i32_238 = arith.constant 0 : i32
    %772 = vector.broadcast %c0_i32_238 : i32 to vector<1x1x5xi32>
    %773 = arith.cmpi eq, %420, %772 : vector<1x1x5xi32>
    %cst_239 = arith.constant 0.000000e+00 : f32
    %774 = vector.shape_cast %773 : vector<1x1x5xi1> to vector<1x1x5xi1>
    %775 = vector.broadcast %774 : vector<1x1x5xi1> to vector<2x1x5xi1>
    %776 = vector.shape_cast %771 : vector<2x1x1xf32> to vector<2x1x1xf32>
    %777 = vector.broadcast %776 : vector<2x1x1xf32> to vector<2x1x5xf32>
    %778 = vector.broadcast %cst_239 : f32 to vector<2x1x5xf32>
    %779 = arith.select %775, %777, %778 : vector<2x1x5xi1>, vector<2x1x5xf32>
    %780 = arith.addf %758, %779 : vector<2x1x5xf32>
    %781 = vector.extract_strided_slice %417 {offsets = [1, 0], sizes = [1, 5], strides = [1, 1]} : vector<5x5xf32> to vector<1x5xf32>
    %782 = vector.shape_cast %781 : vector<1x5xf32> to vector<1x1x5xf32>
    %783 = vector.broadcast %782 : vector<1x1x5xf32> to vector<2x1x5xf32>
    %784 = arith.addf %757, %783 : vector<2x1x5xf32>
    %cst_240 = arith.constant dense<0xFF800000> : vector<2x1xf32>
    %785 = vector.multi_reduction <maximumf>, %784, %cst_240 [2] : vector<2x1x5xf32> to vector<2x1xf32>
    %786 = vector.shape_cast %785 : vector<2x1xf32> to vector<2x1x1xf32>
    %787 = vector.broadcast %786 : vector<2x1x1xf32> to vector<2x1x5xf32>
    %788 = arith.subf %784, %787 : vector<2x1x5xf32>
    %789 = math.exp %788 : vector<2x1x5xf32>
    %cst_241 = arith.constant dense<0.000000e+00> : vector<2x1xf32>
    %790 = vector.multi_reduction <add>, %789, %cst_241 [2] : vector<2x1x5xf32> to vector<2x1xf32>
    %791 = vector.shape_cast %790 : vector<2x1xf32> to vector<2x1x1xf32>
    %792 = math.log %791 : vector<2x1x1xf32>
    %793 = arith.addf %786, %792 : vector<2x1x1xf32>
    %c1_i32_242 = arith.constant 1 : i32
    %794 = vector.broadcast %c1_i32_242 : i32 to vector<1x1x5xi32>
    %795 = arith.cmpi eq, %420, %794 : vector<1x1x5xi32>
    %cst_243 = arith.constant 0.000000e+00 : f32
    %796 = vector.shape_cast %795 : vector<1x1x5xi1> to vector<1x1x5xi1>
    %797 = vector.broadcast %796 : vector<1x1x5xi1> to vector<2x1x5xi1>
    %798 = vector.shape_cast %793 : vector<2x1x1xf32> to vector<2x1x1xf32>
    %799 = vector.broadcast %798 : vector<2x1x1xf32> to vector<2x1x5xf32>
    %800 = vector.broadcast %cst_243 : f32 to vector<2x1x5xf32>
    %801 = arith.select %797, %799, %800 : vector<2x1x5xi1>, vector<2x1x5xf32>
    %802 = arith.addf %780, %801 : vector<2x1x5xf32>
    %803 = vector.extract_strided_slice %417 {offsets = [2, 0], sizes = [1, 5], strides = [1, 1]} : vector<5x5xf32> to vector<1x5xf32>
    %804 = vector.shape_cast %803 : vector<1x5xf32> to vector<1x1x5xf32>
    %805 = vector.broadcast %804 : vector<1x1x5xf32> to vector<2x1x5xf32>
    %806 = arith.addf %757, %805 : vector<2x1x5xf32>
    %cst_244 = arith.constant dense<0xFF800000> : vector<2x1xf32>
    %807 = vector.multi_reduction <maximumf>, %806, %cst_244 [2] : vector<2x1x5xf32> to vector<2x1xf32>
    %808 = vector.shape_cast %807 : vector<2x1xf32> to vector<2x1x1xf32>
    %809 = vector.broadcast %808 : vector<2x1x1xf32> to vector<2x1x5xf32>
    %810 = arith.subf %806, %809 : vector<2x1x5xf32>
    %811 = math.exp %810 : vector<2x1x5xf32>
    %cst_245 = arith.constant dense<0.000000e+00> : vector<2x1xf32>
    %812 = vector.multi_reduction <add>, %811, %cst_245 [2] : vector<2x1x5xf32> to vector<2x1xf32>
    %813 = vector.shape_cast %812 : vector<2x1xf32> to vector<2x1x1xf32>
    %814 = math.log %813 : vector<2x1x1xf32>
    %815 = arith.addf %808, %814 : vector<2x1x1xf32>
    %c2_i32_246 = arith.constant 2 : i32
    %816 = vector.broadcast %c2_i32_246 : i32 to vector<1x1x5xi32>
    %817 = arith.cmpi eq, %420, %816 : vector<1x1x5xi32>
    %cst_247 = arith.constant 0.000000e+00 : f32
    %818 = vector.shape_cast %817 : vector<1x1x5xi1> to vector<1x1x5xi1>
    %819 = vector.broadcast %818 : vector<1x1x5xi1> to vector<2x1x5xi1>
    %820 = vector.shape_cast %815 : vector<2x1x1xf32> to vector<2x1x1xf32>
    %821 = vector.broadcast %820 : vector<2x1x1xf32> to vector<2x1x5xf32>
    %822 = vector.broadcast %cst_247 : f32 to vector<2x1x5xf32>
    %823 = arith.select %819, %821, %822 : vector<2x1x5xi1>, vector<2x1x5xf32>
    %824 = arith.addf %802, %823 : vector<2x1x5xf32>
    %825 = vector.extract_strided_slice %417 {offsets = [3, 0], sizes = [1, 5], strides = [1, 1]} : vector<5x5xf32> to vector<1x5xf32>
    %826 = vector.shape_cast %825 : vector<1x5xf32> to vector<1x1x5xf32>
    %827 = vector.broadcast %826 : vector<1x1x5xf32> to vector<2x1x5xf32>
    %828 = arith.addf %757, %827 : vector<2x1x5xf32>
    %cst_248 = arith.constant dense<0xFF800000> : vector<2x1xf32>
    %829 = vector.multi_reduction <maximumf>, %828, %cst_248 [2] : vector<2x1x5xf32> to vector<2x1xf32>
    %830 = vector.shape_cast %829 : vector<2x1xf32> to vector<2x1x1xf32>
    %831 = vector.broadcast %830 : vector<2x1x1xf32> to vector<2x1x5xf32>
    %832 = arith.subf %828, %831 : vector<2x1x5xf32>
    %833 = math.exp %832 : vector<2x1x5xf32>
    %cst_249 = arith.constant dense<0.000000e+00> : vector<2x1xf32>
    %834 = vector.multi_reduction <add>, %833, %cst_249 [2] : vector<2x1x5xf32> to vector<2x1xf32>
    %835 = vector.shape_cast %834 : vector<2x1xf32> to vector<2x1x1xf32>
    %836 = math.log %835 : vector<2x1x1xf32>
    %837 = arith.addf %830, %836 : vector<2x1x1xf32>
    %c3_i32_250 = arith.constant 3 : i32
    %838 = vector.broadcast %c3_i32_250 : i32 to vector<1x1x5xi32>
    %839 = arith.cmpi eq, %420, %838 : vector<1x1x5xi32>
    %cst_251 = arith.constant 0.000000e+00 : f32
    %840 = vector.shape_cast %839 : vector<1x1x5xi1> to vector<1x1x5xi1>
    %841 = vector.broadcast %840 : vector<1x1x5xi1> to vector<2x1x5xi1>
    %842 = vector.shape_cast %837 : vector<2x1x1xf32> to vector<2x1x1xf32>
    %843 = vector.broadcast %842 : vector<2x1x1xf32> to vector<2x1x5xf32>
    %844 = vector.broadcast %cst_251 : f32 to vector<2x1x5xf32>
    %845 = arith.select %841, %843, %844 : vector<2x1x5xi1>, vector<2x1x5xf32>
    %846 = arith.addf %824, %845 : vector<2x1x5xf32>
    %847 = vector.extract_strided_slice %417 {offsets = [4, 0], sizes = [1, 5], strides = [1, 1]} : vector<5x5xf32> to vector<1x5xf32>
    %848 = vector.shape_cast %847 : vector<1x5xf32> to vector<1x1x5xf32>
    %849 = vector.broadcast %848 : vector<1x1x5xf32> to vector<2x1x5xf32>
    %850 = arith.addf %757, %849 : vector<2x1x5xf32>
    %cst_252 = arith.constant dense<0xFF800000> : vector<2x1xf32>
    %851 = vector.multi_reduction <maximumf>, %850, %cst_252 [2] : vector<2x1x5xf32> to vector<2x1xf32>
    %852 = vector.shape_cast %851 : vector<2x1xf32> to vector<2x1x1xf32>
    %853 = vector.broadcast %852 : vector<2x1x1xf32> to vector<2x1x5xf32>
    %854 = arith.subf %850, %853 : vector<2x1x5xf32>
    %855 = math.exp %854 : vector<2x1x5xf32>
    %cst_253 = arith.constant dense<0.000000e+00> : vector<2x1xf32>
    %856 = vector.multi_reduction <add>, %855, %cst_253 [2] : vector<2x1x5xf32> to vector<2x1xf32>
    %857 = vector.shape_cast %856 : vector<2x1xf32> to vector<2x1x1xf32>
    %858 = math.log %857 : vector<2x1x1xf32>
    %859 = arith.addf %852, %858 : vector<2x1x1xf32>
    %c4_i32_254 = arith.constant 4 : i32
    %860 = vector.broadcast %c4_i32_254 : i32 to vector<1x1x5xi32>
    %861 = arith.cmpi eq, %420, %860 : vector<1x1x5xi32>
    %cst_255 = arith.constant 0.000000e+00 : f32
    %862 = vector.shape_cast %861 : vector<1x1x5xi1> to vector<1x1x5xi1>
    %863 = vector.broadcast %862 : vector<1x1x5xi1> to vector<2x1x5xi1>
    %864 = vector.shape_cast %859 : vector<2x1x1xf32> to vector<2x1x1xf32>
    %865 = vector.broadcast %864 : vector<2x1x1xf32> to vector<2x1x5xf32>
    %866 = vector.broadcast %cst_255 : f32 to vector<2x1x5xf32>
    %867 = arith.select %863, %865, %866 : vector<2x1x5xi1>, vector<2x1x5xf32>
    %868 = arith.addf %846, %867 : vector<2x1x5xf32>
    %869 = vector.extract_strided_slice %415 {offsets = [0, 5, 0], sizes = [2, 1, 5], strides = [1, 1, 1]} : vector<2x8x5xf32> to vector<2x1x5xf32>
    %870 = vector.extract_strided_slice %417 {offsets = [0, 0], sizes = [1, 5], strides = [1, 1]} : vector<5x5xf32> to vector<1x5xf32>
    %871 = vector.shape_cast %870 : vector<1x5xf32> to vector<1x1x5xf32>
    %872 = vector.broadcast %871 : vector<1x1x5xf32> to vector<2x1x5xf32>
    %873 = arith.addf %868, %872 : vector<2x1x5xf32>
    %cst_256 = arith.constant dense<0xFF800000> : vector<2x1xf32>
    %874 = vector.multi_reduction <maximumf>, %873, %cst_256 [2] : vector<2x1x5xf32> to vector<2x1xf32>
    %875 = vector.shape_cast %874 : vector<2x1xf32> to vector<2x1x1xf32>
    %876 = vector.broadcast %875 : vector<2x1x1xf32> to vector<2x1x5xf32>
    %877 = arith.subf %873, %876 : vector<2x1x5xf32>
    %878 = math.exp %877 : vector<2x1x5xf32>
    %cst_257 = arith.constant dense<0.000000e+00> : vector<2x1xf32>
    %879 = vector.multi_reduction <add>, %878, %cst_257 [2] : vector<2x1x5xf32> to vector<2x1xf32>
    %880 = vector.shape_cast %879 : vector<2x1xf32> to vector<2x1x1xf32>
    %881 = math.log %880 : vector<2x1x1xf32>
    %882 = arith.addf %875, %881 : vector<2x1x1xf32>
    %c0_i32_258 = arith.constant 0 : i32
    %883 = vector.broadcast %c0_i32_258 : i32 to vector<1x1x5xi32>
    %884 = arith.cmpi eq, %420, %883 : vector<1x1x5xi32>
    %cst_259 = arith.constant 0.000000e+00 : f32
    %885 = vector.shape_cast %884 : vector<1x1x5xi1> to vector<1x1x5xi1>
    %886 = vector.broadcast %885 : vector<1x1x5xi1> to vector<2x1x5xi1>
    %887 = vector.shape_cast %882 : vector<2x1x1xf32> to vector<2x1x1xf32>
    %888 = vector.broadcast %887 : vector<2x1x1xf32> to vector<2x1x5xf32>
    %889 = vector.broadcast %cst_259 : f32 to vector<2x1x5xf32>
    %890 = arith.select %886, %888, %889 : vector<2x1x5xi1>, vector<2x1x5xf32>
    %891 = arith.addf %869, %890 : vector<2x1x5xf32>
    %892 = vector.extract_strided_slice %417 {offsets = [1, 0], sizes = [1, 5], strides = [1, 1]} : vector<5x5xf32> to vector<1x5xf32>
    %893 = vector.shape_cast %892 : vector<1x5xf32> to vector<1x1x5xf32>
    %894 = vector.broadcast %893 : vector<1x1x5xf32> to vector<2x1x5xf32>
    %895 = arith.addf %868, %894 : vector<2x1x5xf32>
    %cst_260 = arith.constant dense<0xFF800000> : vector<2x1xf32>
    %896 = vector.multi_reduction <maximumf>, %895, %cst_260 [2] : vector<2x1x5xf32> to vector<2x1xf32>
    %897 = vector.shape_cast %896 : vector<2x1xf32> to vector<2x1x1xf32>
    %898 = vector.broadcast %897 : vector<2x1x1xf32> to vector<2x1x5xf32>
    %899 = arith.subf %895, %898 : vector<2x1x5xf32>
    %900 = math.exp %899 : vector<2x1x5xf32>
    %cst_261 = arith.constant dense<0.000000e+00> : vector<2x1xf32>
    %901 = vector.multi_reduction <add>, %900, %cst_261 [2] : vector<2x1x5xf32> to vector<2x1xf32>
    %902 = vector.shape_cast %901 : vector<2x1xf32> to vector<2x1x1xf32>
    %903 = math.log %902 : vector<2x1x1xf32>
    %904 = arith.addf %897, %903 : vector<2x1x1xf32>
    %c1_i32_262 = arith.constant 1 : i32
    %905 = vector.broadcast %c1_i32_262 : i32 to vector<1x1x5xi32>
    %906 = arith.cmpi eq, %420, %905 : vector<1x1x5xi32>
    %cst_263 = arith.constant 0.000000e+00 : f32
    %907 = vector.shape_cast %906 : vector<1x1x5xi1> to vector<1x1x5xi1>
    %908 = vector.broadcast %907 : vector<1x1x5xi1> to vector<2x1x5xi1>
    %909 = vector.shape_cast %904 : vector<2x1x1xf32> to vector<2x1x1xf32>
    %910 = vector.broadcast %909 : vector<2x1x1xf32> to vector<2x1x5xf32>
    %911 = vector.broadcast %cst_263 : f32 to vector<2x1x5xf32>
    %912 = arith.select %908, %910, %911 : vector<2x1x5xi1>, vector<2x1x5xf32>
    %913 = arith.addf %891, %912 : vector<2x1x5xf32>
    %914 = vector.extract_strided_slice %417 {offsets = [2, 0], sizes = [1, 5], strides = [1, 1]} : vector<5x5xf32> to vector<1x5xf32>
    %915 = vector.shape_cast %914 : vector<1x5xf32> to vector<1x1x5xf32>
    %916 = vector.broadcast %915 : vector<1x1x5xf32> to vector<2x1x5xf32>
    %917 = arith.addf %868, %916 : vector<2x1x5xf32>
    %cst_264 = arith.constant dense<0xFF800000> : vector<2x1xf32>
    %918 = vector.multi_reduction <maximumf>, %917, %cst_264 [2] : vector<2x1x5xf32> to vector<2x1xf32>
    %919 = vector.shape_cast %918 : vector<2x1xf32> to vector<2x1x1xf32>
    %920 = vector.broadcast %919 : vector<2x1x1xf32> to vector<2x1x5xf32>
    %921 = arith.subf %917, %920 : vector<2x1x5xf32>
    %922 = math.exp %921 : vector<2x1x5xf32>
    %cst_265 = arith.constant dense<0.000000e+00> : vector<2x1xf32>
    %923 = vector.multi_reduction <add>, %922, %cst_265 [2] : vector<2x1x5xf32> to vector<2x1xf32>
    %924 = vector.shape_cast %923 : vector<2x1xf32> to vector<2x1x1xf32>
    %925 = math.log %924 : vector<2x1x1xf32>
    %926 = arith.addf %919, %925 : vector<2x1x1xf32>
    %c2_i32_266 = arith.constant 2 : i32
    %927 = vector.broadcast %c2_i32_266 : i32 to vector<1x1x5xi32>
    %928 = arith.cmpi eq, %420, %927 : vector<1x1x5xi32>
    %cst_267 = arith.constant 0.000000e+00 : f32
    %929 = vector.shape_cast %928 : vector<1x1x5xi1> to vector<1x1x5xi1>
    %930 = vector.broadcast %929 : vector<1x1x5xi1> to vector<2x1x5xi1>
    %931 = vector.shape_cast %926 : vector<2x1x1xf32> to vector<2x1x1xf32>
    %932 = vector.broadcast %931 : vector<2x1x1xf32> to vector<2x1x5xf32>
    %933 = vector.broadcast %cst_267 : f32 to vector<2x1x5xf32>
    %934 = arith.select %930, %932, %933 : vector<2x1x5xi1>, vector<2x1x5xf32>
    %935 = arith.addf %913, %934 : vector<2x1x5xf32>
    %936 = vector.extract_strided_slice %417 {offsets = [3, 0], sizes = [1, 5], strides = [1, 1]} : vector<5x5xf32> to vector<1x5xf32>
    %937 = vector.shape_cast %936 : vector<1x5xf32> to vector<1x1x5xf32>
    %938 = vector.broadcast %937 : vector<1x1x5xf32> to vector<2x1x5xf32>
    %939 = arith.addf %868, %938 : vector<2x1x5xf32>
    %cst_268 = arith.constant dense<0xFF800000> : vector<2x1xf32>
    %940 = vector.multi_reduction <maximumf>, %939, %cst_268 [2] : vector<2x1x5xf32> to vector<2x1xf32>
    %941 = vector.shape_cast %940 : vector<2x1xf32> to vector<2x1x1xf32>
    %942 = vector.broadcast %941 : vector<2x1x1xf32> to vector<2x1x5xf32>
    %943 = arith.subf %939, %942 : vector<2x1x5xf32>
    %944 = math.exp %943 : vector<2x1x5xf32>
    %cst_269 = arith.constant dense<0.000000e+00> : vector<2x1xf32>
    %945 = vector.multi_reduction <add>, %944, %cst_269 [2] : vector<2x1x5xf32> to vector<2x1xf32>
    %946 = vector.shape_cast %945 : vector<2x1xf32> to vector<2x1x1xf32>
    %947 = math.log %946 : vector<2x1x1xf32>
    %948 = arith.addf %941, %947 : vector<2x1x1xf32>
    %c3_i32_270 = arith.constant 3 : i32
    %949 = vector.broadcast %c3_i32_270 : i32 to vector<1x1x5xi32>
    %950 = arith.cmpi eq, %420, %949 : vector<1x1x5xi32>
    %cst_271 = arith.constant 0.000000e+00 : f32
    %951 = vector.shape_cast %950 : vector<1x1x5xi1> to vector<1x1x5xi1>
    %952 = vector.broadcast %951 : vector<1x1x5xi1> to vector<2x1x5xi1>
    %953 = vector.shape_cast %948 : vector<2x1x1xf32> to vector<2x1x1xf32>
    %954 = vector.broadcast %953 : vector<2x1x1xf32> to vector<2x1x5xf32>
    %955 = vector.broadcast %cst_271 : f32 to vector<2x1x5xf32>
    %956 = arith.select %952, %954, %955 : vector<2x1x5xi1>, vector<2x1x5xf32>
    %957 = arith.addf %935, %956 : vector<2x1x5xf32>
    %958 = vector.extract_strided_slice %417 {offsets = [4, 0], sizes = [1, 5], strides = [1, 1]} : vector<5x5xf32> to vector<1x5xf32>
    %959 = vector.shape_cast %958 : vector<1x5xf32> to vector<1x1x5xf32>
    %960 = vector.broadcast %959 : vector<1x1x5xf32> to vector<2x1x5xf32>
    %961 = arith.addf %868, %960 : vector<2x1x5xf32>
    %cst_272 = arith.constant dense<0xFF800000> : vector<2x1xf32>
    %962 = vector.multi_reduction <maximumf>, %961, %cst_272 [2] : vector<2x1x5xf32> to vector<2x1xf32>
    %963 = vector.shape_cast %962 : vector<2x1xf32> to vector<2x1x1xf32>
    %964 = vector.broadcast %963 : vector<2x1x1xf32> to vector<2x1x5xf32>
    %965 = arith.subf %961, %964 : vector<2x1x5xf32>
    %966 = math.exp %965 : vector<2x1x5xf32>
    %cst_273 = arith.constant dense<0.000000e+00> : vector<2x1xf32>
    %967 = vector.multi_reduction <add>, %966, %cst_273 [2] : vector<2x1x5xf32> to vector<2x1xf32>
    %968 = vector.shape_cast %967 : vector<2x1xf32> to vector<2x1x1xf32>
    %969 = math.log %968 : vector<2x1x1xf32>
    %970 = arith.addf %963, %969 : vector<2x1x1xf32>
    %c4_i32_274 = arith.constant 4 : i32
    %971 = vector.broadcast %c4_i32_274 : i32 to vector<1x1x5xi32>
    %972 = arith.cmpi eq, %420, %971 : vector<1x1x5xi32>
    %cst_275 = arith.constant 0.000000e+00 : f32
    %973 = vector.shape_cast %972 : vector<1x1x5xi1> to vector<1x1x5xi1>
    %974 = vector.broadcast %973 : vector<1x1x5xi1> to vector<2x1x5xi1>
    %975 = vector.shape_cast %970 : vector<2x1x1xf32> to vector<2x1x1xf32>
    %976 = vector.broadcast %975 : vector<2x1x1xf32> to vector<2x1x5xf32>
    %977 = vector.broadcast %cst_275 : f32 to vector<2x1x5xf32>
    %978 = arith.select %974, %976, %977 : vector<2x1x5xi1>, vector<2x1x5xf32>
    %979 = arith.addf %957, %978 : vector<2x1x5xf32>
    %980 = vector.extract_strided_slice %415 {offsets = [0, 6, 0], sizes = [2, 1, 5], strides = [1, 1, 1]} : vector<2x8x5xf32> to vector<2x1x5xf32>
    %981 = vector.extract_strided_slice %417 {offsets = [0, 0], sizes = [1, 5], strides = [1, 1]} : vector<5x5xf32> to vector<1x5xf32>
    %982 = vector.shape_cast %981 : vector<1x5xf32> to vector<1x1x5xf32>
    %983 = vector.broadcast %982 : vector<1x1x5xf32> to vector<2x1x5xf32>
    %984 = arith.addf %979, %983 : vector<2x1x5xf32>
    %cst_276 = arith.constant dense<0xFF800000> : vector<2x1xf32>
    %985 = vector.multi_reduction <maximumf>, %984, %cst_276 [2] : vector<2x1x5xf32> to vector<2x1xf32>
    %986 = vector.shape_cast %985 : vector<2x1xf32> to vector<2x1x1xf32>
    %987 = vector.broadcast %986 : vector<2x1x1xf32> to vector<2x1x5xf32>
    %988 = arith.subf %984, %987 : vector<2x1x5xf32>
    %989 = math.exp %988 : vector<2x1x5xf32>
    %cst_277 = arith.constant dense<0.000000e+00> : vector<2x1xf32>
    %990 = vector.multi_reduction <add>, %989, %cst_277 [2] : vector<2x1x5xf32> to vector<2x1xf32>
    %991 = vector.shape_cast %990 : vector<2x1xf32> to vector<2x1x1xf32>
    %992 = math.log %991 : vector<2x1x1xf32>
    %993 = arith.addf %986, %992 : vector<2x1x1xf32>
    %c0_i32_278 = arith.constant 0 : i32
    %994 = vector.broadcast %c0_i32_278 : i32 to vector<1x1x5xi32>
    %995 = arith.cmpi eq, %420, %994 : vector<1x1x5xi32>
    %cst_279 = arith.constant 0.000000e+00 : f32
    %996 = vector.shape_cast %995 : vector<1x1x5xi1> to vector<1x1x5xi1>
    %997 = vector.broadcast %996 : vector<1x1x5xi1> to vector<2x1x5xi1>
    %998 = vector.shape_cast %993 : vector<2x1x1xf32> to vector<2x1x1xf32>
    %999 = vector.broadcast %998 : vector<2x1x1xf32> to vector<2x1x5xf32>
    %1000 = vector.broadcast %cst_279 : f32 to vector<2x1x5xf32>
    %1001 = arith.select %997, %999, %1000 : vector<2x1x5xi1>, vector<2x1x5xf32>
    %1002 = arith.addf %980, %1001 : vector<2x1x5xf32>
    %1003 = vector.extract_strided_slice %417 {offsets = [1, 0], sizes = [1, 5], strides = [1, 1]} : vector<5x5xf32> to vector<1x5xf32>
    %1004 = vector.shape_cast %1003 : vector<1x5xf32> to vector<1x1x5xf32>
    %1005 = vector.broadcast %1004 : vector<1x1x5xf32> to vector<2x1x5xf32>
    %1006 = arith.addf %979, %1005 : vector<2x1x5xf32>
    %cst_280 = arith.constant dense<0xFF800000> : vector<2x1xf32>
    %1007 = vector.multi_reduction <maximumf>, %1006, %cst_280 [2] : vector<2x1x5xf32> to vector<2x1xf32>
    %1008 = vector.shape_cast %1007 : vector<2x1xf32> to vector<2x1x1xf32>
    %1009 = vector.broadcast %1008 : vector<2x1x1xf32> to vector<2x1x5xf32>
    %1010 = arith.subf %1006, %1009 : vector<2x1x5xf32>
    %1011 = math.exp %1010 : vector<2x1x5xf32>
    %cst_281 = arith.constant dense<0.000000e+00> : vector<2x1xf32>
    %1012 = vector.multi_reduction <add>, %1011, %cst_281 [2] : vector<2x1x5xf32> to vector<2x1xf32>
    %1013 = vector.shape_cast %1012 : vector<2x1xf32> to vector<2x1x1xf32>
    %1014 = math.log %1013 : vector<2x1x1xf32>
    %1015 = arith.addf %1008, %1014 : vector<2x1x1xf32>
    %c1_i32_282 = arith.constant 1 : i32
    %1016 = vector.broadcast %c1_i32_282 : i32 to vector<1x1x5xi32>
    %1017 = arith.cmpi eq, %420, %1016 : vector<1x1x5xi32>
    %cst_283 = arith.constant 0.000000e+00 : f32
    %1018 = vector.shape_cast %1017 : vector<1x1x5xi1> to vector<1x1x5xi1>
    %1019 = vector.broadcast %1018 : vector<1x1x5xi1> to vector<2x1x5xi1>
    %1020 = vector.shape_cast %1015 : vector<2x1x1xf32> to vector<2x1x1xf32>
    %1021 = vector.broadcast %1020 : vector<2x1x1xf32> to vector<2x1x5xf32>
    %1022 = vector.broadcast %cst_283 : f32 to vector<2x1x5xf32>
    %1023 = arith.select %1019, %1021, %1022 : vector<2x1x5xi1>, vector<2x1x5xf32>
    %1024 = arith.addf %1002, %1023 : vector<2x1x5xf32>
    %1025 = vector.extract_strided_slice %417 {offsets = [2, 0], sizes = [1, 5], strides = [1, 1]} : vector<5x5xf32> to vector<1x5xf32>
    %1026 = vector.shape_cast %1025 : vector<1x5xf32> to vector<1x1x5xf32>
    %1027 = vector.broadcast %1026 : vector<1x1x5xf32> to vector<2x1x5xf32>
    %1028 = arith.addf %979, %1027 : vector<2x1x5xf32>
    %cst_284 = arith.constant dense<0xFF800000> : vector<2x1xf32>
    %1029 = vector.multi_reduction <maximumf>, %1028, %cst_284 [2] : vector<2x1x5xf32> to vector<2x1xf32>
    %1030 = vector.shape_cast %1029 : vector<2x1xf32> to vector<2x1x1xf32>
    %1031 = vector.broadcast %1030 : vector<2x1x1xf32> to vector<2x1x5xf32>
    %1032 = arith.subf %1028, %1031 : vector<2x1x5xf32>
    %1033 = math.exp %1032 : vector<2x1x5xf32>
    %cst_285 = arith.constant dense<0.000000e+00> : vector<2x1xf32>
    %1034 = vector.multi_reduction <add>, %1033, %cst_285 [2] : vector<2x1x5xf32> to vector<2x1xf32>
    %1035 = vector.shape_cast %1034 : vector<2x1xf32> to vector<2x1x1xf32>
    %1036 = math.log %1035 : vector<2x1x1xf32>
    %1037 = arith.addf %1030, %1036 : vector<2x1x1xf32>
    %c2_i32_286 = arith.constant 2 : i32
    %1038 = vector.broadcast %c2_i32_286 : i32 to vector<1x1x5xi32>
    %1039 = arith.cmpi eq, %420, %1038 : vector<1x1x5xi32>
    %cst_287 = arith.constant 0.000000e+00 : f32
    %1040 = vector.shape_cast %1039 : vector<1x1x5xi1> to vector<1x1x5xi1>
    %1041 = vector.broadcast %1040 : vector<1x1x5xi1> to vector<2x1x5xi1>
    %1042 = vector.shape_cast %1037 : vector<2x1x1xf32> to vector<2x1x1xf32>
    %1043 = vector.broadcast %1042 : vector<2x1x1xf32> to vector<2x1x5xf32>
    %1044 = vector.broadcast %cst_287 : f32 to vector<2x1x5xf32>
    %1045 = arith.select %1041, %1043, %1044 : vector<2x1x5xi1>, vector<2x1x5xf32>
    %1046 = arith.addf %1024, %1045 : vector<2x1x5xf32>
    %1047 = vector.extract_strided_slice %417 {offsets = [3, 0], sizes = [1, 5], strides = [1, 1]} : vector<5x5xf32> to vector<1x5xf32>
    %1048 = vector.shape_cast %1047 : vector<1x5xf32> to vector<1x1x5xf32>
    %1049 = vector.broadcast %1048 : vector<1x1x5xf32> to vector<2x1x5xf32>
    %1050 = arith.addf %979, %1049 : vector<2x1x5xf32>
    %cst_288 = arith.constant dense<0xFF800000> : vector<2x1xf32>
    %1051 = vector.multi_reduction <maximumf>, %1050, %cst_288 [2] : vector<2x1x5xf32> to vector<2x1xf32>
    %1052 = vector.shape_cast %1051 : vector<2x1xf32> to vector<2x1x1xf32>
    %1053 = vector.broadcast %1052 : vector<2x1x1xf32> to vector<2x1x5xf32>
    %1054 = arith.subf %1050, %1053 : vector<2x1x5xf32>
    %1055 = math.exp %1054 : vector<2x1x5xf32>
    %cst_289 = arith.constant dense<0.000000e+00> : vector<2x1xf32>
    %1056 = vector.multi_reduction <add>, %1055, %cst_289 [2] : vector<2x1x5xf32> to vector<2x1xf32>
    %1057 = vector.shape_cast %1056 : vector<2x1xf32> to vector<2x1x1xf32>
    %1058 = math.log %1057 : vector<2x1x1xf32>
    %1059 = arith.addf %1052, %1058 : vector<2x1x1xf32>
    %c3_i32_290 = arith.constant 3 : i32
    %1060 = vector.broadcast %c3_i32_290 : i32 to vector<1x1x5xi32>
    %1061 = arith.cmpi eq, %420, %1060 : vector<1x1x5xi32>
    %cst_291 = arith.constant 0.000000e+00 : f32
    %1062 = vector.shape_cast %1061 : vector<1x1x5xi1> to vector<1x1x5xi1>
    %1063 = vector.broadcast %1062 : vector<1x1x5xi1> to vector<2x1x5xi1>
    %1064 = vector.shape_cast %1059 : vector<2x1x1xf32> to vector<2x1x1xf32>
    %1065 = vector.broadcast %1064 : vector<2x1x1xf32> to vector<2x1x5xf32>
    %1066 = vector.broadcast %cst_291 : f32 to vector<2x1x5xf32>
    %1067 = arith.select %1063, %1065, %1066 : vector<2x1x5xi1>, vector<2x1x5xf32>
    %1068 = arith.addf %1046, %1067 : vector<2x1x5xf32>
    %1069 = vector.extract_strided_slice %417 {offsets = [4, 0], sizes = [1, 5], strides = [1, 1]} : vector<5x5xf32> to vector<1x5xf32>
    %1070 = vector.shape_cast %1069 : vector<1x5xf32> to vector<1x1x5xf32>
    %1071 = vector.broadcast %1070 : vector<1x1x5xf32> to vector<2x1x5xf32>
    %1072 = arith.addf %979, %1071 : vector<2x1x5xf32>
    %cst_292 = arith.constant dense<0xFF800000> : vector<2x1xf32>
    %1073 = vector.multi_reduction <maximumf>, %1072, %cst_292 [2] : vector<2x1x5xf32> to vector<2x1xf32>
    %1074 = vector.shape_cast %1073 : vector<2x1xf32> to vector<2x1x1xf32>
    %1075 = vector.broadcast %1074 : vector<2x1x1xf32> to vector<2x1x5xf32>
    %1076 = arith.subf %1072, %1075 : vector<2x1x5xf32>
    %1077 = math.exp %1076 : vector<2x1x5xf32>
    %cst_293 = arith.constant dense<0.000000e+00> : vector<2x1xf32>
    %1078 = vector.multi_reduction <add>, %1077, %cst_293 [2] : vector<2x1x5xf32> to vector<2x1xf32>
    %1079 = vector.shape_cast %1078 : vector<2x1xf32> to vector<2x1x1xf32>
    %1080 = math.log %1079 : vector<2x1x1xf32>
    %1081 = arith.addf %1074, %1080 : vector<2x1x1xf32>
    %c4_i32_294 = arith.constant 4 : i32
    %1082 = vector.broadcast %c4_i32_294 : i32 to vector<1x1x5xi32>
    %1083 = arith.cmpi eq, %420, %1082 : vector<1x1x5xi32>
    %cst_295 = arith.constant 0.000000e+00 : f32
    %1084 = vector.shape_cast %1083 : vector<1x1x5xi1> to vector<1x1x5xi1>
    %1085 = vector.broadcast %1084 : vector<1x1x5xi1> to vector<2x1x5xi1>
    %1086 = vector.shape_cast %1081 : vector<2x1x1xf32> to vector<2x1x1xf32>
    %1087 = vector.broadcast %1086 : vector<2x1x1xf32> to vector<2x1x5xf32>
    %1088 = vector.broadcast %cst_295 : f32 to vector<2x1x5xf32>
    %1089 = arith.select %1085, %1087, %1088 : vector<2x1x5xi1>, vector<2x1x5xf32>
    %1090 = arith.addf %1068, %1089 : vector<2x1x5xf32>
    %1091 = vector.extract_strided_slice %415 {offsets = [0, 7, 0], sizes = [2, 1, 5], strides = [1, 1, 1]} : vector<2x8x5xf32> to vector<2x1x5xf32>
    %1092 = vector.extract_strided_slice %417 {offsets = [0, 0], sizes = [1, 5], strides = [1, 1]} : vector<5x5xf32> to vector<1x5xf32>
    %1093 = vector.shape_cast %1092 : vector<1x5xf32> to vector<1x1x5xf32>
    %1094 = vector.broadcast %1093 : vector<1x1x5xf32> to vector<2x1x5xf32>
    %1095 = arith.addf %1090, %1094 : vector<2x1x5xf32>
    %cst_296 = arith.constant dense<0xFF800000> : vector<2x1xf32>
    %1096 = vector.multi_reduction <maximumf>, %1095, %cst_296 [2] : vector<2x1x5xf32> to vector<2x1xf32>
    %1097 = vector.shape_cast %1096 : vector<2x1xf32> to vector<2x1x1xf32>
    %1098 = vector.broadcast %1097 : vector<2x1x1xf32> to vector<2x1x5xf32>
    %1099 = arith.subf %1095, %1098 : vector<2x1x5xf32>
    %1100 = math.exp %1099 : vector<2x1x5xf32>
    %cst_297 = arith.constant dense<0.000000e+00> : vector<2x1xf32>
    %1101 = vector.multi_reduction <add>, %1100, %cst_297 [2] : vector<2x1x5xf32> to vector<2x1xf32>
    %1102 = vector.shape_cast %1101 : vector<2x1xf32> to vector<2x1x1xf32>
    %1103 = math.log %1102 : vector<2x1x1xf32>
    %1104 = arith.addf %1097, %1103 : vector<2x1x1xf32>
    %c0_i32_298 = arith.constant 0 : i32
    %1105 = vector.broadcast %c0_i32_298 : i32 to vector<1x1x5xi32>
    %1106 = arith.cmpi eq, %420, %1105 : vector<1x1x5xi32>
    %cst_299 = arith.constant 0.000000e+00 : f32
    %1107 = vector.shape_cast %1106 : vector<1x1x5xi1> to vector<1x1x5xi1>
    %1108 = vector.broadcast %1107 : vector<1x1x5xi1> to vector<2x1x5xi1>
    %1109 = vector.shape_cast %1104 : vector<2x1x1xf32> to vector<2x1x1xf32>
    %1110 = vector.broadcast %1109 : vector<2x1x1xf32> to vector<2x1x5xf32>
    %1111 = vector.broadcast %cst_299 : f32 to vector<2x1x5xf32>
    %1112 = arith.select %1108, %1110, %1111 : vector<2x1x5xi1>, vector<2x1x5xf32>
    %1113 = arith.addf %1091, %1112 : vector<2x1x5xf32>
    %1114 = vector.extract_strided_slice %417 {offsets = [1, 0], sizes = [1, 5], strides = [1, 1]} : vector<5x5xf32> to vector<1x5xf32>
    %1115 = vector.shape_cast %1114 : vector<1x5xf32> to vector<1x1x5xf32>
    %1116 = vector.broadcast %1115 : vector<1x1x5xf32> to vector<2x1x5xf32>
    %1117 = arith.addf %1090, %1116 : vector<2x1x5xf32>
    %cst_300 = arith.constant dense<0xFF800000> : vector<2x1xf32>
    %1118 = vector.multi_reduction <maximumf>, %1117, %cst_300 [2] : vector<2x1x5xf32> to vector<2x1xf32>
    %1119 = vector.shape_cast %1118 : vector<2x1xf32> to vector<2x1x1xf32>
    %1120 = vector.broadcast %1119 : vector<2x1x1xf32> to vector<2x1x5xf32>
    %1121 = arith.subf %1117, %1120 : vector<2x1x5xf32>
    %1122 = math.exp %1121 : vector<2x1x5xf32>
    %cst_301 = arith.constant dense<0.000000e+00> : vector<2x1xf32>
    %1123 = vector.multi_reduction <add>, %1122, %cst_301 [2] : vector<2x1x5xf32> to vector<2x1xf32>
    %1124 = vector.shape_cast %1123 : vector<2x1xf32> to vector<2x1x1xf32>
    %1125 = math.log %1124 : vector<2x1x1xf32>
    %1126 = arith.addf %1119, %1125 : vector<2x1x1xf32>
    %c1_i32_302 = arith.constant 1 : i32
    %1127 = vector.broadcast %c1_i32_302 : i32 to vector<1x1x5xi32>
    %1128 = arith.cmpi eq, %420, %1127 : vector<1x1x5xi32>
    %cst_303 = arith.constant 0.000000e+00 : f32
    %1129 = vector.shape_cast %1128 : vector<1x1x5xi1> to vector<1x1x5xi1>
    %1130 = vector.broadcast %1129 : vector<1x1x5xi1> to vector<2x1x5xi1>
    %1131 = vector.shape_cast %1126 : vector<2x1x1xf32> to vector<2x1x1xf32>
    %1132 = vector.broadcast %1131 : vector<2x1x1xf32> to vector<2x1x5xf32>
    %1133 = vector.broadcast %cst_303 : f32 to vector<2x1x5xf32>
    %1134 = arith.select %1130, %1132, %1133 : vector<2x1x5xi1>, vector<2x1x5xf32>
    %1135 = arith.addf %1113, %1134 : vector<2x1x5xf32>
    %1136 = vector.extract_strided_slice %417 {offsets = [2, 0], sizes = [1, 5], strides = [1, 1]} : vector<5x5xf32> to vector<1x5xf32>
    %1137 = vector.shape_cast %1136 : vector<1x5xf32> to vector<1x1x5xf32>
    %1138 = vector.broadcast %1137 : vector<1x1x5xf32> to vector<2x1x5xf32>
    %1139 = arith.addf %1090, %1138 : vector<2x1x5xf32>
    %cst_304 = arith.constant dense<0xFF800000> : vector<2x1xf32>
    %1140 = vector.multi_reduction <maximumf>, %1139, %cst_304 [2] : vector<2x1x5xf32> to vector<2x1xf32>
    %1141 = vector.shape_cast %1140 : vector<2x1xf32> to vector<2x1x1xf32>
    %1142 = vector.broadcast %1141 : vector<2x1x1xf32> to vector<2x1x5xf32>
    %1143 = arith.subf %1139, %1142 : vector<2x1x5xf32>
    %1144 = math.exp %1143 : vector<2x1x5xf32>
    %cst_305 = arith.constant dense<0.000000e+00> : vector<2x1xf32>
    %1145 = vector.multi_reduction <add>, %1144, %cst_305 [2] : vector<2x1x5xf32> to vector<2x1xf32>
    %1146 = vector.shape_cast %1145 : vector<2x1xf32> to vector<2x1x1xf32>
    %1147 = math.log %1146 : vector<2x1x1xf32>
    %1148 = arith.addf %1141, %1147 : vector<2x1x1xf32>
    %c2_i32_306 = arith.constant 2 : i32
    %1149 = vector.broadcast %c2_i32_306 : i32 to vector<1x1x5xi32>
    %1150 = arith.cmpi eq, %420, %1149 : vector<1x1x5xi32>
    %cst_307 = arith.constant 0.000000e+00 : f32
    %1151 = vector.shape_cast %1150 : vector<1x1x5xi1> to vector<1x1x5xi1>
    %1152 = vector.broadcast %1151 : vector<1x1x5xi1> to vector<2x1x5xi1>
    %1153 = vector.shape_cast %1148 : vector<2x1x1xf32> to vector<2x1x1xf32>
    %1154 = vector.broadcast %1153 : vector<2x1x1xf32> to vector<2x1x5xf32>
    %1155 = vector.broadcast %cst_307 : f32 to vector<2x1x5xf32>
    %1156 = arith.select %1152, %1154, %1155 : vector<2x1x5xi1>, vector<2x1x5xf32>
    %1157 = arith.addf %1135, %1156 : vector<2x1x5xf32>
    %1158 = vector.extract_strided_slice %417 {offsets = [3, 0], sizes = [1, 5], strides = [1, 1]} : vector<5x5xf32> to vector<1x5xf32>
    %1159 = vector.shape_cast %1158 : vector<1x5xf32> to vector<1x1x5xf32>
    %1160 = vector.broadcast %1159 : vector<1x1x5xf32> to vector<2x1x5xf32>
    %1161 = arith.addf %1090, %1160 : vector<2x1x5xf32>
    %cst_308 = arith.constant dense<0xFF800000> : vector<2x1xf32>
    %1162 = vector.multi_reduction <maximumf>, %1161, %cst_308 [2] : vector<2x1x5xf32> to vector<2x1xf32>
    %1163 = vector.shape_cast %1162 : vector<2x1xf32> to vector<2x1x1xf32>
    %1164 = vector.broadcast %1163 : vector<2x1x1xf32> to vector<2x1x5xf32>
    %1165 = arith.subf %1161, %1164 : vector<2x1x5xf32>
    %1166 = math.exp %1165 : vector<2x1x5xf32>
    %cst_309 = arith.constant dense<0.000000e+00> : vector<2x1xf32>
    %1167 = vector.multi_reduction <add>, %1166, %cst_309 [2] : vector<2x1x5xf32> to vector<2x1xf32>
    %1168 = vector.shape_cast %1167 : vector<2x1xf32> to vector<2x1x1xf32>
    %1169 = math.log %1168 : vector<2x1x1xf32>
    %1170 = arith.addf %1163, %1169 : vector<2x1x1xf32>
    %c3_i32_310 = arith.constant 3 : i32
    %1171 = vector.broadcast %c3_i32_310 : i32 to vector<1x1x5xi32>
    %1172 = arith.cmpi eq, %420, %1171 : vector<1x1x5xi32>
    %cst_311 = arith.constant 0.000000e+00 : f32
    %1173 = vector.shape_cast %1172 : vector<1x1x5xi1> to vector<1x1x5xi1>
    %1174 = vector.broadcast %1173 : vector<1x1x5xi1> to vector<2x1x5xi1>
    %1175 = vector.shape_cast %1170 : vector<2x1x1xf32> to vector<2x1x1xf32>
    %1176 = vector.broadcast %1175 : vector<2x1x1xf32> to vector<2x1x5xf32>
    %1177 = vector.broadcast %cst_311 : f32 to vector<2x1x5xf32>
    %1178 = arith.select %1174, %1176, %1177 : vector<2x1x5xi1>, vector<2x1x5xf32>
    %1179 = arith.addf %1157, %1178 : vector<2x1x5xf32>
    %1180 = vector.extract_strided_slice %417 {offsets = [4, 0], sizes = [1, 5], strides = [1, 1]} : vector<5x5xf32> to vector<1x5xf32>
    %1181 = vector.shape_cast %1180 : vector<1x5xf32> to vector<1x1x5xf32>
    %1182 = vector.broadcast %1181 : vector<1x1x5xf32> to vector<2x1x5xf32>
    %1183 = arith.addf %1090, %1182 : vector<2x1x5xf32>
    %cst_312 = arith.constant dense<0xFF800000> : vector<2x1xf32>
    %1184 = vector.multi_reduction <maximumf>, %1183, %cst_312 [2] : vector<2x1x5xf32> to vector<2x1xf32>
    %1185 = vector.shape_cast %1184 : vector<2x1xf32> to vector<2x1x1xf32>
    %1186 = vector.broadcast %1185 : vector<2x1x1xf32> to vector<2x1x5xf32>
    %1187 = arith.subf %1183, %1186 : vector<2x1x5xf32>
    %1188 = math.exp %1187 : vector<2x1x5xf32>
    %cst_313 = arith.constant dense<0.000000e+00> : vector<2x1xf32>
    %1189 = vector.multi_reduction <add>, %1188, %cst_313 [2] : vector<2x1x5xf32> to vector<2x1xf32>
    %1190 = vector.shape_cast %1189 : vector<2x1xf32> to vector<2x1x1xf32>
    %1191 = math.log %1190 : vector<2x1x1xf32>
    %1192 = arith.addf %1185, %1191 : vector<2x1x1xf32>
    %c4_i32_314 = arith.constant 4 : i32
    %1193 = vector.broadcast %c4_i32_314 : i32 to vector<1x1x5xi32>
    %1194 = arith.cmpi eq, %420, %1193 : vector<1x1x5xi32>
    %cst_315 = arith.constant 0.000000e+00 : f32
    %1195 = vector.shape_cast %1194 : vector<1x1x5xi1> to vector<1x1x5xi1>
    %1196 = vector.broadcast %1195 : vector<1x1x5xi1> to vector<2x1x5xi1>
    %1197 = vector.shape_cast %1192 : vector<2x1x1xf32> to vector<2x1x1xf32>
    %1198 = vector.broadcast %1197 : vector<2x1x1xf32> to vector<2x1x5xf32>
    %1199 = vector.broadcast %cst_315 : f32 to vector<2x1x5xf32>
    %1200 = arith.select %1196, %1198, %1199 : vector<2x1x5xi1>, vector<2x1x5xf32>
    %1201 = arith.addf %1179, %1200 : vector<2x1x5xf32>
    %1202 = vector.shape_cast %419 : vector<1x5xf32> to vector<1x1x5xf32>
    %1203 = vector.broadcast %1202 : vector<1x1x5xf32> to vector<2x1x5xf32>
    %1204 = arith.addf %1201, %1203 : vector<2x1x5xf32>
    %cst_316 = arith.constant dense<0xFF800000> : vector<2x1xf32>
    %1205 = vector.multi_reduction <maximumf>, %1204, %cst_316 [2] : vector<2x1x5xf32> to vector<2x1xf32>
    %1206 = vector.shape_cast %1205 : vector<2x1xf32> to vector<2x1x1xf32>
    %1207 = vector.broadcast %1206 : vector<2x1x1xf32> to vector<2x1x5xf32>
    %1208 = arith.subf %1204, %1207 : vector<2x1x5xf32>
    %1209 = math.exp %1208 : vector<2x1x5xf32>
    %cst_317 = arith.constant dense<0.000000e+00> : vector<2x1xf32>
    %1210 = vector.multi_reduction <add>, %1209, %cst_317 [2] : vector<2x1x5xf32> to vector<2x1xf32>
    %1211 = vector.shape_cast %1210 : vector<2x1xf32> to vector<2x1x1xf32>
    %1212 = math.log %1211 : vector<2x1x1xf32>
    %1213 = arith.addf %1206, %1212 : vector<2x1x1xf32>
    %1214 = vector.shape_cast %1213 : vector<2x1x1xf32> to vector<1x2x1x1xf32>
    %cst_318 = arith.constant dense<0.000000e+00> : vector<1xf32>
    %1215 = vector.multi_reduction <add>, %1214, %cst_318 [1, 2, 3] : vector<1x2x1x1xf32> to vector<1xf32>
    %1216 = vector.shape_cast %1215 : vector<1xf32> to vector<1x1x1x1xf32>
    %1217 = vector.extract %1216[0, 0, 0, 0] : f32 from vector<1x1x1x1xf32>
    %1218 = arith.mulf %416, %415 : vector<2x8x5xf32>
    %1219 = vector.shape_cast %1218 : vector<2x8x5xf32> to vector<1x2x8x5xf32>
    %cst_319 = arith.constant dense<0.000000e+00> : vector<1xf32>
    %1220 = vector.multi_reduction <add>, %1219, %cst_319 [1, 2, 3] : vector<1x2x8x5xf32> to vector<1xf32>
    %1221 = vector.shape_cast %1220 : vector<1xf32> to vector<1x1x1x1xf32>
    %1222 = vector.extract %1221[0, 0, 0, 0] : f32 from vector<1x1x1x1xf32>
    %1223 = vector.extract_strided_slice %416 {offsets = [0, 0, 0], sizes = [2, 1, 5], strides = [1, 1, 1]} : vector<2x8x5xf32> to vector<2x1x5xf32>
    %1224 = vector.shape_cast %418 : vector<1x5xf32> to vector<1x1x5xf32>
    %1225 = vector.broadcast %1224 : vector<1x1x5xf32> to vector<2x1x5xf32>
    %1226 = arith.mulf %1223, %1225 : vector<2x1x5xf32>
    %1227 = vector.shape_cast %1226 : vector<2x1x5xf32> to vector<1x2x1x5xf32>
    %cst_320 = arith.constant dense<0.000000e+00> : vector<1xf32>
    %1228 = vector.multi_reduction <add>, %1227, %cst_320 [1, 2, 3] : vector<1x2x1x5xf32> to vector<1xf32>
    %1229 = vector.shape_cast %1228 : vector<1xf32> to vector<1x1x1x1xf32>
    %1230 = vector.extract %1229[0, 0, 0, 0] : f32 from vector<1x1x1x1xf32>
    %1231 = vector.extract_strided_slice %416 {offsets = [0, 7, 0], sizes = [2, 1, 5], strides = [1, 1, 1]} : vector<2x8x5xf32> to vector<2x1x5xf32>
    %1232 = vector.shape_cast %419 : vector<1x5xf32> to vector<1x1x5xf32>
    %1233 = vector.broadcast %1232 : vector<1x1x5xf32> to vector<2x1x5xf32>
    %1234 = arith.mulf %1231, %1233 : vector<2x1x5xf32>
    %1235 = vector.shape_cast %1234 : vector<2x1x5xf32> to vector<1x2x1x5xf32>
    %cst_321 = arith.constant dense<0.000000e+00> : vector<1xf32>
    %1236 = vector.multi_reduction <add>, %1235, %cst_321 [1, 2, 3] : vector<1x2x1x5xf32> to vector<1xf32>
    %1237 = vector.shape_cast %1236 : vector<1xf32> to vector<1x1x1x1xf32>
    %1238 = vector.extract %1237[0, 0, 0, 0] : f32 from vector<1x1x1x1xf32>
    %1239 = vector.extract_strided_slice %416 {offsets = [0, 0, 0], sizes = [2, 7, 5], strides = [1, 1, 1]} : vector<2x8x5xf32> to vector<2x7x5xf32>
    %1240 = vector.extract_strided_slice %416 {offsets = [0, 1, 0], sizes = [2, 7, 5], strides = [1, 1, 1]} : vector<2x8x5xf32> to vector<2x7x5xf32>
    %1241 = vector.extract_strided_slice %417 {offsets = [0, 0], sizes = [1, 5], strides = [1, 1]} : vector<5x5xf32> to vector<1x5xf32>
    %1242 = vector.shape_cast %1241 : vector<1x5xf32> to vector<1x1x5xf32>
    %1243 = vector.broadcast %1242 : vector<1x1x5xf32> to vector<2x7x5xf32>
    %1244 = arith.mulf %1239, %1243 : vector<2x7x5xf32>
    %cst_322 = arith.constant dense<0.000000e+00> : vector<2x7xf32>
    %1245 = vector.multi_reduction <add>, %1244, %cst_322 [2] : vector<2x7x5xf32> to vector<2x7xf32>
    %1246 = vector.shape_cast %1245 : vector<2x7xf32> to vector<2x7x1xf32>
    %1247 = vector.extract_strided_slice %1240 {offsets = [0, 0, 0], sizes = [2, 7, 1], strides = [1, 1, 1]} : vector<2x7x5xf32> to vector<2x7x1xf32>
    %1248 = arith.mulf %1247, %1246 : vector<2x7x1xf32>
    %1249 = vector.shape_cast %1248 : vector<2x7x1xf32> to vector<1x2x7x1xf32>
    %cst_323 = arith.constant dense<0.000000e+00> : vector<1xf32>
    %1250 = vector.multi_reduction <add>, %1249, %cst_323 [1, 2, 3] : vector<1x2x7x1xf32> to vector<1xf32>
    %1251 = vector.shape_cast %1250 : vector<1xf32> to vector<1x1x1x1xf32>
    %1252 = vector.extract %1251[0, 0, 0, 0] : f32 from vector<1x1x1x1xf32>
    %cst_324 = arith.constant 0.000000e+00 : f32
    %1253 = arith.addf %cst_324, %1252 : f32
    %1254 = vector.extract_strided_slice %417 {offsets = [1, 0], sizes = [1, 5], strides = [1, 1]} : vector<5x5xf32> to vector<1x5xf32>
    %1255 = vector.shape_cast %1254 : vector<1x5xf32> to vector<1x1x5xf32>
    %1256 = vector.broadcast %1255 : vector<1x1x5xf32> to vector<2x7x5xf32>
    %1257 = arith.mulf %1239, %1256 : vector<2x7x5xf32>
    %cst_325 = arith.constant dense<0.000000e+00> : vector<2x7xf32>
    %1258 = vector.multi_reduction <add>, %1257, %cst_325 [2] : vector<2x7x5xf32> to vector<2x7xf32>
    %1259 = vector.shape_cast %1258 : vector<2x7xf32> to vector<2x7x1xf32>
    %1260 = vector.extract_strided_slice %1240 {offsets = [0, 0, 1], sizes = [2, 7, 1], strides = [1, 1, 1]} : vector<2x7x5xf32> to vector<2x7x1xf32>
    %1261 = arith.mulf %1260, %1259 : vector<2x7x1xf32>
    %1262 = vector.shape_cast %1261 : vector<2x7x1xf32> to vector<1x2x7x1xf32>
    %cst_326 = arith.constant dense<0.000000e+00> : vector<1xf32>
    %1263 = vector.multi_reduction <add>, %1262, %cst_326 [1, 2, 3] : vector<1x2x7x1xf32> to vector<1xf32>
    %1264 = vector.shape_cast %1263 : vector<1xf32> to vector<1x1x1x1xf32>
    %1265 = vector.extract %1264[0, 0, 0, 0] : f32 from vector<1x1x1x1xf32>
    %1266 = arith.addf %1253, %1265 : f32
    %1267 = vector.extract_strided_slice %417 {offsets = [2, 0], sizes = [1, 5], strides = [1, 1]} : vector<5x5xf32> to vector<1x5xf32>
    %1268 = vector.shape_cast %1267 : vector<1x5xf32> to vector<1x1x5xf32>
    %1269 = vector.broadcast %1268 : vector<1x1x5xf32> to vector<2x7x5xf32>
    %1270 = arith.mulf %1239, %1269 : vector<2x7x5xf32>
    %cst_327 = arith.constant dense<0.000000e+00> : vector<2x7xf32>
    %1271 = vector.multi_reduction <add>, %1270, %cst_327 [2] : vector<2x7x5xf32> to vector<2x7xf32>
    %1272 = vector.shape_cast %1271 : vector<2x7xf32> to vector<2x7x1xf32>
    %1273 = vector.extract_strided_slice %1240 {offsets = [0, 0, 2], sizes = [2, 7, 1], strides = [1, 1, 1]} : vector<2x7x5xf32> to vector<2x7x1xf32>
    %1274 = arith.mulf %1273, %1272 : vector<2x7x1xf32>
    %1275 = vector.shape_cast %1274 : vector<2x7x1xf32> to vector<1x2x7x1xf32>
    %cst_328 = arith.constant dense<0.000000e+00> : vector<1xf32>
    %1276 = vector.multi_reduction <add>, %1275, %cst_328 [1, 2, 3] : vector<1x2x7x1xf32> to vector<1xf32>
    %1277 = vector.shape_cast %1276 : vector<1xf32> to vector<1x1x1x1xf32>
    %1278 = vector.extract %1277[0, 0, 0, 0] : f32 from vector<1x1x1x1xf32>
    %1279 = arith.addf %1266, %1278 : f32
    %1280 = vector.extract_strided_slice %417 {offsets = [3, 0], sizes = [1, 5], strides = [1, 1]} : vector<5x5xf32> to vector<1x5xf32>
    %1281 = vector.shape_cast %1280 : vector<1x5xf32> to vector<1x1x5xf32>
    %1282 = vector.broadcast %1281 : vector<1x1x5xf32> to vector<2x7x5xf32>
    %1283 = arith.mulf %1239, %1282 : vector<2x7x5xf32>
    %cst_329 = arith.constant dense<0.000000e+00> : vector<2x7xf32>
    %1284 = vector.multi_reduction <add>, %1283, %cst_329 [2] : vector<2x7x5xf32> to vector<2x7xf32>
    %1285 = vector.shape_cast %1284 : vector<2x7xf32> to vector<2x7x1xf32>
    %1286 = vector.extract_strided_slice %1240 {offsets = [0, 0, 3], sizes = [2, 7, 1], strides = [1, 1, 1]} : vector<2x7x5xf32> to vector<2x7x1xf32>
    %1287 = arith.mulf %1286, %1285 : vector<2x7x1xf32>
    %1288 = vector.shape_cast %1287 : vector<2x7x1xf32> to vector<1x2x7x1xf32>
    %cst_330 = arith.constant dense<0.000000e+00> : vector<1xf32>
    %1289 = vector.multi_reduction <add>, %1288, %cst_330 [1, 2, 3] : vector<1x2x7x1xf32> to vector<1xf32>
    %1290 = vector.shape_cast %1289 : vector<1xf32> to vector<1x1x1x1xf32>
    %1291 = vector.extract %1290[0, 0, 0, 0] : f32 from vector<1x1x1x1xf32>
    %1292 = arith.addf %1279, %1291 : f32
    %1293 = vector.extract_strided_slice %417 {offsets = [4, 0], sizes = [1, 5], strides = [1, 1]} : vector<5x5xf32> to vector<1x5xf32>
    %1294 = vector.shape_cast %1293 : vector<1x5xf32> to vector<1x1x5xf32>
    %1295 = vector.broadcast %1294 : vector<1x1x5xf32> to vector<2x7x5xf32>
    %1296 = arith.mulf %1239, %1295 : vector<2x7x5xf32>
    %cst_331 = arith.constant dense<0.000000e+00> : vector<2x7xf32>
    %1297 = vector.multi_reduction <add>, %1296, %cst_331 [2] : vector<2x7x5xf32> to vector<2x7xf32>
    %1298 = vector.shape_cast %1297 : vector<2x7xf32> to vector<2x7x1xf32>
    %1299 = vector.extract_strided_slice %1240 {offsets = [0, 0, 4], sizes = [2, 7, 1], strides = [1, 1, 1]} : vector<2x7x5xf32> to vector<2x7x1xf32>
    %1300 = arith.mulf %1299, %1298 : vector<2x7x1xf32>
    %1301 = vector.shape_cast %1300 : vector<2x7x1xf32> to vector<1x2x7x1xf32>
    %cst_332 = arith.constant dense<0.000000e+00> : vector<1xf32>
    %1302 = vector.multi_reduction <add>, %1301, %cst_332 [1, 2, 3] : vector<1x2x7x1xf32> to vector<1xf32>
    %1303 = vector.shape_cast %1302 : vector<1xf32> to vector<1x1x1x1xf32>
    %1304 = vector.extract %1303[0, 0, 0, 0] : f32 from vector<1x1x1x1xf32>
    %1305 = arith.addf %1292, %1304 : f32
    %1306 = arith.addf %1222, %1230 : f32
    %1307 = arith.addf %1306, %1238 : f32
    %1308 = arith.addf %1307, %1305 : f32
    %1309 = arith.subf %1217, %1308 : f32
    %cst_333 = arith.constant 5.000000e-01 : f32
    %1310 = arith.mulf %1309, %cst_333 : f32
    %c0_334 = arith.constant 0 : index
    %c0_335 = arith.constant 0 : index
    %1311 = memref.load %arg23[%c0_334, %c0_335] : memref<1x1xf32, #tpu.memory_space<smem>>
    memref.store %1310, %arg23[%c0_334, %c0_335] : memref<1x1xf32, #tpu.memory_space<smem>>
    return
  }
}

</mosaic_0001>

<bundles_post_ra>
// kernel: tpu_custom_call.1
= control target key start
LH: loop header
LB: loop body
LE: loop exit
PB: predicated region body
PF: predicated region fallthrough
CT: control target
= control target key end

     0   :  { %s9039_s0 = inlined_call_operand.hbm [shape: f32[16,32], index: 0, kind: input, shape index: {}]   ;;  %s9040_s1 = inlined_call_operand.hbm [shape: f32[2,1,8], index: 1, kind: input, shape index: {}]   ;;  %s9041_s2 = inlined_call_operand.vmem [shape: f32[1,32], index: 2, kind: input, shape index: {}]   ;;  %s9042_s3 = inlined_call_operand.hbm [shape: f32[1,32], index: 3, kind: input, shape index: {}]   ;;  %s9043_s4 = inlined_call_operand.vmem [shape: f32[2,32,96], index: 4, kind: input, shape index: {}]   ;;  %s9044_s5 = inlined_call_operand.hbm [shape: f32[2,1,96], index: 5, kind: input, shape index: {}]   ;;  %s9045_s6 = inlined_call_operand.vmem [shape: f32[2,32,32], index: 6, kind: input, shape index: {}]   ;;  %s9046_s7 = inlined_call_operand.hbm [shape: f32[2,1,32], index: 7, kind: input, shape index: {}]   ;;  %s9047_s8 = inlined_call_operand.hbm [shape: f32[2,1,32], index: 8, kind: input, shape index: {}]   ;;  %s9048_s9 = inlined_call_operand.hbm [shape: f32[2,1,32], index: 9, kind: input, shape index: {}]   ;;  %s9049_s10 = inlined_call_operand.vmem [shape: f32[2,32,64], index: 10, kind: input, shape index: {}]   ;;  %s9050_s11 = inlined_call_operand.hbm [shape: f32[2,1,64], index: 11, kind: input, shape index: {}]   ;;  %s9051_s12 = inlined_call_operand.vmem [shape: f32[2,64,32], index: 12, kind: input, shape index: {}]   ;;  %s9052_s13 = inlined_call_operand.hbm [shape: f32[2,1,32], index: 13, kind: input, shape index: {}]   ;;  %s9053_s14 = inlined_call_operand.hbm [shape: f32[2,1,32], index: 14, kind: input, shape index: {}]   ;;  %s9054_s15 = inlined_call_operand.hbm [shape: f32[2,1,32], index: 15, kind: input, shape index: {}]   ;;  %s9055_s16 = inlined_call_operand.vmem [shape: f32[32,128], index: 16, kind: input, shape index: {}]   ;;  %s9056_s17 = inlined_call_operand.vmem [shape: f32[1,128], index: 17, kind: input, shape index: {}]   ;;  %s9057_s18 = inlined_call_operand.vmem [shape: f32[5,5], index: 18, kind: input, shape index: {}]   ;;  %s9058_s19 = inlined_call_operand.vmem [shape: f32[1,5], index: 19, kind: input, shape index: {}]   ;;  %s9059_s20 = inlined_call_operand.vmem [shape: f32[1,5], index: 20, kind: input, shape index: {}]   ;;  %s9060_s21 = inlined_call_operand.vmem [shape: f32[2,8,5], index: 21, kind: input, shape index: {}]   ;;  %s9061_s22 = inlined_call_operand.hbm [shape: f32[16,128], index: 22, kind: output, shape index: {0}]   ;;  %s9062_s23 = inlined_call_operand.hbm [shape: f32[1,1], index: 23, kind: output, shape index: {1}]  }
   0x1   :  { %9067 = sst [smem:[#allocation31_spill]] %s9039_s0 }
   0x2   :  { %9068 = sst [smem:[#allocation32_spill]] %s9040_s1 }
   0x3   :  { %9069 = sst [smem:[#allocation33_spill]] %s9041_s2 }
   0x4   :  { %9070 = sst [smem:[#allocation34_spill]] %s9042_s3 }
   0x5   :  { %9071 = sst [smem:[#allocation35_spill]] %s9043_s4 }
   0x6   :  { %9072 = sst [smem:[#allocation36_spill]] %s9044_s5 }
   0x7   :  { %9073 = sst [smem:[#allocation37_spill]] %s9045_s6 }
   0x8   :  { %9074 = sst [smem:[#allocation38_spill]] %s9046_s7 }
   0x9   :  { %29 = vsyncpa [#allocation3], 0 }
   0xa   :  { %30 = vsyncpa [#allocation7], 0 }
   0xb   :  { %31 = vsyncpa [#allocation10], 0 }
   0xc   :  { %32 = vsyncpa [#allocation13], 0 }
   0xd   :  { %33 = vsyncpa [#allocation16], 0 }
   0xe   :  { %34 = vsyncpa [#allocation19], 0 }
   0xf   :  { %35 = vsyncpa [#allocation4], 0 }
  0x10   :  { %36 = vsyncpa [#allocation5], 0  ;;  %s7485_s4 = smov [#allocation6]  }
  0x11   :  { %s54_s30 = sshll.u32 %s7485_s4, 4  ;;  %s55_s30 = int_to_ptr.vmem [resolvable:$true] %s54_s30 }
  0x12   :  { %s7229_s24 = scalar_lea.vmem %s55_s30, 32  ;;  %p7234_p1 = scmp.lt.s32.totalorder %s55_s30, %s55_s30 }
  0x13   :  { %p7230_p0 = scmp.ne.s32.totalorder %s55_s30, %s7229_s24  ;;  %p7235_p2 = scmp.lt.s32.totalorder %s7229_s24, %s7229_s24 }
  0x15   :  { %p7236_p3 = por %p7235_p2, %p7234_p1 }
  0x17   :  { %p7237_p4 = pnand %p7236_p3, %p7230_p0 }
  0x19   :  { %7240 = shalt.err (!%p7237_p4)
}
  0x1a   :  { %s7486_s25 = smov 16   ;;  %s7487_s5 = smov 1  }
  0x1b   :  { %s9075_s2 = sld [smem:[#allocation32_spill]]  ;;  %s7488_s6 = smov [#allocation9]  }
  0x1c   :  { %s80_s27 = sshll.u32 %s7488_s6, 4  ;;  %s7489_s7 = smov [#allocation12]   ;;  %s81_s27 = int_to_ptr.vmem [resolvable:$true] %s80_s27 }
  0x1d   :  { %s106_s28 = sshll.u32 %s7489_s7, 4  ;;  %s7249_s29 = scalar_lea.vmem %s81_s27, 32  ;;  %s107_s28 = int_to_ptr.vmem [resolvable:$true] %s106_s28 }
  0x1e   :  { %p7250_p5 = scmp.ne.s32.totalorder %s81_s27, %s7249_s29  ;;  %p7254_p6 = scmp.lt.s32.totalorder %s81_s27, %s81_s27 }
  0x1f   :  { %p7255_p7 = scmp.lt.s32.totalorder %s7249_s29, %s7249_s29 }
  0x21   :  { %60 = dma.hbm_to_vmem [thread:$0]  %s9075_s2, 32, %s55_s30, [#allocation7], %s7486_s25, %s7486_s25, %s7487_s5  }
  0x22   :  { %p7256_p8 = por %p7255_p7, %p7254_p6 }
  0x24   :  { %p7257_p9 = pnand %p7256_p8, %p7250_p5 }
  0x26   :  { %7260 = shalt.err (!%p7257_p9)
}
  0x27   :  { %s9076_s4 = sld [smem:[#allocation36_spill]]  ;;  %s7269_s30 = scalar_lea.vmem %s107_s28, 32 }
  0x28   :  { %p7270_p10 = scmp.ne.s32.totalorder %s107_s28, %s7269_s30  ;;  %p7274_p11 = scmp.lt.s32.totalorder %s107_s28, %s107_s28 }
  0x29   :  { %p7275_p12 = scmp.lt.s32.totalorder %s7269_s30, %s7269_s30 }
  0x2b   :  { %p7276_p13 = por %p7275_p12, %p7274_p11 }
  0x2d   :  { %86 = dma.hbm_to_vmem [thread:$0]  %s9076_s4, 32, %s81_s27, [#allocation10], %s7486_s25, %s7486_s25, %s7487_s5  }
  0x2e   :  { %p7277_p0 = pnand %p7276_p13, %p7270_p10 }
  0x30   :  { %7280 = shalt.err (!%p7277_p0)
}
  0x31   :  { %112 = dma.hbm_to_vmem [thread:$0]  %s9047_s8, 32, %s107_s28, [#allocation13], %s7486_s25, %s7486_s25, %s7487_s5  }
  0x32   :  { %s7490_s26 = smov [#allocation15]   ;;  %s7491_s6 = smov [#allocation18]  }
  0x33   :  { %s132_s2 = sshll.u32 %s7490_s26, 4  ;;  %s158_s27 = sshll.u32 %s7491_s6, 4  ;;  %s133_s2 = int_to_ptr.vmem [resolvable:$true] %s132_s2  ;;  %s159_s27 = int_to_ptr.vmem [resolvable:$true] %s158_s27 }
  0x34   :  { %s7289_s7 = scalar_lea.vmem %s133_s2, 32  ;;  %p7294_p2 = scmp.lt.s32.totalorder %s133_s2, %s133_s2 }
  0x35   :  { %p7290_p1 = scmp.ne.s32.totalorder %s133_s2, %s7289_s7  ;;  %p7295_p3 = scmp.lt.s32.totalorder %s7289_s7, %s7289_s7 }
  0x37   :  { %p7296_p4 = por %p7295_p3, %p7294_p2 }
  0x39   :  { %p7297_p5 = pnand %p7296_p4, %p7290_p1 }
  0x3b   :  { %7300 = shalt.err (!%p7297_p5)
}
  0x3c   :  { %138 = dma.hbm_to_vmem [thread:$0]  %s9050_s11, 32, %s133_s2, [#allocation16], %s7486_s25, %s7486_s25, %s7487_s5  }
  0x3d   :  { %s7309_s8 = scalar_lea.vmem %s159_s27, 32  ;;  %p7314_p7 = scmp.lt.s32.totalorder %s159_s27, %s159_s27 }
  0x3e   :  { %p7310_p6 = scmp.ne.s32.totalorder %s159_s27, %s7309_s8  ;;  %p7315_p8 = scmp.lt.s32.totalorder %s7309_s8, %s7309_s8 }
  0x40   :  { %p7316_p9 = por %p7315_p8, %p7314_p7 }
  0x42   :  { %p7317_p10 = pnand %p7316_p9, %p7310_p6 }
  0x44   :  { %7320 = shalt.err (!%p7317_p10)
}
  0x45   :  { %164 = dma.hbm_to_vmem [thread:$0]  %s9053_s14, 32, %s159_s27, [#allocation19], %s7486_s25, %s7486_s25, %s7487_s5  }
  0x46   :  { %s7492_s4 = smov [#allocation2]  }
  0x47   :  { %s42_s30 = sshll.u32 %s7492_s4, 4  ;;  %s43_s30 = int_to_ptr.vmem [resolvable:$true] %s42_s30 }
  0x48   :  { %s7329_s24 = scalar_lea.vmem %s43_s30, 256  ;;  %p7334_p12 = scmp.lt.s32.totalorder %s43_s30, %s43_s30 }
  0x49   :  { %p7330_p11 = scmp.ne.s32.totalorder %s43_s30, %s7329_s24  ;;  %p7335_p13 = scmp.lt.s32.totalorder %s7329_s24, %s7329_s24 }
  0x4b   :  { %p7336_p0 = por %p7335_p13, %p7334_p12 }
  0x4d   :  { %p7337_p1 = pnand %p7336_p0, %p7330_p11 }
  0x4f   :  { %7340 = shalt.err (!%p7337_p1)
}
  0x50   :  { %s9065_s11 = smov 128   ;;  %s9066_s1 = smov 8  }
  0x51   :  { %s9077_s6 = sld [smem:[#allocation31_spill]]  ;;  %s7495_s14 = smov [#allocation8]  }
  0x52   :  { %s69_s27 = sshll.u32 %s7495_s14, 4  ;;  %s7496_s7 = smov [#allocation11]   ;;  %s70_s27 = int_to_ptr.vmem [resolvable:$true] %s69_s27 }
  0x53   :  { %s94_s29 = sshll.u32 %s7496_s7, 4  ;;  %s7349_s3 = scalar_lea.vmem %s70_s27, 16  ;;  %s95_s29 = int_to_ptr.vmem [resolvable:$true] %s94_s29 }
  0x54   :  { %p7350_p2 = scmp.ne.s32.totalorder %s70_s27, %s7349_s3  ;;  %s7353_s8 = scalar_lea.vmem %s70_s27, 32 }
  0x55   :  { %p7354_p3 = scmp.lt.s32.totalorder %s70_s27, %s70_s27  ;;  %p7355_p4 = scmp.lt.s32.totalorder %s7353_s8, %s7349_s3 }
  0x57   :  { %48 = dma.hbm_to_vmem [thread:$0]  %s9077_s6, 256, %s43_s30, [#allocation3], %s9065_s11, %s9065_s11, %s9066_s1  }
  0x58   :  { %p7356_p5 = por %p7355_p4, %p7354_p3 }
  0x5a   :  { %p7357_p6 = pnand %p7356_p5, %p7350_p2 }
  0x5c   :  { %7360 = shalt.err (!%p7357_p6)
}
  0x5d   :  { %s9078_s4 = sld [smem:[#allocation34_spill]]  ;;  %s7369_s24 = scalar_lea.vmem %s95_s29, 32 }
  0x5e   :  { %p7370_p7 = scmp.ne.s32.totalorder %s95_s29, %s7369_s24  ;;  %p7374_p8 = scmp.lt.s32.totalorder %s95_s29, %s95_s29 }
  0x5f   :  { %p7375_p9 = scmp.lt.s32.totalorder %s7369_s24, %s7369_s24 }
  0x61   :  { %p7376_p10 = por %p7375_p9, %p7374_p8 }
  0x63   :  { %72 = dma.hbm_to_vmem [thread:$0]  %s9078_s4, 16, %s70_s27, [#allocation7]  }
  0x64   :  { %p7377_p11 = pnand %p7376_p10, %p7370_p7 }
  0x66   :  { %7380 = shalt.err (!%p7377_p11)
}
  0x67   :  { %s9079_s2 = sld [smem:[#allocation38_spill]]  ;;  %s7497_s6 = smov [#allocation14]  }
  0x68   :  { %s118_s14 = sshll.u32 %s7497_s6, 4  ;;  %s7498_s7 = smov [#allocation17]   ;;  %s119_s14 = int_to_ptr.vmem [resolvable:$true] %s118_s14 }
  0x69   :  { %s146_s3 = sshll.u32 %s7498_s7, 4  ;;  %s7389_s27 = scalar_lea.vmem %s119_s14, 32  ;;  %s147_s3 = int_to_ptr.vmem [resolvable:$true] %s146_s3 }
  0x6a   :  { %p7390_p12 = scmp.ne.s32.totalorder %s119_s14, %s7389_s27  ;;  %p7394_p13 = scmp.lt.s32.totalorder %s119_s14, %s119_s14 }
  0x6b   :  { %p7395_p0 = scmp.lt.s32.totalorder %s7389_s27, %s7389_s27 }
  0x6d   :  { %100 = dma.hbm_to_vmem [thread:$0]  %s9079_s2, 32, %s95_s29, [#allocation10], %s7486_s25, %s7486_s25, %s7487_s5  }
  0x6e   :  { %p7396_p1 = por %p7395_p0, %p7394_p13 }
  0x70   :  { %p7397_p2 = pnand %p7396_p1, %p7390_p12 }
  0x72   :  { %7400 = shalt.err (!%p7397_p2)
}
  0x73   :  { %124 = dma.hbm_to_vmem [thread:$0]  %s9048_s9, 32, %s119_s14, [#allocation13], %s7486_s25, %s7486_s25, %s7487_s5  }
  0x74   :  { %s7409_s29 = scalar_lea.vmem %s147_s3, 32  ;;  %p7414_p4 = scmp.lt.s32.totalorder %s147_s3, %s147_s3 }
  0x75   :  { %p7410_p3 = scmp.ne.s32.totalorder %s147_s3, %s7409_s29  ;;  %p7415_p5 = scmp.lt.s32.totalorder %s7409_s29, %s7409_s29 }
  0x77   :  { %p7416_p6 = por %p7415_p5, %p7414_p4 }
  0x79   :  { %p7417_p7 = pnand %p7416_p6, %p7410_p3 }
  0x7b   :  { %7420 = shalt.err (!%p7417_p7)
}
  0x7c   :  { %152 = dma.hbm_to_vmem [thread:$0]  %s9052_s13, 32, %s147_s3, [#allocation16], %s7486_s25, %s7486_s25, %s7487_s5  }
  0x7d   :  { %s7499_s24 = smov [#allocation20]  }
  0x7e   :  { %s170_s30 = sshll.u32 %s7499_s24, 4  ;;  %s171_s30 = int_to_ptr.vmem [resolvable:$true] %s170_s30 }
  0x7f   :  { %s7429_s26 = scalar_lea.vmem %s171_s30, 32  ;;  %p7434_p9 = scmp.lt.s32.totalorder %s171_s30, %s171_s30 }
  0x80   :  { %p7430_p8 = scmp.ne.s32.totalorder %s171_s30, %s7429_s26  ;;  %p7435_p10 = scmp.lt.s32.totalorder %s7429_s26, %s7429_s26 }
  0x82   :  { %p7436_p11 = por %p7435_p10, %p7434_p9 }
  0x84   :  { %p7437_p12 = pnand %p7436_p11, %p7430_p8 }
  0x86   :  { %7440 = shalt.err (!%p7437_p12)
}
  0x87   :  { %176 = dma.hbm_to_vmem [thread:$0]  %s9054_s15, 32, %s171_s30, [#allocation19], %s7486_s25, %s7486_s25, %s7487_s5  }
  0x88   :  { %7469 = dma.done.wait [#allocation3], 256  }
  0x89   :  { %7470 = vsyncadd [#allocation3], 4294967040 }
  0x8a   :  { %7471 = dma.done.wait [#allocation7], 48  }
  0x8b   :  { %7472 = vsyncadd [#allocation7], 4294967248 }
  0x8c   :  { %7473 = dma.done.wait [#allocation10], 64  }
  0x8d   :  { %7474 = vsyncadd [#allocation10], 4294967232 }
  0x8e   :  { %7475 = dma.done.wait [#allocation13], 64  }
  0x8f   :  { %7476 = vsyncadd [#allocation13], 4294967232 }
  0x90   :  { %7477 = dma.done.wait [#allocation16], 64  }
  0x91   :  { %7478 = vsyncadd [#allocation16], 4294967232 }
  0x92   :  { %7479 = dma.done.wait [#allocation19], 64  }
  0x93   :  { %7480 = vsyncadd [#allocation19], 4294967232  ;;  %vm228_vm0 = vcmask 261120   ;;  %v224_v0 = vld [vmem:[#allocation2] sm:$0xff]  ;;  %v225_v1 = vld [vmem:[#allocation2 + $0x8] sm:$0xff]  ;;  %s9080_s25 = sld [smem:[#allocation35_spill]] }
  0x94   :  { %v229_v2 = vsel %vm228_vm0, %v224_v0, 0.0  ;;  %v232_v3 = vsel %vm228_vm0, %v225_v1, 0.0  ;;  %s9081_s29 = sld [smem:[#allocation33_spill]]  ;;  %v6228_v27 = vld [vmem:[#allocation8] ss:$0 sm:$0xff]  ;;  %v7500_v34 = vmov 0.0  }
  0x95   :  { %230 = vadd.xlane.f32.xlu0 %v229_v2  ;;  %6496 = vmatprep.subr.mxu1 %v7500_v34  ;;  %vm7501_vm1 = vmmov 0   ;;  %v6229_v35 = vld [vmem:[#allocation9] ss:$0 sm:$0xff]  ;;  %s7502_s0 = smov 96   ;;  %vm371_vm2 = vcmask 64512   ;;  %s7503_s4 = smov 64  }
  0x96   :  { %6498 = vmatprep.mubr.msk.f32.mxu1 %vm7501_vm1, %v7500_v34  ;;  %v7756_v43 = vld [vmem:[#allocation6] ss:$0 sm:$0xff]  ;;  %v7759_v48 = vld [vmem:[#allocation6 + $0x1] ss:$0 sm:$0xff]  ;;  %s7504_s24 = smov 88   ;;  %s7505_s30 = smov 120  }
  0x97   :  { %s7506_s26 = smov 56   ;;  %s7507_s9 = smov 80   ;;  %vm2223_vm3 = vcmask 523264   ;;  %vm4533_vm4 = vcmask 32768   ;;  %vm4775_vm10 = vcmask 33793   ;;  %vm4964_vm11 = vcmask 34818  }
  0x98   :  { %s7508_s2 = smov 112   ;;  %s9082_s5 = sld [smem:[#allocation37_spill]]  ;;  %vm5147_vm12 = vcmask 35843   ;;  %vm5330_vm13 = vcmask 36868   ;;  %vm5511_vm14 = vcmask 37893   ;;  %vm5692_vm15 = vcmask 38918  }
  0x99   :  { %233 = vadd.xlane.f32.xlu0 %v232_v3  ;;  %v275_v14 = vld [vmem:[%s9080_s25 + $0x18] sm:$0xff]  ;;  %v274_v15 = vld [vmem:[%s9080_s25 + $0x10] sm:$0xff]  ;;  %v273_v16 = vld [vmem:[%s9080_s25 + $0x8] sm:$0xff]  ;;  %s7509_s7 = smov 48   ;;  %s7510_s3 = smov 72  }
  0x9a   :  { %6485 = vmatprep.subr.mxu0 %v275_v14  ;;  %v272_v17 = vld [vmem:[%s9080_s25] sm:$0xff]  ;;  %s7511_s27 = smov 104  }
  0x9b   :  { %6486 = vmatpush3.msra.mxu0 %v275_v14  ;;  %v6227_v25 = vld [vmem:[%s9081_s29] ss:$0 sm:$0xff]  ;;  %s7512_s29 = smov 40  }
  0x9c   :  { %6487 = vmatprep.subr.mxu0 %v274_v15 }
  0x9d   :  { %6488 = vmatpush3.msra.mxu0 %v274_v15 }
  0x9e   :  { %6489 = vmatprep.subr.mxu0 %v273_v16 }
  0x9f   :  { %6490 = vmatpush3.msra.mxu0 %v273_v16 }
  0xa0   :  { %6491 = vmatprep.subr.mxu0 %v272_v17 }
  0xa1   :  { %6492 = vmatpush3.msra.mxu0 %v272_v17 }
  0xa2   :  { %6506 = vmatprep.subr.mxu0 %v7500_v34 }
 0x11e   :  { %v231_v4 = vpop.xlane.xlu0 %230 }
 0x11f   :  { %v236_v5 = vmul.f32 0.03125, %v231_v4 }
 0x121   :  { %v238_v6 = vsub.f32 %v224_v0, %v236_v5 }
 0x122   :  { %v234_v7 = vpop.xlane.xlu0 %233 }
 0x123   :  { %v237_v8 = vmul.f32 0.03125, %v234_v7  ;;  %v240_v9 = vmul.f32 %v238_v6, %v238_v6 }
 0x125   :  { %v239_v10 = vsub.f32 %v225_v1, %v237_v8  ;;  %v242_v11 = vsel %vm228_vm0, %v240_v9, 0.0 }
 0x126   :  { %243 = vadd.xlane.f32.xlu1 %v242_v11 }
 0x127   :  { %v241_v12 = vmul.f32 %v239_v10, %v239_v10 }
 0x129   :  { %v245_v13 = vsel %vm228_vm0, %v241_v12, 0.0 }
 0x12a   :  { %246 = vadd.xlane.f32.xlu1 %v245_v13 }
 0x1af   :  { %v244_v18 = vpop.xlane.xlu1 %243 }
 0x1b0   :  { %v248_v19 = vmul.f32 0.03125, %v244_v18 }
 0x1b2   :  { %v250_v20 = vadd.f32 1e-12, %v248_v19 }
 0x1b3   :  { %v247_v21 = vpop.xlane.xlu1 %246 }
 0x1b4   :  { %6832 = vrsqrt.f32 %v250_v20  ;;  %v249_v22 = vmul.f32 0.03125, %v247_v21 }
 0x1b6   :  { %v251_v23 = vadd.f32 1e-12, %v249_v22 }
 0x1b8   :  { %6834 = vrsqrt.f32 %v251_v23 }
 0x1c1   :  { %v6833_v24 = vpop.eup %6832 }
 0x1c2   :  { %v254_v26 = vmul.f32 %v6833_v24, %v238_v6 }
 0x1c4   :  { %v262_v28 = vmul.f32 %v6227_v25, %v254_v26 }
 0x1c5   :  { %v6835_v29 = vpop.eup %6834 }
 0x1c6   :  { %v255_v30 = vmul.f32 %v6835_v29, %v239_v10  ;;  %v7722_v31 = vadd.f32 %v6228_v27, %v262_v28 }
 0x1c8   :  { %v263_v32 = vmul.f32 %v6227_v25, %v255_v30  ;;  %6493 = vmatprep.mubr.msk.f32.mxu0 %vm228_vm0, %v7722_v31 }
 0x1ca   :  { %v7726_v33 = vadd.f32 %v6228_v27, %v263_v32 }
 0x1cc   :  { %6494 = vmatmul.mubr.msk.f32.vlgmr.msra.gmra.mxu0 %vm228_vm0, %v7726_v33 }
 0x1cd   :  { %6508 = vmatprep.mubr.msk.f32.mxu0 %vm7501_vm1, %v7500_v34 }
 0x28c   :  { %v6495_v36 = vpop.f32.mrf.mxu0 }
 0x28d   :  { %v7736_v37 = vadd.f32 %v6495_v36, %v6229_v35 }
 0x28e   :  { %v355_v38 = vpop.f32.mrf.mxu0 }
 0x28f   :  { %v7738_v39 = vadd.f32 %v6229_v35, %v355_v38  ;;  %447 = vrot.lane.b32.xlu1 %v7736_v37, %s7502_s0 }
 0x291   :  { %369 = vrot.lane.b32.xlu0 %v7738_v39, %s7502_s0 }
 0x301   :  { %v448_v41 = vpop.permute.xlu1 %447 }
 0x303   :  { %v370_v40 = vpop.permute.xlu0 %369 }
 0x304   :  { %6497 = vmatpush3.xpose.msk.msra.mxu1 %vm371_vm2, %v370_v40 }
 0x305   :  { %6501 = vmatprep.subr.mxu1 %v7500_v34 }
 0x307   :  { %6499 = vmatmul.mubr.msk.f32.vlgmr.msra.gmra.mxu1 %vm371_vm2, %v7738_v39 }
 0x308   :  { %6502 = vmatpush3.xpose.msk.msra.mxu1 %vm371_vm2, %v448_v41  ;;  %6503 = vmatprep.mubr.msk.f32.mxu1 %vm7501_vm1, %v7500_v34 }
 0x309   :  { %6511 = vmatprep.subr.mxu1 %v7500_v34 }
 0x30b   :  { %6504 = vmatmul.mubr.msk.f32.vlgmr.msra.gmra.mxu1 %vm371_vm2, %v7736_v37 }
 0x30c   :  { %6513 = vmatprep.mubr.msk.f32.mxu1 %vm7501_vm1, %v7500_v34 }
 0x3c7   :  { %v442_v42 = vpop.f32.mrf.mxu1 }
 0x3c8   :  { %v523_v44 = vmul.f32 0.35355338, %v442_v42  ;;  %v364_v42 = vld [vmem:[%s9082_s5] sm:$0xff] }
 0x3c9   :  { %v6500_v45 = vpop.f32.mrf.mxu1 }
 0x3ca   :  { %v537_v46 = vadd.f32 %v7756_v43, %v523_v44 }
 0x3cb   :  { %v519_v47 = vpop.f32.mrf.mxu1 }
 0x3cc   :  { %v524_v49 = vmul.f32 0.35355338, %v519_v47  ;;  %v539_v50 = vsel %vm371_vm2, %v537_v46, -inf }
 0x3cd   :  { %v6505_v51 = vpop.f32.mrf.mxu1  ;;  %540 = vmax.xlane.f32.xlu1 %v539_v50 }
 0x3ce   :  { %v538_v52 = vadd.f32 %v7759_v48, %v524_v49 }
 0x3d0   :  { %v542_v53 = vsel %vm371_vm2, %v538_v52, -inf }
 0x3d1   :  { %543 = vmax.xlane.f32.xlu0 %v542_v53 }
 0x3de   :  { %637 = vrot.lane.b32.xlu1 %v7736_v37, %s7503_s4 }
 0x3e2   :  { %715 = vrot.lane.b32.xlu1 %v7738_v39, %s7504_s24 }
 0x3e6   :  { %793 = vrot.lane.b32.xlu1 %v7736_v37, %s7504_s24 }
 0x456   :  { %v541_v54 = vpop.xlane.xlu1 %540 }
 0x457   :  { %v545_v55 = vsub.f32 %v537_v46, %v541_v54 }
 0x459   :  { %v547_v56 = vmul.f32 1.442695, %v545_v55  ;;  %v365_v55 = vld [vmem:[%s9082_s5 + $0x8] sm:$0xff] }
 0x45a   :  { %v544_v57 = vpop.xlane.xlu0 %543  ;;  %v638_v58 = vpop.permute.xlu1 %637 }
 0x45b   :  { %6836 = vpow2.f32 %v547_v56  ;;  %v546_v59 = vsub.f32 %v538_v52, %v544_v57  ;;  %6512 = vmatpush3.msra.mxu1 %v638_v58 }
 0x45c   :  { %6521 = vmatprep.subr.mxu1 %v7500_v34 }
 0x45d   :  { %v549_v60 = vmul.f32 1.442695, %v546_v59 }
 0x45e   :  { %v716_v1 = vpop.permute.xlu1 %715 }
 0x45f   :  { %6838 = vpow2.f32 %v549_v60 }
 0x462   :  { %v794_v2 = vpop.permute.xlu1 %793 }
 0x468   :  { %v6837_v61 = vpop.eup %6836 }
 0x469   :  { %v551_v62 = vsel %vm371_vm2, %v6837_v61, 0.0 }
 0x46a   :  { %552 = vadd.xlane.f32.xlu0 %v551_v62 }
 0x46c   :  { %v6839_v63 = vpop.eup %6838 }
 0x46d   :  { %v554_v0 = vsel %vm371_vm2, %v6839_v63, 0.0 }
 0x46e   :  { %555 = vadd.xlane.f32.xlu1 %v554_v0 }
 0x47f   :  { %791 = vrot.lane.b32.xlu1 %v7736_v37, %s7505_s30 }
 0x480   :  { %561 = vrot.lane.b32.xlu0 %v7738_v39, %s7503_s4 }
 0x484   :  { %713 = vrot.lane.b32.xlu0 %v7738_v39, %s7505_s30 }
 0x4f3   :  { %v553_v3 = vpop.xlane.xlu0 %552 }
 0x4f4   :  { %6840 = vrcp.f32 %v553_v3 }
 0x4f7   :  { %v562_v4 = vpop.permute.xlu0 %561  ;;  %v556_v5 = vpop.xlane.xlu1 %555 }
 0x4f8   :  { %6842 = vrcp.f32 %v556_v5  ;;  %6507 = vmatpush3.msra.mxu0 %v562_v4 }
 0x4f9   :  { %6516 = vmatprep.subr.mxu0 %v7500_v34 }
 0x4fb   :  { %v714_v10 = vpop.permute.xlu0 %713  ;;  %v792_v11 = vpop.permute.xlu1 %791 }
 0x501   :  { %v6841_v6 = vpop.eup %6840 }
 0x502   :  { %v559_v7 = vmul.f32 %v6841_v6, %v6837_v61 }
 0x504   :  { %6509 = vmatmul.mubr.msk.f32.vlgmr.msra.gmra.mxu0 %vm371_vm2, %v559_v7 }
 0x505   :  { %v6843_v8 = vpop.eup %6842  ;;  %6517 = vmatpush3.xpose.msk.msra.mxu0 %vm371_vm2, %v716_v1  ;;  %6518 = vmatprep.mubr.msk.f32.mxu0 %vm7501_vm1, %v7500_v34 }
 0x506   :  { %v560_v9 = vmul.f32 %v6843_v8, %v6839_v63  ;;  %6526 = vmatprep.subr.mxu0 %v7500_v34 }
 0x508   :  { %6514 = vmatmul.mubr.msk.f32.vlgmr.msra.gmra.mxu1 %vm371_vm2, %v560_v9  ;;  %6519 = vmatmul.mubr.msk.f32.vlgmr.msra.gmra.mxu0 %vm371_vm2, %v714_v10 }
 0x509   :  { %6522 = vmatpush3.xpose.msk.msra.mxu1 %vm371_vm2, %v794_v2  ;;  %6523 = vmatprep.mubr.msk.f32.mxu1 %vm7501_vm1, %v7500_v34 }
 0x50a   :  { %6531 = vmatprep.subr.mxu1 %v7500_v34  ;;  %6528 = vmatprep.mubr.msk.f32.mxu0 %vm7501_vm1, %v7500_v34 }
 0x50c   :  { %6524 = vmatmul.mubr.msk.f32.vlgmr.msra.gmra.mxu1 %vm371_vm2, %v792_v11 }
 0x50d   :  { %6533 = vmatprep.mubr.msk.f32.mxu1 %vm7501_vm1, %v7500_v34 }
 0x5c4   :  { %v633_v12 = vpop.f32.mrf.mxu0 }
 0x5c6   :  { %v6510_v13 = vpop.f32.mrf.mxu0 }
 0x5c8   :  { %v709_v14 = vpop.f32.mrf.mxu1  ;;  %v787_v15 = vpop.f32.mrf.mxu0 }
 0x5c9   :  { %v869_v16 = vmul.f32 0.35355338, %v787_v15 }
 0x5ca   :  { %v6515_v17 = vpop.f32.mrf.mxu1  ;;  %v6520_v18 = vpop.f32.mrf.mxu0 }
 0x5cb   :  { %v871_v19 = vadd.f32 %v7756_v43, %v869_v16 }
 0x5cc   :  { %v865_v20 = vpop.f32.mrf.mxu1 }
 0x5cd   :  { %v870_v21 = vmul.f32 0.35355338, %v865_v20  ;;  %v873_v22 = vsel %vm371_vm2, %v871_v19, -inf }
 0x5ce   :  { %874 = vmax.xlane.f32.xlu0 %v873_v22  ;;  %v6525_v23 = vpop.f32.mrf.mxu1 }
 0x5cf   :  { %v872_v24 = vadd.f32 %v7759_v48, %v870_v21 }
 0x5d1   :  { %v876_v25 = vsel %vm371_vm2, %v872_v24, -inf }
 0x5d2   :  { %877 = vmax.xlane.f32.xlu1 %v876_v25 }
 0x5e3   :  { %971 = vrot.lane.b32.xlu1 %v7736_v37, %s7506_s26 }
 0x5e7   :  { %1211 = vrot.lane.b32.xlu1 %v7738_v39, %s7507_s9 }
 0x5eb   :  { %1289 = vrot.lane.b32.xlu1 %v7736_v37, %s7507_s9 }
 0x5ef   :  { %1287 = vrot.lane.b32.xlu1 %v7736_v37, %s7508_s2 }
 0x657   :  { %v875_v26 = vpop.xlane.xlu0 %874 }
 0x658   :  { %v879_v27 = vsub.f32 %v871_v19, %v875_v26 }
 0x65a   :  { %v881_v28 = vmul.f32 1.442695, %v879_v27 }
 0x65b   :  { %v878_v29 = vpop.xlane.xlu1 %877 }
 0x65c   :  { %6844 = vpow2.f32 %v881_v28  ;;  %v880_v30 = vsub.f32 %v872_v24, %v878_v29 }
 0x65e   :  { %v883_v32 = vmul.f32 1.442695, %v880_v30 }
 0x65f   :  { %v972_v35 = vpop.permute.xlu1 %971 }
 0x660   :  { %6846 = vpow2.f32 %v883_v32  ;;  %6532 = vmatpush3.msra.mxu1 %v972_v35 }
 0x661   :  { %6541 = vmatprep.subr.mxu1 %v364_v42 }
 0x663   :  { %v1212_v50 = vpop.permute.xlu1 %1211 }
 0x667   :  { %v1290_v53 = vpop.permute.xlu1 %1289 }
 0x669   :  { %v6845_v36 = vpop.eup %6844 }
 0x66a   :  { %v885_v38 = vsel %vm371_vm2, %v6845_v36, 0.0 }
 0x66b   :  { %886 = vadd.xlane.f32.xlu0 %v885_v38  ;;  %v1288_v54 = vpop.permute.xlu1 %1287 }
 0x66d   :  { %v6847_v40 = vpop.eup %6846 }
 0x66e   :  { %v888_v41 = vsel %vm371_vm2, %v6847_v40, 0.0 }
 0x66f   :  { %889 = vadd.xlane.f32.xlu0 %v888_v41 }
 0x685   :  { %895 = vrot.lane.b32.xlu0 %v7738_v39, %s7506_s26 }
 0x689   :  { %1209 = vrot.lane.b32.xlu0 %v7738_v39, %s7508_s2 }
 0x6f4   :  { %v887_v44 = vpop.xlane.xlu0 %886 }
 0x6f5   :  { %6848 = vrcp.f32 %v887_v44 }
 0x6f8   :  { %v890_v45 = vpop.xlane.xlu0 %889 }
 0x6f9   :  { %6850 = vrcp.f32 %v890_v45 }
 0x6fc   :  { %v896_v46 = vpop.permute.xlu0 %895 }
 0x6fd   :  { %6527 = vmatpush3.msra.mxu0 %v896_v46 }
 0x6fe   :  { %6536 = vmatprep.subr.mxu0 %v365_v55 }
 0x700   :  { %v1210_v60 = vpop.permute.xlu0 %1209 }
 0x702   :  { %v6849_v47 = vpop.eup %6848 }
 0x703   :  { %v893_v49 = vmul.f32 %v6849_v47, %v6845_v36  ;;  %v366_v36 = vld [vmem:[%s9082_s5 + $0x10] sm:$0xff] }
 0x705   :  { %6529 = vmatmul.mubr.msk.f32.vlgmr.msra.gmra.mxu0 %vm371_vm2, %v893_v49 }
 0x706   :  { %v6851_v51 = vpop.eup %6850  ;;  %6537 = vmatpush3.msra.mxu0 %v365_v55 }
 0x707   :  { %v894_v52 = vmul.f32 %v6851_v51, %v6847_v40  ;;  %6546 = vmatprep.subr.mxu0 %v7500_v34 }
 0x709   :  { %6534 = vmatmul.mubr.msk.f32.vlgmr.msra.gmra.mxu1 %vm371_vm2, %v894_v52 }
 0x70a   :  { %6543 = vmatprep.mubr.msk.f32.mxu1 %vm371_vm2, %v633_v12  ;;  %6542 = vmatpush3.msra.mxu1 %v364_v42 }
 0x70b   :  { %6551 = vmatprep.subr.mxu1 %v7500_v34 }
 0x70d   :  { %6544 = vmatmul.mubr.msk.f32.vlgmr.msra.gmra.mxu1 %vm371_vm2, %v709_v14 }
 0x70e   :  { %6552 = vmatpush3.xpose.msk.msra.mxu1 %vm371_vm2, %v1290_v53  ;;  %6553 = vmatprep.mubr.msk.f32.mxu1 %vm7501_vm1, %v7500_v34 }
 0x70f   :  { %6561 = vmatprep.subr.mxu1 %v7500_v34 }
 0x711   :  { %6554 = vmatmul.mubr.msk.f32.vlgmr.msra.gmra.mxu1 %vm371_vm2, %v1288_v54 }
 0x712   :  { %6563 = vmatprep.mubr.msk.f32.mxu1 %vm7501_vm1, %v7500_v34 }
 0x7c5   :  { %v967_v56 = vpop.f32.mrf.mxu0 }
 0x7c6   :  { %6538 = vmatprep.mubr.msk.f32.mxu0 %vm371_vm2, %v967_v56 }
 0x7c7   :  { %v6530_v57 = vpop.f32.mrf.mxu0 }
 0x7c9   :  { %v1043_v58 = vpop.f32.mrf.mxu1 }
 0x7ca   :  { %6539 = vmatmul.mubr.msk.f32.vlgmr.msra.gmra.mxu0 %vm371_vm2, %v1043_v58 }
 0x7cb   :  { %6547 = vmatpush3.xpose.msk.msra.mxu0 %vm371_vm2, %v1212_v50  ;;  %v6535_v59 = vpop.f32.mrf.mxu1  ;;  %6548 = vmatprep.mubr.msk.f32.mxu0 %vm7501_vm1, %v7500_v34 }
 0x7cc   :  { %6556 = vmatprep.subr.mxu0 %v7500_v34 }
 0x7cd   :  { %v7839_v61 = vpop.f32.mrf.mxu1 }
 0x7ce   :  { %6549 = vmatmul.mubr.msk.f32.vlgmr.msra.gmra.mxu0 %vm371_vm2, %v1210_v60 }
 0x7cf   :  { %v7842_v62 = vpop.f32.mrf.mxu1  ;;  %6558 = vmatprep.mubr.msk.f32.mxu0 %vm7501_vm1, %v7500_v34 }
 0x7d1   :  { %v1361_v63 = vpop.f32.mrf.mxu1 }
 0x7d2   :  { %v1366_v0 = vmul.f32 0.35355338, %v1361_v63 }
 0x7d3   :  { %v6555_v1 = vpop.f32.mrf.mxu1 }
 0x7d4   :  { %v1368_v2 = vadd.f32 %v7759_v48, %v1366_v0 }
 0x7d6   :  { %v1372_v3 = vsel %vm371_vm2, %v1368_v2, -inf }
 0x7d7   :  { %1373 = vmax.xlane.f32.xlu1 %v1372_v3 }
 0x7e8   :  { %1467 = vrot.lane.b32.xlu1 %v7736_v37, %s7509_s7 }
 0x7ec   :  { %1628 = vrot.lane.b32.xlu1 %v7738_v39, %s7510_s3 }
 0x7f0   :  { %1706 = vrot.lane.b32.xlu1 %v7736_v37, %s7510_s3 }
 0x7f4   :  { %1704 = vrot.lane.b32.xlu1 %v7736_v37, %s7511_s27 }
 0x860   :  { %v1374_v4 = vpop.xlane.xlu1 %1373 }
 0x861   :  { %v1376_v6 = vsub.f32 %v1368_v2, %v1374_v4 }
 0x863   :  { %v1379_v7 = vmul.f32 1.442695, %v1376_v6 }
 0x864   :  { %v1468_v5 = vpop.permute.xlu1 %1467 }
 0x865   :  { %6562 = vmatpush3.msra.mxu1 %v1468_v5  ;;  %6852 = vpow2.f32 %v1379_v7 }
 0x866   :  { %6571 = vmatprep.subr.mxu1 %v7500_v34 }
 0x868   :  { %v1629_v25 = vpop.permute.xlu1 %1628 }
 0x86c   :  { %v1707_v45 = vpop.permute.xlu1 %1706 }
 0x870   :  { %v1705_v49 = vpop.permute.xlu1 %1704 }
 0x872   :  { %v6853_v15 = vpop.eup %6852 }
 0x873   :  { %v1384_v16 = vsel %vm371_vm2, %v6853_v15, 0.0 }
 0x88a   :  { %v7857_v8 = vpop.f32.mrf.mxu0 }
 0x88b   :  { %v1206_v55 = vadd.f32 %v7839_v61, %v7857_v8 }
 0x88c   :  { %v7859_v9 = vpop.f32.mrf.mxu0 }
 0x88d   :  { %v1201_v57 = vadd.f32 %v7842_v62, %v7859_v9 }
 0x88e   :  { %v1283_v10 = vpop.f32.mrf.mxu0 }
 0x88f   :  { %v1365_v11 = vmul.f32 0.35355338, %v1283_v10 }
 0x890   :  { %v6550_v12 = vpop.f32.mrf.mxu0 }
 0x891   :  { %v1367_v13 = vadd.f32 %v7756_v43, %v1365_v11 }
 0x893   :  { %v1369_v14 = vsel %vm371_vm2, %v1367_v13, -inf }
 0x894   :  { %1370 = vmax.xlane.f32.xlu0 %v1369_v14  ;;  %v367_v14 = vld [vmem:[%s9082_s5 + $0x18] sm:$0xff] }
 0x898   :  { %1385 = vadd.xlane.f32.xlu0 %v1384_v16 }
 0x91d   :  { %v1371_v17 = vpop.xlane.xlu0 %1370 }
 0x91e   :  { %v1375_v18 = vsub.f32 %v1367_v13, %v1371_v17 }
 0x920   :  { %v1377_v19 = vmul.f32 1.442695, %v1375_v18 }
 0x921   :  { %v1386_v20 = vpop.xlane.xlu0 %1385 }
 0x922   :  { %6854 = vpow2.f32 %v1377_v19  ;;  %v6266_v19 = vld [vmem:[#allocation11] ss:$0 sm:$0xff] }
 0x923   :  { %6856 = vrcp.f32 %v1386_v20 }
 0x92f   :  { %v6855_v21 = vpop.eup %6854 }
 0x930   :  { %v6857_v22 = vpop.eup %6856  ;;  %v1381_v23 = vsel %vm371_vm2, %v6855_v21, 0.0 }
 0x931   :  { %1382 = vadd.xlane.f32.xlu0 %v1381_v23  ;;  %v1390_v24 = vmul.f32 %v6857_v22, %v6853_v15 }
 0x933   :  { %6564 = vmatmul.mubr.msk.f32.vlgmr.msra.gmra.mxu1 %vm371_vm2, %v1390_v24 }
 0x934   :  { %6572 = vmatpush3.xpose.msk.msra.mxu1 %vm371_vm2, %v1629_v25  ;;  %6573 = vmatprep.mubr.msk.f32.mxu1 %vm7501_vm1, %v7500_v34 }
 0x935   :  { %6581 = vmatprep.subr.mxu1 %v7500_v34 }
 0x947   :  { %1391 = vrot.lane.b32.xlu0 %v7738_v39, %s7509_s7 }
 0x94b   :  { %1626 = vrot.lane.b32.xlu0 %v7738_v39, %s7511_s27 }
 0x9ba   :  { %v1383_v26 = vpop.xlane.xlu0 %1382 }
 0x9bb   :  { %6858 = vrcp.f32 %v1383_v26 }
 0x9be   :  { %v1392_v27 = vpop.permute.xlu0 %1391 }
 0x9bf   :  { %6557 = vmatpush3.msra.mxu0 %v1392_v27 }
 0x9c0   :  { %6566 = vmatprep.subr.mxu0 %v366_v36 }
 0x9c2   :  { %v1627_v28 = vpop.permute.xlu0 %1626 }
 0x9c3   :  { %6574 = vmatmul.mubr.msk.f32.vlgmr.msra.gmra.mxu1 %vm371_vm2, %v1627_v28 }
 0x9c4   :  { %6583 = vmatprep.mubr.msk.f32.mxu1 %vm7501_vm1, %v7500_v34 }
 0x9c8   :  { %v6859_v29 = vpop.eup %6858 }
 0x9c9   :  { %v1389_v30 = vmul.f32 %v6859_v29, %v6855_v21 }
 0x9cb   :  { %6559 = vmatmul.mubr.msk.f32.vlgmr.msra.gmra.mxu0 %vm371_vm2, %v1389_v30 }
 0x9cc   :  { %6567 = vmatpush3.msra.mxu0 %v366_v36 }
 0x9cd   :  { %6576 = vmatprep.subr.mxu0 %v7500_v34 }
 0x9f3   :  { %v1539_v32 = vpop.f32.mrf.mxu1 }
 0x9f5   :  { %v6565_v35 = vpop.f32.mrf.mxu1 }
 0xa83   :  { %v1700_v38 = vpop.f32.mrf.mxu1 }
 0xa84   :  { %v1782_v40 = vmul.f32 0.35355338, %v1700_v38 }
 0xa85   :  { %v6575_v41 = vpop.f32.mrf.mxu1 }
 0xa86   :  { %v1784_v42 = vadd.f32 %v7756_v43, %v1782_v40 }
 0xa88   :  { %v1786_v44 = vsel %vm371_vm2, %v1784_v42, -inf }
 0xa89   :  { %1787 = vmax.xlane.f32.xlu0 %v1786_v44  ;;  %v2100_v44 = vld [vmem:[%s9049_s10 + $0x10] sm:$0xff] }
 0xa8b   :  { %v1463_v46 = vpop.f32.mrf.mxu0 }
 0xa8c   :  { %6568 = vmatprep.mubr.msk.f32.mxu0 %vm371_vm2, %v1463_v46  ;;  %v2098_v46 = vld [vmem:[%s9049_s10] sm:$0xff] }
 0xa8d   :  { %v6560_v47 = vpop.f32.mrf.mxu0  ;;  %6569 = vmatmul.mubr.msk.f32.vlgmr.msra.gmra.mxu0 %vm371_vm2, %v1539_v32 }
 0xa8e   :  { %6577 = vmatpush3.xpose.msk.msra.mxu0 %vm371_vm2, %v1707_v45  ;;  %6578 = vmatprep.mubr.msk.f32.mxu0 %vm7501_vm1, %v7500_v34  ;;  %v2099_v45 = vld [vmem:[%s9049_s10 + $0x8] sm:$0xff] }
 0xa8f   :  { %6586 = vmatprep.subr.mxu0 %v7500_v34 }
 0xa91   :  { %6579 = vmatmul.mubr.msk.f32.vlgmr.msra.gmra.mxu0 %vm371_vm2, %v1705_v49 }
 0xa92   :  { %6588 = vmatprep.mubr.msk.f32.mxu0 %vm7501_vm1, %v7500_v34 }
 0xb12   :  { %v1788_v50 = vpop.xlane.xlu0 %1787 }
 0xb13   :  { %v1792_v51 = vsub.f32 %v1784_v42, %v1788_v50 }
 0xb15   :  { %v1794_v52 = vmul.f32 1.442695, %v1792_v51 }
 0xb17   :  { %6860 = vpow2.f32 %v1794_v52 }
 0xb24   :  { %v6861_v53 = vpop.eup %6860 }
 0xb25   :  { %v1798_v54 = vsel %vm371_vm2, %v6861_v53, 0.0 }
 0xb26   :  { %1799 = vadd.xlane.f32.xlu0 %v1798_v54 }
 0xb4d   :  { %v6570_v56 = vpop.f32.mrf.mxu0 }
 0xb4e   :  { %v1625_v58 = vadd.f32 %v6570_v56, %v1206_v55  ;;  %v6267_v55 = vld [vmem:[#allocation12] ss:$0 sm:$0xff] }
 0xb4f   :  { %v1615_v59 = vpop.f32.mrf.mxu0 }
 0xb50   :  { %v1624_v60 = vadd.f32 %v1615_v59, %v1201_v57 }
 0xb51   :  { %v1778_v63 = vpop.f32.mrf.mxu0 }
 0xb52   :  { %v1783_v0 = vmul.f32 0.35355338, %v1778_v63 }
 0xb53   :  { %v6580_v1 = vpop.f32.mrf.mxu0 }
 0xb54   :  { %v1785_v2 = vadd.f32 %v7759_v48, %v1783_v0 }
 0xb56   :  { %v1789_v3 = vsel %vm371_vm2, %v1785_v2, -inf }
 0xb57   :  { %1790 = vmax.xlane.f32.xlu1 %v1789_v3  ;;  %v2214_v3 = vld [vmem:[%s9051_s12 + $0x30] sm:$0xff] }
 0xb68   :  { %1884 = vrot.lane.b32.xlu1 %v7736_v37, %s7512_s29 }
 0xbaf   :  { %v1800_v8 = vpop.xlane.xlu0 %1799 }
 0xbe0   :  { %v1791_v61 = vpop.xlane.xlu1 %1790 }
 0xbe1   :  { %v1793_v4 = vsub.f32 %v1785_v2, %v1791_v61  ;;  %v2215_v2 = vld [vmem:[%s9051_s12 + $0x38] sm:$0xff]  ;;  %v2213_v61 = vld [vmem:[%s9051_s12 + $0x28] sm:$0xff] }
 0xbe3   :  { %v1796_v5 = vmul.f32 1.442695, %v1793_v4  ;;  %v2212_v4 = vld [vmem:[%s9051_s12 + $0x20] sm:$0xff] }
 0xbe4   :  { %v1885_v6 = vpop.permute.xlu1 %1884 }
 0xbe5   :  { %6862 = vpow2.f32 %v1796_v5  ;;  %6587 = vmatpush3.msra.mxu0 %v1885_v6  ;;  %v2211_v5 = vld [vmem:[%s9051_s12 + $0x18] sm:$0xff]  ;;  %v2210_v6 = vld [vmem:[%s9051_s12 + $0x10] sm:$0xff] }
 0xbe6   :  { %6864 = vrcp.f32 %v1800_v8  ;;  %v6269_v8 = vld [vmem:[#allocation15] ss:$0 sm:$0xff] }
 0xbf2   :  { %v6863_v62 = vpop.eup %6862 }
 0xbf3   :  { %v1801_v7 = vsel %vm371_vm2, %v6863_v62, 0.0  ;;  %v6865_v10 = vpop.eup %6864 }
 0xbf4   :  { %1802 = vadd.xlane.f32.xlu0 %v1801_v7  ;;  %v1806_v37 = vmul.f32 %v6865_v10, %v6861_v53  ;;  %v2208_v7 = vld [vmem:[%s9051_s12] sm:$0xff] }
 0xc0a   :  { %1808 = vrot.lane.b32.xlu0 %v7738_v39, %s7512_s29 }
 0xc7d   :  { %v1803_v9 = vpop.xlane.xlu0 %1802 }
 0xc7e   :  { %6866 = vrcp.f32 %v1803_v9 }
 0xc81   :  { %v1809_v11 = vpop.permute.xlu0 %1808 }
 0xc82   :  { %6582 = vmatpush3.msra.mxu1 %v1809_v11 }
 0xc83   :  { %6584 = vmatmul.mubr.msk.f32.vlgmr.msra.gmra.mxu1 %vm371_vm2, %v1806_v37  ;;  %6591 = vmatprep.subr.mxu1 %v367_v14 }
 0xc84   :  { %6592 = vmatpush3.msra.mxu1 %v367_v14 }
 0xc85   :  { %6607 = vmatprep.subr.mxu1 %v2215_v2 }
 0xc8b   :  { %v6867_v12 = vpop.eup %6866 }
 0xc8c   :  { %v1807_v13 = vmul.f32 %v6867_v12, %v6863_v62  ;;  %v2209_v62 = vld [vmem:[%s9051_s12 + $0x8] sm:$0xff] }
 0xc8e   :  { %6589 = vmatmul.mubr.msk.f32.vlgmr.msra.gmra.mxu0 %vm371_vm2, %v1807_v13 }
 0xd43   :  { %v1880_v39 = vpop.f32.mrf.mxu1 }
 0xd44   :  { %6593 = vmatprep.mubr.msk.f32.mxu1 %vm371_vm2, %v1880_v39 }
 0xd45   :  { %v6585_v15 = vpop.f32.mrf.mxu1 }
 0xd4e   :  { %v1956_v16 = vpop.f32.mrf.mxu0 }
 0xd4f   :  { %6594 = vmatmul.mubr.msk.f32.vlgmr.msra.gmra.mxu1 %vm371_vm2, %v1956_v16 }
 0xd50   :  { %v6590_v17 = vpop.f32.mrf.mxu0  ;;  %6608 = vmatpush3.msra.mxu1 %v2215_v2  ;;  %v6275_v2 = vld [vmem:[#allocation18] ss:$0 sm:$0xff] }
 0xd51   :  { %6609 = vmatprep.subr.mxu1 %v2214_v3 }
 0xd52   :  { %6610 = vmatpush3.msra.mxu1 %v2214_v3 }
 0xd53   :  { %6611 = vmatprep.subr.mxu1 %v2213_v61 }
 0xd54   :  { %6612 = vmatpush3.msra.mxu1 %v2213_v61 }
 0xd55   :  { %6613 = vmatprep.subr.mxu1 %v2212_v4 }
 0xd56   :  { %6614 = vmatpush3.msra.mxu1 %v2212_v4 }
 0xd57   :  { %6615 = vmatprep.subr.mxu1 %v2211_v5 }
 0xd58   :  { %6616 = vmatpush3.msra.mxu1 %v2211_v5 }
 0xd59   :  { %6617 = vmatprep.subr.mxu1 %v2210_v6 }
 0xd5a   :  { %6618 = vmatpush3.msra.mxu1 %v2210_v6  ;;  %v6276_v6 = vld [vmem:[#allocation20] ss:$0 sm:$0xff] }
 0xd5b   :  { %6619 = vmatprep.subr.mxu1 %v2209_v62 }
 0xd5c   :  { %6620 = vmatpush3.msra.mxu1 %v2209_v62 }
 0xd5d   :  { %6621 = vmatprep.subr.mxu1 %v2208_v7 }
 0xd5e   :  { %6622 = vmatpush3.msra.mxu1 %v2208_v7 }
 0xd5f   :  { %6642 = vmatprep.subr.mxu1 %v7500_v34 }
 0xe0f   :  { %v6595_v18 = vpop.f32.mrf.mxu1 }
 0xe10   :  { %v2042_v20 = vadd.f32 %v6595_v18, %v1625_v58 }
 0xe11   :  { %v2032_v21 = vpop.f32.mrf.mxu1 }
 0xe12   :  { %v2051_v22 = vadd.f32 %v6266_v19, %v2042_v20  ;;  %v2041_v23 = vadd.f32 %v2032_v21, %v1624_v60  ;;  %v6268_v60 = vld [vmem:[#allocation14] ss:$0 sm:$0xff] }
 0xe14   :  { %v2050_v24 = vadd.f32 %v6266_v19, %v2041_v23  ;;  %v2053_v25 = vadd.f32 %v2051_v22, %v7726_v33 }
 0xe16   :  { %v2059_v26 = vsel %vm228_vm0, %v2053_v25, 0.0  ;;  %v2052_v27 = vadd.f32 %v2050_v24, %v7722_v31  ;;  %v2101_v31 = vld [vmem:[%s9049_s10 + $0x18] sm:$0xff] }
 0xe17   :  { %2060 = vadd.xlane.f32.xlu0 %v2059_v26  ;;  %6596 = vmatprep.subr.mxu0 %v2101_v31 }
 0xe18   :  { %v2056_v28 = vsel %vm228_vm0, %v2052_v27, 0.0  ;;  %6597 = vmatpush3.msra.mxu0 %v2101_v31 }
 0xe19   :  { %2057 = vadd.xlane.f32.xlu1 %v2056_v28  ;;  %6598 = vmatprep.subr.mxu0 %v2100_v44 }
 0xe1a   :  { %6599 = vmatpush3.msra.mxu0 %v2100_v44 }
 0xe1b   :  { %6600 = vmatprep.subr.mxu0 %v2099_v45 }
 0xe1c   :  { %6601 = vmatpush3.msra.mxu0 %v2099_v45 }
 0xe1d   :  { %6602 = vmatprep.subr.mxu0 %v2098_v46 }
 0xe1e   :  { %6603 = vmatpush3.msra.mxu0 %v2098_v46 }
 0xea0   :  { %v2061_v29 = vpop.xlane.xlu0 %2060 }
 0xea1   :  { %v2063_v30 = vmul.f32 0.03125, %v2061_v29  ;;  %v6272_v29 = vld [vmem:[#allocation17] ss:$0 sm:$0xff] }
 0xea2   :  { %v2058_v32 = vpop.xlane.xlu1 %2057 }
 0xea3   :  { %v2065_v35 = vsub.f32 %v2053_v25, %v2063_v30  ;;  %v2062_v36 = vmul.f32 0.03125, %v2058_v32 }
 0xea5   :  { %v2064_v38 = vsub.f32 %v2052_v27, %v2062_v36  ;;  %v2067_v40 = vmul.f32 %v2065_v35, %v2065_v35 }
 0xea7   :  { %v2071_v41 = vsel %vm228_vm0, %v2067_v40, 0.0  ;;  %v2066_v42 = vmul.f32 %v2064_v38, %v2064_v38 }
 0xea8   :  { %2072 = vadd.xlane.f32.xlu1 %v2071_v41 }
 0xea9   :  { %v2068_v33 = vsel %vm228_vm0, %v2066_v42, 0.0 }
 0xeaa   :  { %2069 = vadd.xlane.f32.xlu0 %v2068_v33 }
 0xf31   :  { %v2073_v47 = vpop.xlane.xlu1 %2072 }
 0xf32   :  { %v2075_v49 = vmul.f32 0.03125, %v2073_v47 }
 0xf33   :  { %v2070_v50 = vpop.xlane.xlu0 %2069 }
 0xf34   :  { %v2077_v51 = vadd.f32 1e-12, %v2075_v49  ;;  %v2074_v52 = vmul.f32 0.03125, %v2070_v50 }
 0xf36   :  { %6868 = vrsqrt.f32 %v2077_v51  ;;  %v2076_v53 = vadd.f32 1e-12, %v2074_v52 }
 0xf38   :  { %6870 = vrsqrt.f32 %v2076_v53  ;;  %v6280_v53 = vld [vmem:[%s9080_s25 + $0x38] sm:$0xff] }
 0xf39   :  { %6626 = vmatprep.subr.mxu0 %v6280_v53 }
 0xf43   :  { %v6869_v54 = vpop.eup %6868 }
 0xf44   :  { %v2081_v56 = vmul.f32 %v6869_v54, %v2065_v35  ;;  %v6279_v54 = vld [vmem:[%s9080_s25 + $0x30] sm:$0xff] }
 0xf45   :  { %v6871_v57 = vpop.eup %6870 }
 0xf46   :  { %v2080_v58 = vmul.f32 %v6871_v57, %v2064_v38  ;;  %v2089_v59 = vmul.f32 %v6267_v55, %v2081_v56  ;;  %v6277_v56 = vld [vmem:[%s9080_s25 + $0x20] sm:$0xff] }
 0xf48   :  { %v2088_v63 = vmul.f32 %v6267_v55, %v2080_v58  ;;  %v2097_v1 = vadd.f32 %v6268_v60, %v2089_v59  ;;  %v6278_v55 = vld [vmem:[%s9080_s25 + $0x28] sm:$0xff] }
 0xf4a   :  { %v7930_v0 = vadd.f32 %v6268_v60, %v2088_v63 }
 0xf4c   :  { %6604 = vmatprep.mubr.msk.f32.mxu0 %vm228_vm0, %v7930_v0 }
 0xf4d   :  { %6605 = vmatmul.mubr.msk.f32.vlgmr.msra.gmra.mxu0 %vm228_vm0, %v2097_v1 }
 0xf4e   :  { %6627 = vmatpush3.msra.mxu0 %v6280_v53 }
 0xf4f   :  { %6628 = vmatprep.subr.mxu0 %v6279_v54 }
 0xf50   :  { %6629 = vmatpush3.msra.mxu0 %v6279_v54 }
 0xf51   :  { %6630 = vmatprep.subr.mxu0 %v6278_v55 }
 0xf52   :  { %6631 = vmatpush3.msra.mxu0 %v6278_v55 }
 0xf53   :  { %6632 = vmatprep.subr.mxu0 %v6277_v56 }
 0xf54   :  { %6633 = vmatpush3.msra.mxu0 %v6277_v56 }
 0xf55   :  { %6637 = vmatprep.subr.mxu0 %v7500_v34 }
0x100d   :  { %v6606_v9 = vpop.f32.mrf.mxu0 }
0x100e   :  { %v2187_v10 = vadd.f32 %v6606_v9, %v6269_v8  ;;  %v6281_v9 = vld [vmem:[#allocation9 + $0x1] ss:$0 sm:$0xff] }
0x100f   :  { %v2181_v11 = vpop.f32.mrf.mxu0 }
0x1010   :  { %v2193_v37 = vmul.f32 0.044715, %v2187_v10  ;;  %v2182_v12 = vadd.f32 %v6269_v8, %v2181_v11  ;;  %v2191_v26 = vmul.f32 0.5, %v2187_v10 }
0x1012   :  { %v2195_v13 = vmul.f32 %v2193_v37, %v2187_v10  ;;  %v2192_v14 = vmul.f32 0.044715, %v2182_v12  ;;  %v2190_v24 = vmul.f32 0.5, %v2182_v12 }
0x1014   :  { %v2197_v39 = vmul.f32 %v2195_v13, %v2187_v10  ;;  %v2194_v15 = vmul.f32 %v2192_v14, %v2182_v12 }
0x1016   :  { %v2199_v16 = vadd.f32 %v2197_v39, %v2187_v10  ;;  %v2196_v17 = vmul.f32 %v2194_v15, %v2182_v12 }
0x1018   :  { %v2201_v18 = vmul.f32 0.7978846, %v2199_v16  ;;  %v2198_v19 = vadd.f32 %v2196_v17, %v2182_v12 }
0x101a   :  { %6872 = vtanh.f32 %v2201_v18  ;;  %v2200_v20 = vmul.f32 0.7978846, %v2198_v19 }
0x101c   :  { %6874 = vtanh.f32 %v2200_v20 }
0x1027   :  { %v6873_v21 = vpop.eup %6872 }
0x1028   :  { %v2205_v23 = vadd.f32 1.0, %v6873_v21 }
0x1029   :  { %v6875_v22 = vpop.eup %6874 }
0x102a   :  { %v2204_v25 = vadd.f32 1.0, %v6875_v22  ;;  %v2207_v28 = vmul.f32 %v2205_v23, %v2191_v26 }
0x102c   :  { %v2206_v27 = vmul.f32 %v2204_v25, %v2190_v24 }
0x102e   :  { %6623 = vmatprep.mubr.msk.f32.mxu1 %vm2223_vm3, %v2206_v27 }
0x102f   :  { %6624 = vmatmul.mubr.msk.f32.vlgmr.msra.gmra.mxu1 %vm2223_vm3, %v2207_v28 }
0x1030   :  { %6644 = vmatprep.mubr.msk.f32.mxu1 %vm7501_vm1, %v7500_v34 }
0x10ef   :  { %v6625_v30 = vpop.f32.mrf.mxu1 }
0x10f0   :  { %v2302_v32 = vadd.f32 %v6625_v30, %v6272_v29 }
0x10f1   :  { %v2296_v35 = vpop.f32.mrf.mxu1 }
0x10f2   :  { %v2297_v36 = vadd.f32 %v6272_v29, %v2296_v35  ;;  %v2306_v38 = vadd.f32 %v2302_v32, %v2097_v1 }
0x10f4   :  { %v2312_v40 = vsel %vm228_vm0, %v2306_v38, 0.0  ;;  %v2305_v41 = vadd.f32 %v2297_v36, %v7930_v0 }
0x10f5   :  { %2313 = vadd.xlane.f32.xlu1 %v2312_v40 }
0x10f6   :  { %v2309_v42 = vsel %vm228_vm0, %v2305_v41, 0.0 }
0x10f7   :  { %2310 = vadd.xlane.f32.xlu0 %v2309_v42 }
0x117e   :  { %v2314_v33 = vpop.xlane.xlu1 %2313 }
0x117f   :  { %v2316_v31 = vmul.f32 0.03125, %v2314_v33 }
0x1180   :  { %v2311_v44 = vpop.xlane.xlu0 %2310 }
0x1181   :  { %v2318_v45 = vsub.f32 %v2306_v38, %v2316_v31  ;;  %v2315_v46 = vmul.f32 0.03125, %v2311_v44 }
0x1183   :  { %v2317_v47 = vsub.f32 %v2305_v41, %v2315_v46  ;;  %v2320_v49 = vmul.f32 %v2318_v45, %v2318_v45 }
0x1185   :  { %v2324_v50 = vsel %vm228_vm0, %v2320_v49, 0.0  ;;  %v2319_v51 = vmul.f32 %v2317_v47, %v2317_v47 }
0x1186   :  { %2325 = vadd.xlane.f32.xlu1 %v2324_v50 }
0x1187   :  { %v2321_v52 = vsel %vm228_vm0, %v2319_v51, 0.0 }
0x1188   :  { %2322 = vadd.xlane.f32.xlu0 %v2321_v52 }
0x120f   :  { %v2326_v57 = vpop.xlane.xlu1 %2325 }
0x1210   :  { %v2328_v58 = vmul.f32 0.03125, %v2326_v57 }
0x1211   :  { %v2323_v59 = vpop.xlane.xlu0 %2322 }
0x1212   :  { %v2330_v60 = vadd.f32 1e-12, %v2328_v58  ;;  %v2327_v63 = vmul.f32 0.03125, %v2323_v59  ;;  %v8048_v58 = vld [vmem:[#allocation6 + $0x1] ss:$0 sm:$0xff] }
0x1214   :  { %6876 = vrsqrt.f32 %v2330_v60  ;;  %v2329_v0 = vadd.f32 1e-12, %v2327_v63 }
0x1216   :  { %6878 = vrsqrt.f32 %v2329_v0  ;;  %v8052_v0 = vld [vmem:[#allocation6] ss:$0 sm:$0xff] }
0x1221   :  { %v6877_v1 = vpop.eup %6876 }
0x1222   :  { %v2334_v3 = vmul.f32 %v6877_v1, %v2318_v45 }
0x1223   :  { %v6879_v61 = vpop.eup %6878 }
0x1224   :  { %v2333_v4 = vmul.f32 %v6879_v61, %v2317_v47  ;;  %v2342_v5 = vmul.f32 %v6275_v2, %v2334_v3 }
0x1226   :  { %v2341_v62 = vmul.f32 %v6275_v2, %v2333_v4  ;;  %v7984_v8 = vadd.f32 %v6276_v6, %v2342_v5 }
0x1228   :  { %v7982_v7 = vadd.f32 %v6276_v6, %v2341_v62 }
0x122a   :  { %6634 = vmatprep.mubr.msk.f32.mxu0 %vm228_vm0, %v7982_v7 }
0x122b   :  { %6635 = vmatmul.mubr.msk.f32.vlgmr.msra.gmra.mxu0 %vm228_vm0, %v7984_v8 }
0x122c   :  { %6639 = vmatprep.mubr.msk.f32.mxu0 %vm7501_vm1, %v7500_v34 }
0x12eb   :  { %v6636_v10 = vpop.f32.mrf.mxu0 }
0x12ec   :  { %v7992_v11 = vadd.f32 %v6636_v10, %v6281_v9 }
0x12ed   :  { %v2436_v37 = vpop.f32.mrf.mxu0 }
0x12ee   :  { %v7994_v12 = vadd.f32 %v6281_v9, %v2436_v37  ;;  %2528 = vrot.lane.b32.xlu1 %v7992_v11, %s7502_s0 }
0x12f0   :  { %2451 = vrot.lane.b32.xlu0 %v7994_v12, %s7502_s0 }
0x1360   :  { %v2529_v13 = vpop.permute.xlu1 %2528 }
0x1361   :  { %6643 = vmatpush3.xpose.msk.msra.mxu1 %vm371_vm2, %v2529_v13 }
0x1362   :  { %v2452_v14 = vpop.permute.xlu0 %2451  ;;  %6652 = vmatprep.subr.mxu1 %v7500_v34 }
0x1363   :  { %6638 = vmatpush3.xpose.msk.msra.mxu0 %vm371_vm2, %v2452_v14 }
0x1364   :  { %6645 = vmatmul.mubr.msk.f32.vlgmr.msra.gmra.mxu1 %vm371_vm2, %v7992_v11  ;;  %6647 = vmatprep.subr.mxu0 %v7500_v34 }
0x1365   :  { %6654 = vmatprep.mubr.msk.f32.mxu1 %vm7501_vm1, %v7500_v34 }
0x1366   :  { %6640 = vmatmul.mubr.msk.f32.vlgmr.msra.gmra.mxu0 %vm371_vm2, %v7994_v12 }
0x1367   :  { %6649 = vmatprep.mubr.msk.f32.mxu0 %vm7501_vm1, %v7500_v34 }
0x1424   :  { %v2600_v39 = vpop.f32.mrf.mxu1 }
0x1425   :  { %v2605_v15 = vmul.f32 0.35355338, %v2600_v39  ;;  %v6284_v39 = vld [vmem:[%s9082_s5 + $0x20] sm:$0xff] }
0x1426   :  { %v2523_v16 = vpop.f32.mrf.mxu0  ;;  %v6646_v17 = vpop.f32.mrf.mxu1 }
0x1427   :  { %v2604_v18 = vmul.f32 0.35355338, %v2523_v16  ;;  %v2607_v19 = vadd.f32 %v7759_v48, %v2605_v15 }
0x1428   :  { %v6641_v20 = vpop.f32.mrf.mxu0 }
0x1429   :  { %v2611_v21 = vsel %vm371_vm2, %v2607_v19, -inf  ;;  %v2606_v22 = vadd.f32 %v7756_v43, %v2604_v18 }
0x142a   :  { %2612 = vmax.xlane.f32.xlu0 %v2611_v21 }
0x142b   :  { %v2608_v23 = vsel %vm371_vm2, %v2606_v22, -inf }
0x142c   :  { %2609 = vmax.xlane.f32.xlu1 %v2608_v23 }
0x14b3   :  { %v2613_v24 = vpop.xlane.xlu0 %2612 }
0x14b4   :  { %v2615_v25 = vsub.f32 %v2607_v19, %v2613_v24 }
0x14b5   :  { %v2610_v26 = vpop.xlane.xlu1 %2609 }
0x14b6   :  { %v2618_v27 = vmul.f32 1.442695, %v2615_v25  ;;  %v2614_v28 = vsub.f32 %v2606_v22, %v2610_v26  ;;  %v6285_v25 = vld [vmem:[%s9082_s5 + $0x28] sm:$0xff] }
0x14b8   :  { %6880 = vpow2.f32 %v2618_v27  ;;  %v2616_v29 = vmul.f32 1.442695, %v2614_v28 }
0x14ba   :  { %6882 = vpow2.f32 %v2616_v29 }
0x14c5   :  { %v6881_v30 = vpop.eup %6880 }
0x14c6   :  { %v2623_v48 = vsel %vm371_vm2, %v6881_v30, 0.0 }
0x14c7   :  { %v6883_v32 = vpop.eup %6882  ;;  %2624 = vadd.xlane.f32.xlu1 %v2623_v48 }
0x14c8   :  { %v2620_v35 = vsel %vm371_vm2, %v6883_v32, 0.0 }
0x14c9   :  { %2621 = vadd.xlane.f32.xlu0 %v2620_v35 }
0x14d8   :  { %2706 = vrot.lane.b32.xlu1 %v7992_v11, %s7503_s4 }
0x14dc   :  { %2784 = vrot.lane.b32.xlu1 %v7994_v12, %s7504_s24 }
0x14df   :  { %2630 = vrot.lane.b32.xlu0 %v7994_v12, %s7503_s4 }
0x14e0   :  { %2862 = vrot.lane.b32.xlu1 %v7992_v11, %s7504_s24 }
0x14e3   :  { %2782 = vrot.lane.b32.xlu0 %v7994_v12, %s7505_s30 }
0x14e4   :  { %2860 = vrot.lane.b32.xlu1 %v7992_v11, %s7505_s30 }
0x1550   :  { %v2625_v43 = vpop.xlane.xlu1 %2624 }
0x1551   :  { %6884 = vrcp.f32 %v2625_v43 }
0x1552   :  { %v2622_v36 = vpop.xlane.xlu0 %2621 }
0x1553   :  { %6886 = vrcp.f32 %v2622_v36 }
0x1554   :  { %v2707_v38 = vpop.permute.xlu1 %2706 }
0x1555   :  { %6653 = vmatpush3.msra.mxu1 %v2707_v38 }
0x1556   :  { %v2631_v40 = vpop.permute.xlu0 %2630  ;;  %6662 = vmatprep.subr.mxu1 %v7500_v34 }
0x1557   :  { %6648 = vmatpush3.msra.mxu0 %v2631_v40 }
0x1558   :  { %v2785_v41 = vpop.permute.xlu1 %2784  ;;  %6657 = vmatprep.subr.mxu0 %v7500_v34 }
0x155a   :  { %v2783_v47 = vpop.permute.xlu0 %2782 }
0x155c   :  { %v2863_v33 = vpop.permute.xlu1 %2862 }
0x155e   :  { %v6885_v42 = vpop.eup %6884 }
0x155f   :  { %v2629_v31 = vmul.f32 %v6885_v42, %v6881_v30 }
0x1560   :  { %v6887_v44 = vpop.eup %6886  ;;  %v2861_v46 = vpop.permute.xlu1 %2860 }
0x1561   :  { %6655 = vmatmul.mubr.msk.f32.vlgmr.msra.gmra.mxu1 %vm371_vm2, %v2629_v31  ;;  %v2628_v45 = vmul.f32 %v6887_v44, %v6883_v32 }
0x1562   :  { %6663 = vmatpush3.xpose.msk.msra.mxu1 %vm371_vm2, %v2863_v33  ;;  %6664 = vmatprep.mubr.msk.f32.mxu1 %vm7501_vm1, %v7500_v34 }
0x1563   :  { %6650 = vmatmul.mubr.msk.f32.vlgmr.msra.gmra.mxu0 %vm371_vm2, %v2628_v45  ;;  %6672 = vmatprep.subr.mxu1 %v7500_v34 }
0x1564   :  { %6658 = vmatpush3.xpose.msk.msra.mxu0 %vm371_vm2, %v2785_v41  ;;  %6659 = vmatprep.mubr.msk.f32.mxu0 %vm7501_vm1, %v7500_v34 }
0x1565   :  { %6665 = vmatmul.mubr.msk.f32.vlgmr.msra.gmra.mxu1 %vm371_vm2, %v2861_v46  ;;  %6667 = vmatprep.subr.mxu0 %v7500_v34 }
0x1566   :  { %6674 = vmatprep.mubr.msk.f32.mxu1 %vm7501_vm1, %v7500_v34 }
0x1567   :  { %6660 = vmatmul.mubr.msk.f32.vlgmr.msra.gmra.mxu0 %vm371_vm2, %v2783_v47 }
0x1568   :  { %6669 = vmatprep.mubr.msk.f32.mxu0 %vm7501_vm1, %v7500_v34 }
0x1621   :  { %v2778_v49 = vpop.f32.mrf.mxu1 }
0x1623   :  { %v2702_v50 = vpop.f32.mrf.mxu0  ;;  %v6656_v51 = vpop.f32.mrf.mxu1 }
0x1625   :  { %v6651_v52 = vpop.f32.mrf.mxu0  ;;  %v2934_v53 = vpop.f32.mrf.mxu1 }
0x1626   :  { %v2939_v54 = vmul.f32 0.35355338, %v2934_v53 }
0x1627   :  { %v2856_v55 = vpop.f32.mrf.mxu0  ;;  %v6666_v56 = vpop.f32.mrf.mxu1 }
0x1628   :  { %v2938_v57 = vmul.f32 0.35355338, %v2856_v55  ;;  %v2941_v59 = vadd.f32 %v8048_v58, %v2939_v54 }
0x1629   :  { %v6661_v60 = vpop.f32.mrf.mxu0 }
0x162a   :  { %v2945_v63 = vsel %vm371_vm2, %v2941_v59, -inf  ;;  %v2940_v1 = vadd.f32 %v8052_v0, %v2938_v57 }
0x162b   :  { %2946 = vmax.xlane.f32.xlu1 %v2945_v63 }
0x162c   :  { %v2942_v2 = vsel %vm371_vm2, %v2940_v1, -inf }
0x162d   :  { %2943 = vmax.xlane.f32.xlu0 %v2942_v2 }
0x163c   :  { %3040 = vrot.lane.b32.xlu1 %v7992_v11, %s7506_s26 }
0x1640   :  { %3280 = vrot.lane.b32.xlu1 %v7994_v12, %s7507_s9 }
0x1644   :  { %3358 = vrot.lane.b32.xlu1 %v7992_v11, %s7507_s9 }
0x1648   :  { %3356 = vrot.lane.b32.xlu1 %v7992_v11, %s7508_s2 }
0x16b4   :  { %v2947_v3 = vpop.xlane.xlu1 %2946 }
0x16b5   :  { %v2949_v61 = vsub.f32 %v2941_v59, %v2947_v3 }
0x16b6   :  { %v2944_v4 = vpop.xlane.xlu0 %2943 }
0x16b7   :  { %v2952_v5 = vmul.f32 1.442695, %v2949_v61  ;;  %v2948_v6 = vsub.f32 %v2940_v1, %v2944_v4 }
0x16b8   :  { %v3041_v62 = vpop.permute.xlu1 %3040 }
0x16b9   :  { %6888 = vpow2.f32 %v2952_v5  ;;  %v2950_v9 = vmul.f32 1.442695, %v2948_v6  ;;  %6673 = vmatpush3.msra.mxu1 %v3041_v62 }
0x16ba   :  { %6682 = vmatprep.subr.mxu1 %v6284_v39 }
0x16bb   :  { %6890 = vpow2.f32 %v2950_v9 }
0x16bc   :  { %v3281_v18 = vpop.permute.xlu1 %3280 }
0x16c0   :  { %v3359_v22 = vpop.permute.xlu1 %3358 }
0x16c4   :  { %v3357_v24 = vpop.permute.xlu1 %3356 }
0x16c6   :  { %v6889_v10 = vpop.eup %6888 }
0x16c7   :  { %v2957_v37 = vsel %vm371_vm2, %v6889_v10, 0.0 }
0x16c8   :  { %v6891_v13 = vpop.eup %6890  ;;  %2958 = vadd.xlane.f32.xlu0 %v2957_v37 }
0x16c9   :  { %v2954_v14 = vsel %vm371_vm2, %v6891_v13, 0.0 }
0x16cc   :  { %2955 = vadd.xlane.f32.xlu0 %v2954_v14 }
0x16e2   :  { %2964 = vrot.lane.b32.xlu0 %v7994_v12, %s7506_s26 }
0x16e6   :  { %3278 = vrot.lane.b32.xlu0 %v7994_v12, %s7508_s2  ;;  %s7515_s2 = smov 126  }
0x1751   :  { %v2959_v15 = vpop.xlane.xlu0 %2958 }
0x1752   :  { %6892 = vrcp.f32 %v2959_v15 }
0x1755   :  { %v2956_v16 = vpop.xlane.xlu0 %2955 }
0x1756   :  { %6894 = vrcp.f32 %v2956_v16 }
0x1759   :  { %v2965_v17 = vpop.permute.xlu0 %2964 }
0x175a   :  { %6668 = vmatpush3.msra.mxu0 %v2965_v17 }
0x175b   :  { %6677 = vmatprep.subr.mxu0 %v6285_v25 }
0x175d   :  { %v3279_v35 = vpop.permute.xlu0 %3278 }
0x175f   :  { %v6893_v19 = vpop.eup %6892 }
0x1760   :  { %v2963_v20 = vmul.f32 %v6893_v19, %v6889_v10  ;;  %v6286_v10 = vld [vmem:[%s9082_s5 + $0x30] sm:$0xff] }
0x1762   :  { %6675 = vmatmul.mubr.msk.f32.vlgmr.msra.gmra.mxu1 %vm371_vm2, %v2963_v20 }
0x1763   :  { %v6895_v21 = vpop.eup %6894  ;;  %6684 = vmatprep.mubr.msk.f32.mxu1 %vm371_vm2, %v2702_v50  ;;  %6683 = vmatpush3.msra.mxu1 %v6284_v39 }
0x1764   :  { %6692 = vmatprep.subr.mxu1 %v7500_v34  ;;  %v2962_v23 = vmul.f32 %v6895_v21, %v6891_v13 }
0x1766   :  { %6670 = vmatmul.mubr.msk.f32.vlgmr.msra.gmra.mxu0 %vm371_vm2, %v2962_v23  ;;  %6685 = vmatmul.mubr.msk.f32.vlgmr.msra.gmra.mxu1 %vm371_vm2, %v2778_v49 }
0x1767   :  { %6693 = vmatpush3.xpose.msk.msra.mxu1 %vm371_vm2, %v3359_v22  ;;  %6694 = vmatprep.mubr.msk.f32.mxu1 %vm7501_vm1, %v7500_v34 }
0x1768   :  { %6702 = vmatprep.subr.mxu1 %v7500_v34  ;;  %6678 = vmatpush3.msra.mxu0 %v6285_v25 }
0x1769   :  { %6687 = vmatprep.subr.mxu0 %v7500_v34 }
0x176a   :  { %6695 = vmatmul.mubr.msk.f32.vlgmr.msra.gmra.mxu1 %vm371_vm2, %v3357_v24 }
0x176b   :  { %6704 = vmatprep.mubr.msk.f32.mxu1 %vm7501_vm1, %v7500_v34 }
0x1822   :  { %v3112_v26 = vpop.f32.mrf.mxu1 }
0x1824   :  { %v6676_v27 = vpop.f32.mrf.mxu1 }
0x1826   :  { %v3036_v28 = vpop.f32.mrf.mxu0  ;;  %v8089_v29 = vpop.f32.mrf.mxu1 }
0x1827   :  { %6679 = vmatprep.mubr.msk.f32.mxu0 %vm371_vm2, %v3036_v28 }
0x1828   :  { %v6671_v30 = vpop.f32.mrf.mxu0  ;;  %6680 = vmatmul.mubr.msk.f32.vlgmr.msra.gmra.mxu0 %vm371_vm2, %v3112_v26  ;;  %v8093_v48 = vpop.f32.mrf.mxu1 }
0x1829   :  { %6688 = vmatpush3.xpose.msk.msra.mxu0 %vm371_vm2, %v3281_v18  ;;  %6689 = vmatprep.mubr.msk.f32.mxu0 %vm7501_vm1, %v7500_v34 }
0x182a   :  { %v3430_v32 = vpop.f32.mrf.mxu1  ;;  %6697 = vmatprep.subr.mxu0 %v7500_v34 }
0x182b   :  { %v3435_v43 = vmul.f32 0.35355338, %v3430_v32 }
0x182c   :  { %6690 = vmatmul.mubr.msk.f32.vlgmr.msra.gmra.mxu0 %vm371_vm2, %v3279_v35  ;;  %v6696_v36 = vpop.f32.mrf.mxu1 }
0x182d   :  { %v3437_v38 = vadd.f32 %v8048_v58, %v3435_v43  ;;  %6699 = vmatprep.mubr.msk.f32.mxu0 %vm7501_vm1, %v7500_v34 }
0x182f   :  { %v3441_v40 = vsel %vm371_vm2, %v3437_v38, -inf }
0x1830   :  { %3442 = vmax.xlane.f32.xlu1 %v3441_v40 }
0x1841   :  { %3536 = vrot.lane.b32.xlu1 %v7992_v11, %s7509_s7 }
0x1845   :  { %3697 = vrot.lane.b32.xlu1 %v7994_v12, %s7510_s3 }
0x1849   :  { %3775 = vrot.lane.b32.xlu1 %v7992_v11, %s7510_s3 }
0x184d   :  { %3773 = vrot.lane.b32.xlu1 %v7992_v11, %s7511_s27 }
0x18b9   :  { %v3443_v41 = vpop.xlane.xlu1 %3442 }
0x18ba   :  { %v3445_v33 = vsub.f32 %v3437_v38, %v3443_v41 }
0x18bc   :  { %v3448_v31 = vmul.f32 1.442695, %v3445_v33 }
0x18bd   :  { %v3537_v42 = vpop.permute.xlu1 %3536 }
0x18be   :  { %6703 = vmatpush3.msra.mxu1 %v3537_v42  ;;  %6896 = vpow2.f32 %v3448_v31 }
0x18bf   :  { %6712 = vmatprep.subr.mxu1 %v7500_v34 }
0x18c1   :  { %v3698_v2 = vpop.permute.xlu1 %3697 }
0x18c5   :  { %v3776_v16 = vpop.permute.xlu1 %3775 }
0x18c9   :  { %v3774_v19 = vpop.permute.xlu1 %3773 }
0x18cb   :  { %v6897_v52 = vpop.eup %6896 }
0x18cc   :  { %v3453_v53 = vsel %vm371_vm2, %v6897_v52, 0.0 }
0x18e8   :  { %v8113_v44 = vpop.f32.mrf.mxu0 }
0x18e9   :  { %v3275_v24 = vadd.f32 %v8089_v29, %v8113_v44 }
0x18ea   :  { %v8115_v45 = vpop.f32.mrf.mxu0 }
0x18eb   :  { %v3270_v26 = vadd.f32 %v8093_v48, %v8115_v45 }
0x18ec   :  { %v3352_v46 = vpop.f32.mrf.mxu0 }
0x18ed   :  { %v3434_v47 = vmul.f32 0.35355338, %v3352_v46 }
0x18ee   :  { %v6691_v49 = vpop.f32.mrf.mxu0 }
0x18ef   :  { %v3436_v50 = vadd.f32 %v8052_v0, %v3434_v47  ;;  %v6287_v47 = vld [vmem:[%s9082_s5 + $0x38] sm:$0xff]  ;;  %s7516_s5 = smov 125  }
0x18f1   :  { %v3438_v51 = vsel %vm371_vm2, %v3436_v50, -inf }
0x18f2   :  { %3439 = vmax.xlane.f32.xlu0 %v3438_v51 }
0x18f6   :  { %3454 = vadd.xlane.f32.xlu0 %v3453_v53  ;;  %v6320_v53 = vld [vmem:[#allocation11 + $0x1] ss:$0 sm:$0xff] }
0x197b   :  { %v3440_v54 = vpop.xlane.xlu0 %3439 }
0x197c   :  { %v3444_v55 = vsub.f32 %v3436_v50, %v3440_v54 }
0x197e   :  { %v3446_v56 = vmul.f32 1.442695, %v3444_v55 }
0x197f   :  { %v3455_v57 = vpop.xlane.xlu0 %3454 }
0x1980   :  { %6898 = vpow2.f32 %v3446_v56 }
0x1981   :  { %6900 = vrcp.f32 %v3455_v57 }
0x198d   :  { %v6899_v59 = vpop.eup %6898 }
0x198e   :  { %v6901_v60 = vpop.eup %6900  ;;  %v3450_v63 = vsel %vm371_vm2, %v6899_v59, 0.0 }
0x198f   :  { %3451 = vadd.xlane.f32.xlu0 %v3450_v63  ;;  %v3459_v1 = vmul.f32 %v6901_v60, %v6897_v52 }
0x1991   :  { %6705 = vmatmul.mubr.msk.f32.vlgmr.msra.gmra.mxu1 %vm371_vm2, %v3459_v1 }
0x1992   :  { %6713 = vmatpush3.xpose.msk.msra.mxu1 %vm371_vm2, %v3698_v2  ;;  %6714 = vmatprep.mubr.msk.f32.mxu1 %vm7501_vm1, %v7500_v34 }
0x1993   :  { %6722 = vmatprep.subr.mxu1 %v7500_v34 }
0x19a5   :  { %3460 = vrot.lane.b32.xlu0 %v7994_v12, %s7509_s7  ;;  %s7517_s7 = smov 124  }
0x19a9   :  { %3695 = vrot.lane.b32.xlu0 %v7994_v12, %s7511_s27 }
0x1a18   :  { %v3452_v3 = vpop.xlane.xlu0 %3451 }
0x1a19   :  { %6902 = vrcp.f32 %v3452_v3 }
0x1a1c   :  { %v3461_v61 = vpop.permute.xlu0 %3460 }
0x1a1d   :  { %6698 = vmatpush3.msra.mxu0 %v3461_v61 }
0x1a1e   :  { %6707 = vmatprep.subr.mxu0 %v6286_v10 }
0x1a20   :  { %v3696_v4 = vpop.permute.xlu0 %3695 }
0x1a21   :  { %6715 = vmatmul.mubr.msk.f32.vlgmr.msra.gmra.mxu1 %vm371_vm2, %v3696_v4 }
0x1a22   :  { %6724 = vmatprep.mubr.msk.f32.mxu1 %vm7501_vm1, %v7500_v34 }
0x1a26   :  { %v6903_v5 = vpop.eup %6902 }
0x1a27   :  { %v3458_v6 = vmul.f32 %v6903_v5, %v6899_v59 }
0x1a29   :  { %6700 = vmatmul.mubr.msk.f32.vlgmr.msra.gmra.mxu0 %vm371_vm2, %v3458_v6 }
0x1a2a   :  { %6708 = vmatpush3.msra.mxu0 %v6286_v10 }
0x1a2b   :  { %6717 = vmatprep.subr.mxu0 %v7500_v34 }
0x1a51   :  { %v3608_v62 = vpop.f32.mrf.mxu1 }
0x1a53   :  { %v6706_v9 = vpop.f32.mrf.mxu1 }
0x1ae1   :  { %v3769_v37 = vpop.f32.mrf.mxu1 }
0x1ae2   :  { %v3851_v13 = vmul.f32 0.35355338, %v3769_v37 }
0x1ae3   :  { %v6716_v14 = vpop.f32.mrf.mxu1 }
0x1ae4   :  { %v3853_v39 = vadd.f32 %v8052_v0, %v3851_v13  ;;  %v6325_v13 = vld [vmem:[%s9049_s10 + $0x30] sm:$0xff]  ;;  %v6324_v14 = vld [vmem:[%s9049_s10 + $0x28] sm:$0xff] }
0x1ae6   :  { %v3855_v15 = vsel %vm371_vm2, %v3853_v39, -inf }
0x1ae7   :  { %3856 = vmax.xlane.f32.xlu0 %v3855_v15 }
0x1ae9   :  { %v3532_v17 = vpop.f32.mrf.mxu0 }
0x1aea   :  { %6709 = vmatprep.mubr.msk.f32.mxu0 %vm371_vm2, %v3532_v17 }
0x1aeb   :  { %v6701_v18 = vpop.f32.mrf.mxu0  ;;  %6710 = vmatmul.mubr.msk.f32.vlgmr.msra.gmra.mxu0 %vm371_vm2, %v3608_v62 }
0x1aec   :  { %6718 = vmatpush3.xpose.msk.msra.mxu0 %vm371_vm2, %v3776_v16  ;;  %6719 = vmatprep.mubr.msk.f32.mxu0 %vm7501_vm1, %v7500_v34 }
0x1aed   :  { %6727 = vmatprep.subr.mxu0 %v7500_v34 }
0x1aef   :  { %6720 = vmatmul.mubr.msk.f32.vlgmr.msra.gmra.mxu0 %vm371_vm2, %v3774_v19 }
0x1af0   :  { %6729 = vmatprep.mubr.msk.f32.mxu0 %vm7501_vm1, %v7500_v34  ;;  %vm5978_vm1 = vcmask 38912  }
0x1b70   :  { %v3857_v0 = vpop.xlane.xlu0 %3856 }
0x1b71   :  { %v3861_v20 = vsub.f32 %v3853_v39, %v3857_v0  ;;  %v6323_v39 = vld [vmem:[%s9049_s10 + $0x20] sm:$0xff] }
0x1b73   :  { %v3863_v21 = vmul.f32 1.442695, %v3861_v20 }
0x1b75   :  { %6904 = vpow2.f32 %v3863_v21  ;;  %v6321_v21 = vld [vmem:[#allocation12 + $0x1] ss:$0 sm:$0xff] }
0x1b82   :  { %v6905_v22 = vpop.eup %6904 }
0x1b83   :  { %v3867_v23 = vsel %vm371_vm2, %v6905_v22, 0.0 }
0x1b84   :  { %3868 = vadd.xlane.f32.xlu0 %v3867_v23 }
0x1bab   :  { %v6711_v25 = vpop.f32.mrf.mxu0 }
0x1bac   :  { %v3694_v27 = vadd.f32 %v6711_v25, %v3275_v24 }
0x1bad   :  { %v3684_v28 = vpop.f32.mrf.mxu0 }
0x1bae   :  { %v3693_v30 = vadd.f32 %v3684_v28, %v3270_v26  ;;  %v6322_v26 = vld [vmem:[#allocation14 + $0x1] ss:$0 sm:$0xff] }
0x1baf   :  { %v3847_v32 = vpop.f32.mrf.mxu0 }
0x1bb0   :  { %v3852_v34 = vmul.f32 0.35355338, %v3847_v32  ;;  %v6337_v32 = vld [vmem:[%s9051_s12 + $0x78] sm:$0xff] }
0x1bb1   :  { %v6721_v35 = vpop.f32.mrf.mxu0 }
0x1bb2   :  { %v3854_v43 = vadd.f32 %v8048_v58, %v3852_v34  ;;  %v6336_v34 = vld [vmem:[%s9051_s12 + $0x70] sm:$0xff]  ;;  %v6335_v35 = vld [vmem:[%s9051_s12 + $0x68] sm:$0xff] }
0x1bb4   :  { %v3858_v36 = vsel %vm371_vm2, %v3854_v43, -inf }
0x1bb5   :  { %3859 = vmax.xlane.f32.xlu1 %v3858_v36  ;;  %v6333_v36 = vld [vmem:[%s9051_s12 + $0x58] sm:$0xff] }
0x1bc6   :  { %3953 = vrot.lane.b32.xlu1 %v7992_v11, %s7512_s29 }
0x1c0d   :  { %v3869_v58 = vpop.xlane.xlu0 %3868 }
0x1c3e   :  { %v3860_v38 = vpop.xlane.xlu1 %3859 }
0x1c3f   :  { %v3862_v29 = vsub.f32 %v3854_v43, %v3860_v38  ;;  %v6334_v43 = vld [vmem:[%s9051_s12 + $0x60] sm:$0xff]  ;;  %v6332_v38 = vld [vmem:[%s9051_s12 + $0x50] sm:$0xff] }
0x1c41   :  { %v3865_v40 = vmul.f32 1.442695, %v3862_v29  ;;  %v6331_v29 = vld [vmem:[%s9051_s12 + $0x48] sm:$0xff] }
0x1c42   :  { %v3954_v41 = vpop.permute.xlu1 %3953 }
0x1c43   :  { %6906 = vpow2.f32 %v3865_v40  ;;  %6728 = vmatpush3.msra.mxu0 %v3954_v41  ;;  %v6330_v40 = vld [vmem:[%s9051_s12 + $0x40] sm:$0xff]  ;;  %v6327_v41 = vld [vmem:[#allocation15 + $0x1] ss:$0 sm:$0xff] }
0x1c44   :  { %6908 = vrcp.f32 %v3869_v58 }
0x1c50   :  { %v6907_v48 = vpop.eup %6906 }
0x1c51   :  { %v3870_v42 = vsel %vm371_vm2, %v6907_v48, 0.0  ;;  %v6909_v31 = vpop.eup %6908 }
0x1c52   :  { %3871 = vadd.xlane.f32.xlu0 %v3870_v42  ;;  %v3875_v11 = vmul.f32 %v6909_v31, %v6905_v22 }
0x1c68   :  { %3877 = vrot.lane.b32.xlu0 %v7994_v12, %s7512_s29 }
0x1cdb   :  { %v3872_v33 = vpop.xlane.xlu0 %3871 }
0x1cdc   :  { %6910 = vrcp.f32 %v3872_v33 }
0x1cdf   :  { %v3878_v44 = vpop.permute.xlu0 %3877 }
0x1ce0   :  { %6723 = vmatpush3.msra.mxu1 %v3878_v44 }
0x1ce1   :  { %6725 = vmatmul.mubr.msk.f32.vlgmr.msra.gmra.mxu1 %vm371_vm2, %v3875_v11  ;;  %6732 = vmatprep.subr.mxu1 %v6287_v47 }
0x1ce2   :  { %6733 = vmatpush3.msra.mxu1 %v6287_v47 }
0x1ce3   :  { %6748 = vmatprep.subr.mxu1 %v6337_v32 }
0x1ce9   :  { %v6911_v45 = vpop.eup %6910 }
0x1cea   :  { %v3876_v46 = vmul.f32 %v6911_v45, %v6907_v48 }
0x1cec   :  { %6730 = vmatmul.mubr.msk.f32.vlgmr.msra.gmra.mxu0 %vm371_vm2, %v3876_v46 }
0x1da1   :  { %v3949_v12 = vpop.f32.mrf.mxu1 }
0x1da2   :  { %6734 = vmatprep.mubr.msk.f32.mxu1 %vm371_vm2, %v3949_v12 }
0x1da3   :  { %v6726_v49 = vpop.f32.mrf.mxu1 }
0x1dac   :  { %v4025_v50 = vpop.f32.mrf.mxu0 }
0x1dad   :  { %6735 = vmatmul.mubr.msk.f32.vlgmr.msra.gmra.mxu1 %vm371_vm2, %v4025_v50  ;;  %vm5999_vm2 = vcmask 6144  }
0x1dae   :  { %v6731_v51 = vpop.f32.mrf.mxu0  ;;  %6749 = vmatpush3.msra.mxu1 %v6337_v32 }
0x1daf   :  { %6750 = vmatprep.subr.mxu1 %v6336_v34 }
0x1db0   :  { %6751 = vmatpush3.msra.mxu1 %v6336_v34 }
0x1db1   :  { %6752 = vmatprep.subr.mxu1 %v6335_v35 }
0x1db2   :  { %6753 = vmatpush3.msra.mxu1 %v6335_v35  ;;  %v6342_v35 = vld [vmem:[#allocation20 + $0x1] ss:$0 sm:$0xff] }
0x1db3   :  { %6754 = vmatprep.subr.mxu1 %v6334_v43 }
0x1db4   :  { %6755 = vmatpush3.msra.mxu1 %v6334_v43 }
0x1db5   :  { %6756 = vmatprep.subr.mxu1 %v6333_v36 }
0x1db6   :  { %6757 = vmatpush3.msra.mxu1 %v6333_v36 }
0x1db7   :  { %6758 = vmatprep.subr.mxu1 %v6332_v38 }
0x1db8   :  { %6759 = vmatpush3.msra.mxu1 %v6332_v38 }
0x1db9   :  { %6760 = vmatprep.subr.mxu1 %v6331_v29 }
0x1dba   :  { %6761 = vmatpush3.msra.mxu1 %v6331_v29  ;;  %v4527_v29 = vlaneseq }
0x1dbb   :  { %6762 = vmatprep.subr.mxu1 %v6330_v40 }
0x1dbc   :  { %6763 = vmatpush3.msra.mxu1 %v6330_v40  ;;  %v7513_v40 = vmov 1966171168  }
0x1e6d   :  { %v6736_v52 = vpop.f32.mrf.mxu1 }
0x1e6e   :  { %v4111_v54 = vadd.f32 %v6736_v52, %v3694_v27 }
0x1e6f   :  { %v4101_v55 = vpop.f32.mrf.mxu1 }
0x1e70   :  { %v4121_v56 = vadd.f32 %v6320_v53, %v4111_v54  ;;  %v4110_v57 = vadd.f32 %v4101_v55, %v3693_v30 }
0x1e72   :  { %v4120_v59 = vadd.f32 %v6320_v53, %v4110_v57  ;;  %v4123_v60 = vadd.f32 %v4121_v56, %v7984_v8 }
0x1e74   :  { %v4131_v63 = vsel %vm228_vm0, %v4123_v60, 0.0  ;;  %v4122_v1 = vadd.f32 %v4120_v59, %v7982_v7  ;;  %v6326_v7 = vld [vmem:[%s9049_s10 + $0x38] sm:$0xff] }
0x1e75   :  { %4132 = vadd.xlane.f32.xlu0 %v4131_v63  ;;  %6737 = vmatprep.subr.mxu0 %v6326_v7  ;;  %v6338_v63 = vld [vmem:[#allocation17 + $0x1] ss:$0 sm:$0xff] }
0x1e76   :  { %v4128_v2 = vsel %vm228_vm0, %v4122_v1, 0.0  ;;  %6738 = vmatpush3.msra.mxu0 %v6326_v7 }
0x1e77   :  { %4129 = vadd.xlane.f32.xlu1 %v4128_v2  ;;  %6739 = vmatprep.subr.mxu0 %v6325_v13 }
0x1e78   :  { %6740 = vmatpush3.msra.mxu0 %v6325_v13 }
0x1e79   :  { %6741 = vmatprep.subr.mxu0 %v6324_v14 }
0x1e7a   :  { %6742 = vmatpush3.msra.mxu0 %v6324_v14 }
0x1e7b   :  { %6743 = vmatprep.subr.mxu0 %v6323_v39 }
0x1e7c   :  { %6744 = vmatpush3.msra.mxu0 %v6323_v39 }
0x1efe   :  { %v4133_v3 = vpop.xlane.xlu0 %4132 }
0x1eff   :  { %v4135_v61 = vmul.f32 0.03125, %v4133_v3 }
0x1f00   :  { %v4130_v4 = vpop.xlane.xlu1 %4129 }
0x1f01   :  { %v4137_v5 = vsub.f32 %v4123_v60, %v4135_v61  ;;  %v4134_v6 = vmul.f32 0.03125, %v4130_v4 }
0x1f03   :  { %v4136_v62 = vsub.f32 %v4122_v1, %v4134_v6  ;;  %v4139_v9 = vmul.f32 %v4137_v5, %v4137_v5 }
0x1f05   :  { %v4143_v10 = vsel %vm228_vm0, %v4139_v9, 0.0  ;;  %v4138_v37 = vmul.f32 %v4136_v62, %v4136_v62 }
0x1f06   :  { %4144 = vadd.xlane.f32.xlu1 %v4143_v10 }
0x1f07   :  { %v4140_v8 = vsel %vm228_vm0, %v4138_v37, 0.0 }
0x1f08   :  { %4141 = vadd.xlane.f32.xlu0 %v4140_v8 }
0x1f8f   :  { %v4145_v15 = vpop.xlane.xlu1 %4144 }
0x1f90   :  { %v4147_v16 = vmul.f32 0.03125, %v4145_v15 }
0x1f91   :  { %v4142_v17 = vpop.xlane.xlu0 %4141 }
0x1f92   :  { %v4149_v18 = vadd.f32 1e-12, %v4147_v16  ;;  %v4146_v19 = vmul.f32 0.03125, %v4142_v17  ;;  %v4431_v17 = vld [vmem:[%s9055_s16 + $0x18] sm:$0xff] }
0x1f93   :  { %6767 = vmatprep.subr.mxu0 %v4431_v17 }
0x1f94   :  { %6912 = vrsqrt.f32 %v4149_v18  ;;  %v4148_v0 = vadd.f32 1e-12, %v4146_v19  ;;  %v4430_v18 = vld [vmem:[%s9055_s16 + $0x10] sm:$0xff]  ;;  %v4429_v19 = vld [vmem:[%s9055_s16 + $0x8] sm:$0xff] }
0x1f96   :  { %6914 = vrsqrt.f32 %v4148_v0  ;;  %v4428_v0 = vld [vmem:[%s9055_s16] sm:$0xff] }
0x1fa1   :  { %v6913_v20 = vpop.eup %6912 }
0x1fa2   :  { %v4153_v22 = vmul.f32 %v6913_v20, %v4137_v5 }
0x1fa3   :  { %v6915_v23 = vpop.eup %6914 }
0x1fa4   :  { %v4152_v24 = vmul.f32 %v6915_v23, %v4136_v62  ;;  %v4161_v25 = vmul.f32 %v6321_v21, %v4153_v22 }
0x1fa6   :  { %v4160_v27 = vmul.f32 %v6321_v21, %v4152_v24  ;;  %v4169_v30 = vadd.f32 %v6322_v26, %v4161_v25 }
0x1fa8   :  { %v4168_v28 = vadd.f32 %v6322_v26, %v4160_v27  ;;  %v6341_v27 = vld [vmem:[#allocation18 + $0x1] ss:$0 sm:$0xff] }
0x1faa   :  { %6745 = vmatprep.mubr.msk.f32.mxu0 %vm228_vm0, %v4168_v28 }
0x1fab   :  { %6746 = vmatmul.mubr.msk.f32.vlgmr.msra.gmra.mxu0 %vm228_vm0, %v4169_v30 }
0x1fac   :  { %6768 = vmatpush3.msra.mxu0 %v4431_v17 }
0x1fad   :  { %6769 = vmatprep.subr.mxu0 %v4430_v18 }
0x1fae   :  { %6770 = vmatpush3.msra.mxu0 %v4430_v18 }
0x1faf   :  { %6771 = vmatprep.subr.mxu0 %v4429_v19 }
0x1fb0   :  { %6772 = vmatpush3.msra.mxu0 %v4429_v19 }
0x1fb1   :  { %6773 = vmatprep.subr.mxu0 %v4428_v0 }
0x1fb2   :  { %6774 = vmatpush3.msra.mxu0 %v4428_v0 }
0x206b   :  { %v6747_v48 = vpop.f32.mrf.mxu0 }
0x206c   :  { %v4261_v42 = vadd.f32 %v6747_v48, %v6327_v41 }
0x206d   :  { %v4255_v58 = vpop.f32.mrf.mxu0 }
0x206e   :  { %v4267_v33 = vmul.f32 0.044715, %v4261_v42  ;;  %v4256_v31 = vadd.f32 %v6327_v41, %v4255_v58  ;;  %v4265_v57 = vmul.f32 0.5, %v4261_v42  ;;  %v4573_v41 = vunpack.c.l.s4 %v7513_v40 }
0x2070   :  { %v4269_v44 = vmul.f32 %v4267_v33, %v4261_v42  ;;  %v4266_v11 = vmul.f32 0.044715, %v4256_v31  ;;  %v4264_v55 = vmul.f32 0.5, %v4256_v31  ;;  %v4574_v48 = vunpack.c.0.s8 %v4573_v41  ;;  %v8239_v33 = vld [vmem:[%s9057_s18] sm:$0x1f] }
0x2072   :  { %v4271_v45 = vmul.f32 %v4269_v44, %v4261_v42  ;;  %v4268_v46 = vmul.f32 %v4266_v11, %v4256_v31  ;;  %v6343_v44 = vld [vmem:[%s9056_s17] ss:$0 sm:$0xff] }
0x2074   :  { %v4273_v47 = vadd.f32 %v4271_v45, %v4261_v42  ;;  %v4270_v12 = vmul.f32 %v4268_v46, %v4256_v31  ;;  %v8233_v42 = vshrl.u32 %v4527_v29, 7  ;;  %v4525_v45 = vld [vmem:[%s9058_s19] sm:$0x1] }
0x2076   :  { %v4275_v49 = vmul.f32 0.7978846, %v4273_v47  ;;  %v4272_v50 = vadd.f32 %v4270_v12, %v4256_v31  ;;  %v4577_v58 = vsub.s32 %v4574_v48, %v8233_v42 }
0x2078   :  { %6916 = vtanh.f32 %v4275_v49  ;;  %v4274_v51 = vmul.f32 0.7978846, %v4272_v50  ;;  %v4578_v31 = vrot.slane %v8239_v33, %v4577_v58 }
0x207a   :  { %6918 = vtanh.f32 %v4274_v51  ;;  %v4579_v47 = vcombine.high %v4578_v31, %v4578_v31  ;;  %v4586_v51 = vrot.slane %v4578_v31, %v4577_v58 }
0x2085   :  { %v6917_v52 = vpop.eup %6916 }
0x2086   :  { %v4279_v54 = vadd.f32 1.0, %v6917_v52 }
0x2087   :  { %v6919_v53 = vpop.eup %6918 }
0x2088   :  { %v4278_v56 = vadd.f32 1.0, %v6919_v53  ;;  %v4281_v60 = vmul.f32 %v4279_v54, %v4265_v57  ;;  %v4593_v54 = vrot.slane %v4579_v47, %v4577_v58 }
0x208a   :  { %v4280_v59 = vmul.f32 %v4278_v56, %v4264_v55  ;;  %v4716_v55 = vcombine.high %v8239_v33, %v8239_v33 }
0x208c   :  { %6764 = vmatprep.mubr.msk.f32.mxu1 %vm2223_vm3, %v4280_v59 }
0x208d   :  { %6765 = vmatmul.mubr.msk.f32.vlgmr.msra.gmra.mxu1 %vm2223_vm3, %v4281_v60  ;;  %v4634_v60 = vcombine.high %v4586_v51, %v4586_v51  ;;  %vm5925_vm3 = vcmask 39936  }
0x214d   :  { %v6766_v1 = vpop.f32.mrf.mxu1 }
0x214e   :  { %v4377_v2 = vadd.f32 %v6766_v1, %v6338_v63 }
0x214f   :  { %v4371_v3 = vpop.f32.mrf.mxu1 }
0x2150   :  { %v4372_v61 = vadd.f32 %v6338_v63, %v4371_v3  ;;  %v4381_v4 = vadd.f32 %v4377_v2, %v4169_v30 }
0x2152   :  { %v4389_v5 = vsel %vm228_vm0, %v4381_v4, 0.0  ;;  %v4380_v6 = vadd.f32 %v4372_v61, %v4168_v28  ;;  %v4675_v61 = vcombine.high %v4593_v54, %v4593_v54 }
0x2153   :  { %4390 = vadd.xlane.f32.xlu1 %v4389_v5 }
0x2154   :  { %v4386_v62 = vsel %vm228_vm0, %v4380_v6, 0.0 }
0x2155   :  { %4387 = vadd.xlane.f32.xlu0 %v4386_v62 }
0x21dc   :  { %v4391_v9 = vpop.xlane.xlu1 %4390 }
0x21dd   :  { %v4393_v10 = vmul.f32 0.03125, %v4391_v9 }
0x21de   :  { %v4388_v37 = vpop.xlane.xlu0 %4387 }
0x21df   :  { %v4395_v8 = vsub.f32 %v4381_v4, %v4393_v10  ;;  %v4392_v7 = vmul.f32 0.03125, %v4388_v37  ;;  %v4723_v4 = vrot.slane %v4716_v55, %v4577_v58 }
0x21e1   :  { %v4394_v13 = vsub.f32 %v4380_v6, %v4392_v7  ;;  %v4397_v14 = vmul.f32 %v4395_v8, %v4395_v8  ;;  %v4730_v10 = vrot.slane %v4723_v4, %v4577_v58 }
0x21e3   :  { %v4401_v39 = vsel %vm228_vm0, %v4397_v14, 0.0  ;;  %v4396_v15 = vmul.f32 %v4394_v13, %v4394_v13 }
0x21e4   :  { %4402 = vadd.xlane.f32.xlu1 %v4401_v39 }
0x21e5   :  { %v4398_v16 = vsel %vm228_vm0, %v4396_v15, 0.0 }
0x21e6   :  { %4399 = vadd.xlane.f32.xlu0 %v4398_v16 }
0x226d   :  { %v4403_v20 = vpop.xlane.xlu1 %4402 }
0x226e   :  { %v4405_v21 = vmul.f32 0.03125, %v4403_v20 }
0x226f   :  { %v4400_v22 = vpop.xlane.xlu0 %4399 }
0x2270   :  { %v4407_v23 = vadd.f32 1e-12, %v4405_v21  ;;  %v4404_v24 = vmul.f32 0.03125, %v4400_v22 }
0x2272   :  { %6920 = vrsqrt.f32 %v4407_v23  ;;  %v4406_v25 = vadd.f32 1e-12, %v4404_v24 }
0x2274   :  { %6922 = vrsqrt.f32 %v4406_v25 }
0x227f   :  { %v6921_v26 = vpop.eup %6920 }
0x2280   :  { %v4411_v28 = vmul.f32 %v6921_v26, %v4395_v8 }
0x2281   :  { %v6923_v30 = vpop.eup %6922 }
0x2282   :  { %v4410_v32 = vmul.f32 %v6923_v30, %v4394_v13  ;;  %v4419_v34 = vmul.f32 %v6341_v27, %v4411_v28 }
0x2284   :  { %v4418_v43 = vmul.f32 %v6341_v27, %v4410_v32  ;;  %v4427_v38 = vadd.f32 %v6342_v35, %v4419_v34 }
0x2286   :  { %v4426_v36 = vadd.f32 %v6342_v35, %v4418_v43 }
0x2288   :  { %6775 = vmatprep.mubr.msk.f32.mxu0 %vm228_vm0, %v4426_v36 }
0x2289   :  { %6776 = vmatmul.mubr.msk.f32.vlgmr.msra.gmra.mxu0 %vm228_vm0, %v4427_v38  ;;  %vm5879_vm0 = vcmask 39943  }
0x2349   :  { %v6777_v11 = vpop.f32.mrf.mxu0 }
0x234a   :  { %v8248_v46 = vadd.f32 %v6777_v11, %v6343_v44 }
0x234b   :  { %v4511_v12 = vpop.f32.mrf.mxu0 }
0x234c   :  { %4521 = vst [vmem:[#allocation21 + $0x8] sm:$0xff] %v8248_v46  ;;  %v8251_v49 = vadd.f32 %v6343_v44, %v4511_v12  ;;  %v4530_v50 = vadd.f32 %v4525_v45, %v8248_v46 }
0x234e   :  { %4520 = vst [vmem:[#allocation21] sm:$0xff] %v8251_v49  ;;  %v4532_v52 = vadd.f32 %v4530_v50, %v8239_v33  ;;  %v4529_v53 = vadd.f32 %v4525_v45, %v8251_v49  ;;  %v4596_v59 = vadd.f32 %v4593_v54, %v4530_v50  ;;  %v4637_v3 = vadd.f32 %v4634_v60, %v4530_v50 }
0x234f   :  { %v4678_v9 = vadd.f32 %v4675_v61, %v4530_v50  ;;  %v4733_v13 = vadd.f32 %v4730_v10, %v4530_v50 }
0x2350   :  { %v4537_v56 = vsel %vm4533_vm4, %v4532_v52, -inf  ;;  %v4531_v57 = vadd.f32 %v4529_v53, %v8239_v33  ;;  %v4595_v1 = vadd.f32 %v4593_v54, %v4529_v53  ;;  %v4600_v2 = vsel %vm4533_vm4, %v4596_v59, -inf }
0x2351   :  { %4538 = vmax.xlane.f32.xlu1 %v4537_v56  ;;  %v4636_v6 = vadd.f32 %v4634_v60, %v4529_v53  ;;  %v4641_v62 = vsel %vm4533_vm4, %v4637_v3, -inf  ;;  %v4677_v8 = vadd.f32 %v4675_v61, %v4529_v53  ;;  %v4682_v7 = vsel %vm4533_vm4, %v4678_v9, -inf }
0x2352   :  { %v4534_v63 = vsel %vm4533_vm4, %v4531_v57, -inf  ;;  %v4597_v5 = vsel %vm4533_vm4, %v4595_v1, -inf  ;;  %v4732_v39 = vadd.f32 %v4730_v10, %v4529_v53  ;;  %v4737_v15 = vsel %vm4533_vm4, %v4733_v13, -inf }
0x2353   :  { %4535 = vmax.xlane.f32.xlu0 %v4534_v63  ;;  %v4638_v37 = vsel %vm4533_vm4, %v4636_v6, -inf  ;;  %v4679_v14 = vsel %vm4533_vm4, %v4677_v8, -inf }
0x2354   :  { %v4734_v16 = vsel %vm4533_vm4, %v4732_v39, -inf }
0x2355   :  { %4601 = vmax.xlane.f32.xlu1 %v4600_v2 }
0x2357   :  { %4598 = vmax.xlane.f32.xlu0 %v4597_v5 }
0x2359   :  { %4642 = vmax.xlane.f32.xlu1 %v4641_v62 }
0x235b   :  { %4639 = vmax.xlane.f32.xlu0 %v4638_v37 }
0x235d   :  { %4683 = vmax.xlane.f32.xlu1 %v4682_v7 }
0x235f   :  { %4680 = vmax.xlane.f32.xlu0 %v4679_v14 }
0x2361   :  { %4738 = vmax.xlane.f32.xlu1 %v4737_v15 }
0x2363   :  { %4735 = vmax.xlane.f32.xlu0 %v4734_v16 }
0x23da   :  { %v8270_v17 = vpop.xlane.xlu1 %4538 }
0x23db   :  { %v4541_v18 = vsub.f32 %v4532_v52, %v8270_v17 }
0x23dc   :  { %v8273_v19 = vpop.xlane.xlu0 %4535 }
0x23dd   :  { %v4544_v0 = vmul.f32 1.442695, %v4541_v18  ;;  %v4540_v20 = vsub.f32 %v4531_v57, %v8273_v19 }
0x23de   :  { %v8276_v21 = vpop.xlane.xlu1 %4601 }
0x23df   :  { %6924 = vpow2.f32 %v4544_v0  ;;  %v4542_v22 = vmul.f32 1.442695, %v4540_v20  ;;  %v4604_v23 = vsub.f32 %v4596_v59, %v8276_v21  ;;  %v8311_v20 = vand.u32 127, %v4527_v29 }
0x23e0   :  { %v8279_v24 = vpop.xlane.xlu0 %4598 }
0x23e1   :  { %6926 = vpow2.f32 %v4542_v22  ;;  %v4607_v25 = vmul.f32 1.442695, %v4604_v23  ;;  %v4603_v26 = vsub.f32 %v4595_v1, %v8279_v24  ;;  %vm4558_vm5 = vcmp.eq.s32.totalorder %v8311_v20, 0 }
0x23e2   :  { %v8282_v27 = vpop.xlane.xlu1 %4642  ;;  %vm4621_vm6 = vcmp.eq.s32.totalorder %v8311_v20, 1  ;;  %vm4662_vm7 = vcmp.eq.s32.totalorder %v8311_v20, 2  ;;  %vm4703_vm8 = vcmp.eq.s32.totalorder %v8311_v20, 3  ;;  %vm4758_vm9 = vcmp.eq.s32.totalorder %v8311_v20, 4 }
0x23e3   :  { %6928 = vpow2.f32 %v4607_v25  ;;  %v4605_v28 = vmul.f32 1.442695, %v4603_v26  ;;  %v4645_v30 = vsub.f32 %v4637_v3, %v8282_v27  ;;  %v6101_v20 = vsub.s32 3, %v8233_v42 }
0x23e4   :  { %v8285_v32 = vpop.xlane.xlu0 %4639 }
0x23e5   :  { %6930 = vpow2.f32 %v4605_v28  ;;  %v4648_v34 = vmul.f32 1.442695, %v4645_v30  ;;  %v4644_v35 = vsub.f32 %v4636_v6, %v8285_v32 }
0x23e6   :  { %v8288_v43 = vpop.xlane.xlu1 %4683 }
0x23e7   :  { %6932 = vpow2.f32 %v4648_v34  ;;  %v4646_v36 = vmul.f32 1.442695, %v4644_v35  ;;  %v4686_v38 = vsub.f32 %v4678_v9, %v8288_v43 }
0x23e8   :  { %v8291_v40 = vpop.xlane.xlu0 %4680 }
0x23e9   :  { %6934 = vpow2.f32 %v4646_v36  ;;  %v4689_v41 = vmul.f32 1.442695, %v4686_v38  ;;  %v4685_v48 = vsub.f32 %v4677_v8, %v8291_v40 }
0x23ea   :  { %v8294_v58 = vpop.xlane.xlu1 %4738 }
0x23eb   :  { %6936 = vpow2.f32 %v4689_v41  ;;  %v4687_v31 = vmul.f32 1.442695, %v4685_v48  ;;  %v4741_v44 = vsub.f32 %v4733_v13, %v8294_v58 }
0x23ec   :  { %v6925_v11 = vpop.eup %6924  ;;  %v8297_v45 = vpop.xlane.xlu0 %4735 }
0x23ed   :  { %6938 = vpow2.f32 %v4687_v31  ;;  %v4744_v47 = vmul.f32 1.442695, %v4741_v44  ;;  %v4740_v12 = vsub.f32 %v4732_v39, %v8297_v45  ;;  %v4549_v50 = vsel %vm4533_vm4, %v6925_v11, 0.0 }
0x23ee   :  { %v6927_v51 = vpop.eup %6926  ;;  %4550 = vadd.xlane.f32.xlu1 %v4549_v50 }
0x23ef   :  { %6940 = vpow2.f32 %v4744_v47  ;;  %v4742_v52 = vmul.f32 1.442695, %v4740_v12  ;;  %v4546_v53 = vsel %vm4533_vm4, %v6927_v51, 0.0 }
0x23f0   :  { %v6929_v54 = vpop.eup %6928  ;;  %4547 = vadd.xlane.f32.xlu0 %v4546_v53 }
0x23f1   :  { %6942 = vpow2.f32 %v4742_v52  ;;  %v4612_v55 = vsel %vm4533_vm4, %v6929_v54, 0.0 }
0x23f2   :  { %v6931_v56 = vpop.eup %6930  ;;  %4613 = vadd.xlane.f32.xlu1 %v4612_v55 }
0x23f3   :  { %v4609_v57 = vsel %vm4533_vm4, %v6931_v56, 0.0 }
0x23f4   :  { %v6933_v59 = vpop.eup %6932  ;;  %4610 = vadd.xlane.f32.xlu0 %v4609_v57 }
0x23f5   :  { %v4653_v60 = vsel %vm4533_vm4, %v6933_v59, 0.0 }
0x23f6   :  { %v6935_v63 = vpop.eup %6934  ;;  %4654 = vadd.xlane.f32.xlu1 %v4653_v60 }
0x23f7   :  { %v4650_v1 = vsel %vm4533_vm4, %v6935_v63, 0.0 }
0x23f8   :  { %v6937_v2 = vpop.eup %6936  ;;  %4651 = vadd.xlane.f32.xlu0 %v4650_v1 }
0x23f9   :  { %v4694_v3 = vsel %vm4533_vm4, %v6937_v2, 0.0 }
0x23fa   :  { %v6939_v61 = vpop.eup %6938  ;;  %4695 = vadd.xlane.f32.xlu1 %v4694_v3 }
0x23fb   :  { %v4691_v4 = vsel %vm4533_vm4, %v6939_v61, 0.0 }
0x23fc   :  { %v6941_v5 = vpop.eup %6940  ;;  %4692 = vadd.xlane.f32.xlu0 %v4691_v4 }
0x23fd   :  { %v4749_v6 = vsel %vm4533_vm4, %v6941_v5, 0.0 }
0x23fe   :  { %v6943_v62 = vpop.eup %6942  ;;  %4750 = vadd.xlane.f32.xlu1 %v4749_v6 }
0x23ff   :  { %v4746_v9 = vsel %vm4533_vm4, %v6943_v62, 0.0 }
0x2400   :  { %4747 = vadd.xlane.f32.xlu0 %v4746_v9 }
0x2477   :  { %v4551_v10 = vpop.xlane.xlu1 %4550 }
0x2478   :  { %6944 = vlog2.f32 %v4551_v10 }
0x2479   :  { %v4548_v37 = vpop.xlane.xlu0 %4547 }
0x247a   :  { %6946 = vlog2.f32 %v4548_v37 }
0x247b   :  { %v4614_v8 = vpop.xlane.xlu1 %4613 }
0x247c   :  { %6948 = vlog2.f32 %v4614_v8 }
0x247d   :  { %v4611_v7 = vpop.xlane.xlu0 %4610 }
0x247e   :  { %6950 = vlog2.f32 %v4611_v7 }
0x247f   :  { %v4655_v13 = vpop.xlane.xlu1 %4654 }
0x2480   :  { %6952 = vlog2.f32 %v4655_v13 }
0x2481   :  { %v4652_v14 = vpop.xlane.xlu0 %4651 }
0x2482   :  { %6954 = vlog2.f32 %v4652_v14 }
0x2483   :  { %v4696_v39 = vpop.xlane.xlu1 %4695 }
0x2484   :  { %6956 = vlog2.f32 %v4696_v39 }
0x2485   :  { %v6945_v15 = vpop.eup %6944  ;;  %v4693_v16 = vpop.xlane.xlu0 %4692 }
0x2486   :  { %v4555_v18 = vmul.f32 0.6931472, %v6945_v15  ;;  %6958 = vlog2.f32 %v4693_v16  ;;  %v8349_v16 = vrot.slane %v8239_v33, 7 }
0x2487   :  { %v6947_v0 = vpop.eup %6946  ;;  %v4751_v22 = vpop.xlane.xlu1 %4750 }
0x2488   :  { %v4553_v23 = vmul.f32 0.6931472, %v6947_v0  ;;  %6960 = vlog2.f32 %v4751_v22  ;;  %v4557_v28 = vadd.f32 %v4555_v18, %v8270_v17 }
0x2489   :  { %v6949_v25 = vpop.eup %6948  ;;  %v4748_v26 = vpop.xlane.xlu0 %4747 }
0x248a   :  { %v4618_v30 = vmul.f32 0.6931472, %v6949_v25  ;;  %6962 = vlog2.f32 %v4748_v26  ;;  %v4556_v35 = vadd.f32 %v4553_v23, %v8273_v19  ;;  %v4562_v29 = vsel %vm4558_vm5, %v4557_v28, 0.0 }
0x248b   :  { %v6951_v34 = vpop.eup %6950  ;;  %v4566_v12 = vrot.slane %v4562_v29, 7 }
0x248c   :  { %v4620_v36 = vadd.f32 %v4618_v30, %v8276_v21  ;;  %v4616_v38 = vmul.f32 0.6931472, %v6951_v34  ;;  %v4561_v44 = vsel %vm4558_vm5, %v4556_v35, 0.0  ;;  %v8358_v30 = vrot.slane %v8239_v33, 1 }
0x248d   :  { %v6953_v41 = vpop.eup %6952  ;;  %v4565_v54 = vrot.slane %v4561_v44, 7  ;;  %v4570_v60 = vadd.f32 %v4566_v12, %v8248_v46  ;;  %v8372_v44 = vrot.slane %v8239_v33, 3 }
0x248e   :  { %v4619_v48 = vadd.f32 %v4616_v38, %v8279_v24  ;;  %v4659_v31 = vmul.f32 0.6931472, %v6953_v41  ;;  %v4625_v19 = vsel %vm4621_vm6, %v4620_v36, 0.0  ;;  %v8365_v41 = vrot.slane %v8239_v33, 2 }
0x248f   :  { %v6955_v17 = vpop.eup %6954  ;;  %v4629_v55 = vrot.slane %v4625_v19, 7  ;;  %v4569_v4 = vadd.f32 %v4565_v54, %v8251_v49 }
0x2490   :  { %v4661_v21 = vadd.f32 %v4659_v31, %v8282_v27  ;;  %v4657_v11 = vmul.f32 0.6931472, %v6955_v17  ;;  %v4624_v50 = vsel %vm4621_vm6, %v4619_v48, 0.0 }
0x2491   :  { %v6957_v47 = vpop.eup %6956  ;;  %v4628_v63 = vrot.slane %v4624_v50, 7  ;;  %v4633_v5 = vadd.f32 %v4629_v55, %v4570_v60 }
0x2492   :  { %v4666_v24 = vsel %vm4662_vm7, %v4661_v21, 0.0  ;;  %v4660_v51 = vadd.f32 %v4657_v11, %v8285_v32  ;;  %v4700_v52 = vmul.f32 0.6931472, %v6957_v47 }
0x2493   :  { %v6959_v53 = vpop.eup %6958  ;;  %v4670_v1 = vrot.slane %v4666_v24, 7  ;;  %v4632_v37 = vadd.f32 %v4628_v63, %v4569_v4 }
0x2494   :  { %v4665_v27 = vsel %vm4662_vm7, %v4660_v51, 0.0  ;;  %v4702_v56 = vadd.f32 %v4700_v52, %v8288_v43  ;;  %v4698_v57 = vmul.f32 0.6931472, %v6959_v53 }
0x2495   :  { %v6961_v59 = vpop.eup %6960  ;;  %v4669_v6 = vrot.slane %v4665_v27, 7  ;;  %v4674_v8 = vadd.f32 %v4670_v1, %v4633_v5 }
0x2496   :  { %v4707_v32 = vsel %vm4703_vm8, %v4702_v56, 0.0  ;;  %v4701_v2 = vadd.f32 %v4698_v57, %v8291_v40  ;;  %v4755_v3 = vmul.f32 0.6931472, %v6961_v59 }
0x2497   :  { %v6963_v61 = vpop.eup %6962  ;;  %v4711_v43 = vrot.slane %v4707_v32, 7  ;;  %v4673_v14 = vadd.f32 %v4669_v6, %v4632_v37 }
0x2498   :  { %v4706_v62 = vsel %vm4703_vm8, %v4701_v2, 0.0  ;;  %v4757_v9 = vadd.f32 %v4755_v3, %v8294_v58  ;;  %v4753_v10 = vmul.f32 0.6931472, %v6963_v61 }
0x2499   :  { %v4710_v7 = vrot.slane %v4706_v62, 7  ;;  %v4715_v39 = vadd.f32 %v4711_v43, %v4674_v8 }
0x249a   :  { %v4762_v13 = vsel %vm4758_vm9, %v4757_v9, 0.0  ;;  %v4756_v40 = vadd.f32 %v4753_v10, %v8297_v45 }
0x249b   :  { %v4766_v15 = vrot.slane %v4762_v13, 7  ;;  %v4714_v0 = vadd.f32 %v4710_v7, %v4673_v14 }
0x249c   :  { %v4761_v18 = vsel %vm4758_vm9, %v4756_v40, 0.0 }
0x249d   :  { %v4770_v58 = vadd.f32 %v4766_v15, %v4715_v39  ;;  %v4765_v22 = vrot.slane %v4761_v18, 7 }
0x249f   :  { %v4769_v23 = vadd.f32 %v4765_v22, %v4714_v0  ;;  %v4774_v25 = vadd.f32 %v8349_v16, %v4770_v58  ;;  %v4811_v28 = vadd.f32 %v4770_v58, %v8239_v33  ;;  %v4849_v38 = vadd.f32 %v8358_v30, %v4770_v58 }
0x24a0   :  { %v4887_v17 = vadd.f32 %v8365_v41, %v4770_v58  ;;  %v4925_v47 = vadd.f32 %v8372_v44, %v4770_v58 }
0x24a1   :  { %v4779_v26 = vsel %vm4775_vm10, %v4774_v25, -inf  ;;  %v4773_v45 = vadd.f32 %v8349_v16, %v4769_v23  ;;  %v4810_v35 = vadd.f32 %v4769_v23, %v8239_v33  ;;  %v4815_v36 = vsel %vm4775_vm10, %v4811_v28, -inf }
0x24a2   :  { %4780 = vmax.xlane.f32.xlu1 %v4779_v26  ;;  %v4848_v48 = vadd.f32 %v8358_v30, %v4769_v23  ;;  %v4853_v31 = vsel %vm4775_vm10, %v4849_v38, -inf  ;;  %v4886_v21 = vadd.f32 %v8365_v41, %v4769_v23  ;;  %v4891_v11 = vsel %vm4775_vm10, %v4887_v17, -inf }
0x24a3   :  { %v4776_v34 = vsel %vm4775_vm10, %v4773_v45, -inf  ;;  %v4812_v29 = vsel %vm4775_vm10, %v4810_v35, -inf  ;;  %v4924_v50 = vadd.f32 %v8372_v44, %v4769_v23  ;;  %v4929_v24 = vsel %vm4775_vm10, %v4925_v47, -inf }
0x24a4   :  { %4777 = vmax.xlane.f32.xlu0 %v4776_v34  ;;  %v4850_v19 = vsel %vm4775_vm10, %v4848_v48, -inf  ;;  %v4888_v12 = vsel %vm4775_vm10, %v4886_v21, -inf }
0x24a5   :  { %v4926_v51 = vsel %vm4775_vm10, %v4924_v50, -inf }
0x24a6   :  { %4816 = vmax.xlane.f32.xlu1 %v4815_v36 }
0x24a8   :  { %4813 = vmax.xlane.f32.xlu0 %v4812_v29 }
0x24aa   :  { %4854 = vmax.xlane.f32.xlu1 %v4853_v31 }
0x24ac   :  { %4851 = vmax.xlane.f32.xlu0 %v4850_v19 }
0x24ae   :  { %4892 = vmax.xlane.f32.xlu1 %v4891_v11 }
0x24b0   :  { %4889 = vmax.xlane.f32.xlu0 %v4888_v12 }
0x24b2   :  { %4930 = vmax.xlane.f32.xlu1 %v4929_v24 }
0x24b4   :  { %4927 = vmax.xlane.f32.xlu0 %v4926_v51 }
0x252b   :  { %v8382_v52 = vpop.xlane.xlu1 %4780 }
0x252c   :  { %v4783_v53 = vsub.f32 %v4774_v25, %v8382_v52 }
0x252d   :  { %v8385_v54 = vpop.xlane.xlu0 %4777 }
0x252e   :  { %v4786_v55 = vmul.f32 1.442695, %v4783_v53  ;;  %v4782_v27 = vsub.f32 %v4773_v45, %v8385_v54 }
0x252f   :  { %v8388_v56 = vpop.xlane.xlu1 %4816 }
0x2530   :  { %6964 = vpow2.f32 %v4786_v55  ;;  %v4784_v57 = vmul.f32 1.442695, %v4782_v27  ;;  %v4819_v59 = vsub.f32 %v4811_v28, %v8388_v56 }
0x2531   :  { %v8391_v60 = vpop.xlane.xlu0 %4813 }
0x2532   :  { %6966 = vpow2.f32 %v4784_v57  ;;  %v4822_v63 = vmul.f32 1.442695, %v4819_v59  ;;  %v4818_v1 = vsub.f32 %v4810_v35, %v8391_v60 }
0x2533   :  { %v8394_v32 = vpop.xlane.xlu1 %4854 }
0x2534   :  { %6968 = vpow2.f32 %v4822_v63  ;;  %v4820_v2 = vmul.f32 1.442695, %v4818_v1  ;;  %v4857_v3 = vsub.f32 %v4849_v38, %v8394_v32 }
0x2535   :  { %v8397_v61 = vpop.xlane.xlu0 %4851 }
0x2536   :  { %6970 = vpow2.f32 %v4820_v2  ;;  %v4860_v4 = vmul.f32 1.442695, %v4857_v3  ;;  %v4856_v5 = vsub.f32 %v4848_v48, %v8397_v61 }
0x2537   :  { %v8400_v6 = vpop.xlane.xlu1 %4892 }
0x2538   :  { %6972 = vpow2.f32 %v4860_v4  ;;  %v4858_v43 = vmul.f32 1.442695, %v4856_v5  ;;  %v4895_v62 = vsub.f32 %v4887_v17, %v8400_v6 }
0x2539   :  { %v8403_v9 = vpop.xlane.xlu0 %4889 }
0x253a   :  { %6974 = vpow2.f32 %v4858_v43  ;;  %v4898_v10 = vmul.f32 1.442695, %v4895_v62  ;;  %v4894_v37 = vsub.f32 %v4886_v21, %v8403_v9 }
0x253b   :  { %v8406_v8 = vpop.xlane.xlu1 %4930 }
0x253c   :  { %6976 = vpow2.f32 %v4898_v10  ;;  %v4896_v7 = vmul.f32 1.442695, %v4894_v37  ;;  %v4933_v13 = vsub.f32 %v4925_v47, %v8406_v8 }
0x253d   :  { %v6965_v40 = vpop.eup %6964  ;;  %v8409_v14 = vpop.xlane.xlu0 %4927 }
0x253e   :  { %6978 = vpow2.f32 %v4896_v7  ;;  %v4936_v39 = vmul.f32 1.442695, %v4933_v13  ;;  %v4932_v15 = vsub.f32 %v4924_v50, %v8409_v14  ;;  %v4791_v18 = vsel %vm4775_vm10, %v6965_v40, 0.0 }
0x253f   :  { %v6967_v0 = vpop.eup %6966  ;;  %4792 = vadd.xlane.f32.xlu1 %v4791_v18 }
0x2540   :  { %6980 = vpow2.f32 %v4936_v39  ;;  %v4934_v58 = vmul.f32 1.442695, %v4932_v15  ;;  %v4788_v22 = vsel %vm4775_vm10, %v6967_v0, 0.0 }
0x2541   :  { %v6969_v23 = vpop.eup %6968  ;;  %4789 = vadd.xlane.f32.xlu0 %v4788_v22 }
0x2542   :  { %6982 = vpow2.f32 %v4934_v58  ;;  %v4827_v25 = vsel %vm4775_vm10, %v6969_v23, 0.0 }
0x2543   :  { %v6971_v26 = vpop.eup %6970  ;;  %4828 = vadd.xlane.f32.xlu1 %v4827_v25 }
0x2544   :  { %v4824_v45 = vsel %vm4775_vm10, %v6971_v26, 0.0 }
0x2545   :  { %v6973_v28 = vpop.eup %6972  ;;  %4825 = vadd.xlane.f32.xlu0 %v4824_v45 }
0x2546   :  { %v4865_v34 = vsel %vm4775_vm10, %v6973_v28, 0.0 }
0x2547   :  { %v6975_v35 = vpop.eup %6974  ;;  %4866 = vadd.xlane.f32.xlu1 %v4865_v34 }
0x2548   :  { %v4862_v36 = vsel %vm4775_vm10, %v6975_v35, 0.0 }
0x2549   :  { %v6977_v38 = vpop.eup %6976  ;;  %4863 = vadd.xlane.f32.xlu0 %v4862_v36 }
0x254a   :  { %v4903_v29 = vsel %vm4775_vm10, %v6977_v38, 0.0 }
0x254b   :  { %v6979_v48 = vpop.eup %6978  ;;  %4904 = vadd.xlane.f32.xlu1 %v4903_v29 }
0x254c   :  { %v4900_v31 = vsel %vm4775_vm10, %v6979_v48, 0.0 }
0x254d   :  { %v6981_v17 = vpop.eup %6980  ;;  %4901 = vadd.xlane.f32.xlu0 %v4900_v31 }
0x254e   :  { %v4941_v19 = vsel %vm4775_vm10, %v6981_v17, 0.0 }
0x254f   :  { %v6983_v21 = vpop.eup %6982  ;;  %4942 = vadd.xlane.f32.xlu1 %v4941_v19 }
0x2550   :  { %v4938_v11 = vsel %vm4775_vm10, %v6983_v21, 0.0 }
0x2551   :  { %4939 = vadd.xlane.f32.xlu0 %v4938_v11 }
0x25c8   :  { %v4793_v47 = vpop.xlane.xlu1 %4792 }
0x25c9   :  { %6984 = vlog2.f32 %v4793_v47 }
0x25ca   :  { %v4790_v12 = vpop.xlane.xlu0 %4789 }
0x25cb   :  { %6986 = vlog2.f32 %v4790_v12 }
0x25cc   :  { %v4829_v50 = vpop.xlane.xlu1 %4828 }
0x25cd   :  { %6988 = vlog2.f32 %v4829_v50 }
0x25ce   :  { %v4826_v24 = vpop.xlane.xlu0 %4825 }
0x25cf   :  { %6990 = vlog2.f32 %v4826_v24 }
0x25d0   :  { %v4867_v51 = vpop.xlane.xlu1 %4866 }
0x25d1   :  { %6992 = vlog2.f32 %v4867_v51 }
0x25d2   :  { %v4864_v53 = vpop.xlane.xlu0 %4863 }
0x25d3   :  { %6994 = vlog2.f32 %v4864_v53 }
0x25d4   :  { %v4905_v55 = vpop.xlane.xlu1 %4904 }
0x25d5   :  { %6996 = vlog2.f32 %v4905_v55 }
0x25d6   :  { %v6985_v27 = vpop.eup %6984  ;;  %v4902_v57 = vpop.xlane.xlu0 %4901 }
0x25d7   :  { %v4797_v59 = vmul.f32 0.6931472, %v6985_v27  ;;  %6998 = vlog2.f32 %v4902_v57 }
0x25d8   :  { %v6987_v63 = vpop.eup %6986  ;;  %v4943_v1 = vpop.xlane.xlu1 %4942 }
0x25d9   :  { %v4795_v2 = vmul.f32 0.6931472, %v6987_v63  ;;  %7000 = vlog2.f32 %v4943_v1  ;;  %v4799_v5 = vadd.f32 %v4797_v59, %v8382_v52  ;;  %v8453_v63 = vrot.slane %v8239_v33, 6 }
0x25da   :  { %v6989_v3 = vpop.eup %6988  ;;  %v4940_v4 = vpop.xlane.xlu0 %4939 }
0x25db   :  { %v4833_v43 = vmul.f32 0.6931472, %v6989_v3  ;;  %7002 = vlog2.f32 %v4940_v4  ;;  %v4798_v10 = vadd.f32 %v4795_v2, %v8385_v54  ;;  %v4801_v40 = vsel %vm4558_vm5, %v4799_v5, 0.0 }
0x25dc   :  { %v6991_v62 = vpop.eup %6990 }
0x25dd   :  { %v4835_v37 = vadd.f32 %v4833_v43, %v8388_v56  ;;  %v4831_v7 = vmul.f32 0.6931472, %v6991_v62  ;;  %v4800_v0 = vsel %vm4558_vm5, %v4798_v10, 0.0  ;;  %v4805_v56 = vrot.slane %v4801_v40, 7 }
0x25de   :  { %v6993_v13 = vpop.eup %6992  ;;  %v4804_v28 = vrot.slane %v4800_v0, 7 }
0x25df   :  { %v4834_v39 = vadd.f32 %v4831_v7, %v8391_v60  ;;  %v4871_v15 = vmul.f32 0.6931472, %v6993_v13  ;;  %v4837_v52 = vsel %vm4621_vm6, %v4835_v37, 0.0  ;;  %v4809_v29 = vadd.f32 %v4805_v56, %v8248_v46 }
0x25e0   :  { %v6995_v18 = vpop.eup %6994  ;;  %v4841_v34 = vrot.slane %v4837_v52, 7  ;;  %v4808_v11 = vadd.f32 %v4804_v28, %v8251_v49 }
0x25e1   :  { %v4873_v58 = vadd.f32 %v4871_v15, %v8394_v32  ;;  %v4869_v54 = vmul.f32 0.6931472, %v6995_v18  ;;  %v4836_v23 = vsel %vm4621_vm6, %v4834_v39, 0.0 }
0x25e2   :  { %v6997_v22 = vpop.eup %6996  ;;  %v4840_v48 = vrot.slane %v4836_v23, 7  ;;  %v4845_v47 = vadd.f32 %v4841_v34, %v4809_v29 }
0x25e3   :  { %v4875_v25 = vsel %vm4662_vm7, %v4873_v58, 0.0  ;;  %v4872_v60 = vadd.f32 %v4869_v54, %v8397_v61  ;;  %v4909_v26 = vmul.f32 0.6931472, %v6997_v22 }
0x25e4   :  { %v6999_v45 = vpop.eup %6998  ;;  %v4879_v31 = vrot.slane %v4875_v25, 7  ;;  %v4844_v51 = vadd.f32 %v4840_v48, %v4808_v11 }
0x25e5   :  { %v4874_v35 = vsel %vm4662_vm7, %v4872_v60, 0.0  ;;  %v4911_v32 = vadd.f32 %v4909_v26, %v8400_v6  ;;  %v4907_v36 = vmul.f32 0.6931472, %v6999_v45 }
0x25e6   :  { %v7001_v38 = vpop.eup %7000  ;;  %v4878_v12 = vrot.slane %v4874_v35, 7  ;;  %v4883_v53 = vadd.f32 %v4879_v31, %v4845_v47 }
0x25e7   :  { %v4913_v17 = vsel %vm4703_vm8, %v4911_v32, 0.0  ;;  %v4910_v61 = vadd.f32 %v4907_v36, %v8403_v9  ;;  %v4947_v19 = vmul.f32 0.6931472, %v7001_v38 }
0x25e8   :  { %v7003_v21 = vpop.eup %7002  ;;  %v4917_v50 = vrot.slane %v4913_v17, 7  ;;  %v4882_v57 = vadd.f32 %v4878_v12, %v4844_v51 }
0x25e9   :  { %v4912_v6 = vsel %vm4703_vm8, %v4910_v61, 0.0  ;;  %v4949_v24 = vadd.f32 %v4947_v19, %v8406_v8  ;;  %v4945_v46 = vmul.f32 0.6931472, %v7003_v21 }
0x25ea   :  { %v4916_v55 = vrot.slane %v4912_v6, 7  ;;  %v4921_v59 = vadd.f32 %v4917_v50, %v4883_v53 }
0x25eb   :  { %v4951_v27 = vsel %vm4758_vm9, %v4949_v24, 0.0  ;;  %v4948_v9 = vadd.f32 %v4945_v46, %v8409_v14 }
0x25ec   :  { %v4955_v49 = vrot.slane %v4951_v27, 7  ;;  %v4920_v2 = vadd.f32 %v4916_v55, %v4882_v57 }
0x25ed   :  { %v4950_v1 = vsel %vm4758_vm9, %v4948_v9, 0.0 }
0x25ee   :  { %v4959_v8 = vadd.f32 %v4955_v49, %v4921_v59  ;;  %v4954_v3 = vrot.slane %v4950_v1, 7 }
0x25f0   :  { %v4958_v4 = vadd.f32 %v4954_v3, %v4920_v2  ;;  %v4963_v5 = vadd.f32 %v8453_v63, %v4959_v8  ;;  %v5000_v62 = vadd.f32 %v4959_v8, %v8349_v16  ;;  %v5036_v13 = vadd.f32 %v4959_v8, %v8239_v33 }
0x25f1   :  { %v5072_v18 = vadd.f32 %v4959_v8, %v8358_v30  ;;  %v5108_v54 = vadd.f32 %v4959_v8, %v8365_v41 }
0x25f2   :  { %v4968_v43 = vsel %vm4964_vm11, %v4963_v5, -inf  ;;  %v4962_v14 = vadd.f32 %v8453_v63, %v4958_v4  ;;  %v4999_v37 = vadd.f32 %v4958_v4, %v8349_v16  ;;  %v5004_v7 = vsel %vm4964_vm11, %v5000_v62, -inf }
0x25f3   :  { %4969 = vmax.xlane.f32.xlu1 %v4968_v43  ;;  %v5035_v39 = vadd.f32 %v4958_v4, %v8239_v33  ;;  %v5040_v15 = vsel %vm4964_vm11, %v5036_v13, -inf  ;;  %v5071_v52 = vadd.f32 %v4958_v4, %v8358_v30  ;;  %v5076_v58 = vsel %vm4964_vm11, %v5072_v18, -inf }
0x25f4   :  { %v4965_v10 = vsel %vm4964_vm11, %v4962_v14, -inf  ;;  %v5001_v40 = vsel %vm4964_vm11, %v4999_v37, -inf  ;;  %v5107_v33 = vadd.f32 %v4958_v4, %v8365_v41  ;;  %v5112_v56 = vsel %vm4964_vm11, %v5108_v54, -inf }
0x25f5   :  { %4966 = vmax.xlane.f32.xlu0 %v4965_v10  ;;  %v5037_v0 = vsel %vm4964_vm11, %v5035_v39, -inf  ;;  %v5073_v22 = vsel %vm4964_vm11, %v5071_v52, -inf }
0x25f6   :  { %v5109_v23 = vsel %vm4964_vm11, %v5107_v33, -inf }
0x25f7   :  { %5005 = vmax.xlane.f32.xlu1 %v5004_v7 }
0x25f9   :  { %5002 = vmax.xlane.f32.xlu0 %v5001_v40 }
0x25fb   :  { %5041 = vmax.xlane.f32.xlu1 %v5040_v15 }
0x25fd   :  { %5038 = vmax.xlane.f32.xlu0 %v5037_v0 }
0x25ff   :  { %5077 = vmax.xlane.f32.xlu1 %v5076_v58 }
0x2601   :  { %5074 = vmax.xlane.f32.xlu0 %v5073_v22 }
0x2603   :  { %5113 = vmax.xlane.f32.xlu1 %v5112_v56 }
0x2605   :  { %5110 = vmax.xlane.f32.xlu0 %v5109_v23 }
0x267c   :  { %v8477_v25 = vpop.xlane.xlu1 %4969 }
0x267d   :  { %v4972_v60 = vsub.f32 %v4963_v5, %v8477_v25 }
0x267e   :  { %v8480_v26 = vpop.xlane.xlu0 %4966 }
0x267f   :  { %v4975_v45 = vmul.f32 1.442695, %v4972_v60  ;;  %v4971_v28 = vsub.f32 %v4962_v14, %v8480_v26 }
0x2680   :  { %v8483_v34 = vpop.xlane.xlu1 %5005 }
0x2681   :  { %7004 = vpow2.f32 %v4975_v45  ;;  %v4973_v35 = vmul.f32 1.442695, %v4971_v28  ;;  %v5008_v32 = vsub.f32 %v5000_v62, %v8483_v34 }
0x2682   :  { %v8486_v36 = vpop.xlane.xlu0 %5002 }
0x2683   :  { %7006 = vpow2.f32 %v4973_v35  ;;  %v5011_v38 = vmul.f32 1.442695, %v5008_v32  ;;  %v5007_v29 = vsub.f32 %v4999_v37, %v8486_v36 }
0x2684   :  { %v8489_v48 = vpop.xlane.xlu1 %5041 }
0x2685   :  { %7008 = vpow2.f32 %v5011_v38  ;;  %v5009_v31 = vmul.f32 1.442695, %v5007_v29  ;;  %v5044_v17 = vsub.f32 %v5036_v13, %v8489_v48 }
0x2686   :  { %v8492_v61 = vpop.xlane.xlu0 %5038 }
0x2687   :  { %7010 = vpow2.f32 %v5009_v31  ;;  %v5047_v19 = vmul.f32 1.442695, %v5044_v17  ;;  %v5043_v21 = vsub.f32 %v5035_v39, %v8492_v61 }
0x2688   :  { %v8495_v11 = vpop.xlane.xlu1 %5077 }
0x2689   :  { %7012 = vpow2.f32 %v5047_v19  ;;  %v5045_v47 = vmul.f32 1.442695, %v5043_v21  ;;  %v5080_v12 = vsub.f32 %v5072_v18, %v8495_v11 }
0x268a   :  { %v8498_v50 = vpop.xlane.xlu0 %5074 }
0x268b   :  { %7014 = vpow2.f32 %v5045_v47  ;;  %v5083_v6 = vmul.f32 1.442695, %v5080_v12  ;;  %v5079_v24 = vsub.f32 %v5071_v52, %v8498_v50 }
0x268c   :  { %v8501_v46 = vpop.xlane.xlu1 %5113 }
0x268d   :  { %7016 = vpow2.f32 %v5083_v6  ;;  %v5081_v51 = vmul.f32 1.442695, %v5079_v24  ;;  %v5116_v53 = vsub.f32 %v5108_v54, %v8501_v46 }
0x268e   :  { %v7005_v55 = vpop.eup %7004  ;;  %v8504_v27 = vpop.xlane.xlu0 %5110 }
0x268f   :  { %7018 = vpow2.f32 %v5081_v51  ;;  %v5119_v9 = vmul.f32 1.442695, %v5116_v53  ;;  %v5115_v57 = vsub.f32 %v5107_v33, %v8504_v27  ;;  %v4980_v59 = vsel %vm4964_vm11, %v7005_v55, 0.0 }
0x2690   :  { %v7007_v49 = vpop.eup %7006  ;;  %4981 = vadd.xlane.f32.xlu1 %v4980_v59 }
0x2691   :  { %7020 = vpow2.f32 %v5119_v9  ;;  %v5117_v1 = vmul.f32 1.442695, %v5115_v57  ;;  %v4977_v2 = vsel %vm4964_vm11, %v7007_v49, 0.0 }
0x2692   :  { %v7009_v8 = vpop.eup %7008  ;;  %4978 = vadd.xlane.f32.xlu0 %v4977_v2 }
0x2693   :  { %7022 = vpow2.f32 %v5117_v1  ;;  %v5016_v3 = vsel %vm4964_vm11, %v7009_v8, 0.0 }
0x2694   :  { %v7011_v4 = vpop.eup %7010  ;;  %5017 = vadd.xlane.f32.xlu1 %v5016_v3 }
0x2695   :  { %v5013_v5 = vsel %vm4964_vm11, %v7011_v4, 0.0 }
0x2696   :  { %v7013_v43 = vpop.eup %7012  ;;  %5014 = vadd.xlane.f32.xlu0 %v5013_v5 }
0x2697   :  { %v5052_v14 = vsel %vm4964_vm11, %v7013_v43, 0.0 }
0x2698   :  { %v7015_v62 = vpop.eup %7014  ;;  %5053 = vadd.xlane.f32.xlu1 %v5052_v14 }
0x2699   :  { %v5049_v10 = vsel %vm4964_vm11, %v7015_v62, 0.0 }
0x269a   :  { %v7017_v37 = vpop.eup %7016  ;;  %5050 = vadd.xlane.f32.xlu0 %v5049_v10  ;;  %v8536_v10 = vld [vmem:[#allocation21 + $0x8] sm:$0xff] }
0x269b   :  { %v5088_v7 = vsel %vm4964_vm11, %v7017_v37, 0.0 }
0x269c   :  { %v7019_v13 = vpop.eup %7018  ;;  %5089 = vadd.xlane.f32.xlu1 %v5088_v7 }
0x269d   :  { %v5085_v40 = vsel %vm4964_vm11, %v7019_v13, 0.0 }
0x269e   :  { %v7021_v39 = vpop.eup %7020  ;;  %5086 = vadd.xlane.f32.xlu0 %v5085_v40 }
0x269f   :  { %v5124_v15 = vsel %vm4964_vm11, %v7021_v39, 0.0 }
0x26a0   :  { %v7023_v18 = vpop.eup %7022  ;;  %5125 = vadd.xlane.f32.xlu1 %v5124_v15 }
0x26a1   :  { %v5121_v0 = vsel %vm4964_vm11, %v7023_v18, 0.0  ;;  %v8542_v18 = vld [vmem:[#allocation21] sm:$0xff] }
0x26a2   :  { %5122 = vadd.xlane.f32.xlu0 %v5121_v0 }
0x2719   :  { %v4982_v52 = vpop.xlane.xlu1 %4981 }
0x271a   :  { %7024 = vlog2.f32 %v4982_v52 }
0x271b   :  { %v4979_v58 = vpop.xlane.xlu0 %4978 }
0x271c   :  { %7026 = vlog2.f32 %v4979_v58 }
0x271d   :  { %v5018_v54 = vpop.xlane.xlu1 %5017 }
0x271e   :  { %7028 = vlog2.f32 %v5018_v54 }
0x271f   :  { %v5015_v22 = vpop.xlane.xlu0 %5014 }
0x2720   :  { %7030 = vlog2.f32 %v5015_v22 }
0x2721   :  { %v5054_v33 = vpop.xlane.xlu1 %5053 }
0x2722   :  { %7032 = vlog2.f32 %v5054_v33 }
0x2723   :  { %v5051_v56 = vpop.xlane.xlu0 %5050 }
0x2724   :  { %7034 = vlog2.f32 %v5051_v56 }
0x2725   :  { %v5090_v23 = vpop.xlane.xlu1 %5089 }
0x2726   :  { %7036 = vlog2.f32 %v5090_v23 }
0x2727   :  { %v7025_v60 = vpop.eup %7024  ;;  %v5087_v45 = vpop.xlane.xlu0 %5086 }
0x2728   :  { %v4986_v28 = vmul.f32 0.6931472, %v7025_v60  ;;  %7038 = vlog2.f32 %v5087_v45 }
0x2729   :  { %v7027_v35 = vpop.eup %7026  ;;  %v5126_v32 = vpop.xlane.xlu1 %5125 }
0x272a   :  { %v4984_v38 = vmul.f32 0.6931472, %v7027_v35  ;;  %7040 = vlog2.f32 %v5126_v32  ;;  %v4988_v17 = vadd.f32 %v4986_v28, %v8477_v25 }
0x272b   :  { %v7029_v29 = vpop.eup %7028  ;;  %v5123_v31 = vpop.xlane.xlu0 %5122 }
0x272c   :  { %v5022_v19 = vmul.f32 0.6931472, %v7029_v29  ;;  %7042 = vlog2.f32 %v5123_v31  ;;  %v4987_v47 = vadd.f32 %v4984_v38, %v8480_v26  ;;  %v4990_v51 = vsel %vm4558_vm5, %v4988_v17, 0.0  ;;  %v8554_v38 = vld [vmem:[%s9057_s18] sm:$0x1f] }
0x272d   :  { %v7031_v21 = vpop.eup %7030  ;;  %v8557_v29 = vrot.slane %v8554_v38, 5 }
0x272e   :  { %v5024_v12 = vadd.f32 %v5022_v19, %v8483_v34  ;;  %v5020_v6 = vmul.f32 0.6931472, %v7031_v21  ;;  %v4989_v57 = vsel %vm4558_vm5, %v4987_v47, 0.0  ;;  %v4994_v34 = vrot.slane %v4990_v51, 7 }
0x272f   :  { %v7033_v24 = vpop.eup %7032  ;;  %v4993_v4 = vrot.slane %v4989_v57, 7 }
0x2730   :  { %v5023_v53 = vadd.f32 %v5020_v6, %v8486_v36  ;;  %v5058_v55 = vmul.f32 0.6931472, %v7033_v24  ;;  %v5026_v25 = vsel %vm4621_vm6, %v5024_v12, 0.0  ;;  %v4998_v37 = vadd.f32 %v8536_v10, %v4994_v34 }
0x2731   :  { %v7035_v9 = vpop.eup %7034  ;;  %v5030_v5 = vrot.slane %v5026_v25, 7  ;;  %v4997_v0 = vadd.f32 %v8542_v18, %v4993_v4 }
0x2732   :  { %v5060_v59 = vadd.f32 %v5058_v55, %v8489_v48  ;;  %v5056_v26 = vmul.f32 0.6931472, %v7035_v9  ;;  %v5025_v1 = vsel %vm4621_vm6, %v5023_v53, 0.0 }
0x2733   :  { %v7037_v49 = vpop.eup %7036  ;;  %v5029_v7 = vrot.slane %v5025_v1, 7 }
0x2734   :  { %v5062_v2 = vsel %vm4662_vm7, %v5060_v59, 0.0  ;;  %v5059_v36 = vadd.f32 %v5056_v26, %v8492_v61  ;;  %v5094_v8 = vmul.f32 0.6931472, %v7037_v49 }
0x2735   :  { %v7039_v3 = vpop.eup %7038  ;;  %v5066_v13 = vrot.slane %v5062_v2, 7  ;;  %v5033_v56 = vadd.f32 %v5029_v7, %v4997_v0 }
0x2736   :  { %v5061_v43 = vsel %vm4662_vm7, %v5059_v36, 0.0  ;;  %v5096_v48 = vadd.f32 %v5094_v8, %v8495_v11  ;;  %v5092_v14 = vmul.f32 0.6931472, %v7039_v3  ;;  %v5034_v11 = vadd.f32 %v5030_v5, %v4998_v37 }
0x2737   :  { %v7041_v62 = vpop.eup %7040  ;;  %v5065_v52 = vrot.slane %v5061_v43, 7 }
0x2738   :  { %v5098_v61 = vsel %vm4703_vm8, %v5096_v48, 0.0  ;;  %v5095_v40 = vadd.f32 %v5092_v14, %v8498_v50  ;;  %v5130_v39 = vmul.f32 0.6931472, %v7041_v62  ;;  %v5070_v23 = vadd.f32 %v5066_v13, %v5034_v11 }
0x2739   :  { %v7043_v15 = vpop.eup %7042  ;;  %v5102_v58 = vrot.slane %v5098_v61, 7  ;;  %v5069_v28 = vadd.f32 %v5065_v52, %v5033_v56 }
0x273a   :  { %v5097_v54 = vsel %vm4703_vm8, %v5095_v40, 0.0  ;;  %v5132_v22 = vadd.f32 %v5130_v39, %v8501_v46  ;;  %v5128_v33 = vmul.f32 0.6931472, %v7043_v15 }
0x273b   :  { %v5101_v60 = vrot.slane %v5097_v54, 7  ;;  %v5106_v35 = vadd.f32 %v5102_v58, %v5070_v23 }
0x273c   :  { %v5134_v50 = vsel %vm4758_vm9, %v5132_v22, 0.0  ;;  %v5131_v45 = vadd.f32 %v5128_v33, %v8504_v27 }
0x273d   :  { %v5138_v32 = vrot.slane %v5134_v50, 7  ;;  %v5105_v31 = vadd.f32 %v5101_v60, %v5069_v28 }
0x273e   :  { %v5133_v46 = vsel %vm4758_vm9, %v5131_v45, 0.0 }
0x273f   :  { %v5142_v17 = vadd.f32 %v5138_v32, %v5106_v35  ;;  %v5137_v19 = vrot.slane %v5133_v46, 7 }
0x2741   :  { %v5141_v21 = vadd.f32 %v5137_v19, %v5105_v31  ;;  %v5146_v27 = vadd.f32 %v8557_v29, %v5142_v17  ;;  %v5183_v6 = vadd.f32 %v5142_v17, %v8453_v63  ;;  %v5219_v55 = vadd.f32 %v5142_v17, %v8349_v16 }
0x2742   :  { %v5255_v59 = vadd.f32 %v8554_v38, %v5142_v17  ;;  %v5291_v1 = vadd.f32 %v5142_v17, %v8358_v30 }
0x2743   :  { %v5151_v47 = vsel %vm5147_vm12, %v5146_v27, -inf  ;;  %v5145_v12 = vadd.f32 %v8557_v29, %v5141_v21  ;;  %v5182_v51 = vadd.f32 %v5141_v21, %v8453_v63  ;;  %v5187_v53 = vsel %vm5147_vm12, %v5183_v6, -inf }
0x2744   :  { %5152 = vmax.xlane.f32.xlu1 %v5151_v47  ;;  %v5218_v57 = vadd.f32 %v5141_v21, %v8349_v16  ;;  %v5223_v25 = vsel %vm5147_vm12, %v5219_v55, -inf  ;;  %v5254_v49 = vadd.f32 %v8554_v38, %v5141_v21  ;;  %v5259_v34 = vsel %vm5147_vm12, %v5255_v59, -inf }
0x2745   :  { %v5148_v24 = vsel %vm5147_vm12, %v5145_v12, -inf  ;;  %v5184_v9 = vsel %vm5147_vm12, %v5182_v51, -inf  ;;  %v5290_v36 = vadd.f32 %v5141_v21, %v8358_v30  ;;  %v5295_v8 = vsel %vm5147_vm12, %v5291_v1, -inf }
0x2746   :  { %5149 = vmax.xlane.f32.xlu0 %v5148_v24  ;;  %v5220_v26 = vsel %vm5147_vm12, %v5218_v57, -inf  ;;  %v5256_v2 = vsel %vm5147_vm12, %v5254_v49, -inf }
0x2747   :  { %v5292_v3 = vsel %vm5147_vm12, %v5290_v36, -inf }
0x2748   :  { %5188 = vmax.xlane.f32.xlu1 %v5187_v53 }
0x274a   :  { %5185 = vmax.xlane.f32.xlu0 %v5184_v9 }
0x274c   :  { %5224 = vmax.xlane.f32.xlu1 %v5223_v25 }
0x274e   :  { %5221 = vmax.xlane.f32.xlu0 %v5220_v26 }
0x2750   :  { %5260 = vmax.xlane.f32.xlu1 %v5259_v34 }
0x2752   :  { %5257 = vmax.xlane.f32.xlu0 %v5256_v2 }
0x2754   :  { %5296 = vmax.xlane.f32.xlu1 %v5295_v8 }
0x2756   :  { %5293 = vmax.xlane.f32.xlu0 %v5292_v3 }
0x27cd   :  { %v8581_v4 = vpop.xlane.xlu1 %5152 }
0x27ce   :  { %v5155_v5 = vsub.f32 %v5146_v27, %v8581_v4 }
0x27cf   :  { %v8584_v43 = vpop.xlane.xlu0 %5149 }
0x27d0   :  { %v5158_v48 = vmul.f32 1.442695, %v5155_v5  ;;  %v5154_v14 = vsub.f32 %v5145_v12, %v8584_v43 }
0x27d1   :  { %v8587_v62 = vpop.xlane.xlu1 %5188 }
0x27d2   :  { %7044 = vpow2.f32 %v5158_v48  ;;  %v5156_v30 = vmul.f32 1.442695, %v5154_v14  ;;  %v5191_v37 = vsub.f32 %v5183_v6, %v8587_v62 }
0x27d3   :  { %v8590_v7 = vpop.xlane.xlu0 %5185 }
0x27d4   :  { %7046 = vpow2.f32 %v5156_v30  ;;  %v5194_v13 = vmul.f32 1.442695, %v5191_v37  ;;  %v5190_v61 = vsub.f32 %v5182_v51, %v8590_v7 }
0x27d5   :  { %v8593_v40 = vpop.xlane.xlu1 %5224 }
0x27d6   :  { %7048 = vpow2.f32 %v5194_v13  ;;  %v5192_v39 = vmul.f32 1.442695, %v5190_v61  ;;  %v5227_v15 = vsub.f32 %v5219_v55, %v8593_v40 }
0x27d7   :  { %v8596_v0 = vpop.xlane.xlu0 %5221 }
0x27d8   :  { %7050 = vpow2.f32 %v5192_v39  ;;  %v5230_v11 = vmul.f32 1.442695, %v5227_v15  ;;  %v5226_v52 = vsub.f32 %v5218_v57, %v8596_v0 }
0x27d9   :  { %v8599_v58 = vpop.xlane.xlu1 %5260 }
0x27da   :  { %7052 = vpow2.f32 %v5230_v11  ;;  %v5228_v54 = vmul.f32 1.442695, %v5226_v52  ;;  %v5263_v22 = vsub.f32 %v5255_v59, %v8599_v58 }
0x27db   :  { %v8602_v33 = vpop.xlane.xlu0 %5257 }
0x27dc   :  { %7054 = vpow2.f32 %v5228_v54  ;;  %v5266_v56 = vmul.f32 1.442695, %v5263_v22  ;;  %v5262_v23 = vsub.f32 %v5254_v49, %v8602_v33 }
0x27dd   :  { %v8605_v60 = vpop.xlane.xlu1 %5296 }
0x27de   :  { %7056 = vpow2.f32 %v5266_v56  ;;  %v5264_v50 = vmul.f32 1.442695, %v5262_v23  ;;  %v5299_v45 = vsub.f32 %v5291_v1, %v8605_v60 }
0x27df   :  { %v7045_v28 = vpop.eup %7044  ;;  %v8608_v35 = vpop.xlane.xlu0 %5293 }
0x27e0   :  { %7058 = vpow2.f32 %v5264_v50  ;;  %v5302_v32 = vmul.f32 1.442695, %v5299_v45  ;;  %v5298_v46 = vsub.f32 %v5290_v36, %v8608_v35  ;;  %v5163_v31 = vsel %vm5147_vm12, %v7045_v28, 0.0 }
0x27e1   :  { %v7047_v17 = vpop.eup %7046  ;;  %5164 = vadd.xlane.f32.xlu1 %v5163_v31 }
0x27e2   :  { %7060 = vpow2.f32 %v5302_v32  ;;  %v5300_v19 = vmul.f32 1.442695, %v5298_v46  ;;  %v5160_v21 = vsel %vm5147_vm12, %v7047_v17, 0.0 }
0x27e3   :  { %v7049_v27 = vpop.eup %7048  ;;  %5161 = vadd.xlane.f32.xlu0 %v5160_v21 }
0x27e4   :  { %7062 = vpow2.f32 %v5300_v19  ;;  %v5199_v47 = vsel %vm5147_vm12, %v7049_v27, 0.0 }
0x27e5   :  { %v7051_v12 = vpop.eup %7050  ;;  %5200 = vadd.xlane.f32.xlu1 %v5199_v47 }
0x27e6   :  { %v5196_v6 = vsel %vm5147_vm12, %v7051_v12, 0.0 }
0x27e7   :  { %v7053_v24 = vpop.eup %7052  ;;  %5197 = vadd.xlane.f32.xlu0 %v5196_v6 }
0x27e8   :  { %v5235_v51 = vsel %vm5147_vm12, %v7053_v24, 0.0 }
0x27e9   :  { %v7055_v53 = vpop.eup %7054  ;;  %5236 = vadd.xlane.f32.xlu1 %v5235_v51 }
0x27ea   :  { %v5232_v55 = vsel %vm5147_vm12, %v7055_v53, 0.0 }
0x27eb   :  { %v7057_v9 = vpop.eup %7056  ;;  %5233 = vadd.xlane.f32.xlu0 %v5232_v55 }
0x27ec   :  { %v5271_v57 = vsel %vm5147_vm12, %v7057_v9, 0.0 }
0x27ed   :  { %v7059_v25 = vpop.eup %7058  ;;  %5272 = vadd.xlane.f32.xlu1 %v5271_v57 }
0x27ee   :  { %v5268_v59 = vsel %vm5147_vm12, %v7059_v25, 0.0 }
0x27ef   :  { %v7061_v26 = vpop.eup %7060  ;;  %5269 = vadd.xlane.f32.xlu0 %v5268_v59 }
0x27f0   :  { %v5307_v49 = vsel %vm5147_vm12, %v7061_v26, 0.0 }
0x27f1   :  { %v7063_v34 = vpop.eup %7062  ;;  %5308 = vadd.xlane.f32.xlu1 %v5307_v49 }
0x27f2   :  { %v5304_v1 = vsel %vm5147_vm12, %v7063_v34, 0.0 }
0x27f3   :  { %5305 = vadd.xlane.f32.xlu0 %v5304_v1 }
0x286a   :  { %v5165_v2 = vpop.xlane.xlu1 %5164 }
0x286b   :  { %7064 = vlog2.f32 %v5165_v2 }
0x286c   :  { %v5162_v36 = vpop.xlane.xlu0 %5161 }
0x286d   :  { %7066 = vlog2.f32 %v5162_v36 }
0x286e   :  { %v5201_v8 = vpop.xlane.xlu1 %5200 }
0x286f   :  { %7068 = vlog2.f32 %v5201_v8 }
0x2870   :  { %v5198_v3 = vpop.xlane.xlu0 %5197 }
0x2871   :  { %7070 = vlog2.f32 %v5198_v3 }
0x2872   :  { %v5237_v5 = vpop.xlane.xlu1 %5236 }
0x2873   :  { %7072 = vlog2.f32 %v5237_v5 }
0x2874   :  { %v5234_v48 = vpop.xlane.xlu0 %5233 }
0x2875   :  { %7074 = vlog2.f32 %v5234_v48 }
0x2876   :  { %v5273_v14 = vpop.xlane.xlu1 %5272 }
0x2877   :  { %7076 = vlog2.f32 %v5273_v14 }
0x2878   :  { %v7065_v30 = vpop.eup %7064  ;;  %v5270_v37 = vpop.xlane.xlu0 %5269 }
0x2879   :  { %v5169_v13 = vmul.f32 0.6931472, %v7065_v30  ;;  %7078 = vlog2.f32 %v5270_v37 }
0x287a   :  { %v7067_v61 = vpop.eup %7066  ;;  %v5309_v39 = vpop.xlane.xlu1 %5308 }
0x287b   :  { %v5167_v15 = vmul.f32 0.6931472, %v7067_v61  ;;  %7080 = vlog2.f32 %v5309_v39  ;;  %v5171_v54 = vadd.f32 %v5169_v13, %v8581_v4 }
0x287c   :  { %v7069_v11 = vpop.eup %7068  ;;  %v5306_v52 = vpop.xlane.xlu0 %5305 }
0x287d   :  { %v5205_v22 = vmul.f32 0.6931472, %v7069_v11  ;;  %7082 = vlog2.f32 %v5306_v52  ;;  %v5170_v23 = vadd.f32 %v5167_v15, %v8584_v43  ;;  %v5173_v32 = vsel %vm4558_vm5, %v5171_v54, 0.0 }
0x287e   :  { %v7071_v56 = vpop.eup %7070  ;;  %v8652_v11 = vrot.slane %v8554_v38, 4 }
0x287f   :  { %v5207_v50 = vadd.f32 %v5205_v22, %v8587_v62  ;;  %v5203_v45 = vmul.f32 0.6931472, %v7071_v56  ;;  %v5172_v19 = vsel %vm4558_vm5, %v5170_v23, 0.0  ;;  %v5177_v62 = vrot.slane %v5173_v32, 7 }
0x2880   :  { %v7073_v28 = vpop.eup %7072  ;;  %v5176_v51 = vrot.slane %v5172_v19, 7 }
0x2881   :  { %v5206_v46 = vadd.f32 %v5203_v45, %v8590_v7  ;;  %v5241_v31 = vmul.f32 0.6931472, %v7073_v28  ;;  %v5209_v4 = vsel %vm4621_vm6, %v5207_v50, 0.0  ;;  %v5181_v25 = vadd.f32 %v8536_v10, %v5177_v62 }
0x2882   :  { %v7075_v17 = vpop.eup %7074  ;;  %v5213_v53 = vrot.slane %v5209_v4, 7  ;;  %v5180_v2 = vadd.f32 %v8542_v18, %v5176_v51 }
0x2883   :  { %v5243_v21 = vadd.f32 %v5241_v31, %v8593_v40  ;;  %v5239_v43 = vmul.f32 0.6931472, %v7075_v17  ;;  %v5208_v47 = vsel %vm4621_vm6, %v5206_v46, 0.0 }
0x2884   :  { %v7077_v27 = vpop.eup %7076  ;;  %v5212_v59 = vrot.slane %v5208_v47, 7  ;;  %v5217_v36 = vadd.f32 %v5213_v53, %v5181_v25 }
0x2885   :  { %v5245_v12 = vsel %vm4662_vm7, %v5243_v21, 0.0  ;;  %v5242_v7 = vadd.f32 %v5239_v43, %v8596_v0  ;;  %v5277_v6 = vmul.f32 0.6931472, %v7077_v27 }
0x2886   :  { %v7079_v24 = vpop.eup %7078  ;;  %v5249_v26 = vrot.slane %v5245_v12, 7  ;;  %v5216_v14 = vadd.f32 %v5212_v59, %v5180_v2 }
0x2887   :  { %v5244_v55 = vsel %vm4662_vm7, %v5242_v7, 0.0  ;;  %v5279_v40 = vadd.f32 %v5277_v6, %v8599_v58  ;;  %v5275_v9 = vmul.f32 0.6931472, %v7079_v24 }
0x2888   :  { %v7081_v57 = vpop.eup %7080  ;;  %v5248_v8 = vrot.slane %v5244_v55, 7  ;;  %v5253_v30 = vadd.f32 %v5249_v26, %v5217_v36 }
0x2889   :  { %v5281_v49 = vsel %vm4703_vm8, %v5279_v40, 0.0  ;;  %v5278_v0 = vadd.f32 %v5275_v9, %v8602_v33  ;;  %v5313_v34 = vmul.f32 0.6931472, %v7081_v57 }
0x288a   :  { %v7083_v1 = vpop.eup %7082  ;;  %v5285_v3 = vrot.slane %v5281_v49, 7  ;;  %v5252_v61 = vadd.f32 %v5248_v8, %v5216_v14 }
0x288b   :  { %v5280_v58 = vsel %vm4703_vm8, %v5278_v0, 0.0  ;;  %v5315_v5 = vadd.f32 %v5313_v34, %v8605_v60  ;;  %v5311_v48 = vmul.f32 0.6931472, %v7083_v1 }
0x288c   :  { %v5284_v37 = vrot.slane %v5280_v58, 7  ;;  %v5289_v39 = vadd.f32 %v5285_v3, %v5253_v30 }
0x288d   :  { %v5317_v13 = vsel %vm4758_vm9, %v5315_v5, 0.0  ;;  %v5314_v33 = vadd.f32 %v5311_v48, %v8608_v35 }
0x288e   :  { %v5321_v15 = vrot.slane %v5317_v13, 7  ;;  %v5288_v54 = vadd.f32 %v5284_v37, %v5252_v61 }
0x288f   :  { %v5316_v52 = vsel %vm4758_vm9, %v5314_v33, 0.0 }
0x2890   :  { %v5325_v60 = vadd.f32 %v5321_v15, %v5289_v39  ;;  %v5320_v22 = vrot.slane %v5316_v52, 7 }
0x2892   :  { %v5324_v56 = vadd.f32 %v5320_v22, %v5288_v54  ;;  %v5329_v23 = vadd.f32 %v8652_v11, %v5325_v60  ;;  %v5366_v45 = vadd.f32 %v5325_v60, %v8557_v29  ;;  %v5402_v31 = vadd.f32 %v5325_v60, %v8453_v63 }
0x2893   :  { %v5438_v21 = vadd.f32 %v5325_v60, %v8349_v16  ;;  %v5474_v47 = vadd.f32 %v8554_v38, %v5325_v60 }
0x2894   :  { %v5334_v50 = vsel %vm5330_vm13, %v5329_v23, -inf  ;;  %v5328_v35 = vadd.f32 %v8652_v11, %v5324_v56  ;;  %v5365_v32 = vadd.f32 %v5324_v56, %v8557_v29  ;;  %v5370_v46 = vsel %vm5330_vm13, %v5366_v45, -inf }
0x2895   :  { %5335 = vmax.xlane.f32.xlu1 %v5334_v50  ;;  %v5401_v19 = vadd.f32 %v5324_v56, %v8453_v63  ;;  %v5406_v4 = vsel %vm5330_vm13, %v5402_v31, -inf  ;;  %v5437_v27 = vadd.f32 %v5324_v56, %v8349_v16  ;;  %v5442_v62 = vsel %vm5330_vm13, %v5438_v21, -inf }
0x2896   :  { %v5331_v28 = vsel %vm5330_vm13, %v5328_v35, -inf  ;;  %v5367_v17 = vsel %vm5330_vm13, %v5365_v32, -inf  ;;  %v5473_v7 = vadd.f32 %v8554_v38, %v5324_v56  ;;  %v5478_v6 = vsel %vm5330_vm13, %v5474_v47, -inf }
0x2897   :  { %5332 = vmax.xlane.f32.xlu0 %v5331_v28  ;;  %v5403_v43 = vsel %vm5330_vm13, %v5401_v19, -inf  ;;  %v5439_v12 = vsel %vm5330_vm13, %v5437_v27, -inf }
0x2898   :  { %v5475_v24 = vsel %vm5330_vm13, %v5473_v7, -inf }
0x2899   :  { %5371 = vmax.xlane.f32.xlu1 %v5370_v46 }
0x289b   :  { %5368 = vmax.xlane.f32.xlu0 %v5367_v17 }
0x289d   :  { %5407 = vmax.xlane.f32.xlu1 %v5406_v4 }
0x289f   :  { %5404 = vmax.xlane.f32.xlu0 %v5403_v43 }
0x28a1   :  { %5443 = vmax.xlane.f32.xlu1 %v5442_v62 }
0x28a3   :  { %5440 = vmax.xlane.f32.xlu0 %v5439_v12 }
0x28a5   :  { %5479 = vmax.xlane.f32.xlu1 %v5478_v6 }
0x28a7   :  { %5476 = vmax.xlane.f32.xlu0 %v5475_v24 }
0x291e   :  { %v8676_v51 = vpop.xlane.xlu1 %5335 }
0x291f   :  { %v5338_v53 = vsub.f32 %v5329_v23, %v8676_v51 }
0x2920   :  { %v8679_v55 = vpop.xlane.xlu0 %5332 }
0x2921   :  { %v5341_v40 = vmul.f32 1.442695, %v5338_v53  ;;  %v5337_v9 = vsub.f32 %v5328_v35, %v8679_v55 }
0x2922   :  { %v8682_v57 = vpop.xlane.xlu1 %5371 }
0x2923   :  { %7084 = vpow2.f32 %v5341_v40  ;;  %v5339_v38 = vmul.f32 1.442695, %v5337_v9  ;;  %v5374_v25 = vsub.f32 %v5366_v45, %v8682_v57 }
0x2924   :  { %v8685_v59 = vpop.xlane.xlu0 %5368 }
0x2925   :  { %7086 = vpow2.f32 %v5339_v38  ;;  %v5377_v26 = vmul.f32 1.442695, %v5374_v25  ;;  %v5373_v49 = vsub.f32 %v5365_v32, %v8685_v59 }
0x2926   :  { %v8688_v0 = vpop.xlane.xlu1 %5407 }
0x2927   :  { %7088 = vpow2.f32 %v5377_v26  ;;  %v5375_v34 = vmul.f32 1.442695, %v5373_v49  ;;  %v5410_v1 = vsub.f32 %v5402_v31, %v8688_v0 }
0x2928   :  { %v8691_v2 = vpop.xlane.xlu0 %5404 }
0x2929   :  { %7090 = vpow2.f32 %v5375_v34  ;;  %v5413_v36 = vmul.f32 1.442695, %v5410_v1  ;;  %v5409_v8 = vsub.f32 %v5401_v19, %v8691_v2 }
0x292a   :  { %v8694_v3 = vpop.xlane.xlu1 %5443 }
0x292b   :  { %7092 = vpow2.f32 %v5413_v36  ;;  %v5411_v58 = vmul.f32 1.442695, %v5409_v8  ;;  %v5446_v5 = vsub.f32 %v5438_v21, %v8694_v3 }
0x292c   :  { %v8697_v48 = vpop.xlane.xlu0 %5440 }
0x292d   :  { %7094 = vpow2.f32 %v5411_v58  ;;  %v5449_v14 = vmul.f32 1.442695, %v5446_v5  ;;  %v5445_v30 = vsub.f32 %v5437_v27, %v8697_v48 }
0x292e   :  { %v8700_v37 = vpop.xlane.xlu1 %5479 }
0x292f   :  { %7096 = vpow2.f32 %v5449_v14  ;;  %v5447_v13 = vmul.f32 1.442695, %v5445_v30  ;;  %v5482_v33 = vsub.f32 %v5474_v47, %v8700_v37 }
0x2930   :  { %v7085_v61 = vpop.eup %7084  ;;  %v8703_v39 = vpop.xlane.xlu0 %5476 }
0x2931   :  { %7098 = vpow2.f32 %v5447_v13  ;;  %v5485_v15 = vmul.f32 1.442695, %v5482_v33  ;;  %v5481_v52 = vsub.f32 %v5473_v7, %v8703_v39  ;;  %v5346_v54 = vsel %vm5330_vm13, %v7085_v61, 0.0 }
0x2932   :  { %v7087_v60 = vpop.eup %7086  ;;  %5347 = vadd.xlane.f32.xlu1 %v5346_v54 }
0x2933   :  { %7100 = vpow2.f32 %v5485_v15  ;;  %v5483_v22 = vmul.f32 1.442695, %v5481_v52  ;;  %v5343_v56 = vsel %vm5330_vm13, %v7087_v60, 0.0 }
0x2934   :  { %v7089_v23 = vpop.eup %7088  ;;  %5344 = vadd.xlane.f32.xlu0 %v5343_v56 }
0x2935   :  { %7102 = vpow2.f32 %v5483_v22  ;;  %v5382_v50 = vsel %vm5330_vm13, %v7089_v23, 0.0 }
0x2936   :  { %v7091_v35 = vpop.eup %7090  ;;  %5383 = vadd.xlane.f32.xlu1 %v5382_v50 }
0x2937   :  { %v5379_v45 = vsel %vm5330_vm13, %v7091_v35, 0.0 }
0x2938   :  { %v7093_v28 = vpop.eup %7092  ;;  %5380 = vadd.xlane.f32.xlu0 %v5379_v45 }
0x2939   :  { %v5418_v32 = vsel %vm5330_vm13, %v7093_v28, 0.0 }
0x293a   :  { %v7095_v46 = vpop.eup %7094  ;;  %5419 = vadd.xlane.f32.xlu1 %v5418_v32 }
0x293b   :  { %v5415_v31 = vsel %vm5330_vm13, %v7095_v46, 0.0 }
0x293c   :  { %v7097_v17 = vpop.eup %7096  ;;  %5416 = vadd.xlane.f32.xlu0 %v5415_v31 }
0x293d   :  { %v5454_v19 = vsel %vm5330_vm13, %v7097_v17, 0.0 }
0x293e   :  { %v7099_v4 = vpop.eup %7098  ;;  %5455 = vadd.xlane.f32.xlu1 %v5454_v19 }
0x293f   :  { %v5451_v21 = vsel %vm5330_vm13, %v7099_v4, 0.0 }
0x2940   :  { %v7101_v43 = vpop.eup %7100  ;;  %5452 = vadd.xlane.f32.xlu0 %v5451_v21 }
0x2941   :  { %v5490_v27 = vsel %vm5330_vm13, %v7101_v43, 0.0 }
0x2942   :  { %v7103_v62 = vpop.eup %7102  ;;  %5491 = vadd.xlane.f32.xlu1 %v5490_v27 }
0x2943   :  { %v5487_v47 = vsel %vm5330_vm13, %v7103_v62, 0.0 }
0x2944   :  { %5488 = vadd.xlane.f32.xlu0 %v5487_v47 }
0x29bb   :  { %v5348_v12 = vpop.xlane.xlu1 %5347 }
0x29bc   :  { %7104 = vlog2.f32 %v5348_v12 }
0x29bd   :  { %v5345_v7 = vpop.xlane.xlu0 %5344 }
0x29be   :  { %7106 = vlog2.f32 %v5345_v7 }
0x29bf   :  { %v5384_v6 = vpop.xlane.xlu1 %5383 }
0x29c0   :  { %7108 = vlog2.f32 %v5384_v6 }
0x29c1   :  { %v5381_v24 = vpop.xlane.xlu0 %5380 }
0x29c2   :  { %7110 = vlog2.f32 %v5381_v24 }
0x29c3   :  { %v5420_v53 = vpop.xlane.xlu1 %5419 }
0x29c4   :  { %7112 = vlog2.f32 %v5420_v53 }
0x29c5   :  { %v5417_v40 = vpop.xlane.xlu0 %5416 }
0x29c6   :  { %7114 = vlog2.f32 %v5417_v40 }
0x29c7   :  { %v5456_v9 = vpop.xlane.xlu1 %5455 }
0x29c8   :  { %7116 = vlog2.f32 %v5456_v9 }
0x29c9   :  { %v7105_v38 = vpop.eup %7104  ;;  %v5453_v25 = vpop.xlane.xlu0 %5452 }
0x29ca   :  { %v5352_v26 = vmul.f32 0.6931472, %v7105_v38  ;;  %7118 = vlog2.f32 %v5453_v25 }
0x29cb   :  { %v7107_v49 = vpop.eup %7106  ;;  %v5492_v34 = vpop.xlane.xlu1 %5491 }
0x29cc   :  { %v5350_v1 = vmul.f32 0.6931472, %v7107_v49  ;;  %7120 = vlog2.f32 %v5492_v34  ;;  %v5354_v58 = vadd.f32 %v5352_v26, %v8676_v51 }
0x29cd   :  { %v7109_v36 = vpop.eup %7108  ;;  %v5489_v8 = vpop.xlane.xlu0 %5488 }
0x29ce   :  { %v5388_v5 = vmul.f32 0.6931472, %v7109_v36  ;;  %7122 = vlog2.f32 %v5489_v8  ;;  %v5353_v30 = vadd.f32 %v5350_v1, %v8679_v55  ;;  %v5356_v15 = vsel %vm4558_vm5, %v5354_v58, 0.0 }
0x29cf   :  { %v7111_v14 = vpop.eup %7110 }
0x29d0   :  { %v5390_v13 = vadd.f32 %v5388_v5, %v8682_v57  ;;  %v5386_v33 = vmul.f32 0.6931472, %v7111_v14  ;;  %v5355_v22 = vsel %vm4558_vm5, %v5353_v30, 0.0  ;;  %v5360_v57 = vrot.slane %v5356_v15, 7 }
0x29d1   :  { %v7113_v61 = vpop.eup %7112  ;;  %v5359_v32 = vrot.slane %v5355_v22, 7 }
0x29d2   :  { %v5389_v52 = vadd.f32 %v5386_v33, %v8685_v59  ;;  %v5424_v54 = vmul.f32 0.6931472, %v7113_v61  ;;  %v5392_v51 = vsel %vm4621_vm6, %v5390_v13, 0.0  ;;  %v5364_v4 = vadd.f32 %v8536_v10, %v5360_v57 }
0x29d3   :  { %v7115_v60 = vpop.eup %7114  ;;  %v5396_v46 = vrot.slane %v5392_v51, 7  ;;  %v5363_v12 = vadd.f32 %v8542_v18, %v5359_v32 }
0x29d4   :  { %v5426_v56 = vadd.f32 %v5424_v54, %v8688_v0  ;;  %v5422_v55 = vmul.f32 0.6931472, %v7115_v60  ;;  %v5391_v50 = vsel %vm4621_vm6, %v5389_v52, 0.0 }
0x29d5   :  { %v7117_v23 = vpop.eup %7116  ;;  %v5395_v21 = vrot.slane %v5391_v50, 7  ;;  %v5400_v7 = vadd.f32 %v5396_v46, %v5364_v4 }
0x29d6   :  { %v5428_v35 = vsel %vm4662_vm7, %v5426_v56, 0.0  ;;  %v5425_v59 = vadd.f32 %v5422_v55, %v8691_v2  ;;  %v5460_v45 = vmul.f32 0.6931472, %v7117_v23 }
0x29d7   :  { %v7119_v28 = vpop.eup %7118  ;;  %v5432_v43 = vrot.slane %v5428_v35, 7  ;;  %v5399_v40 = vadd.f32 %v5395_v21, %v5363_v12 }
0x29d8   :  { %v5427_v31 = vsel %vm4662_vm7, %v5425_v59, 0.0  ;;  %v5462_v0 = vadd.f32 %v5460_v45, %v8694_v3  ;;  %v5458_v17 = vmul.f32 0.6931472, %v7119_v28 }
0x29d9   :  { %v7121_v19 = vpop.eup %7120  ;;  %v5431_v6 = vrot.slane %v5427_v31, 7  ;;  %v5436_v9 = vadd.f32 %v5432_v43, %v5400_v7 }
0x29da   :  { %v5464_v27 = vsel %vm4703_vm8, %v5462_v0, 0.0  ;;  %v5461_v2 = vadd.f32 %v5458_v17, %v8697_v48  ;;  %v5496_v62 = vmul.f32 0.6931472, %v7121_v19 }
0x29db   :  { %v7123_v47 = vpop.eup %7122  ;;  %v5468_v24 = vrot.slane %v5464_v27, 7  ;;  %v5435_v26 = vadd.f32 %v5431_v6, %v5399_v40 }
0x29dc   :  { %v5463_v3 = vsel %vm4703_vm8, %v5461_v2, 0.0  ;;  %v5498_v53 = vadd.f32 %v5496_v62, %v8700_v37  ;;  %v5494_v10 = vmul.f32 0.6931472, %v7123_v47 }
0x29dd   :  { %v5467_v38 = vrot.slane %v5463_v3, 7  ;;  %v5472_v49 = vadd.f32 %v5468_v24, %v5436_v9 }
0x29de   :  { %v5500_v25 = vsel %vm4758_vm9, %v5498_v53, 0.0  ;;  %v5497_v48 = vadd.f32 %v5494_v10, %v8703_v39 }
0x29df   :  { %v5504_v18 = vrot.slane %v5500_v25, 7  ;;  %v5471_v1 = vadd.f32 %v5467_v38, %v5435_v26 }
0x29e0   :  { %v5499_v34 = vsel %vm4758_vm9, %v5497_v48, 0.0 }
0x29e1   :  { %v5508_v36 = vadd.f32 %v5504_v18, %v5472_v49  ;;  %v5503_v8 = vrot.slane %v5499_v34, 7 }
0x29e3   :  { %v5507_v37 = vadd.f32 %v5503_v8, %v5471_v1  ;;  %v5510_v58 = vadd.f32 %v5508_v36, %v8372_v44  ;;  %v5547_v30 = vadd.f32 %v5508_v36, %v8652_v11  ;;  %v5583_v61 = vadd.f32 %v5508_v36, %v8557_v29 }
0x29e4   :  { %v5619_v60 = vadd.f32 %v5508_v36, %v8453_v63  ;;  %v5655_v55 = vadd.f32 %v5508_v36, %v8349_v16 }
0x29e5   :  { %v5515_v5 = vsel %vm5511_vm14, %v5510_v58, -inf  ;;  %v5509_v14 = vadd.f32 %v5507_v37, %v8372_v44  ;;  %v5546_v13 = vadd.f32 %v5507_v37, %v8652_v11  ;;  %v5551_v33 = vsel %vm5511_vm14, %v5547_v30, -inf }
0x29e6   :  { %5516 = vmax.xlane.f32.xlu1 %v5515_v5  ;;  %v5582_v52 = vadd.f32 %v5507_v37, %v8557_v29  ;;  %v5587_v54 = vsel %vm5511_vm14, %v5583_v61, -inf  ;;  %v5618_v51 = vadd.f32 %v5507_v37, %v8453_v63  ;;  %v5623_v56 = vsel %vm5511_vm14, %v5619_v60, -inf }
0x29e7   :  { %v5512_v39 = vsel %vm5511_vm14, %v5509_v14, -inf  ;;  %v5548_v15 = vsel %vm5511_vm14, %v5546_v13, -inf  ;;  %v5654_v57 = vadd.f32 %v5507_v37, %v8349_v16  ;;  %v5659_v50 = vsel %vm5511_vm14, %v5655_v55, -inf }
0x29e8   :  { %5513 = vmax.xlane.f32.xlu0 %v5512_v39  ;;  %v5584_v22 = vsel %vm5511_vm14, %v5582_v52, -inf  ;;  %v5620_v23 = vsel %vm5511_vm14, %v5618_v51, -inf }
0x29e9   :  { %v5656_v35 = vsel %vm5511_vm14, %v5654_v57, -inf }
0x29ea   :  { %5552 = vmax.xlane.f32.xlu1 %v5551_v33 }
0x29ec   :  { %5549 = vmax.xlane.f32.xlu0 %v5548_v15 }
0x29ee   :  { %5588 = vmax.xlane.f32.xlu1 %v5587_v54 }
0x29f0   :  { %5585 = vmax.xlane.f32.xlu0 %v5584_v22 }
0x29f2   :  { %5624 = vmax.xlane.f32.xlu1 %v5623_v56 }
0x29f4   :  { %5621 = vmax.xlane.f32.xlu0 %v5620_v23 }
0x29f6   :  { %5660 = vmax.xlane.f32.xlu1 %v5659_v50 }
0x29f8   :  { %5657 = vmax.xlane.f32.xlu0 %v5656_v35 }
0x2a6f   :  { %v8768_v59 = vpop.xlane.xlu1 %5516 }
0x2a70   :  { %v5519_v45 = vsub.f32 %v5510_v58, %v8768_v59 }
0x2a71   :  { %v8771_v28 = vpop.xlane.xlu0 %5513 }
0x2a72   :  { %v5522_v32 = vmul.f32 1.442695, %v5519_v45  ;;  %v5518_v46 = vsub.f32 %v5509_v14, %v8771_v28 }
0x2a73   :  { %v8774_v31 = vpop.xlane.xlu1 %5552 }
0x2a74   :  { %7124 = vpow2.f32 %v5522_v32  ;;  %v5520_v16 = vmul.f32 1.442695, %v5518_v46  ;;  %v5555_v0 = vsub.f32 %v5547_v30, %v8774_v31 }
0x2a75   :  { %v8777_v17 = vpop.xlane.xlu0 %5549 }
0x2a76   :  { %7126 = vpow2.f32 %v5520_v16  ;;  %v5558_v19 = vmul.f32 1.442695, %v5555_v0  ;;  %v5554_v4 = vsub.f32 %v5546_v13, %v8777_v17 }
0x2a77   :  { %v8780_v21 = vpop.xlane.xlu1 %5588 }
0x2a78   :  { %7128 = vpow2.f32 %v5558_v19  ;;  %v5556_v43 = vmul.f32 1.442695, %v5554_v4  ;;  %v5591_v27 = vsub.f32 %v5583_v61, %v8780_v21 }
0x2a79   :  { %v8783_v2 = vpop.xlane.xlu0 %5585 }
0x2a7a   :  { %7130 = vpow2.f32 %v5556_v43  ;;  %v5594_v62 = vmul.f32 1.442695, %v5591_v27  ;;  %v5590_v47 = vsub.f32 %v5582_v52, %v8783_v2 }
0x2a7b   :  { %v8786_v12 = vpop.xlane.xlu1 %5624 }
0x2a7c   :  { %7132 = vpow2.f32 %v5594_v62  ;;  %v5592_v7 = vmul.f32 1.442695, %v5590_v47  ;;  %v5627_v6 = vsub.f32 %v5619_v60, %v8786_v12 }
0x2a7d   :  { %v8789_v24 = vpop.xlane.xlu0 %5621 }
0x2a7e   :  { %7134 = vpow2.f32 %v5592_v7  ;;  %v5630_v3 = vmul.f32 1.442695, %v5627_v6  ;;  %v5626_v53 = vsub.f32 %v5618_v51, %v8789_v24 }
0x2a7f   :  { %v8792_v10 = vpop.xlane.xlu1 %5660 }
0x2a80   :  { %7136 = vpow2.f32 %v5630_v3  ;;  %v5628_v40 = vmul.f32 1.442695, %v5626_v53  ;;  %v5663_v9 = vsub.f32 %v5655_v55, %v8792_v10 }
0x2a81   :  { %v7125_v38 = vpop.eup %7124  ;;  %v8795_v25 = vpop.xlane.xlu0 %5657 }
0x2a82   :  { %7138 = vpow2.f32 %v5628_v40  ;;  %v5666_v48 = vmul.f32 1.442695, %v5663_v9  ;;  %v5662_v26 = vsub.f32 %v5654_v57, %v8795_v25  ;;  %v5527_v49 = vsel %vm5511_vm14, %v7125_v38, 0.0 }
0x2a83   :  { %v7127_v18 = vpop.eup %7126  ;;  %5528 = vadd.xlane.f32.xlu1 %v5527_v49 }
0x2a84   :  { %7140 = vpow2.f32 %v5666_v48  ;;  %v5664_v34 = vmul.f32 1.442695, %v5662_v26  ;;  %v5524_v1 = vsel %vm5511_vm14, %v7127_v18, 0.0 }
0x2a85   :  { %v7129_v36 = vpop.eup %7128  ;;  %5525 = vadd.xlane.f32.xlu0 %v5524_v1 }
0x2a86   :  { %7142 = vpow2.f32 %v5664_v34  ;;  %v5563_v8 = vsel %vm5511_vm14, %v7129_v36, 0.0 }
0x2a87   :  { %v7131_v37 = vpop.eup %7130  ;;  %5564 = vadd.xlane.f32.xlu1 %v5563_v8 }
0x2a88   :  { %v5560_v58 = vsel %vm5511_vm14, %v7131_v37, 0.0 }
0x2a89   :  { %v7133_v5 = vpop.eup %7132  ;;  %5561 = vadd.xlane.f32.xlu0 %v5560_v58 }
0x2a8a   :  { %v5599_v14 = vsel %vm5511_vm14, %v7133_v5, 0.0 }
0x2a8b   :  { %v7135_v30 = vpop.eup %7134  ;;  %5600 = vadd.xlane.f32.xlu1 %v5599_v14 }
0x2a8c   :  { %v5596_v39 = vsel %vm5511_vm14, %v7135_v30, 0.0 }
0x2a8d   :  { %v7137_v13 = vpop.eup %7136  ;;  %5597 = vadd.xlane.f32.xlu0 %v5596_v39  ;;  %v8827_v39 = vld [vmem:[#allocation21 + $0x8] sm:$0xff] }
0x2a8e   :  { %v5635_v33 = vsel %vm5511_vm14, %v7137_v13, 0.0 }
0x2a8f   :  { %v7139_v61 = vpop.eup %7138  ;;  %5636 = vadd.xlane.f32.xlu1 %v5635_v33 }
0x2a90   :  { %v5632_v15 = vsel %vm5511_vm14, %v7139_v61, 0.0 }
0x2a91   :  { %v7141_v52 = vpop.eup %7140  ;;  %5633 = vadd.xlane.f32.xlu0 %v5632_v15 }
0x2a92   :  { %v5671_v54 = vsel %vm5511_vm14, %v7141_v52, 0.0 }
0x2a93   :  { %v7143_v60 = vpop.eup %7142  ;;  %5672 = vadd.xlane.f32.xlu1 %v5671_v54 }
0x2a94   :  { %v5668_v22 = vsel %vm5511_vm14, %v7143_v60, 0.0  ;;  %v8833_v60 = vld [vmem:[#allocation21] sm:$0xff] }
0x2a95   :  { %5669 = vadd.xlane.f32.xlu0 %v5668_v22 }
0x2b0c   :  { %v5529_v51 = vpop.xlane.xlu1 %5528 }
0x2b0d   :  { %7144 = vlog2.f32 %v5529_v51 }
0x2b0e   :  { %v5526_v56 = vpop.xlane.xlu0 %5525 }
0x2b0f   :  { %7146 = vlog2.f32 %v5526_v56 }
0x2b10   :  { %v5565_v55 = vpop.xlane.xlu1 %5564 }
0x2b11   :  { %7148 = vlog2.f32 %v5565_v55 }
0x2b12   :  { %v5562_v23 = vpop.xlane.xlu0 %5561 }
0x2b13   :  { %7150 = vlog2.f32 %v5562_v23 }
0x2b14   :  { %v5601_v57 = vpop.xlane.xlu1 %5600 }
0x2b15   :  { %7152 = vlog2.f32 %v5601_v57 }
0x2b16   :  { %v5598_v50 = vpop.xlane.xlu0 %5597 }
0x2b17   :  { %7154 = vlog2.f32 %v5598_v50 }
0x2b18   :  { %v5637_v35 = vpop.xlane.xlu1 %5636 }
0x2b19   :  { %7156 = vlog2.f32 %v5637_v35 }
0x2b1a   :  { %v7145_v45 = vpop.eup %7144  ;;  %v5634_v32 = vpop.xlane.xlu0 %5633 }
0x2b1b   :  { %v5533_v46 = vmul.f32 0.6931472, %v7145_v45  ;;  %7158 = vlog2.f32 %v5634_v32 }
0x2b1c   :  { %v7147_v16 = vpop.eup %7146  ;;  %v5673_v0 = vpop.xlane.xlu1 %5672 }
0x2b1d   :  { %v5531_v19 = vmul.f32 0.6931472, %v7147_v16  ;;  %7160 = vlog2.f32 %v5673_v0  ;;  %v5535_v27 = vadd.f32 %v5533_v46, %v8768_v59 }
0x2b1e   :  { %v7149_v4 = vpop.eup %7148  ;;  %v5670_v43 = vpop.xlane.xlu0 %5669 }
0x2b1f   :  { %v5569_v62 = vmul.f32 0.6931472, %v7149_v4  ;;  %7162 = vlog2.f32 %v5670_v43  ;;  %v5534_v7 = vadd.f32 %v5531_v19, %v8771_v28  ;;  %v5537_v40 = vsel %vm4558_vm5, %v5535_v27, 0.0 }
0x2b20   :  { %v7151_v47 = vpop.eup %7150 }
0x2b21   :  { %v5571_v6 = vadd.f32 %v5569_v62, %v8774_v31  ;;  %v5567_v3 = vmul.f32 0.6931472, %v7151_v47  ;;  %v5536_v26 = vsel %vm4558_vm5, %v5534_v7, 0.0  ;;  %v5541_v31 = vrot.slane %v5537_v40, 7 }
0x2b22   :  { %v7153_v53 = vpop.eup %7152  ;;  %v5540_v37 = vrot.slane %v5536_v26, 7 }
0x2b23   :  { %v5570_v9 = vadd.f32 %v5567_v3, %v8777_v17  ;;  %v5605_v38 = vmul.f32 0.6931472, %v7153_v53  ;;  %v5573_v59 = vsel %vm4621_vm6, %v5571_v6, 0.0  ;;  %v5545_v13 = vadd.f32 %v8827_v39, %v5541_v31 }
0x2b24   :  { %v7155_v48 = vpop.eup %7154  ;;  %v5577_v58 = vrot.slane %v5573_v59, 7  ;;  %v5544_v22 = vadd.f32 %v8833_v60, %v5540_v37 }
0x2b25   :  { %v5607_v49 = vadd.f32 %v5605_v38, %v8780_v21  ;;  %v5603_v28 = vmul.f32 0.6931472, %v7155_v48  ;;  %v5572_v34 = vsel %vm4621_vm6, %v5570_v9, 0.0 }
0x2b26   :  { %v7157_v18 = vpop.eup %7156  ;;  %v5576_v33 = vrot.slane %v5572_v34, 7 }
0x2b27   :  { %v5609_v1 = vsel %vm4662_vm7, %v5607_v49, 0.0  ;;  %v5606_v17 = vadd.f32 %v5603_v28, %v8783_v2  ;;  %v5641_v36 = vmul.f32 0.6931472, %v7157_v18 }
0x2b28   :  { %v7159_v8 = vpop.eup %7158  ;;  %v5613_v61 = vrot.slane %v5609_v1, 7  ;;  %v5580_v50 = vadd.f32 %v5576_v33, %v5544_v22 }
0x2b29   :  { %v5608_v5 = vsel %vm4662_vm7, %v5606_v17, 0.0  ;;  %v5643_v21 = vadd.f32 %v5641_v36, %v8786_v12  ;;  %v5639_v14 = vmul.f32 0.6931472, %v7159_v8  ;;  %v5581_v12 = vadd.f32 %v5577_v58, %v5545_v13 }
0x2b2a   :  { %v7161_v30 = vpop.eup %7160  ;;  %v5612_v51 = vrot.slane %v5608_v5, 7 }
0x2b2b   :  { %v5645_v2 = vsel %vm4703_vm8, %v5643_v21, 0.0  ;;  %v5642_v15 = vadd.f32 %v5639_v14, %v8789_v24  ;;  %v5677_v52 = vmul.f32 0.6931472, %v7161_v30  ;;  %v5617_v35 = vadd.f32 %v5613_v61, %v5581_v12 }
0x2b2c   :  { %v7163_v54 = vpop.eup %7162  ;;  %v5649_v56 = vrot.slane %v5645_v2, 7  ;;  %v5616_v46 = vadd.f32 %v5612_v51, %v5580_v50 }
0x2b2d   :  { %v5644_v55 = vsel %vm4703_vm8, %v5642_v15, 0.0  ;;  %v5679_v23 = vadd.f32 %v5677_v52, %v8792_v10  ;;  %v5675_v57 = vmul.f32 0.6931472, %v7163_v54 }
0x2b2e   :  { %v5648_v45 = vrot.slane %v5644_v55, 7  ;;  %v5653_v16 = vadd.f32 %v5649_v56, %v5617_v35 }
0x2b2f   :  { %v5681_v24 = vsel %vm4758_vm9, %v5679_v23, 0.0  ;;  %v5678_v32 = vadd.f32 %v5675_v57, %v8795_v25 }
0x2b30   :  { %v5685_v0 = vrot.slane %v5681_v24, 7  ;;  %v5652_v4 = vadd.f32 %v5648_v45, %v5616_v46 }
0x2b31   :  { %v5680_v19 = vsel %vm4758_vm9, %v5678_v32, 0.0 }
0x2b32   :  { %v5689_v43 = vadd.f32 %v5685_v0, %v5653_v16  ;;  %v5684_v27 = vrot.slane %v5680_v19, 7 }
0x2b34   :  { %v5688_v10 = vadd.f32 %v5684_v27, %v5652_v4  ;;  %v5691_v62 = vadd.f32 %v5689_v43, %v8365_v41  ;;  %v5728_v6 = vadd.f32 %v5689_v43, %v8372_v44  ;;  %v5764_v40 = vadd.f32 %v5689_v43, %v8652_v11 }
0x2b35   :  { %v5800_v48 = vadd.f32 %v5689_v43, %v8557_v29  ;;  %v5836_v49 = vadd.f32 %v5689_v43, %v8453_v63 }
0x2b36   :  { %v5696_v47 = vsel %vm5692_vm15, %v5691_v62, -inf  ;;  %v5690_v7 = vadd.f32 %v5688_v10, %v8365_v41  ;;  %v5727_v3 = vadd.f32 %v5688_v10, %v8372_v44  ;;  %v5732_v53 = vsel %vm5692_vm15, %v5728_v6, -inf }
0x2b37   :  { %5697 = vmax.xlane.f32.xlu1 %v5696_v47  ;;  %v5763_v38 = vadd.f32 %v5688_v10, %v8652_v11  ;;  %v5768_v41 = vsel %vm5692_vm15, %v5764_v40, -inf  ;;  %v5799_v44 = vadd.f32 %v5688_v10, %v8557_v29  ;;  %v5804_v59 = vsel %vm5692_vm15, %v5800_v48, -inf }
0x2b38   :  { %v5693_v25 = vsel %vm5692_vm15, %v5690_v7, -inf  ;;  %v5729_v9 = vsel %vm5692_vm15, %v5727_v3, -inf  ;;  %v5835_v11 = vadd.f32 %v5688_v10, %v8453_v63  ;;  %v5840_v18 = vsel %vm5692_vm15, %v5836_v49, -inf }
0x2b39   :  { %5694 = vmax.xlane.f32.xlu0 %v5693_v25  ;;  %v5765_v26 = vsel %vm5692_vm15, %v5763_v38, -inf  ;;  %v5801_v28 = vsel %vm5692_vm15, %v5799_v44, -inf }
0x2b3a   :  { %v5837_v31 = vsel %vm5692_vm15, %v5835_v11, -inf }
0x2b3b   :  { %5733 = vmax.xlane.f32.xlu1 %v5732_v53 }
0x2b3d   :  { %5730 = vmax.xlane.f32.xlu0 %v5729_v9 }
0x2b3f   :  { %5769 = vmax.xlane.f32.xlu1 %v5768_v41 }
0x2b41   :  { %5766 = vmax.xlane.f32.xlu0 %v5765_v26 }
0x2b43   :  { %5805 = vmax.xlane.f32.xlu1 %v5804_v59 }
0x2b45   :  { %5802 = vmax.xlane.f32.xlu0 %v5801_v28 }
0x2b47   :  { %5841 = vmax.xlane.f32.xlu1 %v5840_v18 }
0x2b49   :  { %5838 = vmax.xlane.f32.xlu0 %v5837_v31 }
0x2bc0   :  { %v8864_v34 = vpop.xlane.xlu1 %5697 }
0x2bc1   :  { %v5700_v29 = vsub.f32 %v5691_v62, %v8864_v34 }
0x2bc2   :  { %v8867_v1 = vpop.xlane.xlu0 %5694 }
0x2bc3   :  { %v5703_v17 = vmul.f32 1.442695, %v5700_v29  ;;  %v5699_v36 = vsub.f32 %v5690_v7, %v8867_v1 }
0x2bc4   :  { %v8870_v8 = vpop.xlane.xlu1 %5733 }
0x2bc5   :  { %7164 = vpow2.f32 %v5703_v17  ;;  %v5701_v63 = vmul.f32 1.442695, %v5699_v36  ;;  %v5736_v37 = vsub.f32 %v5728_v6, %v8870_v8 }
0x2bc6   :  { %v8873_v58 = vpop.xlane.xlu0 %5730 }
0x2bc7   :  { %7166 = vpow2.f32 %v5701_v63  ;;  %v5739_v5 = vmul.f32 1.442695, %v5736_v37  ;;  %v5735_v21 = vsub.f32 %v5727_v3, %v8873_v58 }
0x2bc8   :  { %v8876_v14 = vpop.xlane.xlu1 %5769 }
0x2bc9   :  { %7168 = vpow2.f32 %v5739_v5  ;;  %v5737_v30 = vmul.f32 1.442695, %v5735_v21  ;;  %v5772_v13 = vsub.f32 %v5764_v40, %v8876_v14 }
0x2bca   :  { %v8879_v33 = vpop.xlane.xlu0 %5766 }
0x2bcb   :  { %7170 = vpow2.f32 %v5737_v30  ;;  %v5775_v61 = vmul.f32 1.442695, %v5772_v13  ;;  %v5771_v2 = vsub.f32 %v5763_v38, %v8879_v33 }
0x2bcc   :  { %v8882_v15 = vpop.xlane.xlu1 %5805 }
0x2bcd   :  { %7172 = vpow2.f32 %v5775_v61  ;;  %v5773_v52 = vmul.f32 1.442695, %v5771_v2  ;;  %v5808_v54 = vsub.f32 %v5800_v48, %v8882_v15 }
0x2bce   :  { %v8885_v22 = vpop.xlane.xlu0 %5802 }
0x2bcf   :  { %7174 = vpow2.f32 %v5773_v52  ;;  %v5811_v12 = vmul.f32 1.442695, %v5808_v54  ;;  %v5807_v51 = vsub.f32 %v5799_v44, %v8885_v22 }
0x2bd0   :  { %v8888_v56 = vpop.xlane.xlu1 %5841 }
0x2bd1   :  { %7176 = vpow2.f32 %v5811_v12  ;;  %v5809_v55 = vmul.f32 1.442695, %v5807_v51  ;;  %v5844_v23 = vsub.f32 %v5836_v49, %v8888_v56 }
0x2bd2   :  { %v7165_v57 = vpop.eup %7164  ;;  %v8891_v50 = vpop.xlane.xlu0 %5838 }
0x2bd3   :  { %7178 = vpow2.f32 %v5809_v55  ;;  %v5847_v35 = vmul.f32 1.442695, %v5844_v23  ;;  %v5843_v45 = vsub.f32 %v5835_v11, %v8891_v50  ;;  %v5708_v24 = vsel %vm5692_vm15, %v7165_v57, 0.0 }
0x2bd4   :  { %v7167_v32 = vpop.eup %7166  ;;  %5709 = vadd.xlane.f32.xlu1 %v5708_v24 }
0x2bd5   :  { %7180 = vpow2.f32 %v5847_v35  ;;  %v5845_v46 = vmul.f32 1.442695, %v5843_v45  ;;  %v5705_v16 = vsel %vm5692_vm15, %v7167_v32, 0.0 }
0x2bd6   :  { %v7169_v0 = vpop.eup %7168  ;;  %5706 = vadd.xlane.f32.xlu0 %v5705_v16 }
0x2bd7   :  { %7182 = vpow2.f32 %v5845_v46  ;;  %v5744_v19 = vsel %vm5692_vm15, %v7169_v0, 0.0 }
0x2bd8   :  { %v7171_v4 = vpop.eup %7170  ;;  %5745 = vadd.xlane.f32.xlu1 %v5744_v19 }
0x2bd9   :  { %v5741_v43 = vsel %vm5692_vm15, %v7171_v4, 0.0 }
0x2bda   :  { %v7173_v27 = vpop.eup %7172  ;;  %5742 = vadd.xlane.f32.xlu0 %v5741_v43 }
0x2bdb   :  { %v5780_v10 = vsel %vm5692_vm15, %v7173_v27, 0.0 }
0x2bdc   :  { %v7175_v62 = vpop.eup %7174  ;;  %5781 = vadd.xlane.f32.xlu1 %v5780_v10 }
0x2bdd   :  { %v5777_v47 = vsel %vm5692_vm15, %v7175_v62, 0.0 }
0x2bde   :  { %v7177_v7 = vpop.eup %7176  ;;  %5778 = vadd.xlane.f32.xlu0 %v5777_v47 }
0x2bdf   :  { %v5816_v6 = vsel %vm5692_vm15, %v7177_v7, 0.0 }
0x2be0   :  { %v7179_v25 = vpop.eup %7178  ;;  %5817 = vadd.xlane.f32.xlu1 %v5816_v6  ;;  %v6015_v6 = vsub.s32 1, %v8233_v42 }
0x2be1   :  { %v5813_v3 = vsel %vm5692_vm15, %v7179_v25, 0.0 }
0x2be2   :  { %v7181_v53 = vpop.eup %7180  ;;  %5814 = vadd.xlane.f32.xlu0 %v5813_v3 }
0x2be3   :  { %v5852_v40 = vsel %vm5692_vm15, %v7181_v53, 0.0 }
0x2be4   :  { %v7183_v9 = vpop.eup %7182  ;;  %5853 = vadd.xlane.f32.xlu1 %v5852_v40 }
0x2be5   :  { %v5849_v38 = vsel %vm5692_vm15, %v7183_v9, 0.0 }
0x2be6   :  { %5850 = vadd.xlane.f32.xlu0 %v5849_v38 }
0x2c5d   :  { %v5710_v41 = vpop.xlane.xlu1 %5709 }
0x2c5e   :  { %7184 = vlog2.f32 %v5710_v41 }
0x2c5f   :  { %v5707_v48 = vpop.xlane.xlu0 %5706 }
0x2c60   :  { %7186 = vlog2.f32 %v5707_v48 }
0x2c61   :  { %v5746_v26 = vpop.xlane.xlu1 %5745 }
0x2c62   :  { %7188 = vlog2.f32 %v5746_v26 }
0x2c63   :  { %v5743_v44 = vpop.xlane.xlu0 %5742 }
0x2c64   :  { %7190 = vlog2.f32 %v5743_v44 }
0x2c65   :  { %v5782_v59 = vpop.xlane.xlu1 %5781 }
0x2c66   :  { %7192 = vlog2.f32 %v5782_v59 }
0x2c67   :  { %v5779_v49 = vpop.xlane.xlu0 %5778 }
0x2c68   :  { %7194 = vlog2.f32 %v5779_v49  ;;  %v7219_v49 = vld [vmem:[%s9057_s18] sm:$0x1f] }
0x2c69   :  { %v5818_v28 = vpop.xlane.xlu1 %5817 }
0x2c6a   :  { %7196 = vlog2.f32 %v5818_v28  ;;  %v6016_v28 = vrot.slane %v7219_v49, %v6015_v6 }
0x2c6b   :  { %v7185_v11 = vpop.eup %7184  ;;  %v5815_v18 = vpop.xlane.xlu0 %5814 }
0x2c6c   :  { %v5714_v31 = vmul.f32 0.6931472, %v7185_v11  ;;  %7198 = vlog2.f32 %v5815_v18 }
0x2c6d   :  { %v7187_v29 = vpop.eup %7186  ;;  %v5854_v17 = vpop.xlane.xlu1 %5853 }
0x2c6e   :  { %v5712_v36 = vmul.f32 0.6931472, %v7187_v29  ;;  %7200 = vlog2.f32 %v5854_v17  ;;  %v5716_v5 = vadd.f32 %v5714_v31, %v8864_v34 }
0x2c6f   :  { %v7189_v63 = vpop.eup %7188  ;;  %v5851_v37 = vpop.xlane.xlu0 %5850 }
0x2c70   :  { %v5750_v21 = vmul.f32 0.6931472, %v7189_v63  ;;  %7202 = vlog2.f32 %v5851_v37  ;;  %v5715_v13 = vadd.f32 %v5712_v36, %v8867_v1  ;;  %v5718_v54 = vsel %vm4558_vm5, %v5716_v5, 0.0  ;;  %v8948_v63 = vld [vmem:[%s9060_s21 + $0x8] sm:$0xff] }
0x2c71   :  { %v7191_v30 = vpop.eup %7190  ;;  %v6058_v37 = vsub.s32 2, %v8233_v42  ;;  %v6018_v5 = vmul.f32 %v6016_v28, %v8948_v63 }
0x2c72   :  { %v5752_v61 = vadd.f32 %v5750_v21, %v8870_v8  ;;  %v5748_v2 = vmul.f32 0.6931472, %v7191_v30  ;;  %v5717_v23 = vsel %vm4558_vm5, %v5715_v13, 0.0  ;;  %v5722_v8 = vrot.slane %v5718_v54, 7  ;;  %v8957_v13 = vld [vmem:[%s9060_s21] sm:$0xff]  ;;  %s7514_s21 = smov 127  }
0x2c73   :  { %v7193_v52 = vpop.eup %7192  ;;  %v5721_v16 = vrot.slane %v5717_v23, 7  ;;  %v6059_v54 = vrot.slane %v7219_v49, %v6058_v37  ;;  %v6102_v23 = vrot.slane %v7219_v49, %v6101_v20 }
0x2c74   :  { %v5751_v12 = vadd.f32 %v5748_v2, %v8873_v58  ;;  %v5786_v51 = vmul.f32 0.6931472, %v7193_v52  ;;  %v5754_v34 = vsel %vm4621_vm6, %v5752_v61, 0.0  ;;  %v5726_v27 = vadd.f32 %v8827_v39, %v5722_v8 }
0x2c75   :  { %v7195_v55 = vpop.eup %7194  ;;  %v5758_v0 = vrot.slane %v5754_v34, 7  ;;  %v5725_v3 = vadd.f32 %v8833_v60, %v5721_v16  ;;  %v6017_v52 = vmul.f32 %v6016_v28, %v8957_v13  ;;  %v6144_v34 = vsub.s32 4, %v8233_v42 }
0x2c76   :  { %v5788_v57 = vadd.f32 %v5786_v51, %v8876_v14  ;;  %v5784_v1 = vmul.f32 0.6931472, %v7195_v55  ;;  %v5753_v45 = vsel %vm4621_vm6, %v5751_v12, 0.0  ;;  %v6022_v12 = vsel %vm5978_vm1, %v6018_v5, 0.0 }
0x2c77   :  { %v7197_v35 = vpop.eup %7196  ;;  %v5757_v10 = vrot.slane %v5753_v45, 7  ;;  %v5762_v53 = vadd.f32 %v5758_v0, %v5726_v27  ;;  %v6061_v55 = vmul.f32 %v6059_v54, %v8948_v63  ;;  %v6104_v8 = vmul.f32 %v6102_v23, %v8948_v63 }
0x2c78   :  { %v5790_v24 = vsel %vm4662_vm7, %v5788_v57, 0.0  ;;  %v5787_v58 = vadd.f32 %v5784_v1, %v8879_v33  ;;  %v5822_v32 = vmul.f32 0.6931472, %v7197_v35  ;;  %v6019_v57 = vsel %vm5978_vm1, %v6017_v52, 0.0 }
0x2c79   :  { %v7199_v46 = vpop.eup %7198  ;;  %v5794_v62 = vrot.slane %v5790_v24, 7  ;;  %v5761_v48 = vadd.f32 %v5757_v10, %v5725_v3  ;;  %v6060_v1 = vmul.f32 %v6059_v54, %v8957_v13  ;;  %v6065_v35 = vsel %vm5978_vm1, %v6061_v55, 0.0 }
0x2c7a   :  { %v5789_v19 = vsel %vm4662_vm7, %v5787_v58, 0.0  ;;  %v5824_v14 = vadd.f32 %v5822_v32, %v8882_v15  ;;  %v5820_v4 = vmul.f32 0.6931472, %v7199_v46  ;;  %v6145_v45 = vrot.slane %v7219_v49, %v6144_v34 }
0x2c7b   :  { %v7201_v43 = vpop.eup %7200  ;;  %v5793_v40 = vrot.slane %v5789_v19, 7  ;;  %v5798_v44 = vadd.f32 %v5794_v62, %v5762_v53  ;;  %v6062_v24 = vsel %vm5978_vm1, %v6060_v1, 0.0  ;;  %v6103_v58 = vmul.f32 %v6102_v23, %v8957_v13 }
0x2c7c   :  { %v5826_v47 = vsel %vm4703_vm8, %v5824_v14, 0.0  ;;  %v5823_v33 = vadd.f32 %v5820_v4, %v8885_v22  ;;  %v5858_v7 = vmul.f32 0.6931472, %v7201_v43  ;;  %v6108_v32 = vsel %vm5978_vm1, %v6104_v8, 0.0 }
0x2c7d   :  { %v7203_v25 = vpop.eup %7202  ;;  %v5830_v15 = vrot.slane %v5826_v47, 7  ;;  %v5797_v31 = vadd.f32 %v5793_v40, %v5761_v48  ;;  %v6147_v46 = vmul.f32 %v6145_v45, %v8948_v63  ;;  %v6105_v16 = vsel %vm5978_vm1, %v6103_v58, 0.0 }
0x2c7e   :  { %v5825_v9 = vsel %vm4703_vm8, %v5823_v33, 0.0  ;;  %v5860_v38 = vadd.f32 %v5858_v7, %v8888_v56  ;;  %v5856_v41 = vmul.f32 0.6931472, %v7203_v25  ;;  %v8941_v56 = vld [vmem:[%s9059_s20] ss:$0 sm:$0xff]  ;;  %v6146_v0 = vmul.f32 %v6145_v45, %v8957_v13 }
0x2c7f   :  { %v5829_v26 = vrot.slane %v5825_v9, 7  ;;  %v5834_v11 = vadd.f32 %v5830_v15, %v5798_v44  ;;  %v6151_v19 = vsel %vm5978_vm1, %v6147_v46, 0.0  ;;  %v5974_v4 = vsub.s32 0, %v8233_v42  ;;  %v7220_v45 = vld [vmem:[%s9058_s19] sm:$0x1]  ;;  %s7518_s19 = smov [#allocation21]  }
0x2c80   :  { %v5859_v22 = vadd.f32 %v5856_v41, %v8891_v50  ;;  %v5862_v59 = vsel %vm4758_vm9, %v5860_v38, 0.0  ;;  %v6148_v14 = vsel %vm5978_vm1, %v6146_v0, 0.0  ;;  %v5939_v58 = vmul.f32 %v7220_v45, %v8948_v63  ;;  %s6197_s27 = sshll.u32 %s7518_s19, 4  ;;  %s6198_s27 = int_to_ptr.vmem [resolvable:$true] %s6197_s27 }
0x2c81   :  { %v5866_v18 = vrot.slane %v5862_v59, 7  ;;  %v5833_v17 = vadd.f32 %v5829_v26, %v5797_v31  ;;  %v5975_v43 = vrot.slane %v7219_v49, %v5974_v4  ;;  %v5953_v0 = vmul.f32 %v8941_v56, %v8948_v63  ;;  %s7441_s29 = scalar_lea.vmem %s6198_s27, 256  ;;  %p7446_p0 = scmp.lt.s32.totalorder %s6198_s27, %s6198_s27 }
0x2c82   :  { %v5861_v29 = vsel %vm4758_vm9, %v5859_v22, 0.0  ;;  %p7442_p13 = scmp.ne.s32.totalorder %s6198_s27, %s7441_s29  ;;  %p7447_p1 = scmp.lt.s32.totalorder %s7441_s29, %s7441_s29 }
0x2c83   :  { %v5870_v50 = vadd.f32 %v5866_v18, %v5834_v11  ;;  %v5865_v36 = vrot.slane %v5861_v29, 7  ;;  %v5977_v27 = vmul.f32 %v5975_v43, %v8948_v63  ;;  %v5976_v10 = vmul.f32 %v5975_v43, %v8957_v13 }
0x2c84   :  { %p7448_p2 = por %p7447_p1, %p7446_p0 }
0x2c85   :  { %v5878_v21 = vadd.f32 %v8941_v56, %v5870_v50  ;;  %v5869_v30 = vadd.f32 %v5865_v36, %v5833_v17  ;;  %v5982_v62 = vsel %vm5978_vm1, %v5977_v27, 0.0  ;;  %v5979_v47 = vsel %vm5978_vm1, %v5976_v10, 0.0 }
0x2c86   :  { %v5957_v10 = vrot.slane %v5953_v0, 7  ;;  %p7449_p3 = pnand %p7448_p2, %p7442_p13 }
0x2c87   :  { %v5883_v61 = vsel %vm5879_vm0, %v5878_v21, -inf  ;;  %v5877_v2 = vadd.f32 %v8941_v56, %v5869_v30 }
0x2c88   :  { %5884 = vmax.xlane.f32.xlu1 %v5883_v61 }
0x2c89   :  { %v5880_v51 = vsel %vm5879_vm0, %v5877_v2, -inf }
0x2c8a   :  { %5881 = vmax.xlane.f32.xlu0 %v5880_v51 }
0x2c8c   :  { %6023 = vadd.xlane.f32.xlu1 %v6022_v12 }
0x2c8e   :  { %6020 = vadd.xlane.f32.xlu0 %v6019_v57 }
0x2c90   :  { %6066 = vadd.xlane.f32.xlu1 %v6065_v35 }
0x2c92   :  { %6063 = vadd.xlane.f32.xlu0 %v6062_v24  ;;  %v5938_v24 = vmul.f32 %v7220_v45, %v8957_v13 }
0x2c94   :  { %6109 = vadd.xlane.f32.xlu1 %v6108_v32 }
0x2c96   :  { %6106 = vadd.xlane.f32.xlu0 %v6105_v16  ;;  %v5952_v16 = vmul.f32 %v8941_v56, %v8957_v13  ;;  %v5961_v56 = vsel %vm4533_vm4, %v5957_v10, 0.0 }
0x2c98   :  { %6152 = vadd.xlane.f32.xlu1 %v6151_v19  ;;  %v5940_v19 = vsel %vm4533_vm4, %v5938_v24, 0.0  ;;  %v5956_v27 = vrot.slane %v5952_v16, 7 }
0x2c9a   :  { %6149 = vadd.xlane.f32.xlu0 %v6148_v14  ;;  %v5941_v14 = vsel %vm4533_vm4, %v5939_v58, 0.0 }
0x2c9c   :  { %5983 = vadd.xlane.f32.xlu1 %v5982_v62  ;;  %v5923_v62 = vmul.f32 %v8833_v60, %v8957_v13 }
0x2c9e   :  { %5980 = vadd.xlane.f32.xlu0 %v5979_v47  ;;  %v5942_v47 = vadd.f32 %v5941_v14, %v5940_v19 }
0x2d11   :  { %v8983_v33 = vpop.xlane.xlu1 %5884 }
0x2d12   :  { %v5887_v7 = vsub.f32 %v5878_v21, %v8983_v33 }
0x2d13   :  { %v8986_v6 = vpop.xlane.xlu0 %5881 }
0x2d14   :  { %v5890_v25 = vmul.f32 1.442695, %v5887_v7  ;;  %v5886_v42 = vsub.f32 %v5877_v2, %v8986_v6 }
0x2d15   :  { %v6024_v41 = vpop.xlane.xlu1 %6023 }
0x2d16   :  { %7204 = vpow2.f32 %v5890_v25  ;;  %v5888_v3 = vmul.f32 1.442695, %v5886_v42  ;;  %v6028_v48 = vrot.slane %v6024_v41, 7  ;;  %v5960_v42 = vsel %vm4533_vm4, %v5956_v27, 0.0 }
0x2d17   :  { %v6021_v9 = vpop.xlane.xlu0 %6020  ;;  %vm5910_vm4 = vcmask 0  }
0x2d18   :  { %7206 = vpow2.f32 %v5888_v3  ;;  %v6032_v22 = vmul.f32 %v6028_v48, %v8948_v63  ;;  %v6027_v49 = vrot.slane %v6021_v9, 7  ;;  %v5924_v3 = vmul.f32 %v8827_v39, %v8948_v63 }
0x2d19   :  { %v6067_v44 = vpop.xlane.xlu1 %6066 }
0x2d1a   :  { %v6036_v11 = vrot.slane %v6032_v22, 1  ;;  %v6071_v31 = vrot.slane %v6067_v44, 7  ;;  %v6031_v50 = vmul.f32 %v6027_v49, %v8957_v13  ;;  %v5927_v60 = vsel %vm5925_vm3, %v5924_v3, 0.0 }
0x2d1b   :  { %v6064_v26 = vpop.xlane.xlu0 %6063 }
0x2d1c   :  { %v6070_v59 = vrot.slane %v6064_v26, 7  ;;  %v6075_v37 = vmul.f32 %v6071_v31, %v8948_v63  ;;  %v6035_v20 = vrot.slane %v6031_v50, 1 }
0x2d1d   :  { %v6110_v28 = vpop.xlane.xlu1 %6109 }
0x2d1e   :  { %v6074_v18 = vmul.f32 %v6070_v59, %v8957_v13  ;;  %v6114_v5 = vrot.slane %v6110_v28, 7  ;;  %v6079_v52 = vrot.slane %v6075_v37, 1 }
0x2d1f   :  { %v6107_v29 = vpop.xlane.xlu0 %6106 }
0x2d20   :  { %v6113_v17 = vrot.slane %v6107_v29, 7  ;;  %v6078_v36 = vrot.slane %v6074_v18, 1  ;;  %v6118_v54 = vmul.f32 %v6114_v5, %v8948_v63 }
0x2d21   :  { %v6153_v30 = vpop.xlane.xlu1 %6152 }
0x2d22   :  { %v6117_v61 = vmul.f32 %v6113_v17, %v8957_v13  ;;  %v6157_v12 = vrot.slane %v6153_v30, 7  ;;  %v6122_v23 = vrot.slane %v6118_v54, 1 }
0x2d23   :  { %v7205_v53 = vpop.eup %7204  ;;  %v6150_v21 = vpop.xlane.xlu0 %6149 }
0x2d24   :  { %v5895_v40 = vsel %vm5879_vm0, %v7205_v53, 0.0  ;;  %v6156_v2 = vrot.slane %v6150_v21, 7  ;;  %v6121_v51 = vrot.slane %v6117_v61, 1  ;;  %v6161_v34 = vmul.f32 %v6157_v12, %v8948_v63 }
0x2d25   :  { %v7207_v15 = vpop.eup %7206  ;;  %5896 = vadd.xlane.f32.xlu1 %v5895_v40  ;;  %v5984_v35 = vpop.xlane.xlu1 %5983  ;;  %v5962_v53 = vadd.f32 %v5961_v56, %v5960_v42  ;;  %v5926_v40 = vsel %vm5925_vm3, %v5923_v62, 0.0 }
0x2d26   :  { %v5892_v38 = vsel %vm5879_vm0, %v7207_v15, 0.0  ;;  %v6160_v55 = vmul.f32 %v6156_v2, %v8957_v13  ;;  %v6165_v1 = vrot.slane %v6161_v34, 1  ;;  %v5988_v32 = vrot.slane %v5984_v35, 7 }
0x2d27   :  { %5893 = vadd.xlane.f32.xlu0 %v5892_v38  ;;  %v5981_v8 = vpop.xlane.xlu0 %5980 }
0x2d28   :  { %v6164_v57 = vrot.slane %v6160_v55, 1  ;;  %v5987_v46 = vrot.slane %v5981_v8, 7  ;;  %v5992_v4 = vmul.f32 %v5988_v32, %v8948_v63 }
0x2d2a   :  { %v5991_v43 = vmul.f32 %v5987_v46, %v8957_v13  ;;  %v5996_v7 = vrot.slane %v5992_v4, 1  ;;  %v5928_v13 = vadd.f32 %v5927_v60, %v5926_v40 }
0x2d2c   :  { %v5995_v25 = vrot.slane %v5991_v43, 1  ;;  %v6001_v9 = vsel %vm5999_vm2, %v5996_v7, 0.0 }
0x2d2e   :  { %v6000_v15 = vsel %vm5999_vm2, %v5995_v25, 0.0 }
0x2d2f   :  { %v6002_v38 = vadd.f32 %v6001_v9, %v6000_v15 }
0x2d36   :  { %6039 = vrot.lane.b32.xlu1 %v6036_v11, %s7514_s21 }
0x2d3a   :  { %6080 = vrot.lane.b32.xlu1 %v6078_v36, %s7515_s2 }
0x2d3d   :  { %6037 = vrot.lane.b32.xlu0 %v6035_v20, %s7514_s21 }
0x2d3e   :  { %6082 = vrot.lane.b32.xlu1 %v6079_v52, %s7515_s2 }
0x2d41   :  { %6123 = vrot.lane.b32.xlu0 %v6121_v51, %s7516_s5 }
0x2d42   :  { %6125 = vrot.lane.b32.xlu1 %v6122_v23, %s7516_s5 }
0x2d45   :  { %6166 = vrot.lane.b32.xlu0 %v6164_v57, %s7517_s7 }
0x2d46   :  { %6168 = vrot.lane.b32.xlu1 %v6165_v1, %s7517_s7 }
0x2d64   :  { %5943 = vadd.xlane.f32.xlu0 %v5942_v47 }
0x2d68   :  { %5963 = vadd.xlane.f32.xlu0 %v5962_v53 }
0x2d6a   :  { %5929 = vadd.xlane.f32.xlu1 %v5928_v13 }
0x2d6c   :  { %6003 = vadd.xlane.f32.xlu0 %v6002_v38 }
0x2dae   :  { %v5897_v41 = vpop.xlane.xlu1 %5896 }
0x2daf   :  { %7208 = vlog2.f32 %v5897_v41 }
0x2db0   :  { %v5894_v48 = vpop.xlane.xlu0 %5893 }
0x2db1   :  { %7210 = vlog2.f32 %v5894_v48 }
0x2db2   :  { %v6040_v26 = vpop.permute.xlu1 %6039 }
0x2db3   :  { %v6044_v39 = vsel %vm5999_vm2, %v6040_v26, 0.0 }
0x2db4   :  { %v6038_v63 = vpop.permute.xlu0 %6037 }
0x2db5   :  { %v6043_v44 = vsel %vm5999_vm2, %v6038_v63, 0.0 }
0x2db6   :  { %v6045_v22 = vadd.f32 %v6044_v39, %v6043_v44  ;;  %v6081_v59 = vpop.permute.xlu1 %6080 }
0x2db7   :  { %v6086_v51 = vsel %vm5999_vm2, %v6081_v59, 0.0 }
0x2db8   :  { %6046 = vadd.xlane.f32.xlu1 %v6045_v22  ;;  %v6124_v28 = vpop.permute.xlu0 %6123 }
0x2db9   :  { %v6129_v31 = vsel %vm5999_vm2, %v6124_v28, 0.0 }
0x2dba   :  { %v6083_v49 = vpop.permute.xlu1 %6082 }
0x2dbb   :  { %v6087_v55 = vsel %vm5999_vm2, %v6083_v49, 0.0 }
0x2dbc   :  { %v7209_v11 = vpop.eup %7208  ;;  %v6167_v12 = vpop.permute.xlu0 %6166  ;;  %v6088_v34 = vadd.f32 %v6087_v55, %v6086_v51 }
0x2dbd   :  { %v5901_v18 = vmul.f32 0.6931472, %v7209_v11  ;;  %v6172_v23 = vsel %vm5999_vm2, %v6167_v12, 0.0 }
0x2dbe   :  { %v7211_v29 = vpop.eup %7210  ;;  %v6126_v50 = vpop.permute.xlu1 %6125 }
0x2dbf   :  { %v5903_v17 = vadd.f32 %v5901_v18, %v8983_v33  ;;  %v5899_v36 = vmul.f32 0.6931472, %v7211_v29  ;;  %v6130_v37 = vsel %vm5999_vm2, %v6126_v50, 0.0 }
0x2dc0   :  { %v6131_v5 = vadd.f32 %v6130_v37, %v6129_v31 }
0x2dc1   :  { %v5907_v21 = vrot.slane %v5903_v17, 7  ;;  %v5902_v30 = vadd.f32 %v5899_v36, %v8986_v6 }
0x2dc2   :  { %6132 = vadd.xlane.f32.xlu1 %v6131_v5  ;;  %v6169_v54 = vpop.permute.xlu1 %6168 }
0x2dc3   :  { %v5906_v20 = vrot.slane %v5902_v30, 7  ;;  %v5912_v2 = vsel %vm5910_vm4, %v5907_v21, 0.0  ;;  %v6173_v33 = vsel %vm5999_vm2, %v6169_v54, 0.0 }
0x2dc4   :  { %v6174_v6 = vadd.f32 %v6173_v33, %v6172_v23 }
0x2dc5   :  { %v5911_v61 = vsel %vm5910_vm4, %v5906_v20, 0.0 }
0x2dc6   :  { %v5913_v52 = vadd.f32 %v5912_v2, %v5911_v61 }
0x2dc8   :  { %5914 = vadd.xlane.f32.xlu0 %v5913_v52 }
0x2dcc   :  { %6089 = vadd.xlane.f32.xlu0 %v6088_v34 }
0x2dd0   :  { %6175 = vadd.xlane.f32.xlu0 %v6174_v6 }
0x2dd1   :  { %7452 = shalt.err (!%p7449_p3)
}
0x2dd2   :  { %s9083_s11 = smov 8   ;;  %s9084_s1 = smov 128  }
0x2dd3   :  { %6203 = dma.vmem_to_hbm [thread:$0]  %s6198_s27, 256, %s9061_s22, [#allocation4], %s9084_s1, %s9084_s1, %s9083_s11  }
0x2dd4   :  { %s7519_s2 = smov [#allocation22]  }
0x2ded   :  { %v5944_v57 = vpop.xlane.xlu0 %5943 }
0x2dee   :  { %v5945_v58 = vrot.slane %v5944_v57, 4 }
0x2df0   :  { %v5946_v14 = vadd.f32 %v5945_v58, %v5944_v57 }
0x2df1   :  { %v5964_v1 = vpop.xlane.xlu0 %5963 }
0x2df2   :  { %v5965_v32 = vrot.slane %v5964_v1, 4  ;;  %v5947_v7 = vrot.slane %v5946_v14, 2 }
0x2df3   :  { %v5930_v35 = vpop.xlane.xlu1 %5929 }
0x2df4   :  { %v5931_v45 = vrot.slane %v5930_v35, 4  ;;  %v5966_v4 = vadd.f32 %v5965_v32, %v5964_v1  ;;  %v5948_v38 = vadd.f32 %v5947_v7, %v5946_v14 }
0x2df5   :  { %v6004_v24 = vpop.xlane.xlu0 %6003 }
0x2df6   :  { %v6005_v46 = vrot.slane %v6004_v24, 4  ;;  %v5932_v0 = vadd.f32 %v5931_v45, %v5930_v35  ;;  %v5967_v42 = vrot.slane %v5966_v4, 2  ;;  %v5949_v18 = vrot.slane %v5948_v38, 1 }
0x2df8   :  { %v6006_v27 = vadd.f32 %v6005_v46, %v6004_v24  ;;  %v5933_v10 = vrot.slane %v5932_v0, 2  ;;  %v5968_v48 = vadd.f32 %v5967_v42, %v5966_v4  ;;  %v5950_v20 = vadd.f32 %v5949_v18, %v5948_v38 }
0x2dfa   :  { %v6007_v3 = vrot.slane %v6006_v27, 2  ;;  %v5934_v9 = vadd.f32 %v5933_v10, %v5932_v0  ;;  %v5969_v29 = vrot.slane %v5968_v48, 1 }
0x2dfc   :  { %v6008_v63 = vadd.f32 %v6007_v3, %v6006_v27  ;;  %v5935_v22 = vrot.slane %v5934_v9, 1  ;;  %v5970_v2 = vadd.f32 %v5969_v29, %v5968_v48 }
0x2dfe   :  { %v6009_v36 = vrot.slane %v6008_v63, 1  ;;  %v5936_v5 = vadd.f32 %v5935_v22, %v5934_v9 }
0x2e00   :  { %v6010_v12 = vadd.f32 %v6009_v36, %v6008_v63 }
0x2e41   :  { %v6047_v8 = vpop.xlane.xlu1 %6046 }
0x2e42   :  { %v6048_v19 = vrot.slane %v6047_v8, 4 }
0x2e44   :  { %v6049_v62 = vadd.f32 %v6048_v19, %v6047_v8 }
0x2e46   :  { %v6050_v40 = vrot.slane %v6049_v62, 2 }
0x2e48   :  { %v6051_v59 = vadd.f32 %v6050_v40, %v6049_v62 }
0x2e4a   :  { %v6052_v21 = vrot.slane %v6051_v59, 1 }
0x2e4b   :  { %v6133_v16 = vpop.xlane.xlu1 %6132 }
0x2e4c   :  { %v6134_v43 = vrot.slane %v6133_v16, 4  ;;  %v6053_v55 = vadd.f32 %v6052_v21, %v6051_v59 }
0x2e4e   :  { %v6135_v56 = vadd.f32 %v6134_v43, %v6133_v16 }
0x2e50   :  { %v6136_v41 = vrot.slane %v6135_v56, 2 }
0x2e51   :  { %v5915_v47 = vpop.xlane.xlu0 %5914 }
0x2e52   :  { %v5916_v25 = vrot.slane %v5915_v47, 4  ;;  %v6137_v31 = vadd.f32 %v6136_v41, %v6135_v56 }
0x2e54   :  { %v5917_v53 = vadd.f32 %v5916_v25, %v5915_v47  ;;  %v6138_v52 = vrot.slane %v6137_v31, 1 }
0x2e55   :  { %v6090_v15 = vpop.xlane.xlu0 %6089 }
0x2e56   :  { %v5918_v60 = vrot.slane %v5917_v53, 2  ;;  %v6091_v13 = vrot.slane %v6090_v15, 4  ;;  %v6139_v23 = vadd.f32 %v6138_v52, %v6137_v31 }
0x2e58   :  { %v6092_v26 = vadd.f32 %v6091_v13, %v6090_v15  ;;  %v5919_v39 = vadd.f32 %v5918_v60, %v5917_v53 }
0x2e59   :  { %v6176_v44 = vpop.xlane.xlu0 %6175 }
0x2e5a   :  { %v6093_v49 = vrot.slane %v6092_v26, 2  ;;  %v6177_v28 = vrot.slane %v6176_v44, 4  ;;  %v5920_v11 = vrot.slane %v5919_v39, 1 }
0x2e5c   :  { %v6178_v50 = vadd.f32 %v6177_v28, %v6176_v44  ;;  %v5921_v17 = vadd.f32 %v5920_v11, %v5919_v39  ;;  %v6094_v37 = vadd.f32 %v6093_v49, %v6092_v26 }
0x2e5e   :  { %v6179_v30 = vrot.slane %v6178_v50, 2  ;;  %6778 = vpush %v5921_v17  ;;  %v6095_v61 = vrot.slane %v6094_v37, 1 }
0x2e5f   :  { %6780 = vpush %v5936_v5 }
0x2e60   :  { %v6180_v54 = vadd.f32 %v6179_v30, %v6178_v50  ;;  %6782 = vpush %v5950_v20  ;;  %v6096_v51 = vadd.f32 %v6095_v61, %v6094_v37 }
0x2e61   :  { %6784 = vpush %v5970_v2 }
0x2e62   :  { %6786 = vpush %v6010_v12  ;;  %v6181_v33 = vrot.slane %v6180_v54, 1 }
0x2e63   :  { %6788 = vpush %v6053_v55 }
0x2e64   :  { %6790 = vpush %v6096_v51  ;;  %v6182_v34 = vadd.f32 %v6181_v33, %v6180_v54 }
0x2e65   :  { %6792 = vpush %v6139_v23 }
0x2e66   :  { %6794 = vpush %v6182_v34 }
0x2e8f   :  { %s6779_s22 = spop %6778 }
0x2e90   :  { %s6781_s16 = spop %6780 }
0x2e91   :  { %s6783_s14 = spop %6782 }
0x2e92   :  { %s6785_s8 = spop %6784  ;;  %s6185_s25 = sadd.f32 %s6783_s14, %s6781_s16 }
0x2e93   :  { %s6787_s28 = spop %6786 }
0x2e94   :  { %s6789_s13 = spop %6788  ;;  %s6186_s26 = sadd.f32 %s6785_s8, %s6185_s25 }
0x2e95   :  { %s6055_s15 = sadd.f32 %s6789_s13, %s6787_s28  ;;  %s6791_s17 = spop %6790 }
0x2e96   :  { %s6793_s4 = spop %6792 }
0x2e97   :  { %s6098_s0 = sadd.f32 %s6791_s17, %s6055_s15  ;;  %s6795_s24 = spop %6794 }
0x2e99   :  { %s6141_s30 = sadd.f32 %s6793_s4, %s6098_s0 }
0x2e9b   :  { %s6184_s9 = sadd.f32 %s6795_s24, %s6141_s30 }
0x2e9d   :  { %s6187_s18 = sadd.f32 %s6186_s26, %s6184_s9 }
0x2e9f   :  { %s6188_s20 = ssub.f32 %s6779_s22, %s6187_s18 }
0x2ea1   :  { %s6189_s21 = smul.f32 0.5, %s6188_s20 }
0x2ea3   :  { %6191 = sst [smem:[#allocation22]] %s6189_s21 }
0x2ea4   :  { %6211 = dma.smem_to_hbm %s7519_s2, 16, %s9062_s23, [#allocation5]  }
0x2ea5   :  { %7481 = dma.done.wait [#allocation4], 256  }
0x2ea6   :  { %7482 = vsyncadd [#allocation4], 4294967040 }
0x2ea7   :  { %7483 = dma.done.wait [#allocation5], 16  }
0x2ea8   :  { %7484 = vsyncadd [#allocation5], 4294967280 }
0x2ea9   :  { %6218 = sfence }
0x2eaa   :  { %6219 = vsyncpa [#allocation3], 1 }
0x2eab   :  { %6220 = vsyncpa [#allocation7], 1 }
0x2eac   :  { %6221 = vsyncpa [#allocation10], 1 }
0x2ead   :  { %6222 = vsyncpa [#allocation13], 1 }
0x2eae   :  { %6223 = vsyncpa [#allocation16], 1 }
0x2eaf   :  { %6224 = vsyncpa [#allocation19], 1 }
0x2eb0   :  { %6225 = vsyncpa [#allocation4], 1 }
0x2eb1   :  { %6226 = vsyncpa [#allocation5], 1 }

</bundles_post_ra>
